<compile_context>
chip_gen: v6e
topology: v6e:2x2x1
jax: 0.10.0
libtpu: 0.0.40
codegen_flags: <defaults>
</compile_context>

<pallas_src>
import numpy as np
import jax
import jax.numpy as jnp
from jax.experimental import pallas as pl
from jax.experimental.pallas import tpu as pltpu

# ---- DenseNet-169 hyper-parameters (torchvision.models.densenet169) --------
GROWTH = 32
BLOCK_CONFIG = (6, 12, 32, 32)
BN_SIZE = 4
BOTTLENECK = BN_SIZE * GROWTH          # 128
NUM_INIT_FEATURES = 64
NUM_CLASSES = 156
BN_EPS = 1e-5

_VMEM = pltpu.MemorySpace.VMEM


# ---------------------------- Pallas kernels --------------------------------
def _conv_bn_relu_kernel(cols_ref, w_ref, s_ref, b_ref, o_ref):
    """Stem: relu(bn0(cols @ w0)).  cols f32, w bf16, s/b (1, Cout) f32."""
    y = jnp.dot(cols_ref[...].astype(jnp.bfloat16), w_ref[...],
                preferred_element_type=jnp.float32)
    o_ref[...] = jnp.maximum(y * s_ref[...] + b_ref[...], 0.0)


def _bottleneck_kernel(x_ref, s1_ref, b1_ref, w1_ref, s2_ref, b2_ref, o_ref):
    """Dense-layer 1x1 bottleneck, fully fused: relu(bn2(relu(bn1(x)) @ w1))."""
    a = jnp.maximum(x_ref[...] * s1_ref[...] + b1_ref[...], 0.0)
    y = jnp.dot(a.astype(jnp.bfloat16), w1_ref[...],
                preferred_element_type=jnp.float32)
    o_ref[...] = jnp.maximum(y * s2_ref[...] + b2_ref[...], 0.0)


def _matmul_kernel(a_ref, w_ref, o_ref):
    """Plain MXU matmul (3x3 conv on im2col columns)."""
    o_ref[...] = jnp.dot(a_ref[...].astype(jnp.bfloat16), w_ref[...],
                         preferred_element_type=jnp.float32)


def _transition_kernel(p0_ref, p1_ref, p2_ref, p3_ref, s_ref, b_ref, w_ref,
                       o_ref):
    """avgpool2x2(relu(bn(x))) @ w   (== avgpool(conv1x1(relu(bn(x)))))."""
    s = s_ref[...]
    b = b_ref[...]
    a = (jnp.maximum(p0_ref[...] * s + b, 0.0) +
         jnp.maximum(p1_ref[...] * s + b, 0.0) +
         jnp.maximum(p2_ref[...] * s + b, 0.0) +
         jnp.maximum(p3_ref[...] * s + b, 0.0)) * 0.25
    o_ref[...] = jnp.dot(a.astype(jnp.bfloat16), w_ref[...],
                         preferred_element_type=jnp.float32)


def _max9_kernel(p0, p1, p2, p3, p4, p5, p6, p7, p8, o_ref):
    m = p0[...]
    for r in (p1, p2, p3, p4, p5, p6, p7, p8):
        m = jnp.maximum(m, r[...])
    o_ref[...] = m


def _head_kernel(x_ref, s_ref, b_ref, w_ref, bias_ref, o_ref):
    """sigmoid(global_avgpool(relu(bn5(x))) @ w + bias).  x: (N, HW, C)."""
    a = jnp.maximum(x_ref[...] * s_ref[...] + b_ref[...], 0.0)
    pooled = jnp.mean(a, axis=1)                              # (N, C)
    y = jnp.dot(pooled.astype(jnp.bfloat16), w_ref[...],
                preferred_element_type=jnp.float32) + bias_ref[...]
    o_ref[...] = 1.0 / (1.0 + jnp.exp(-y))


# ---------------------------- Pallas wrappers --------------------------------
def _row_tiled_matmul_call(kernel, out_cols, x_rows, *others):
    """kernel(x_tile, *others, o_tile); x/out tiled over rows, others whole."""
    M, K = x_rows.shape
    bm = M
    for cand in (256, 128):
        if M % cand == 0 and M // cand > 1:
            bm = cand
            break
    in_specs = [pl.BlockSpec((bm, K), lambda i: (i, 0))]
    in_specs += [pl.BlockSpec(o.shape, lambda i: (0, 0)) for o in others]
    return pl.pallas_call(
        kernel,
        out_shape=jax.ShapeDtypeStruct((M, out_cols), jnp.float32),
        grid=(M // bm,),
        in_specs=in_specs,
        out_specs=pl.BlockSpec((bm, out_cols), lambda i: (i, 0)),
        compiler_params=pltpu.CompilerParams(
            dimension_semantics=("parallel",)),
    )(x_rows, *others)


def _im2col_nhwc(x, k, stride, pad):
    """x: (N, H, W, C) -> ((N*Ho*Wo, k*k*C), Ho, Wo); columns are (tap, C)."""
    N, H, W, C = x.shape
    Ho = (H + 2 * pad - k) // stride + 1
    Wo = (W + 2 * pad - k) // stride + 1
    xp = jnp.pad(x, ((0, 0), (pad, pad), (pad, pad), (0, 0)))
    patches = []
    for i in range(k):
        for j in range(k):
            patches.append(
                xp[:, i:i + stride * (Ho - 1) + 1:stride,
                      j:j + stride * (Wo - 1) + 1:stride, :])
    p = jnp.stack(patches, axis=3)            # (N, Ho, Wo, k*k, C)
    return p.reshape(N * Ho * Wo, k * k * C), Ho, Wo


def _maxpool_3x3_s2_p1(x4):
    """x4: (N, H, W, C) -> ((N*Ho*Wo, C), Ho, Wo)."""
    N, H, W, C = x4.shape
    Ho = (H + 2 - 3) // 2 + 1
    Wo = (W + 2 - 3) // 2 + 1
    xp = jnp.pad(x4, ((0, 0), (1, 1), (1, 1), (0, 0)),
                 constant_values=-jnp.inf)
    phases = [xp[:, i:i + 2 * (Ho - 1) + 1:2,
                    j:j + 2 * (Wo - 1) + 1:2, :].reshape(N * Ho * Wo, C)
              for i in range(3) for j in range(3)]
    out = pl.pallas_call(
        _max9_kernel,
        out_shape=jax.ShapeDtypeStruct((N * Ho * Wo, C), jnp.float32),
        in_specs=[pl.BlockSpec(memory_space=_VMEM)] * 9,
        out_specs=pl.BlockSpec(memory_space=_VMEM),
    )(*phases)
    return out, Ho, Wo


def _transition(x4, p):
    """Fused BN+ReLU+avgpool(2)+1x1 conv.  x4: (N, H, W, Cin)."""
    N, H, W, Cin = x4.shape
    Ho, Wo = H // 2, W // 2
    phases = [x4[:, i:2 * Ho:2, j:2 * Wo:2, :].reshape(N * Ho * Wo, Cin)
              for i in range(2) for j in range(2)]
    Cout = p["w"].shape[1]
    out = pl.pallas_call(
        _transition_kernel,
        out_shape=jax.ShapeDtypeStruct((N * Ho * Wo, Cout), jnp.float32),
        in_specs=[pl.BlockSpec(memory_space=_VMEM)] * 7,
        out_specs=pl.BlockSpec(memory_space=_VMEM),
    )(*phases, p["scale"], p["shift"], p["w"])
    return out, Ho, Wo


def _head(x_slab, N, HW, C, params):
    """Fused norm5 + ReLU + global avg-pool + Linear + Sigmoid."""
    x3 = x_slab.reshape(N, HW, C)
    return pl.pallas_call(
        _head_kernel,
        out_shape=jax.ShapeDtypeStruct((N, NUM_CLASSES), jnp.float32),
        in_specs=[pl.BlockSpec(memory_space=_VMEM)] * 5,
        out_specs=pl.BlockSpec(memory_space=_VMEM),
    )(x3, params["norm5_scale"], params["norm5_shift"],
      params["cls_w"], params["cls_b"])


# ---------------------------- parameters ------------------------------------
def make_params():
    rng = np.random.RandomState(0)

    def conv_w_mat(cout, cin, k):
        """PyTorch (Cout, Cin, k, k) -> matmul weight (k*k*Cin, Cout), bf16."""
        std = np.sqrt(2.0 / (cin * k * k))
        w = rng.normal(0.0, std, (cout, cin, k, k)).astype(np.float32)
        wm = np.transpose(w, (2, 3, 1, 0)).reshape(k * k * cin, cout)
        return jnp.asarray(wm).astype(jnp.bfloat16)

    def bn_fold(c):
        gamma = 1.0 + 0.1 * rng.normal(size=c)
        beta = 0.1 * rng.normal(size=c)
        mean = 0.1 * rng.normal(size=c)
        var = np.abs(1.0 + 0.1 * rng.normal(size=c))
        scale = (gamma / np.sqrt(var + BN_EPS)).astype(np.float32)
        shift = (beta - mean * scale).astype(np.float32)
        return jnp.asarray(scale)[None, :], jnp.asarray(shift)[None, :]

    params = {}
    params["conv0_w"] = conv_w_mat(NUM_INIT_FEATURES, 3, 7)        # (147, 64)
    params["norm0_scale"], params["norm0_shift"] = bn_fold(NUM_INIT_FEATURES)

    blocks, transitions = [], []
    c = NUM_INIT_FEATURES
    for bi, n_layers in enumerate(BLOCK_CONFIG):
        c_final = c + n_layers * GROWTH
        layers = []
        for l in range(n_layers):
            c_cur = c + l * GROWTH
            pad = c_final - c_cur
            s1, b1 = bn_fold(c_cur)
            # zero-pad BN params / 1x1 weight rows up to c_final (exact)
            s1 = jnp.pad(s1, ((0, 0), (0, pad)))
            b1 = jnp.pad(b1, ((0, 0), (0, pad)))
            w1 = conv_w_mat(BOTTLENECK, c_cur, 1)                  # (c_cur,128)
            w1 = jnp.pad(w1, ((0, pad), (0, 0)))
            s2, b2 = bn_fold(BOTTLENECK)
            w2 = conv_w_mat(GROWTH, BOTTLENECK, 3)                 # (1152, 32)
            layers.append(dict(s1=s1, b1=b1, w1=w1, s2=s2, b2=b2, w2=w2))
        blocks.append(layers)
        c = c_final
        if bi != len(BLOCK_CONFIG) - 1:
            st, sht = bn_fold(c)
            wt = conv_w_mat(c // 2, c, 1)                          # (c, c//2)
            transitions.append(dict(scale=st, shift=sht, w=wt))
            c = c // 2
    params["blocks"] = blocks
    params["transitions"] = transitions

    s5, b5 = bn_fold(c)                                            # c = 1664
    params["norm5_scale"] = s5[:, None, :]                         # (1,1,1664)
    params["norm5_shift"] = b5[:, None, :]
    wc = rng.normal(0.0, np.sqrt(1.0 / c),
                    (NUM_CLASSES, c)).astype(np.float32)
    params["cls_w"] = jnp.asarray(wc.T).astype(jnp.bfloat16)       # (1664,156)
    params["cls_b"] = jnp.zeros((1, NUM_CLASSES), jnp.float32)
    return params


# ---------------------------- forward pass -----------------------------------
@jax.jit
def densenet169_forward(x, params):
    """x: (N, 3, H, W) in PyTorch NCHW.  Returns (N, NUM_CLASSES)."""
    N = x.shape[0]
    xh = jnp.transpose(x, (0, 2, 3, 1))                 # NHWC once, up front

    # Stem: conv0 (7x7 s2 p3) + norm0 + relu fused, then 3x3/s2 maxpool.
    cols, H, W = _im2col_nhwc(xh, 7, 2, 3)
    y = _row_tiled_matmul_call(_conv_bn_relu_kernel, NUM_INIT_FEATURES, cols,
                               params["conv0_w"], params["norm0_scale"],
                               params["norm0_shift"])
    y, H, W = _maxpool_3x3_s2_p1(y.reshape(N, H, W, NUM_INIT_FEATURES))

    c = NUM_INIT_FEATURES
    for bi, n_layers in enumerate(BLOCK_CONFIG):
        c_final = c + n_layers * GROWTH
        M = N * H * W
        # Channel-padded concat buffer; XLA updates it in place (DUS) under jit.
        # TODO(synk): write the 32 new channels straight from the 3x3-conv
        # pallas_call via input_output_aliases + a prefetched channel offset.
        buf = jnp.zeros((M, c_final), jnp.float32).at[:, :c].set(y)
        for l in range(n_layers):
            p = params["blocks"][bi][l]
            # fused: relu(bn2(relu(bn1(concat)) @ w1))  -> (M, 128)
            t = _row_tiled_matmul_call(_bottleneck_kernel, BOTTLENECK, buf,
                                       p["s1"], p["b1"], p["w1"],
                                       p["s2"], p["b2"])
            # 3x3 conv, pad 1 (im2col is pure layout glue; padding zeros are
            # applied AFTER bn2/relu2, matching PyTorch order).
            cols3, _, _ = _im2col_nhwc(t.reshape(N, H, W, BOTTLENECK), 3, 1, 1)
            new = _row_tiled_matmul_call(_matmul_kernel, GROWTH, cols3,
                                         p["w2"])                   # (M, 32)
            c_cur = c + l * GROWTH
            buf = buf.at[:, c_cur:c_cur + GROWTH].set(new)   # torch.cat order
        y = buf
        c = c_final
        if bi != len(BLOCK_CONFIG) - 1:
            y, H, W = _transition(y.reshape(N, H, W, c),
                                  params["transitions"][bi])
            c = c // 2

    return _head(y, N, H * W, c, params)


# ---------------------------------- main --------------------------------------
if __name__ == "__main__":
    params = make_params()
    key = jax.random.PRNGKey(0)
    # Small input consistent with the module: RGB images, 32x32 so the deepest
    # dense block still sees >= 1x1 spatial resolution.
    x = jax.random.normal(key, (2, 3, 32, 32), dtype=jnp.float32)

    out = densenet169_forward(x, params)
    out = jax.block_until_ready(out)

    assert out.shape == (2, NUM_CLASSES), out.shape
    assert bool(jnp.all(jnp.isfinite(out))), "non-finite output"
    print("KERNEL_OK")
</pallas_src>

<mosaic_0001>
module attributes {stable_mosaic.version = 11 : i64} {
  func.func @_conv_bn_relu_kernel(%arg0: i32, %arg1: memref<256x147xf32, #tpu.memory_space<vmem>>, %arg2: memref<147x64xbf16, #tpu.memory_space<vmem>>, %arg3: memref<1x64xf32, #tpu.memory_space<vmem>>, %arg4: memref<1x64xf32, #tpu.memory_space<vmem>>, %arg5: memref<256x64xf32, #tpu.memory_space<vmem>>) attributes {dimension_semantics = [#tpu.dimension_semantics<parallel>], iteration_bounds = array<i64: 2>, scalar_prefetch = 0 : i64, scratch_operands = 0 : i64, tpu.core_type = #tpu.core_type<tc>, window_params = [{transform_indices = @transform_0, window_bounds = array<i64: 256, 147>}, {pipeline_mode = #tpu.pipeline_mode<synchronous>, transform_indices = @transform_1, window_bounds = array<i64: 147, 64>}, {pipeline_mode = #tpu.pipeline_mode<synchronous>, transform_indices = @transform_2, window_bounds = array<i64: 1, 64>}, {pipeline_mode = #tpu.pipeline_mode<synchronous>, transform_indices = @transform_3, window_bounds = array<i64: 1, 64>}, {transform_indices = @transform_4, window_bounds = array<i64: 256, 64>}]} {
    %c0 = arith.constant 0 : index
    %c0_0 = arith.constant 0 : index
    %0 = vector.load %arg1[%c0, %c0_0] : memref<256x147xf32, #tpu.memory_space<vmem>>, vector<256x147xf32>
    %1 = arith.truncf %0 : vector<256x147xf32> to vector<256x147xbf16>
    %c0_1 = arith.constant 0 : index
    %c0_2 = arith.constant 0 : index
    %2 = vector.load %arg2[%c0_1, %c0_2] : memref<147x64xbf16, #tpu.memory_space<vmem>>, vector<147x64xbf16>
    %cst = arith.constant dense<0.000000e+00> : vector<256x64xf32>
    %3 = tpu.matmul %1, %2, %cst {dimension_numbers = #tpu.dot_dimension_numbers<[1], [0], [0], [1], [0, 0, 1, 1], [], []>} : vector<256x147xbf16>, vector<147x64xbf16>, vector<256x64xf32> -> vector<256x64xf32>
    %c0_3 = arith.constant 0 : index
    %c0_4 = arith.constant 0 : index
    %4 = vector.load %arg3[%c0_3, %c0_4] : memref<1x64xf32, #tpu.memory_space<vmem>>, vector<1x64xf32>
    %5 = vector.broadcast %4 : vector<1x64xf32> to vector<256x64xf32>
    %6 = arith.mulf %3, %5 : vector<256x64xf32>
    %c0_5 = arith.constant 0 : index
    %c0_6 = arith.constant 0 : index
    %7 = vector.load %arg4[%c0_5, %c0_6] : memref<1x64xf32, #tpu.memory_space<vmem>>, vector<1x64xf32>
    %8 = vector.broadcast %7 : vector<1x64xf32> to vector<256x64xf32>
    %9 = arith.addf %6, %8 : vector<256x64xf32>
    %cst_7 = arith.constant 0.000000e+00 : f32
    %10 = vector.broadcast %cst_7 : f32 to vector<256x64xf32>
    %11 = arith.maximumf %9, %10 : vector<256x64xf32>
    %c0_8 = arith.constant 0 : index
    %c0_9 = arith.constant 0 : index
    %12 = vector.load %arg5[%c0_8, %c0_9] : memref<256x64xf32, #tpu.memory_space<vmem>>, vector<256x64xf32>
    tpu.vector_store %arg5[%c0_8, %c0_9], %11 {strides = array<i32>} : memref<256x64xf32, #tpu.memory_space<vmem>>, vector<256x64xf32>,
    return
  }
  func.func @transform_0(%arg0: i32) -> (i32, i32) {
    %c0_i32 = arith.constant 0 : i32
    %c0_i32_0 = arith.constant 0 : i32
    return %arg0, %c0_i32 : i32, i32
  }
  func.func @transform_1(%arg0: i32) -> (i32, i32) {
    %c0_i32 = arith.constant 0 : i32
    %c0_i32_0 = arith.constant 0 : i32
    %c0_i32_1 = arith.constant 0 : i32
    return %c0_i32, %c0_i32_0 : i32, i32
  }
  func.func @transform_2(%arg0: i32) -> (i32, i32) {
    %c0_i32 = arith.constant 0 : i32
    %c0_i32_0 = arith.constant 0 : i32
    %c0_i32_1 = arith.constant 0 : i32
    return %c0_i32, %c0_i32_0 : i32, i32
  }
  func.func @transform_3(%arg0: i32) -> (i32, i32) {
    %c0_i32 = arith.constant 0 : i32
    %c0_i32_0 = arith.constant 0 : i32
    %c0_i32_1 = arith.constant 0 : i32
    return %c0_i32, %c0_i32_0 : i32, i32
  }
  func.func @transform_4(%arg0: i32) -> (i32, i32) {
    %c0_i32 = arith.constant 0 : i32
    %c0_i32_0 = arith.constant 0 : i32
    return %arg0, %c0_i32 : i32, i32
  }
}

module attributes {stable_mosaic.version = 11 : i64} {
  func.func @_max9_kernel(%arg0: memref<128x64xf32, #tpu.memory_space<vmem>>, %arg1: memref<128x64xf32, #tpu.memory_space<vmem>>, %arg2: memref<128x64xf32, #tpu.memory_space<vmem>>, %arg3: memref<128x64xf32, #tpu.memory_space<vmem>>, %arg4: memref<128x64xf32, #tpu.memory_space<vmem>>, %arg5: memref<128x64xf32, #tpu.memory_space<vmem>>, %arg6: memref<128x64xf32, #tpu.memory_space<vmem>>, %arg7: memref<128x64xf32, #tpu.memory_space<vmem>>, %arg8: memref<128x64xf32, #tpu.memory_space<vmem>>, %arg9: memref<128x64xf32, #tpu.memory_space<vmem>>) attributes {dimension_semantics = [], scalar_prefetch = 0 : i64, scratch_operands = 0 : i64, tpu.core_type = #tpu.core_type<tc>} {
    %c0 = arith.constant 0 : index
    %c0_0 = arith.constant 0 : index
    %0 = vector.load %arg0[%c0, %c0_0] : memref<128x64xf32, #tpu.memory_space<vmem>>, vector<128x64xf32>
    %c0_1 = arith.constant 0 : index
    %c0_2 = arith.constant 0 : index
    %1 = vector.load %arg1[%c0_1, %c0_2] : memref<128x64xf32, #tpu.memory_space<vmem>>, vector<128x64xf32>
    %2 = arith.maximumf %0, %1 : vector<128x64xf32>
    %c0_3 = arith.constant 0 : index
    %c0_4 = arith.constant 0 : index
    %3 = vector.load %arg2[%c0_3, %c0_4] : memref<128x64xf32, #tpu.memory_space<vmem>>, vector<128x64xf32>
    %4 = arith.maximumf %2, %3 : vector<128x64xf32>
    %c0_5 = arith.constant 0 : index
    %c0_6 = arith.constant 0 : index
    %5 = vector.load %arg3[%c0_5, %c0_6] : memref<128x64xf32, #tpu.memory_space<vmem>>, vector<128x64xf32>
    %6 = arith.maximumf %4, %5 : vector<128x64xf32>
    %c0_7 = arith.constant 0 : index
    %c0_8 = arith.constant 0 : index
    %7 = vector.load %arg4[%c0_7, %c0_8] : memref<128x64xf32, #tpu.memory_space<vmem>>, vector<128x64xf32>
    %8 = arith.maximumf %6, %7 : vector<128x64xf32>
    %c0_9 = arith.constant 0 : index
    %c0_10 = arith.constant 0 : index
    %9 = vector.load %arg5[%c0_9, %c0_10] : memref<128x64xf32, #tpu.memory_space<vmem>>, vector<128x64xf32>
    %10 = arith.maximumf %8, %9 : vector<128x64xf32>
    %c0_11 = arith.constant 0 : index
    %c0_12 = arith.constant 0 : index
    %11 = vector.load %arg6[%c0_11, %c0_12] : memref<128x64xf32, #tpu.memory_space<vmem>>, vector<128x64xf32>
    %12 = arith.maximumf %10, %11 : vector<128x64xf32>
    %c0_13 = arith.constant 0 : index
    %c0_14 = arith.constant 0 : index
    %13 = vector.load %arg7[%c0_13, %c0_14] : memref<128x64xf32, #tpu.memory_space<vmem>>, vector<128x64xf32>
    %14 = arith.maximumf %12, %13 : vector<128x64xf32>
    %c0_15 = arith.constant 0 : index
    %c0_16 = arith.constant 0 : index
    %15 = vector.load %arg8[%c0_15, %c0_16] : memref<128x64xf32, #tpu.memory_space<vmem>>, vector<128x64xf32>
    %16 = arith.maximumf %14, %15 : vector<128x64xf32>
    %c0_17 = arith.constant 0 : index
    %c0_18 = arith.constant 0 : index
    %17 = vector.load %arg9[%c0_17, %c0_18] : memref<128x64xf32, #tpu.memory_space<vmem>>, vector<128x64xf32>
    tpu.vector_store %arg9[%c0_17, %c0_18], %16 {strides = array<i32>} : memref<128x64xf32, #tpu.memory_space<vmem>>, vector<128x64xf32>,
    return
  }
}

module attributes {stable_mosaic.version = 11 : i64} {
  func.func @_bottleneck_kernel(%arg0: i32, %arg1: memref<128x256xf32, #tpu.memory_space<vmem>>, %arg2: memref<1x256xf32, #tpu.memory_space<vmem>>, %arg3: memref<1x256xf32, #tpu.memory_space<vmem>>, %arg4: memref<256x128xbf16, #tpu.memory_space<vmem>>, %arg5: memref<1x128xf32, #tpu.memory_space<vmem>>, %arg6: memref<1x128xf32, #tpu.memory_space<vmem>>, %arg7: memref<128x128xf32, #tpu.memory_space<vmem>>) attributes {dimension_semantics = [#tpu.dimension_semantics<parallel>], iteration_bounds = array<i64: 1>, scalar_prefetch = 0 : i64, scratch_operands = 0 : i64, tpu.core_type = #tpu.core_type<tc>, window_params = [{transform_indices = @transform_0, window_bounds = array<i64: 128, 256>}, {pipeline_mode = #tpu.pipeline_mode<synchronous>, transform_indices = @transform_1, window_bounds = array<i64: 1, 256>}, {pipeline_mode = #tpu.pipeline_mode<synchronous>, transform_indices = @transform_2, window_bounds = array<i64: 1, 256>}, {pipeline_mode = #tpu.pipeline_mode<synchronous>, transform_indices = @transform_3, window_bounds = array<i64: 256, 128>}, {pipeline_mode = #tpu.pipeline_mode<synchronous>, transform_indices = @transform_4, window_bounds = array<i64: 1, 128>}, {pipeline_mode = #tpu.pipeline_mode<synchronous>, transform_indices = @transform_5, window_bounds = array<i64: 1, 128>}, {transform_indices = @transform_6, window_bounds = array<i64: 128, 128>}]} {
    %c0 = arith.constant 0 : index
    %c0_0 = arith.constant 0 : index
    %0 = vector.load %arg1[%c0, %c0_0] : memref<128x256xf32, #tpu.memory_space<vmem>>, vector<128x256xf32>
    %c0_1 = arith.constant 0 : index
    %c0_2 = arith.constant 0 : index
    %1 = vector.load %arg2[%c0_1, %c0_2] : memref<1x256xf32, #tpu.memory_space<vmem>>, vector<1x256xf32>
    %2 = vector.broadcast %1 : vector<1x256xf32> to vector<128x256xf32>
    %3 = arith.mulf %0, %2 : vector<128x256xf32>
    %c0_3 = arith.constant 0 : index
    %c0_4 = arith.constant 0 : index
    %4 = vector.load %arg3[%c0_3, %c0_4] : memref<1x256xf32, #tpu.memory_space<vmem>>, vector<1x256xf32>
    %5 = vector.broadcast %4 : vector<1x256xf32> to vector<128x256xf32>
    %6 = arith.addf %3, %5 : vector<128x256xf32>
    %cst = arith.constant 0.000000e+00 : f32
    %7 = vector.broadcast %cst : f32 to vector<128x256xf32>
    %8 = arith.maximumf %6, %7 : vector<128x256xf32>
    %9 = arith.truncf %8 : vector<128x256xf32> to vector<128x256xbf16>
    %c0_5 = arith.constant 0 : index
    %c0_6 = arith.constant 0 : index
    %10 = vector.load %arg4[%c0_5, %c0_6] : memref<256x128xbf16, #tpu.memory_space<vmem>>, vector<256x128xbf16>
    %cst_7 = arith.constant dense<0.000000e+00> : vector<128x128xf32>
    %11 = tpu.matmul %9, %10, %cst_7 {dimension_numbers = #tpu.dot_dimension_numbers<[1], [0], [0], [1], [0, 0, 1, 1], [], []>} : vector<128x256xbf16>, vector<256x128xbf16>, vector<128x128xf32> -> vector<128x128xf32>
    %c0_8 = arith.constant 0 : index
    %c0_9 = arith.constant 0 : index
    %12 = vector.load %arg5[%c0_8, %c0_9] : memref<1x128xf32, #tpu.memory_space<vmem>>, vector<1x128xf32>
    %13 = vector.broadcast %12 : vector<1x128xf32> to vector<128x128xf32>
    %14 = arith.mulf %11, %13 : vector<128x128xf32>
    %c0_10 = arith.constant 0 : index
    %c0_11 = arith.constant 0 : index
    %15 = vector.load %arg6[%c0_10, %c0_11] : memref<1x128xf32, #tpu.memory_space<vmem>>, vector<1x128xf32>
    %16 = vector.broadcast %15 : vector<1x128xf32> to vector<128x128xf32>
    %17 = arith.addf %14, %16 : vector<128x128xf32>
    %cst_12 = arith.constant 0.000000e+00 : f32
    %18 = vector.broadcast %cst_12 : f32 to vector<128x128xf32>
    %19 = arith.maximumf %17, %18 : vector<128x128xf32>
    %c0_13 = arith.constant 0 : index
    %c0_14 = arith.constant 0 : index
    %20 = vector.load %arg7[%c0_13, %c0_14] : memref<128x128xf32, #tpu.memory_space<vmem>>, vector<128x128xf32>
    tpu.vector_store %arg7[%c0_13, %c0_14], %19 {strides = array<i32>} : memref<128x128xf32, #tpu.memory_space<vmem>>, vector<128x128xf32>,
    return
  }
  func.func @transform_0(%arg0: i32) -> (i32, i32) {
    %c0_i32 = arith.constant 0 : i32
    %c0_i32_0 = arith.constant 0 : i32
    return %arg0, %c0_i32 : i32, i32
  }
  func.func @transform_1(%arg0: i32) -> (i32, i32) {
    %c0_i32 = arith.constant 0 : i32
    %c0_i32_0 = arith.constant 0 : i32
    %c0_i32_1 = arith.constant 0 : i32
    return %c0_i32, %c0_i32_0 : i32, i32
  }
  func.func @transform_2(%arg0: i32) -> (i32, i32) {
    %c0_i32 = arith.constant 0 : i32
    %c0_i32_0 = arith.constant 0 : i32
    %c0_i32_1 = arith.constant 0 : i32
    return %c0_i32, %c0_i32_0 : i32, i32
  }
  func.func @transform_3(%arg0: i32) -> (i32, i32) {
    %c0_i32 = arith.constant 0 : i32
    %c0_i32_0 = arith.constant 0 : i32
    %c0_i32_1 = arith.constant 0 : i32
    return %c0_i32, %c0_i32_0 : i32, i32
  }
  func.func @transform_4(%arg0: i32) -> (i32, i32) {
    %c0_i32 = arith.constant 0 : i32
    %c0_i32_0 = arith.constant 0 : i32
    %c0_i32_1 = arith.constant 0 : i32
    return %c0_i32, %c0_i32_0 : i32, i32
  }
  func.func @transform_5(%arg0: i32) -> (i32, i32) {
    %c0_i32 = arith.constant 0 : i32
    %c0_i32_0 = arith.constant 0 : i32
    %c0_i32_1 = arith.constant 0 : i32
    return %c0_i32, %c0_i32_0 : i32, i32
  }
  func.func @transform_6(%arg0: i32) -> (i32, i32) {
    %c0_i32 = arith.constant 0 : i32
    %c0_i32_0 = arith.constant 0 : i32
    return %arg0, %c0_i32 : i32, i32
  }
}

module attributes {stable_mosaic.version = 11 : i64} {
  func.func @_matmul_kernel(%arg0: i32, %arg1: memref<128x1152xf32, #tpu.memory_space<vmem>>, %arg2: memref<1152x32xbf16, #tpu.memory_space<vmem>>, %arg3: memref<128x32xf32, #tpu.memory_space<vmem>>) attributes {dimension_semantics = [#tpu.dimension_semantics<parallel>], iteration_bounds = array<i64: 1>, scalar_prefetch = 0 : i64, scratch_operands = 0 : i64, tpu.core_type = #tpu.core_type<tc>, window_params = [{transform_indices = @transform_0, window_bounds = array<i64: 128, 1152>}, {pipeline_mode = #tpu.pipeline_mode<synchronous>, transform_indices = @transform_1, window_bounds = array<i64: 1152, 32>}, {transform_indices = @transform_2, window_bounds = array<i64: 128, 32>}]} {
    %c0 = arith.constant 0 : index
    %c0_0 = arith.constant 0 : index
    %0 = vector.load %arg1[%c0, %c0_0] : memref<128x1152xf32, #tpu.memory_space<vmem>>, vector<128x1152xf32>
    %1 = arith.truncf %0 : vector<128x1152xf32> to vector<128x1152xbf16>
    %c0_1 = arith.constant 0 : index
    %c0_2 = arith.constant 0 : index
    %2 = vector.load %arg2[%c0_1, %c0_2] : memref<1152x32xbf16, #tpu.memory_space<vmem>>, vector<1152x32xbf16>
    %cst = arith.constant dense<0.000000e+00> : vector<128x32xf32>
    %3 = tpu.matmul %1, %2, %cst {dimension_numbers = #tpu.dot_dimension_numbers<[1], [0], [0], [1], [0, 0, 1, 1], [], []>} : vector<128x1152xbf16>, vector<1152x32xbf16>, vector<128x32xf32> -> vector<128x32xf32>
    %c0_3 = arith.constant 0 : index
    %c0_4 = arith.constant 0 : index
    %4 = vector.load %arg3[%c0_3, %c0_4] : memref<128x32xf32, #tpu.memory_space<vmem>>, vector<128x32xf32>
    tpu.vector_store %arg3[%c0_3, %c0_4], %3 {strides = array<i32>} : memref<128x32xf32, #tpu.memory_space<vmem>>, vector<128x32xf32>,
    return
  }
  func.func @transform_0(%arg0: i32) -> (i32, i32) {
    %c0_i32 = arith.constant 0 : i32
    %c0_i32_0 = arith.constant 0 : i32
    return %arg0, %c0_i32 : i32, i32
  }
  func.func @transform_1(%arg0: i32) -> (i32, i32) {
    %c0_i32 = arith.constant 0 : i32
    %c0_i32_0 = arith.constant 0 : i32
    %c0_i32_1 = arith.constant 0 : i32
    return %c0_i32, %c0_i32_0 : i32, i32
  }
  func.func @transform_2(%arg0: i32) -> (i32, i32) {
    %c0_i32 = arith.constant 0 : i32
    %c0_i32_0 = arith.constant 0 : i32
    return %arg0, %c0_i32 : i32, i32
  }
}

module attributes {stable_mosaic.version = 11 : i64} {
  func.func @_transition_kernel(%arg0: memref<32x256xf32, #tpu.memory_space<vmem>>, %arg1: memref<32x256xf32, #tpu.memory_space<vmem>>, %arg2: memref<32x256xf32, #tpu.memory_space<vmem>>, %arg3: memref<32x256xf32, #tpu.memory_space<vmem>>, %arg4: memref<1x256xf32, #tpu.memory_space<vmem>>, %arg5: memref<1x256xf32, #tpu.memory_space<vmem>>, %arg6: memref<256x128xbf16, #tpu.memory_space<vmem>>, %arg7: memref<32x128xf32, #tpu.memory_space<vmem>>) attributes {dimension_semantics = [], scalar_prefetch = 0 : i64, scratch_operands = 0 : i64, tpu.core_type = #tpu.core_type<tc>} {
    %c0 = arith.constant 0 : index
    %c0_0 = arith.constant 0 : index
    %0 = vector.load %arg4[%c0, %c0_0] : memref<1x256xf32, #tpu.memory_space<vmem>>, vector<1x256xf32>
    %c0_1 = arith.constant 0 : index
    %c0_2 = arith.constant 0 : index
    %1 = vector.load %arg5[%c0_1, %c0_2] : memref<1x256xf32, #tpu.memory_space<vmem>>, vector<1x256xf32>
    %c0_3 = arith.constant 0 : index
    %c0_4 = arith.constant 0 : index
    %2 = vector.load %arg0[%c0_3, %c0_4] : memref<32x256xf32, #tpu.memory_space<vmem>>, vector<32x256xf32>
    %3 = vector.broadcast %0 : vector<1x256xf32> to vector<32x256xf32>
    %4 = arith.mulf %2, %3 : vector<32x256xf32>
    %5 = vector.broadcast %1 : vector<1x256xf32> to vector<32x256xf32>
    %6 = arith.addf %4, %5 : vector<32x256xf32>
    %cst = arith.constant 0.000000e+00 : f32
    %7 = vector.broadcast %cst : f32 to vector<32x256xf32>
    %8 = arith.maximumf %6, %7 : vector<32x256xf32>
    %c0_5 = arith.constant 0 : index
    %c0_6 = arith.constant 0 : index
    %9 = vector.load %arg1[%c0_5, %c0_6] : memref<32x256xf32, #tpu.memory_space<vmem>>, vector<32x256xf32>
    %10 = vector.broadcast %0 : vector<1x256xf32> to vector<32x256xf32>
    %11 = arith.mulf %9, %10 : vector<32x256xf32>
    %12 = vector.broadcast %1 : vector<1x256xf32> to vector<32x256xf32>
    %13 = arith.addf %11, %12 : vector<32x256xf32>
    %cst_7 = arith.constant 0.000000e+00 : f32
    %14 = vector.broadcast %cst_7 : f32 to vector<32x256xf32>
    %15 = arith.maximumf %13, %14 : vector<32x256xf32>
    %16 = arith.addf %8, %15 : vector<32x256xf32>
    %c0_8 = arith.constant 0 : index
    %c0_9 = arith.constant 0 : index
    %17 = vector.load %arg2[%c0_8, %c0_9] : memref<32x256xf32, #tpu.memory_space<vmem>>, vector<32x256xf32>
    %18 = vector.broadcast %0 : vector<1x256xf32> to vector<32x256xf32>
    %19 = arith.mulf %17, %18 : vector<32x256xf32>
    %20 = vector.broadcast %1 : vector<1x256xf32> to vector<32x256xf32>
    %21 = arith.addf %19, %20 : vector<32x256xf32>
    %cst_10 = arith.constant 0.000000e+00 : f32
    %22 = vector.broadcast %cst_10 : f32 to vector<32x256xf32>
    %23 = arith.maximumf %21, %22 : vector<32x256xf32>
    %24 = arith.addf %16, %23 : vector<32x256xf32>
    %c0_11 = arith.constant 0 : index
    %c0_12 = arith.constant 0 : index
    %25 = vector.load %arg3[%c0_11, %c0_12] : memref<32x256xf32, #tpu.memory_space<vmem>>, vector<32x256xf32>
    %26 = vector.broadcast %0 : vector<1x256xf32> to vector<32x256xf32>
    %27 = arith.mulf %25, %26 : vector<32x256xf32>
    %28 = vector.broadcast %1 : vector<1x256xf32> to vector<32x256xf32>
    %29 = arith.addf %27, %28 : vector<32x256xf32>
    %cst_13 = arith.constant 0.000000e+00 : f32
    %30 = vector.broadcast %cst_13 : f32 to vector<32x256xf32>
    %31 = arith.maximumf %29, %30 : vector<32x256xf32>
    %32 = arith.addf %24, %31 : vector<32x256xf32>
    %cst_14 = arith.constant 2.500000e-01 : f32
    %33 = vector.broadcast %cst_14 : f32 to vector<32x256xf32>
    %34 = arith.mulf %32, %33 : vector<32x256xf32>
    %35 = arith.truncf %34 : vector<32x256xf32> to vector<32x256xbf16>
    %c0_15 = arith.constant 0 : index
    %c0_16 = arith.constant 0 : index
    %36 = vector.load %arg6[%c0_15, %c0_16] : memref<256x128xbf16, #tpu.memory_space<vmem>>, vector<256x128xbf16>
    %cst_17 = arith.constant dense<0.000000e+00> : vector<32x128xf32>
    %37 = tpu.matmul %35, %36, %cst_17 {dimension_numbers = #tpu.dot_dimension_numbers<[1], [0], [0], [1], [0, 0, 1, 1], [], []>} : vector<32x256xbf16>, vector<256x128xbf16>, vector<32x128xf32> -> vector<32x128xf32>
    %c0_18 = arith.constant 0 : index
    %c0_19 = arith.constant 0 : index
    %38 = vector.load %arg7[%c0_18, %c0_19] : memref<32x128xf32, #tpu.memory_space<vmem>>, vector<32x128xf32>
    tpu.vector_store %arg7[%c0_18, %c0_19], %37 {strides = array<i32>} : memref<32x128xf32, #tpu.memory_space<vmem>>, vector<32x128xf32>,
    return
  }
}

module attributes {stable_mosaic.version = 11 : i64} {
  func.func @_bottleneck_kernel(%arg0: i32, %arg1: memref<32x512xf32, #tpu.memory_space<vmem>>, %arg2: memref<1x512xf32, #tpu.memory_space<vmem>>, %arg3: memref<1x512xf32, #tpu.memory_space<vmem>>, %arg4: memref<512x128xbf16, #tpu.memory_space<vmem>>, %arg5: memref<1x128xf32, #tpu.memory_space<vmem>>, %arg6: memref<1x128xf32, #tpu.memory_space<vmem>>, %arg7: memref<32x128xf32, #tpu.memory_space<vmem>>) attributes {dimension_semantics = [#tpu.dimension_semantics<parallel>], iteration_bounds = array<i64: 1>, scalar_prefetch = 0 : i64, scratch_operands = 0 : i64, tpu.core_type = #tpu.core_type<tc>, window_params = [{transform_indices = @transform_0, window_bounds = array<i64: 32, 512>}, {pipeline_mode = #tpu.pipeline_mode<synchronous>, transform_indices = @transform_1, window_bounds = array<i64: 1, 512>}, {pipeline_mode = #tpu.pipeline_mode<synchronous>, transform_indices = @transform_2, window_bounds = array<i64: 1, 512>}, {pipeline_mode = #tpu.pipeline_mode<synchronous>, transform_indices = @transform_3, window_bounds = array<i64: 512, 128>}, {pipeline_mode = #tpu.pipeline_mode<synchronous>, transform_indices = @transform_4, window_bounds = array<i64: 1, 128>}, {pipeline_mode = #tpu.pipeline_mode<synchronous>, transform_indices = @transform_5, window_bounds = array<i64: 1, 128>}, {transform_indices = @transform_6, window_bounds = array<i64: 32, 128>}]} {
    %c0 = arith.constant 0 : index
    %c0_0 = arith.constant 0 : index
    %0 = vector.load %arg1[%c0, %c0_0] : memref<32x512xf32, #tpu.memory_space<vmem>>, vector<32x512xf32>
    %c0_1 = arith.constant 0 : index
    %c0_2 = arith.constant 0 : index
    %1 = vector.load %arg2[%c0_1, %c0_2] : memref<1x512xf32, #tpu.memory_space<vmem>>, vector<1x512xf32>
    %2 = vector.broadcast %1 : vector<1x512xf32> to vector<32x512xf32>
    %3 = arith.mulf %0, %2 : vector<32x512xf32>
    %c0_3 = arith.constant 0 : index
    %c0_4 = arith.constant 0 : index
    %4 = vector.load %arg3[%c0_3, %c0_4] : memref<1x512xf32, #tpu.memory_space<vmem>>, vector<1x512xf32>
    %5 = vector.broadcast %4 : vector<1x512xf32> to vector<32x512xf32>
    %6 = arith.addf %3, %5 : vector<32x512xf32>
    %cst = arith.constant 0.000000e+00 : f32
    %7 = vector.broadcast %cst : f32 to vector<32x512xf32>
    %8 = arith.maximumf %6, %7 : vector<32x512xf32>
    %9 = arith.truncf %8 : vector<32x512xf32> to vector<32x512xbf16>
    %c0_5 = arith.constant 0 : index
    %c0_6 = arith.constant 0 : index
    %10 = vector.load %arg4[%c0_5, %c0_6] : memref<512x128xbf16, #tpu.memory_space<vmem>>, vector<512x128xbf16>
    %cst_7 = arith.constant dense<0.000000e+00> : vector<32x128xf32>
    %11 = tpu.matmul %9, %10, %cst_7 {dimension_numbers = #tpu.dot_dimension_numbers<[1], [0], [0], [1], [0, 0, 1, 1], [], []>} : vector<32x512xbf16>, vector<512x128xbf16>, vector<32x128xf32> -> vector<32x128xf32>
    %c0_8 = arith.constant 0 : index
    %c0_9 = arith.constant 0 : index
    %12 = vector.load %arg5[%c0_8, %c0_9] : memref<1x128xf32, #tpu.memory_space<vmem>>, vector<1x128xf32>
    %13 = vector.broadcast %12 : vector<1x128xf32> to vector<32x128xf32>
    %14 = arith.mulf %11, %13 : vector<32x128xf32>
    %c0_10 = arith.constant 0 : index
    %c0_11 = arith.constant 0 : index
    %15 = vector.load %arg6[%c0_10, %c0_11] : memref<1x128xf32, #tpu.memory_space<vmem>>, vector<1x128xf32>
    %16 = vector.broadcast %15 : vector<1x128xf32> to vector<32x128xf32>
    %17 = arith.addf %14, %16 : vector<32x128xf32>
    %cst_12 = arith.constant 0.000000e+00 : f32
    %18 = vector.broadcast %cst_12 : f32 to vector<32x128xf32>
    %19 = arith.maximumf %17, %18 : vector<32x128xf32>
    %c0_13 = arith.constant 0 : index
    %c0_14 = arith.constant 0 : index
    %20 = vector.load %arg7[%c0_13, %c0_14] : memref<32x128xf32, #tpu.memory_space<vmem>>, vector<32x128xf32>
    tpu.vector_store %arg7[%c0_13, %c0_14], %19 {strides = array<i32>} : memref<32x128xf32, #tpu.memory_space<vmem>>, vector<32x128xf32>,
    return
  }
  func.func @transform_0(%arg0: i32) -> (i32, i32) {
    %c0_i32 = arith.constant 0 : i32
    %c0_i32_0 = arith.constant 0 : i32
    return %arg0, %c0_i32 : i32, i32
  }
  func.func @transform_1(%arg0: i32) -> (i32, i32) {
    %c0_i32 = arith.constant 0 : i32
    %c0_i32_0 = arith.constant 0 : i32
    %c0_i32_1 = arith.constant 0 : i32
    return %c0_i32, %c0_i32_0 : i32, i32
  }
  func.func @transform_2(%arg0: i32) -> (i32, i32) {
    %c0_i32 = arith.constant 0 : i32
    %c0_i32_0 = arith.constant 0 : i32
    %c0_i32_1 = arith.constant 0 : i32
    return %c0_i32, %c0_i32_0 : i32, i32
  }
  func.func @transform_3(%arg0: i32) -> (i32, i32) {
    %c0_i32 = arith.constant 0 : i32
    %c0_i32_0 = arith.constant 0 : i32
    %c0_i32_1 = arith.constant 0 : i32
    return %c0_i32, %c0_i32_0 : i32, i32
  }
  func.func @transform_4(%arg0: i32) -> (i32, i32) {
    %c0_i32 = arith.constant 0 : i32
    %c0_i32_0 = arith.constant 0 : i32
    %c0_i32_1 = arith.constant 0 : i32
    return %c0_i32, %c0_i32_0 : i32, i32
  }
  func.func @transform_5(%arg0: i32) -> (i32, i32) {
    %c0_i32 = arith.constant 0 : i32
    %c0_i32_0 = arith.constant 0 : i32
    %c0_i32_1 = arith.constant 0 : i32
    return %c0_i32, %c0_i32_0 : i32, i32
  }
  func.func @transform_6(%arg0: i32) -> (i32, i32) {
    %c0_i32 = arith.constant 0 : i32
    %c0_i32_0 = arith.constant 0 : i32
    return %arg0, %c0_i32 : i32, i32
  }
}

module attributes {stable_mosaic.version = 11 : i64} {
  func.func @_matmul_kernel(%arg0: i32, %arg1: memref<32x1152xf32, #tpu.memory_space<vmem>>, %arg2: memref<1152x32xbf16, #tpu.memory_space<vmem>>, %arg3: memref<32x32xf32, #tpu.memory_space<vmem>>) attributes {dimension_semantics = [#tpu.dimension_semantics<parallel>], iteration_bounds = array<i64: 1>, scalar_prefetch = 0 : i64, scratch_operands = 0 : i64, tpu.core_type = #tpu.core_type<tc>, window_params = [{transform_indices = @transform_0, window_bounds = array<i64: 32, 1152>}, {pipeline_mode = #tpu.pipeline_mode<synchronous>, transform_indices = @transform_1, window_bounds = array<i64: 1152, 32>}, {transform_indices = @transform_2, window_bounds = array<i64: 32, 32>}]} {
    %c0 = arith.constant 0 : index
    %c0_0 = arith.constant 0 : index
    %0 = vector.load %arg1[%c0, %c0_0] : memref<32x1152xf32, #tpu.memory_space<vmem>>, vector<32x1152xf32>
    %1 = arith.truncf %0 : vector<32x1152xf32> to vector<32x1152xbf16>
    %c0_1 = arith.constant 0 : index
    %c0_2 = arith.constant 0 : index
    %2 = vector.load %arg2[%c0_1, %c0_2] : memref<1152x32xbf16, #tpu.memory_space<vmem>>, vector<1152x32xbf16>
    %cst = arith.constant dense<0.000000e+00> : vector<32x32xf32>
    %3 = tpu.matmul %1, %2, %cst {dimension_numbers = #tpu.dot_dimension_numbers<[1], [0], [0], [1], [0, 0, 1, 1], [], []>} : vector<32x1152xbf16>, vector<1152x32xbf16>, vector<32x32xf32> -> vector<32x32xf32>
    %c0_3 = arith.constant 0 : index
    %c0_4 = arith.constant 0 : index
    %4 = vector.load %arg3[%c0_3, %c0_4] : memref<32x32xf32, #tpu.memory_space<vmem>>, vector<32x32xf32>
    tpu.vector_store %arg3[%c0_3, %c0_4], %3 {strides = array<i32>} : memref<32x32xf32, #tpu.memory_space<vmem>>, vector<32x32xf32>,
    return
  }
  func.func @transform_0(%arg0: i32) -> (i32, i32) {
    %c0_i32 = arith.constant 0 : i32
    %c0_i32_0 = arith.constant 0 : i32
    return %arg0, %c0_i32 : i32, i32
  }
  func.func @transform_1(%arg0: i32) -> (i32, i32) {
    %c0_i32 = arith.constant 0 : i32
    %c0_i32_0 = arith.constant 0 : i32
    %c0_i32_1 = arith.constant 0 : i32
    return %c0_i32, %c0_i32_0 : i32, i32
  }
  func.func @transform_2(%arg0: i32) -> (i32, i32) {
    %c0_i32 = arith.constant 0 : i32
    %c0_i32_0 = arith.constant 0 : i32
    return %arg0, %c0_i32 : i32, i32
  }
}

module attributes {stable_mosaic.version = 11 : i64} {
  func.func @_transition_kernel(%arg0: memref<8x512xf32, #tpu.memory_space<vmem>>, %arg1: memref<8x512xf32, #tpu.memory_space<vmem>>, %arg2: memref<8x512xf32, #tpu.memory_space<vmem>>, %arg3: memref<8x512xf32, #tpu.memory_space<vmem>>, %arg4: memref<1x512xf32, #tpu.memory_space<vmem>>, %arg5: memref<1x512xf32, #tpu.memory_space<vmem>>, %arg6: memref<512x256xbf16, #tpu.memory_space<vmem>>, %arg7: memref<8x256xf32, #tpu.memory_space<vmem>>) attributes {dimension_semantics = [], scalar_prefetch = 0 : i64, scratch_operands = 0 : i64, tpu.core_type = #tpu.core_type<tc>} {
    %c0 = arith.constant 0 : index
    %c0_0 = arith.constant 0 : index
    %0 = vector.load %arg4[%c0, %c0_0] : memref<1x512xf32, #tpu.memory_space<vmem>>, vector<1x512xf32>
    %c0_1 = arith.constant 0 : index
    %c0_2 = arith.constant 0 : index
    %1 = vector.load %arg5[%c0_1, %c0_2] : memref<1x512xf32, #tpu.memory_space<vmem>>, vector<1x512xf32>
    %c0_3 = arith.constant 0 : index
    %c0_4 = arith.constant 0 : index
    %2 = vector.load %arg0[%c0_3, %c0_4] : memref<8x512xf32, #tpu.memory_space<vmem>>, vector<8x512xf32>
    %3 = vector.broadcast %0 : vector<1x512xf32> to vector<8x512xf32>
    %4 = arith.mulf %2, %3 : vector<8x512xf32>
    %5 = vector.broadcast %1 : vector<1x512xf32> to vector<8x512xf32>
    %6 = arith.addf %4, %5 : vector<8x512xf32>
    %cst = arith.constant 0.000000e+00 : f32
    %7 = vector.broadcast %cst : f32 to vector<8x512xf32>
    %8 = arith.maximumf %6, %7 : vector<8x512xf32>
    %c0_5 = arith.constant 0 : index
    %c0_6 = arith.constant 0 : index
    %9 = vector.load %arg1[%c0_5, %c0_6] : memref<8x512xf32, #tpu.memory_space<vmem>>, vector<8x512xf32>
    %10 = vector.broadcast %0 : vector<1x512xf32> to vector<8x512xf32>
    %11 = arith.mulf %9, %10 : vector<8x512xf32>
    %12 = vector.broadcast %1 : vector<1x512xf32> to vector<8x512xf32>
    %13 = arith.addf %11, %12 : vector<8x512xf32>
    %cst_7 = arith.constant 0.000000e+00 : f32
    %14 = vector.broadcast %cst_7 : f32 to vector<8x512xf32>
    %15 = arith.maximumf %13, %14 : vector<8x512xf32>
    %16 = arith.addf %8, %15 : vector<8x512xf32>
    %c0_8 = arith.constant 0 : index
    %c0_9 = arith.constant 0 : index
    %17 = vector.load %arg2[%c0_8, %c0_9] : memref<8x512xf32, #tpu.memory_space<vmem>>, vector<8x512xf32>
    %18 = vector.broadcast %0 : vector<1x512xf32> to vector<8x512xf32>
    %19 = arith.mulf %17, %18 : vector<8x512xf32>
    %20 = vector.broadcast %1 : vector<1x512xf32> to vector<8x512xf32>
    %21 = arith.addf %19, %20 : vector<8x512xf32>
    %cst_10 = arith.constant 0.000000e+00 : f32
    %22 = vector.broadcast %cst_10 : f32 to vector<8x512xf32>
    %23 = arith.maximumf %21, %22 : vector<8x512xf32>
    %24 = arith.addf %16, %23 : vector<8x512xf32>
    %c0_11 = arith.constant 0 : index
    %c0_12 = arith.constant 0 : index
    %25 = vector.load %arg3[%c0_11, %c0_12] : memref<8x512xf32, #tpu.memory_space<vmem>>, vector<8x512xf32>
    %26 = vector.broadcast %0 : vector<1x512xf32> to vector<8x512xf32>
    %27 = arith.mulf %25, %26 : vector<8x512xf32>
    %28 = vector.broadcast %1 : vector<1x512xf32> to vector<8x512xf32>
    %29 = arith.addf %27, %28 : vector<8x512xf32>
    %cst_13 = arith.constant 0.000000e+00 : f32
    %30 = vector.broadcast %cst_13 : f32 to vector<8x512xf32>
    %31 = arith.maximumf %29, %30 : vector<8x512xf32>
    %32 = arith.addf %24, %31 : vector<8x512xf32>
    %cst_14 = arith.constant 2.500000e-01 : f32
    %33 = vector.broadcast %cst_14 : f32 to vector<8x512xf32>
    %34 = arith.mulf %32, %33 : vector<8x512xf32>
    %35 = arith.truncf %34 : vector<8x512xf32> to vector<8x512xbf16>
    %c0_15 = arith.constant 0 : index
    %c0_16 = arith.constant 0 : index
    %36 = vector.load %arg6[%c0_15, %c0_16] : memref<512x256xbf16, #tpu.memory_space<vmem>>, vector<512x256xbf16>
    %cst_17 = arith.constant dense<0.000000e+00> : vector<8x256xf32>
    %37 = tpu.matmul %35, %36, %cst_17 {dimension_numbers = #tpu.dot_dimension_numbers<[1], [0], [0], [1], [0, 0, 1, 1], [], []>} : vector<8x512xbf16>, vector<512x256xbf16>, vector<8x256xf32> -> vector<8x256xf32>
    %c0_18 = arith.constant 0 : index
    %c0_19 = arith.constant 0 : index
    %38 = vector.load %arg7[%c0_18, %c0_19] : memref<8x256xf32, #tpu.memory_space<vmem>>, vector<8x256xf32>
    tpu.vector_store %arg7[%c0_18, %c0_19], %37 {strides = array<i32>} : memref<8x256xf32, #tpu.memory_space<vmem>>, vector<8x256xf32>,
    return
  }
}

module attributes {stable_mosaic.version = 11 : i64} {
  func.func @_bottleneck_kernel(%arg0: i32, %arg1: memref<8x1280xf32, #tpu.memory_space<vmem>>, %arg2: memref<1x1280xf32, #tpu.memory_space<vmem>>, %arg3: memref<1x1280xf32, #tpu.memory_space<vmem>>, %arg4: memref<1280x128xbf16, #tpu.memory_space<vmem>>, %arg5: memref<1x128xf32, #tpu.memory_space<vmem>>, %arg6: memref<1x128xf32, #tpu.memory_space<vmem>>, %arg7: memref<8x128xf32, #tpu.memory_space<vmem>>) attributes {dimension_semantics = [#tpu.dimension_semantics<parallel>], iteration_bounds = array<i64: 1>, scalar_prefetch = 0 : i64, scratch_operands = 0 : i64, tpu.core_type = #tpu.core_type<tc>, window_params = [{transform_indices = @transform_0, window_bounds = array<i64: 8, 1280>}, {pipeline_mode = #tpu.pipeline_mode<synchronous>, transform_indices = @transform_1, window_bounds = array<i64: 1, 1280>}, {pipeline_mode = #tpu.pipeline_mode<synchronous>, transform_indices = @transform_2, window_bounds = array<i64: 1, 1280>}, {pipeline_mode = #tpu.pipeline_mode<synchronous>, transform_indices = @transform_3, window_bounds = array<i64: 1280, 128>}, {pipeline_mode = #tpu.pipeline_mode<synchronous>, transform_indices = @transform_4, window_bounds = array<i64: 1, 128>}, {pipeline_mode = #tpu.pipeline_mode<synchronous>, transform_indices = @transform_5, window_bounds = array<i64: 1, 128>}, {transform_indices = @transform_6, window_bounds = array<i64: 8, 128>}]} {
    %c0 = arith.constant 0 : index
    %c0_0 = arith.constant 0 : index
    %0 = vector.load %arg1[%c0, %c0_0] : memref<8x1280xf32, #tpu.memory_space<vmem>>, vector<8x1280xf32>
    %c0_1 = arith.constant 0 : index
    %c0_2 = arith.constant 0 : index
    %1 = vector.load %arg2[%c0_1, %c0_2] : memref<1x1280xf32, #tpu.memory_space<vmem>>, vector<1x1280xf32>
    %2 = vector.broadcast %1 : vector<1x1280xf32> to vector<8x1280xf32>
    %3 = arith.mulf %0, %2 : vector<8x1280xf32>
    %c0_3 = arith.constant 0 : index
    %c0_4 = arith.constant 0 : index
    %4 = vector.load %arg3[%c0_3, %c0_4] : memref<1x1280xf32, #tpu.memory_space<vmem>>, vector<1x1280xf32>
    %5 = vector.broadcast %4 : vector<1x1280xf32> to vector<8x1280xf32>
    %6 = arith.addf %3, %5 : vector<8x1280xf32>
    %cst = arith.constant 0.000000e+00 : f32
    %7 = vector.broadcast %cst : f32 to vector<8x1280xf32>
    %8 = arith.maximumf %6, %7 : vector<8x1280xf32>
    %9 = arith.truncf %8 : vector<8x1280xf32> to vector<8x1280xbf16>
    %c0_5 = arith.constant 0 : index
    %c0_6 = arith.constant 0 : index
    %10 = vector.load %arg4[%c0_5, %c0_6] : memref<1280x128xbf16, #tpu.memory_space<vmem>>, vector<1280x128xbf16>
    %cst_7 = arith.constant dense<0.000000e+00> : vector<8x128xf32>
    %11 = tpu.matmul %9, %10, %cst_7 {dimension_numbers = #tpu.dot_dimension_numbers<[1], [0], [0], [1], [0, 0, 1, 1], [], []>} : vector<8x1280xbf16>, vector<1280x128xbf16>, vector<8x128xf32> -> vector<8x128xf32>
    %c0_8 = arith.constant 0 : index
    %c0_9 = arith.constant 0 : index
    %12 = vector.load %arg5[%c0_8, %c0_9] : memref<1x128xf32, #tpu.memory_space<vmem>>, vector<1x128xf32>
    %13 = vector.broadcast %12 : vector<1x128xf32> to vector<8x128xf32>
    %14 = arith.mulf %11, %13 : vector<8x128xf32>
    %c0_10 = arith.constant 0 : index
    %c0_11 = arith.constant 0 : index
    %15 = vector.load %arg6[%c0_10, %c0_11] : memref<1x128xf32, #tpu.memory_space<vmem>>, vector<1x128xf32>
    %16 = vector.broadcast %15 : vector<1x128xf32> to vector<8x128xf32>
    %17 = arith.addf %14, %16 : vector<8x128xf32>
    %cst_12 = arith.constant 0.000000e+00 : f32
    %18 = vector.broadcast %cst_12 : f32 to vector<8x128xf32>
    %19 = arith.maximumf %17, %18 : vector<8x128xf32>
    %c0_13 = arith.constant 0 : index
    %c0_14 = arith.constant 0 : index
    %20 = vector.load %arg7[%c0_13, %c0_14] : memref<8x128xf32, #tpu.memory_space<vmem>>, vector<8x128xf32>
    tpu.vector_store %arg7[%c0_13, %c0_14], %19 {strides = array<i32>} : memref<8x128xf32, #tpu.memory_space<vmem>>, vector<8x128xf32>,
    return
  }
  func.func @transform_0(%arg0: i32) -> (i32, i32) {
    %c0_i32 = arith.constant 0 : i32
    %c0_i32_0 = arith.constant 0 : i32
    return %arg0, %c0_i32 : i32, i32
  }
  func.func @transform_1(%arg0: i32) -> (i32, i32) {
    %c0_i32 = arith.constant 0 : i32
    %c0_i32_0 = arith.constant 0 : i32
    %c0_i32_1 = arith.constant 0 : i32
    return %c0_i32, %c0_i32_0 : i32, i32
  }
  func.func @transform_2(%arg0: i32) -> (i32, i32) {
    %c0_i32 = arith.constant 0 : i32
    %c0_i32_0 = arith.constant 0 : i32
    %c0_i32_1 = arith.constant 0 : i32
    return %c0_i32, %c0_i32_0 : i32, i32
  }
  func.func @transform_3(%arg0: i32) -> (i32, i32) {
    %c0_i32 = arith.constant 0 : i32
    %c0_i32_0 = arith.constant 0 : i32
    %c0_i32_1 = arith.constant 0 : i32
    return %c0_i32, %c0_i32_0 : i32, i32
  }
  func.func @transform_4(%arg0: i32) -> (i32, i32) {
    %c0_i32 = arith.constant 0 : i32
    %c0_i32_0 = arith.constant 0 : i32
    %c0_i32_1 = arith.constant 0 : i32
    return %c0_i32, %c0_i32_0 : i32, i32
  }
  func.func @transform_5(%arg0: i32) -> (i32, i32) {
    %c0_i32 = arith.constant 0 : i32
    %c0_i32_0 = arith.constant 0 : i32
    %c0_i32_1 = arith.constant 0 : i32
    return %c0_i32, %c0_i32_0 : i32, i32
  }
  func.func @transform_6(%arg0: i32) -> (i32, i32) {
    %c0_i32 = arith.constant 0 : i32
    %c0_i32_0 = arith.constant 0 : i32
    return %arg0, %c0_i32 : i32, i32
  }
}

module attributes {stable_mosaic.version = 11 : i64} {
  func.func @_matmul_kernel(%arg0: i32, %arg1: memref<8x1152xf32, #tpu.memory_space<vmem>>, %arg2: memref<1152x32xbf16, #tpu.memory_space<vmem>>, %arg3: memref<8x32xf32, #tpu.memory_space<vmem>>) attributes {dimension_semantics = [#tpu.dimension_semantics<parallel>], iteration_bounds = array<i64: 1>, scalar_prefetch = 0 : i64, scratch_operands = 0 : i64, tpu.core_type = #tpu.core_type<tc>, window_params = [{transform_indices = @transform_0, window_bounds = array<i64: 8, 1152>}, {pipeline_mode = #tpu.pipeline_mode<synchronous>, transform_indices = @transform_1, window_bounds = array<i64: 1152, 32>}, {transform_indices = @transform_2, window_bounds = array<i64: 8, 32>}]} {
    %c0 = arith.constant 0 : index
    %c0_0 = arith.constant 0 : index
    %0 = vector.load %arg1[%c0, %c0_0] : memref<8x1152xf32, #tpu.memory_space<vmem>>, vector<8x1152xf32>
    %1 = arith.truncf %0 : vector<8x1152xf32> to vector<8x1152xbf16>
    %c0_1 = arith.constant 0 : index
    %c0_2 = arith.constant 0 : index
    %2 = vector.load %arg2[%c0_1, %c0_2] : memref<1152x32xbf16, #tpu.memory_space<vmem>>, vector<1152x32xbf16>
    %cst = arith.constant dense<0.000000e+00> : vector<8x32xf32>
    %3 = tpu.matmul %1, %2, %cst {dimension_numbers = #tpu.dot_dimension_numbers<[1], [0], [0], [1], [0, 0, 1, 1], [], []>} : vector<8x1152xbf16>, vector<1152x32xbf16>, vector<8x32xf32> -> vector<8x32xf32>
    %c0_3 = arith.constant 0 : index
    %c0_4 = arith.constant 0 : index
    %4 = vector.load %arg3[%c0_3, %c0_4] : memref<8x32xf32, #tpu.memory_space<vmem>>, vector<8x32xf32>
    tpu.vector_store %arg3[%c0_3, %c0_4], %3 {strides = array<i32>} : memref<8x32xf32, #tpu.memory_space<vmem>>, vector<8x32xf32>,
    return
  }
  func.func @transform_0(%arg0: i32) -> (i32, i32) {
    %c0_i32 = arith.constant 0 : i32
    %c0_i32_0 = arith.constant 0 : i32
    return %arg0, %c0_i32 : i32, i32
  }
  func.func @transform_1(%arg0: i32) -> (i32, i32) {
    %c0_i32 = arith.constant 0 : i32
    %c0_i32_0 = arith.constant 0 : i32
    %c0_i32_1 = arith.constant 0 : i32
    return %c0_i32, %c0_i32_0 : i32, i32
  }
  func.func @transform_2(%arg0: i32) -> (i32, i32) {
    %c0_i32 = arith.constant 0 : i32
    %c0_i32_0 = arith.constant 0 : i32
    return %arg0, %c0_i32 : i32, i32
  }
}

module attributes {stable_mosaic.version = 11 : i64} {
  func.func @_transition_kernel(%arg0: memref<2x1280xf32, #tpu.memory_space<vmem>>, %arg1: memref<2x1280xf32, #tpu.memory_space<vmem>>, %arg2: memref<2x1280xf32, #tpu.memory_space<vmem>>, %arg3: memref<2x1280xf32, #tpu.memory_space<vmem>>, %arg4: memref<1x1280xf32, #tpu.memory_space<vmem>>, %arg5: memref<1x1280xf32, #tpu.memory_space<vmem>>, %arg6: memref<1280x640xbf16, #tpu.memory_space<vmem>>, %arg7: memref<2x640xf32, #tpu.memory_space<vmem>>) attributes {dimension_semantics = [], scalar_prefetch = 0 : i64, scratch_operands = 0 : i64, tpu.core_type = #tpu.core_type<tc>} {
    %c0 = arith.constant 0 : index
    %c0_0 = arith.constant 0 : index
    %0 = vector.load %arg4[%c0, %c0_0] : memref<1x1280xf32, #tpu.memory_space<vmem>>, vector<1x1280xf32>
    %c0_1 = arith.constant 0 : index
    %c0_2 = arith.constant 0 : index
    %1 = vector.load %arg5[%c0_1, %c0_2] : memref<1x1280xf32, #tpu.memory_space<vmem>>, vector<1x1280xf32>
    %c0_3 = arith.constant 0 : index
    %c0_4 = arith.constant 0 : index
    %2 = vector.load %arg0[%c0_3, %c0_4] : memref<2x1280xf32, #tpu.memory_space<vmem>>, vector<2x1280xf32>
    %3 = vector.broadcast %0 : vector<1x1280xf32> to vector<2x1280xf32>
    %4 = arith.mulf %2, %3 : vector<2x1280xf32>
    %5 = vector.broadcast %1 : vector<1x1280xf32> to vector<2x1280xf32>
    %6 = arith.addf %4, %5 : vector<2x1280xf32>
    %cst = arith.constant 0.000000e+00 : f32
    %7 = vector.broadcast %cst : f32 to vector<2x1280xf32>
    %8 = arith.maximumf %6, %7 : vector<2x1280xf32>
    %c0_5 = arith.constant 0 : index
    %c0_6 = arith.constant 0 : index
    %9 = vector.load %arg1[%c0_5, %c0_6] : memref<2x1280xf32, #tpu.memory_space<vmem>>, vector<2x1280xf32>
    %10 = vector.broadcast %0 : vector<1x1280xf32> to vector<2x1280xf32>
    %11 = arith.mulf %9, %10 : vector<2x1280xf32>
    %12 = vector.broadcast %1 : vector<1x1280xf32> to vector<2x1280xf32>
    %13 = arith.addf %11, %12 : vector<2x1280xf32>
    %cst_7 = arith.constant 0.000000e+00 : f32
    %14 = vector.broadcast %cst_7 : f32 to vector<2x1280xf32>
    %15 = arith.maximumf %13, %14 : vector<2x1280xf32>
    %16 = arith.addf %8, %15 : vector<2x1280xf32>
    %c0_8 = arith.constant 0 : index
    %c0_9 = arith.constant 0 : index
    %17 = vector.load %arg2[%c0_8, %c0_9] : memref<2x1280xf32, #tpu.memory_space<vmem>>, vector<2x1280xf32>
    %18 = vector.broadcast %0 : vector<1x1280xf32> to vector<2x1280xf32>
    %19 = arith.mulf %17, %18 : vector<2x1280xf32>
    %20 = vector.broadcast %1 : vector<1x1280xf32> to vector<2x1280xf32>
    %21 = arith.addf %19, %20 : vector<2x1280xf32>
    %cst_10 = arith.constant 0.000000e+00 : f32
    %22 = vector.broadcast %cst_10 : f32 to vector<2x1280xf32>
    %23 = arith.maximumf %21, %22 : vector<2x1280xf32>
    %24 = arith.addf %16, %23 : vector<2x1280xf32>
    %c0_11 = arith.constant 0 : index
    %c0_12 = arith.constant 0 : index
    %25 = vector.load %arg3[%c0_11, %c0_12] : memref<2x1280xf32, #tpu.memory_space<vmem>>, vector<2x1280xf32>
    %26 = vector.broadcast %0 : vector<1x1280xf32> to vector<2x1280xf32>
    %27 = arith.mulf %25, %26 : vector<2x1280xf32>
    %28 = vector.broadcast %1 : vector<1x1280xf32> to vector<2x1280xf32>
    %29 = arith.addf %27, %28 : vector<2x1280xf32>
    %cst_13 = arith.constant 0.000000e+00 : f32
    %30 = vector.broadcast %cst_13 : f32 to vector<2x1280xf32>
    %31 = arith.maximumf %29, %30 : vector<2x1280xf32>
    %32 = arith.addf %24, %31 : vector<2x1280xf32>
    %cst_14 = arith.constant 2.500000e-01 : f32
    %33 = vector.broadcast %cst_14 : f32 to vector<2x1280xf32>
    %34 = arith.mulf %32, %33 : vector<2x1280xf32>
    %35 = arith.truncf %34 : vector<2x1280xf32> to vector<2x1280xbf16>
    %c0_15 = arith.constant 0 : index
    %c0_16 = arith.constant 0 : index
    %36 = vector.load %arg6[%c0_15, %c0_16] : memref<1280x640xbf16, #tpu.memory_space<vmem>>, vector<1280x640xbf16>
    %cst_17 = arith.constant dense<0.000000e+00> : vector<2x640xf32>
    %37 = tpu.matmul %35, %36, %cst_17 {dimension_numbers = #tpu.dot_dimension_numbers<[1], [0], [0], [1], [0, 0, 1, 1], [], []>} : vector<2x1280xbf16>, vector<1280x640xbf16>, vector<2x640xf32> -> vector<2x640xf32>
    %c0_18 = arith.constant 0 : index
    %c0_19 = arith.constant 0 : index
    %38 = vector.load %arg7[%c0_18, %c0_19] : memref<2x640xf32, #tpu.memory_space<vmem>>, vector<2x640xf32>
    tpu.vector_store %arg7[%c0_18, %c0_19], %37 {strides = array<i32>} : memref<2x640xf32, #tpu.memory_space<vmem>>, vector<2x640xf32>,
    return
  }
}

module attributes {stable_mosaic.version = 11 : i64} {
  func.func @_bottleneck_kernel(%arg0: i32, %arg1: memref<2x1664xf32, #tpu.memory_space<vmem>>, %arg2: memref<1x1664xf32, #tpu.memory_space<vmem>>, %arg3: memref<1x1664xf32, #tpu.memory_space<vmem>>, %arg4: memref<1664x128xbf16, #tpu.memory_space<vmem>>, %arg5: memref<1x128xf32, #tpu.memory_space<vmem>>, %arg6: memref<1x128xf32, #tpu.memory_space<vmem>>, %arg7: memref<2x128xf32, #tpu.memory_space<vmem>>) attributes {dimension_semantics = [#tpu.dimension_semantics<parallel>], iteration_bounds = array<i64: 1>, scalar_prefetch = 0 : i64, scratch_operands = 0 : i64, tpu.core_type = #tpu.core_type<tc>, window_params = [{transform_indices = @transform_0, window_bounds = array<i64: 2, 1664>}, {pipeline_mode = #tpu.pipeline_mode<synchronous>, transform_indices = @transform_1, window_bounds = array<i64: 1, 1664>}, {pipeline_mode = #tpu.pipeline_mode<synchronous>, transform_indices = @transform_2, window_bounds = array<i64: 1, 1664>}, {pipeline_mode = #tpu.pipeline_mode<synchronous>, transform_indices = @transform_3, window_bounds = array<i64: 1664, 128>}, {pipeline_mode = #tpu.pipeline_mode<synchronous>, transform_indices = @transform_4, window_bounds = array<i64: 1, 128>}, {pipeline_mode = #tpu.pipeline_mode<synchronous>, transform_indices = @transform_5, window_bounds = array<i64: 1, 128>}, {transform_indices = @transform_6, window_bounds = array<i64: 2, 128>}]} {
    %c0 = arith.constant 0 : index
    %c0_0 = arith.constant 0 : index
    %0 = vector.load %arg1[%c0, %c0_0] : memref<2x1664xf32, #tpu.memory_space<vmem>>, vector<2x1664xf32>
    %c0_1 = arith.constant 0 : index
    %c0_2 = arith.constant 0 : index
    %1 = vector.load %arg2[%c0_1, %c0_2] : memref<1x1664xf32, #tpu.memory_space<vmem>>, vector<1x1664xf32>
    %2 = vector.broadcast %1 : vector<1x1664xf32> to vector<2x1664xf32>
    %3 = arith.mulf %0, %2 : vector<2x1664xf32>
    %c0_3 = arith.constant 0 : index
    %c0_4 = arith.constant 0 : index
    %4 = vector.load %arg3[%c0_3, %c0_4] : memref<1x1664xf32, #tpu.memory_space<vmem>>, vector<1x1664xf32>
    %5 = vector.broadcast %4 : vector<1x1664xf32> to vector<2x1664xf32>
    %6 = arith.addf %3, %5 : vector<2x1664xf32>
    %cst = arith.constant 0.000000e+00 : f32
    %7 = vector.broadcast %cst : f32 to vector<2x1664xf32>
    %8 = arith.maximumf %6, %7 : vector<2x1664xf32>
    %9 = arith.truncf %8 : vector<2x1664xf32> to vector<2x1664xbf16>
    %c0_5 = arith.constant 0 : index
    %c0_6 = arith.constant 0 : index
    %10 = vector.load %arg4[%c0_5, %c0_6] : memref<1664x128xbf16, #tpu.memory_space<vmem>>, vector<1664x128xbf16>
    %cst_7 = arith.constant dense<0.000000e+00> : vector<2x128xf32>
    %11 = tpu.matmul %9, %10, %cst_7 {dimension_numbers = #tpu.dot_dimension_numbers<[1], [0], [0], [1], [0, 0, 1, 1], [], []>} : vector<2x1664xbf16>, vector<1664x128xbf16>, vector<2x128xf32> -> vector<2x128xf32>
    %c0_8 = arith.constant 0 : index
    %c0_9 = arith.constant 0 : index
    %12 = vector.load %arg5[%c0_8, %c0_9] : memref<1x128xf32, #tpu.memory_space<vmem>>, vector<1x128xf32>
    %13 = vector.broadcast %12 : vector<1x128xf32> to vector<2x128xf32>
    %14 = arith.mulf %11, %13 : vector<2x128xf32>
    %c0_10 = arith.constant 0 : index
    %c0_11 = arith.constant 0 : index
    %15 = vector.load %arg6[%c0_10, %c0_11] : memref<1x128xf32, #tpu.memory_space<vmem>>, vector<1x128xf32>
    %16 = vector.broadcast %15 : vector<1x128xf32> to vector<2x128xf32>
    %17 = arith.addf %14, %16 : vector<2x128xf32>
    %cst_12 = arith.constant 0.000000e+00 : f32
    %18 = vector.broadcast %cst_12 : f32 to vector<2x128xf32>
    %19 = arith.maximumf %17, %18 : vector<2x128xf32>
    %c0_13 = arith.constant 0 : index
    %c0_14 = arith.constant 0 : index
    %20 = vector.load %arg7[%c0_13, %c0_14] : memref<2x128xf32, #tpu.memory_space<vmem>>, vector<2x128xf32>
    tpu.vector_store %arg7[%c0_13, %c0_14], %19 {strides = array<i32>} : memref<2x128xf32, #tpu.memory_space<vmem>>, vector<2x128xf32>,
    return
  }
  func.func @transform_0(%arg0: i32) -> (i32, i32) {
    %c0_i32 = arith.constant 0 : i32
    %c0_i32_0 = arith.constant 0 : i32
    return %arg0, %c0_i32 : i32, i32
  }
  func.func @transform_1(%arg0: i32) -> (i32, i32) {
    %c0_i32 = arith.constant 0 : i32
    %c0_i32_0 = arith.constant 0 : i32
    %c0_i32_1 = arith.constant 0 : i32
    return %c0_i32, %c0_i32_0 : i32, i32
  }
  func.func @transform_2(%arg0: i32) -> (i32, i32) {
    %c0_i32 = arith.constant 0 : i32
    %c0_i32_0 = arith.constant 0 : i32
    %c0_i32_1 = arith.constant 0 : i32
    return %c0_i32, %c0_i32_0 : i32, i32
  }
  func.func @transform_3(%arg0: i32) -> (i32, i32) {
    %c0_i32 = arith.constant 0 : i32
    %c0_i32_0 = arith.constant 0 : i32
    %c0_i32_1 = arith.constant 0 : i32
    return %c0_i32, %c0_i32_0 : i32, i32
  }
  func.func @transform_4(%arg0: i32) -> (i32, i32) {
    %c0_i32 = arith.constant 0 : i32
    %c0_i32_0 = arith.constant 0 : i32
    %c0_i32_1 = arith.constant 0 : i32
    return %c0_i32, %c0_i32_0 : i32, i32
  }
  func.func @transform_5(%arg0: i32) -> (i32, i32) {
    %c0_i32 = arith.constant 0 : i32
    %c0_i32_0 = arith.constant 0 : i32
    %c0_i32_1 = arith.constant 0 : i32
    return %c0_i32, %c0_i32_0 : i32, i32
  }
  func.func @transform_6(%arg0: i32) -> (i32, i32) {
    %c0_i32 = arith.constant 0 : i32
    %c0_i32_0 = arith.constant 0 : i32
    return %arg0, %c0_i32 : i32, i32
  }
}

module attributes {stable_mosaic.version = 11 : i64} {
  func.func @_matmul_kernel(%arg0: i32, %arg1: memref<2x1152xf32, #tpu.memory_space<vmem>>, %arg2: memref<1152x32xbf16, #tpu.memory_space<vmem>>, %arg3: memref<2x32xf32, #tpu.memory_space<vmem>>) attributes {dimension_semantics = [#tpu.dimension_semantics<parallel>], iteration_bounds = array<i64: 1>, scalar_prefetch = 0 : i64, scratch_operands = 0 : i64, tpu.core_type = #tpu.core_type<tc>, window_params = [{transform_indices = @transform_0, window_bounds = array<i64: 2, 1152>}, {pipeline_mode = #tpu.pipeline_mode<synchronous>, transform_indices = @transform_1, window_bounds = array<i64: 1152, 32>}, {transform_indices = @transform_2, window_bounds = array<i64: 2, 32>}]} {
    %c0 = arith.constant 0 : index
    %c0_0 = arith.constant 0 : index
    %0 = vector.load %arg1[%c0, %c0_0] : memref<2x1152xf32, #tpu.memory_space<vmem>>, vector<2x1152xf32>
    %1 = arith.truncf %0 : vector<2x1152xf32> to vector<2x1152xbf16>
    %c0_1 = arith.constant 0 : index
    %c0_2 = arith.constant 0 : index
    %2 = vector.load %arg2[%c0_1, %c0_2] : memref<1152x32xbf16, #tpu.memory_space<vmem>>, vector<1152x32xbf16>
    %cst = arith.constant dense<0.000000e+00> : vector<2x32xf32>
    %3 = tpu.matmul %1, %2, %cst {dimension_numbers = #tpu.dot_dimension_numbers<[1], [0], [0], [1], [0, 0, 1, 1], [], []>} : vector<2x1152xbf16>, vector<1152x32xbf16>, vector<2x32xf32> -> vector<2x32xf32>
    %c0_3 = arith.constant 0 : index
    %c0_4 = arith.constant 0 : index
    %4 = vector.load %arg3[%c0_3, %c0_4] : memref<2x32xf32, #tpu.memory_space<vmem>>, vector<2x32xf32>
    tpu.vector_store %arg3[%c0_3, %c0_4], %3 {strides = array<i32>} : memref<2x32xf32, #tpu.memory_space<vmem>>, vector<2x32xf32>,
    return
  }
  func.func @transform_0(%arg0: i32) -> (i32, i32) {
    %c0_i32 = arith.constant 0 : i32
    %c0_i32_0 = arith.constant 0 : i32
    return %arg0, %c0_i32 : i32, i32
  }
  func.func @transform_1(%arg0: i32) -> (i32, i32) {
    %c0_i32 = arith.constant 0 : i32
    %c0_i32_0 = arith.constant 0 : i32
    %c0_i32_1 = arith.constant 0 : i32
    return %c0_i32, %c0_i32_0 : i32, i32
  }
  func.func @transform_2(%arg0: i32) -> (i32, i32) {
    %c0_i32 = arith.constant 0 : i32
    %c0_i32_0 = arith.constant 0 : i32
    return %arg0, %c0_i32 : i32, i32
  }
}

module attributes {stable_mosaic.version = 11 : i64} {
  func.func @_bottleneck_kernel(%arg0: i32, %arg1: memref<2x1664xf32, #tpu.memory_space<vmem>>, %arg2: memref<1x1664xf32, #tpu.memory_space<vmem>>, %arg3: memref<1x1664xf32, #tpu.memory_space<vmem>>, %arg4: memref<1664x128xbf16, #tpu.memory_space<vmem>>, %arg5: memref<1x128xf32, #tpu.memory_space<vmem>>, %arg6: memref<1x128xf32, #tpu.memory_space<vmem>>, %arg7: memref<2x128xf32, #tpu.memory_space<vmem>>) attributes {dimension_semantics = [#tpu.dimension_semantics<parallel>], iteration_bounds = array<i64: 1>, scalar_prefetch = 0 : i64, scratch_operands = 0 : i64, tpu.core_type = #tpu.core_type<tc>, window_params = [{transform_indices = @transform_0, window_bounds = array<i64: 2, 1664>}, {pipeline_mode = #tpu.pipeline_mode<synchronous>, transform_indices = @transform_1, window_bounds = array<i64: 1, 1664>}, {pipeline_mode = #tpu.pipeline_mode<synchronous>, transform_indices = @transform_2, window_bounds = array<i64: 1, 1664>}, {pipeline_mode = #tpu.pipeline_mode<synchronous>, transform_indices = @transform_3, window_bounds = array<i64: 1664, 128>}, {pipeline_mode = #tpu.pipeline_mode<synchronous>, transform_indices = @transform_4, window_bounds = array<i64: 1, 128>}, {pipeline_mode = #tpu.pipeline_mode<synchronous>, transform_indices = @transform_5, window_bounds = array<i64: 1, 128>}, {transform_indices = @transform_6, window_bounds = array<i64: 2, 128>}]} {
    %c0 = arith.constant 0 : index
    %c0_0 = arith.constant 0 : index
    %0 = vector.load %arg1[%c0, %c0_0] : memref<2x1664xf32, #tpu.memory_space<vmem>>, vector<2x1664xf32>
    %c0_1 = arith.constant 0 : index
    %c0_2 = arith.constant 0 : index
    %1 = vector.load %arg2[%c0_1, %c0_2] : memref<1x1664xf32, #tpu.memory_space<vmem>>, vector<1x1664xf32>
    %2 = vector.broadcast %1 : vector<1x1664xf32> to vector<2x1664xf32>
    %3 = arith.mulf %0, %2 : vector<2x1664xf32>
    %c0_3 = arith.constant 0 : index
    %c0_4 = arith.constant 0 : index
    %4 = vector.load %arg3[%c0_3, %c0_4] : memref<1x1664xf32, #tpu.memory_space<vmem>>, vector<1x1664xf32>
    %5 = vector.broadcast %4 : vector<1x1664xf32> to vector<2x1664xf32>
    %6 = arith.addf %3, %5 : vector<2x1664xf32>
    %cst = arith.constant 0.000000e+00 : f32
    %7 = vector.broadcast %cst : f32 to vector<2x1664xf32>
    %8 = arith.maximumf %6, %7 : vector<2x1664xf32>
    %9 = arith.truncf %8 : vector<2x1664xf32> to vector<2x1664xbf16>
    %c0_5 = arith.constant 0 : index
    %c0_6 = arith.constant 0 : index
    %10 = vector.load %arg4[%c0_5, %c0_6] : memref<1664x128xbf16, #tpu.memory_space<vmem>>, vector<1664x128xbf16>
    %cst_7 = arith.constant dense<0.000000e+00> : vector<2x128xf32>
    %11 = tpu.matmul %9, %10, %cst_7 {dimension_numbers = #tpu.dot_dimension_numbers<[1], [0], [0], [1], [0, 0, 1, 1], [], []>} : vector<2x1664xbf16>, vector<1664x128xbf16>, vector<2x128xf32> -> vector<2x128xf32>
    %c0_8 = arith.constant 0 : index
    %c0_9 = arith.constant 0 : index
    %12 = vector.load %arg5[%c0_8, %c0_9] : memref<1x128xf32, #tpu.memory_space<vmem>>, vector<1x128xf32>
    %13 = vector.broadcast %12 : vector<1x128xf32> to vector<2x128xf32>
    %14 = arith.mulf %11, %13 : vector<2x128xf32>
    %c0_10 = arith.constant 0 : index
    %c0_11 = arith.constant 0 : index
    %15 = vector.load %arg6[%c0_10, %c0_11] : memref<1x128xf32, #tpu.memory_space<vmem>>, vector<1x128xf32>
    %16 = vector.broadcast %15 : vector<1x128xf32> to vector<2x128xf32>
    %17 = arith.addf %14, %16 : vector<2x128xf32>
    %cst_12 = arith.constant 0.000000e+00 : f32
    %18 = vector.broadcast %cst_12 : f32 to vector<2x128xf32>
    %19 = arith.maximumf %17, %18 : vector<2x128xf32>
    %c0_13 = arith.constant 0 : index
    %c0_14 = arith.constant 0 : index
    %20 = vector.load %arg7[%c0_13, %c0_14] : memref<2x128xf32, #tpu.memory_space<vmem>>, vector<2x128xf32>
    tpu.vector_store %arg7[%c0_13, %c0_14], %19 {strides = array<i32>} : memref<2x128xf32, #tpu.memory_space<vmem>>, vector<2x128xf32>,
    return
  }
  func.func @transform_0(%arg0: i32) -> (i32, i32) {
    %c0_i32 = arith.constant 0 : i32
    %c0_i32_0 = arith.constant 0 : i32
    return %arg0, %c0_i32 : i32, i32
  }
  func.func @transform_1(%arg0: i32) -> (i32, i32) {
    %c0_i32 = arith.constant 0 : i32
    %c0_i32_0 = arith.constant 0 : i32
    %c0_i32_1 = arith.constant 0 : i32
    return %c0_i32, %c0_i32_0 : i32, i32
  }
  func.func @transform_2(%arg0: i32) -> (i32, i32) {
    %c0_i32 = arith.constant 0 : i32
    %c0_i32_0 = arith.constant 0 : i32
    %c0_i32_1 = arith.constant 0 : i32
    return %c0_i32, %c0_i32_0 : i32, i32
  }
  func.func @transform_3(%arg0: i32) -> (i32, i32) {
    %c0_i32 = arith.constant 0 : i32
    %c0_i32_0 = arith.constant 0 : i32
    %c0_i32_1 = arith.constant 0 : i32
    return %c0_i32, %c0_i32_0 : i32, i32
  }
  func.func @transform_4(%arg0: i32) -> (i32, i32) {
    %c0_i32 = arith.constant 0 : i32
    %c0_i32_0 = arith.constant 0 : i32
    %c0_i32_1 = arith.constant 0 : i32
    return %c0_i32, %c0_i32_0 : i32, i32
  }
  func.func @transform_5(%arg0: i32) -> (i32, i32) {
    %c0_i32 = arith.constant 0 : i32
    %c0_i32_0 = arith.constant 0 : i32
    %c0_i32_1 = arith.constant 0 : i32
    return %c0_i32, %c0_i32_0 : i32, i32
  }
  func.func @transform_6(%arg0: i32) -> (i32, i32) {
    %c0_i32 = arith.constant 0 : i32
    %c0_i32_0 = arith.constant 0 : i32
    return %arg0, %c0_i32 : i32, i32
  }
}

module attributes {stable_mosaic.version = 11 : i64} {
  func.func @_matmul_kernel(%arg0: i32, %arg1: memref<2x1152xf32, #tpu.memory_space<vmem>>, %arg2: memref<1152x32xbf16, #tpu.memory_space<vmem>>, %arg3: memref<2x32xf32, #tpu.memory_space<vmem>>) attributes {dimension_semantics = [#tpu.dimension_semantics<parallel>], iteration_bounds = array<i64: 1>, scalar_prefetch = 0 : i64, scratch_operands = 0 : i64, tpu.core_type = #tpu.core_type<tc>, window_params = [{transform_indices = @transform_0, window_bounds = array<i64: 2, 1152>}, {pipeline_mode = #tpu.pipeline_mode<synchronous>, transform_indices = @transform_1, window_bounds = array<i64: 1152, 32>}, {transform_indices = @transform_2, window_bounds = array<i64: 2, 32>}]} {
    %c0 = arith.constant 0 : index
    %c0_0 = arith.constant 0 : index
    %0 = vector.load %arg1[%c0, %c0_0] : memref<2x1152xf32, #tpu.memory_space<vmem>>, vector<2x1152xf32>
    %1 = arith.truncf %0 : vector<2x1152xf32> to vector<2x1152xbf16>
    %c0_1 = arith.constant 0 : index
    %c0_2 = arith.constant 0 : index
    %2 = vector.load %arg2[%c0_1, %c0_2] : memref<1152x32xbf16, #tpu.memory_space<vmem>>, vector<1152x32xbf16>
    %cst = arith.constant dense<0.000000e+00> : vector<2x32xf32>
    %3 = tpu.matmul %1, %2, %cst {dimension_numbers = #tpu.dot_dimension_numbers<[1], [0], [0], [1], [0, 0, 1, 1], [], []>} : vector<2x1152xbf16>, vector<1152x32xbf16>, vector<2x32xf32> -> vector<2x32xf32>
    %c0_3 = arith.constant 0 : index
    %c0_4 = arith.constant 0 : index
    %4 = vector.load %arg3[%c0_3, %c0_4] : memref<2x32xf32, #tpu.memory_space<vmem>>, vector<2x32xf32>
    tpu.vector_store %arg3[%c0_3, %c0_4], %3 {strides = array<i32>} : memref<2x32xf32, #tpu.memory_space<vmem>>, vector<2x32xf32>,
    return
  }
  func.func @transform_0(%arg0: i32) -> (i32, i32) {
    %c0_i32 = arith.constant 0 : i32
    %c0_i32_0 = arith.constant 0 : i32
    return %arg0, %c0_i32 : i32, i32
  }
  func.func @transform_1(%arg0: i32) -> (i32, i32) {
    %c0_i32 = arith.constant 0 : i32
    %c0_i32_0 = arith.constant 0 : i32
    %c0_i32_1 = arith.constant 0 : i32
    return %c0_i32, %c0_i32_0 : i32, i32
  }
  func.func @transform_2(%arg0: i32) -> (i32, i32) {
    %c0_i32 = arith.constant 0 : i32
    %c0_i32_0 = arith.constant 0 : i32
    return %arg0, %c0_i32 : i32, i32
  }
}

module attributes {stable_mosaic.version = 11 : i64} {
  func.func @_head_kernel(%arg0: memref<2x1x1664xf32, #tpu.memory_space<vmem>>, %arg1: memref<1x1x1664xf32, #tpu.memory_space<vmem>>, %arg2: memref<1x1x1664xf32, #tpu.memory_space<vmem>>, %arg3: memref<1664x156xbf16, #tpu.memory_space<vmem>>, %arg4: memref<1x156xf32, #tpu.memory_space<vmem>>, %arg5: memref<2x156xf32, #tpu.memory_space<vmem>>) attributes {dimension_semantics = [], scalar_prefetch = 0 : i64, scratch_operands = 0 : i64, tpu.core_type = #tpu.core_type<tc>} {
    %c0 = arith.constant 0 : index
    %c0_0 = arith.constant 0 : index
    %c0_1 = arith.constant 0 : index
    %0 = vector.load %arg0[%c0, %c0_0, %c0_1] : memref<2x1x1664xf32, #tpu.memory_space<vmem>>, vector<2x1x1664xf32>
    %c0_2 = arith.constant 0 : index
    %c0_3 = arith.constant 0 : index
    %c0_4 = arith.constant 0 : index
    %1 = vector.load %arg1[%c0_2, %c0_3, %c0_4] : memref<1x1x1664xf32, #tpu.memory_space<vmem>>, vector<1x1x1664xf32>
    %2 = vector.broadcast %1 : vector<1x1x1664xf32> to vector<2x1x1664xf32>
    %3 = arith.mulf %0, %2 : vector<2x1x1664xf32>
    %c0_5 = arith.constant 0 : index
    %c0_6 = arith.constant 0 : index
    %c0_7 = arith.constant 0 : index
    %4 = vector.load %arg2[%c0_5, %c0_6, %c0_7] : memref<1x1x1664xf32, #tpu.memory_space<vmem>>, vector<1x1x1664xf32>
    %5 = vector.broadcast %4 : vector<1x1x1664xf32> to vector<2x1x1664xf32>
    %6 = arith.addf %3, %5 : vector<2x1x1664xf32>
    %cst = arith.constant 0.000000e+00 : f32
    %7 = vector.broadcast %cst : f32 to vector<2x1x1664xf32>
    %8 = arith.maximumf %6, %7 : vector<2x1x1664xf32>
    %cst_8 = arith.constant dense<0.000000e+00> : vector<2x1664xf32>
    %9 = vector.multi_reduction <add>, %8, %cst_8 [1] : vector<2x1x1664xf32> to vector<2x1664xf32>
    %cst_9 = arith.constant 1.000000e+00 : f32
    %10 = vector.broadcast %cst_9 : f32 to vector<2x1664xf32>
    %11 = arith.divf %9, %10 : vector<2x1664xf32>
    %12 = arith.truncf %11 : vector<2x1664xf32> to vector<2x1664xbf16>
    %c0_10 = arith.constant 0 : index
    %c0_11 = arith.constant 0 : index
    %13 = vector.load %arg3[%c0_10, %c0_11] : memref<1664x156xbf16, #tpu.memory_space<vmem>>, vector<1664x156xbf16>
    %cst_12 = arith.constant dense<0.000000e+00> : vector<2x156xf32>
    %14 = tpu.matmul %12, %13, %cst_12 {dimension_numbers = #tpu.dot_dimension_numbers<[1], [0], [0], [1], [0, 0, 1, 1], [], []>} : vector<2x1664xbf16>, vector<1664x156xbf16>, vector<2x156xf32> -> vector<2x156xf32>
    %c0_13 = arith.constant 0 : index
    %c0_14 = arith.constant 0 : index
    %15 = vector.load %arg4[%c0_13, %c0_14] : memref<1x156xf32, #tpu.memory_space<vmem>>, vector<1x156xf32>
    %16 = vector.broadcast %15 : vector<1x156xf32> to vector<2x156xf32>
    %17 = arith.addf %14, %16 : vector<2x156xf32>
    %cst_15 = arith.constant 0.000000e+00 : f32
    %18 = vector.broadcast %cst_15 : f32 to vector<2x156xf32>
    %19 = arith.subf %18, %17 : vector<2x156xf32>
    %20 = math.exp %19 : vector<2x156xf32>
    %cst_16 = arith.constant 1.000000e+00 : f32
    %21 = vector.broadcast %cst_16 : f32 to vector<2x156xf32>
    %22 = arith.addf %21, %20 : vector<2x156xf32>
    %cst_17 = arith.constant 1.000000e+00 : f32
    %23 = vector.broadcast %cst_17 : f32 to vector<2x156xf32>
    %24 = arith.divf %23, %22 : vector<2x156xf32>
    %c0_18 = arith.constant 0 : index
    %c0_19 = arith.constant 0 : index
    %25 = vector.load %arg5[%c0_18, %c0_19] : memref<2x156xf32, #tpu.memory_space<vmem>>, vector<2x156xf32>
    tpu.vector_store %arg5[%c0_18, %c0_19], %24 {strides = array<i32>} : memref<2x156xf32, #tpu.memory_space<vmem>>, vector<2x156xf32>,
    return
  }
}

</mosaic_0001>

<bundles_post_ra>
// kernel: densenet169_forward.202
= control target key start
LH: loop header
LB: loop body
LE: loop exit
PB: predicated region body
PF: predicated region fallthrough
CT: control target
= control target key end

     0   :  { %s909_s15 = smov 0   ;;  %s1202_s0 = inlined_call_operand.vmem [shape: f32[512,147], index: 0, kind: input, shape index: {}]   ;;  %s1203_s1 = inlined_call_operand.vmem [shape: bf16[147,64], index: 1, kind: input, shape index: {}]   ;;  %s1204_s2 = inlined_call_operand.vmem [shape: f32[1,64], index: 2, kind: input, shape index: {}]   ;;  %s1205_s3 = inlined_call_operand.vmem [shape: f32[1,64], index: 3, kind: input, shape index: {}]   ;;  %s1206_s4 = inlined_call_operand.vmem [shape: f32[512,64], index: 4, kind: output, shape index: {}]  }
   0x1 LB: > { %s793_s16 = sadd.s32 4294967295, %s880_s15   ;;  %p797_p0 = scmp.ge.s32.totalorder %s880_s15, 1  ;;  %s880_s15 = sphi %s909_s15, %s14_s15  }
   0x2   : > { %p164_p1 = scmp.lt.s32.totalorder %s880_s15, 3 }
   0x4   : > { %p165_p2 = pnand %p797_p0, %p164_p1 }
   0x5   : > { %s798_s23 = sshll.u32 (!%p165_p2), %s793_s16, 5 }
   0x6   : > { %168 = sbr.rel (%p165_p2) target bundleno = 312 (0x138), region = 36  ;;  %p192_p3 = scmp.lt.s32.totalorder (!%p165_p2), %s798_s23, 63 }
   0xb   : > { %v864_v0 = vld [vmem:[%s1203_s1 + $0x38] sm:$0xff]   ;;  %v882_v1 = vmov 0   ;;  %v865_v2 = vld [vmem:[%s1203_s1 + $0x30] sm:$0xff]   ;;  %v866_v3 = vld [vmem:[%s1203_s1 + $0x28] sm:$0xff]   ;;  %s1208_s23 = smov (!%p192_p3, %s798_s23), 63  ;;  %vm377_vm0 = vcmask 154624  }
   0xc   : > { %433 = vmatprep.subr.bf16.mxu0 %v882_v1  ;;  %834 = vmatprep.subr.bf16.mxu1 %v882_v1  ;;  %v867_v4 = vld [vmem:[%s1203_s1 + $0x20] sm:$0xff]   ;;  %s833_s26 = sshll.u32 %s1208_s23, 4  ;;  %v868_v8 = vld [vmem:[%s1203_s1 + $0x18] sm:$0xff]   ;;  %v869_v12 = vld [vmem:[%s1203_s1 + $0x10] sm:$0xff]   ;;  %vm426_vm1 = vcmask 1040384   ;;  %vm427_vm2 = vcmask 1041408  }
   0xd   : > { %434 = vmatpush1.bf16.msra.mxu0 %v864_v0  ;;  %844 = vmatpush1.bf16.msra.mxu1 %v864_v0  ;;  %s943_s29 = scalar_lea.vmem %s1202_s0, %s833_s26  ;;  %v870_v13 = vld [vmem:[%s1203_s1 + $0x8] sm:$0xff]   ;;  %v883_v14 = vmov 65535   ;;  %v871_v16 = vld [vmem:[%s1203_s1] sm:$0xff]   ;;  %s802_s21 = sshll.u32 %s1208_s23, 3  ;;  %vm704_vm3 = vcmask 523264  }
   0xe   : > { %435 = vmatprep.subr.bf16.mxu0 %v882_v1  ;;  %835 = vmatprep.subr.bf16.mxu1 %v882_v1  ;;  %v206_v5 = vld [vmem:[%s943_s29 + $0x8] sm:$0xff]  ;;  %v208_v6 = vld [vmem:[%s943_s29 + $0x18] sm:$0xff]  ;;  %v428_v15 = vsel %vm426_vm1, 4294967295, %v883_v14  ;;  %v873_v20 = vld [vmem:[%s1203_s1 + $0x40] sm:$0xff]   ;;  %s1073_s25 = scalar_lea.vmem %s1206_s4, %s802_s21 }
   0xf   : > { %v238_v7 = vld [vmem:[%s943_s29 + $0x108] sm:$0xff]  ;;  %v270_v9 = vpack.c.bf16 %v208_v6, %v206_v5  ;;  %v240_v10 = vld [vmem:[%s943_s29 + $0x118] sm:$0xff]  ;;  %v429_v18 = vsel %vm427_vm2, %v428_v15, 0  ;;  %v205_v21 = vld [vmem:[%s943_s29] sm:$0xff] }
  0x10   : > { %v286_v11 = vpack.c.bf16 %v240_v10, %v238_v7  ;;  %v872_v17 = vld [vmem:[%s1203_s1 + $0x48] ss:$0 sps:$4 sm:$0x33]   ;;  %v207_v22 = vld [vmem:[%s943_s29 + $0x10] sm:$0xff]  ;;  %v237_v23 = vld [vmem:[%s943_s29 + $0x100] sm:$0xff] }
  0x11   : > { %436 = vmatpush1.bf16.msra.mxu0 %v865_v2  ;;  %845 = vmatpush1.bf16.msra.mxu1 %v865_v2  ;;  %v431_v19 = vand.u32 %v872_v17, %v429_v18  ;;  %v239_v24 = vld [vmem:[%s943_s29 + $0x110] sm:$0xff]  ;;  %v210_v25 = vld [vmem:[%s943_s29 + $0x28] sm:$0xff]  ;;  %v212_v26 = vld [vmem:[%s943_s29 + $0x38] sm:$0xff]  ;;  %v269_v29 = vpack.c.bf16 %v207_v22, %v205_v21 }
  0x12   : > { %437 = vmatprep.subr.bf16.mxu0 %v882_v1  ;;  %836 = vmatprep.subr.bf16.mxu1 %v882_v1  ;;  %v242_v27 = vld [vmem:[%s943_s29 + $0x128] sm:$0xff]  ;;  %v244_v28 = vld [vmem:[%s943_s29 + $0x138] sm:$0xff]  ;;  %v285_v30 = vpack.c.bf16 %v239_v24, %v237_v23  ;;  %v272_v31 = vpack.c.bf16 %v212_v26, %v210_v25  ;;  %v209_v33 = vld [vmem:[%s943_s29 + $0x20] sm:$0xff] }
  0x13   : > { %813 = vmatprep.mubr.msk.bf16.mxu0 %vm377_vm0, %v270_v9  ;;  %821 = vmatprep.mubr.msk.bf16.mxu1 %vm377_vm0, %v286_v11  ;;  %v288_v32 = vpack.c.bf16 %v244_v28, %v242_v27  ;;  %v211_v34 = vld [vmem:[%s943_s29 + $0x30] sm:$0xff]  ;;  %v241_v35 = vld [vmem:[%s943_s29 + $0x120] sm:$0xff]  ;;  %v214_v37 = vld [vmem:[%s943_s29 + $0x48] sm:$0xff] }
  0x14   : > { %v243_v36 = vld [vmem:[%s943_s29 + $0x130] sm:$0xff]  ;;  %v216_v38 = vld [vmem:[%s943_s29 + $0x58] sm:$0xff]  ;;  %v246_v39 = vld [vmem:[%s943_s29 + $0x148] sm:$0xff]  ;;  %v271_v41 = vpack.c.bf16 %v211_v34, %v209_v33 }
  0x15   : > { %438 = vmatpush1.bf16.msra.mxu0 %v866_v3  ;;  %846 = vmatpush1.bf16.msra.mxu1 %v866_v3  ;;  %v248_v40 = vld [vmem:[%s943_s29 + $0x158] sm:$0xff]  ;;  %v287_v42 = vpack.c.bf16 %v243_v36, %v241_v35  ;;  %v274_v43 = vpack.c.bf16 %v216_v38, %v214_v37  ;;  %v213_v45 = vld [vmem:[%s943_s29 + $0x40] sm:$0xff]  ;;  %v215_v46 = vld [vmem:[%s943_s29 + $0x50] sm:$0xff] }
  0x16   : > { %439 = vmatprep.subr.bf16.mxu0 %v882_v1  ;;  %837 = vmatprep.subr.bf16.mxu1 %v882_v1  ;;  %v290_v44 = vpack.c.bf16 %v248_v40, %v246_v39  ;;  %v245_v47 = vld [vmem:[%s943_s29 + $0x140] sm:$0xff]  ;;  %v247_v48 = vld [vmem:[%s943_s29 + $0x150] sm:$0xff]  ;;  %v218_v49 = vld [vmem:[%s943_s29 + $0x68] sm:$0xff]  ;;  %v273_v53 = vpack.c.bf16 %v215_v46, %v213_v45 }
  0x17   : > { %v220_v50 = vld [vmem:[%s943_s29 + $0x78] sm:$0xff]  ;;  %v250_v51 = vld [vmem:[%s943_s29 + $0x168] sm:$0xff]  ;;  %v289_v54 = vpack.c.bf16 %v247_v48, %v245_v47  ;;  %v217_v57 = vld [vmem:[%s943_s29 + $0x60] sm:$0xff] }
  0x18   : > { %v252_v52 = vld [vmem:[%s943_s29 + $0x178] sm:$0xff]  ;;  %v276_v55 = vpack.c.bf16 %v220_v50, %v218_v49  ;;  %v219_v58 = vld [vmem:[%s943_s29 + $0x70] sm:$0xff]  ;;  %v249_v59 = vld [vmem:[%s943_s29 + $0x160] sm:$0xff] }
  0x19   : > { %440 = vmatpush1.bf16.msra.mxu0 %v867_v4  ;;  %847 = vmatpush1.bf16.msra.mxu1 %v867_v4  ;;  %v292_v56 = vpack.c.bf16 %v252_v52, %v250_v51  ;;  %v251_v60 = vld [vmem:[%s943_s29 + $0x170] sm:$0xff]  ;;  %v222_v61 = vld [vmem:[%s943_s29 + $0x88] sm:$0xff]  ;;  %v224_v62 = vld [vmem:[%s943_s29 + $0x98] sm:$0xff] }
  0x1a   : > { %441 = vmatprep.subr.bf16.mxu0 %v882_v1  ;;  %838 = vmatprep.subr.bf16.mxu1 %v882_v1  ;;  %v254_v63 = vld [vmem:[%s943_s29 + $0x188] sm:$0xff]  ;;  %v256_v0 = vld [vmem:[%s943_s29 + $0x198] sm:$0xff]  ;;  %v291_v2 = vpack.c.bf16 %v251_v60, %v249_v59  ;;  %v278_v3 = vpack.c.bf16 %v224_v62, %v222_v61  ;;  %v221_v5 = vld [vmem:[%s943_s29 + $0x80] sm:$0xff] }
  0x1b   : > { %v294_v4 = vpack.c.bf16 %v256_v0, %v254_v63  ;;  %v223_v6 = vld [vmem:[%s943_s29 + $0x90] sm:$0xff]  ;;  %v253_v7 = vld [vmem:[%s943_s29 + $0x180] sm:$0xff]  ;;  %v226_v9 = vld [vmem:[%s943_s29 + $0xa8] sm:$0xff] }
  0x1c   : > { %v228_v10 = vld [vmem:[%s943_s29 + $0xb8] sm:$0xff]  ;;  %v258_v11 = vld [vmem:[%s943_s29 + $0x1a8] sm:$0xff]  ;;  %v225_v17 = vld [vmem:[%s943_s29 + $0xa0] sm:$0xff] }
  0x1d   : > { %442 = vmatpush1.bf16.msra.mxu0 %v868_v8  ;;  %848 = vmatpush1.bf16.msra.mxu1 %v868_v8  ;;  %v255_v8 = vld [vmem:[%s943_s29 + $0x190] sm:$0xff]  ;;  %v280_v15 = vpack.c.bf16 %v228_v10, %v226_v9  ;;  %v230_v21 = vld [vmem:[%s943_s29 + $0xc8] sm:$0xff]  ;;  %v232_v22 = vld [vmem:[%s943_s29 + $0xd8] sm:$0xff] }
  0x1e   : > { %443 = vmatprep.subr.bf16.mxu0 %v882_v1  ;;  %839 = vmatprep.subr.bf16.mxu1 %v882_v1  ;;  %v293_v14 = vpack.c.bf16 %v255_v8, %v253_v7  ;;  %v227_v18 = vld [vmem:[%s943_s29 + $0xb0] sm:$0xff]  ;;  %v262_v23 = vld [vmem:[%s943_s29 + $0x1c8] sm:$0xff]  ;;  %v264_v24 = vld [vmem:[%s943_s29 + $0x1d8] sm:$0xff]  ;;  %v282_v27 = vpack.c.bf16 %v232_v22, %v230_v21 }
  0x1f   : > { %v279_v25 = vpack.c.bf16 %v227_v18, %v225_v17  ;;  %v298_v28 = vpack.c.bf16 %v264_v24, %v262_v23  ;;  %v234_v33 = vld [vmem:[%s943_s29 + $0xe8] sm:$0xff]  ;;  %v236_v34 = vld [vmem:[%s943_s29 + $0xf8] sm:$0xff]  ;;  %v1058_v47 = vld [vmem:[%s1204_s2] ss:$0 sm:$0xff] }
  0x20   : > { %v266_v35 = vld [vmem:[%s943_s29 + $0x1e8] sm:$0xff]  ;;  %v268_v36 = vld [vmem:[%s943_s29 + $0x1f8] sm:$0xff]  ;;  %v284_v39 = vpack.c.bf16 %v236_v34, %v234_v33  ;;  %v1063_v49 = vld [vmem:[%s1205_s3] ss:$0 sm:$0xff] }
  0x21   : > { %444 = vmatpush1.bf16.msra.mxu0 %v869_v12  ;;  %849 = vmatpush1.bf16.msra.mxu1 %v869_v12  ;;  %v260_v12 = vld [vmem:[%s943_s29 + $0x1b8] sm:$0xff]  ;;  %v300_v40 = vpack.c.bf16 %v268_v36, %v266_v35 }
  0x22   : > { %445 = vmatprep.subr.bf16.mxu0 %v882_v1  ;;  %840 = vmatprep.subr.bf16.mxu1 %v882_v1 }
  0x25   : > { %446 = vmatpush1.bf16.msra.mxu0 %v870_v13  ;;  %850 = vmatpush1.bf16.msra.mxu1 %v870_v13  ;;  %v277_v13 = vpack.c.bf16 %v223_v6, %v221_v5 }
  0x26   : > { %447 = vmatprep.subr.bf16.mxu0 %v882_v1  ;;  %841 = vmatprep.subr.bf16.mxu1 %v882_v1 }
  0x29   : > { %448 = vmatpush1.bf16.msra.mxu0 %v871_v16  ;;  %851 = vmatpush1.bf16.msra.mxu1 %v871_v16  ;;  %v296_v16 = vpack.c.bf16 %v260_v12, %v258_v11 }
  0x2a   : > { %461 = vmatprep.subr.bf16.mxu0 %v882_v1  ;;  %842 = vmatprep.subr.bf16.mxu1 %v882_v1 }
  0x2d   : > { %462 = vmatpush2.bf16.msra.mxu0 %v431_v19  ;;  %852 = vmatpush2.bf16.msra.mxu1 %v431_v19  ;;  %v257_v19 = vld [vmem:[%s943_s29 + $0x1a0] sm:$0xff] }
  0x2e   : > { %463 = vmatprep.subr.bf16.mxu0 %v882_v1  ;;  %843 = vmatprep.subr.bf16.mxu1 %v882_v1  ;;  %v275_v1 = vpack.c.bf16 %v219_v58, %v217_v57 }
  0x31   : > { %464 = vmatpush2.bf16.msra.mxu0 %v873_v20  ;;  %853 = vmatpush2.bf16.msra.mxu1 %v873_v20  ;;  %v259_v20 = vld [vmem:[%s943_s29 + $0x1b0] sm:$0xff] }
  0x32   : > { %v295_v26 = vpack.c.bf16 %v259_v20, %v257_v19 }
  0x34   : > { %466 = vmatmul.mubr.bf16.vlgmr.msra.gmra.mxu0 %v269_v29  ;;  %530 = vmatmul.mubr.bf16.vlgmr.msra.gmra.mxu1 %v285_v30  ;;  %v229_v29 = vld [vmem:[%s943_s29 + $0xc0] sm:$0xff]  ;;  %v231_v30 = vld [vmem:[%s943_s29 + $0xd0] sm:$0xff] }
  0x35   : > { %814 = vmatprep.mubr.msk.bf16.mxu0 %vm377_vm0, %v272_v31  ;;  %822 = vmatprep.mubr.msk.bf16.mxu1 %vm377_vm0, %v288_v32  ;;  %v261_v31 = vld [vmem:[%s943_s29 + $0x1c0] sm:$0xff]  ;;  %v263_v32 = vld [vmem:[%s943_s29 + $0x1d0] sm:$0xff]  ;;  %v281_v37 = vpack.c.bf16 %v231_v30, %v229_v29 }
  0x36   : > { %v297_v38 = vpack.c.bf16 %v263_v32, %v261_v31 }
  0x3c   : > { %474 = vmatmul.mubr.bf16.gmra.mxu0 %v271_v41  ;;  %538 = vmatmul.mubr.bf16.gmra.mxu1 %v287_v42  ;;  %v233_v41 = vld [vmem:[%s943_s29 + $0xe0] sm:$0xff]  ;;  %v235_v42 = vld [vmem:[%s943_s29 + $0xf0] sm:$0xff] }
  0x3d   : > { %815 = vmatprep.mubr.msk.bf16.mxu0 %vm377_vm0, %v274_v43  ;;  %823 = vmatprep.mubr.msk.bf16.mxu1 %vm377_vm0, %v290_v44  ;;  %v265_v43 = vld [vmem:[%s943_s29 + $0x1e0] sm:$0xff]  ;;  %v267_v44 = vld [vmem:[%s943_s29 + $0x1f0] sm:$0xff]  ;;  %v283_v45 = vpack.c.bf16 %v235_v42, %v233_v41 }
  0x3e   : > { %v299_v46 = vpack.c.bf16 %v267_v44, %v265_v43 }
  0x44   : > { %482 = vmatmul.mubr.bf16.gmra.mxu0 %v273_v53  ;;  %546 = vmatmul.mubr.bf16.gmra.mxu1 %v289_v54 }
  0x45   : > { %816 = vmatprep.mubr.msk.bf16.mxu0 %vm377_vm0, %v276_v55  ;;  %824 = vmatprep.mubr.msk.bf16.mxu1 %vm377_vm0, %v292_v56 }
  0x4c   : > { %490 = vmatmul.mubr.bf16.gmra.mxu0 %v275_v1  ;;  %554 = vmatmul.mubr.bf16.gmra.mxu1 %v291_v2 }
  0x4d   : > { %817 = vmatprep.mubr.msk.bf16.mxu0 %vm377_vm0, %v278_v3  ;;  %825 = vmatprep.mubr.msk.bf16.mxu1 %vm377_vm0, %v294_v4 }
  0x54   : > { %498 = vmatmul.mubr.bf16.gmra.mxu0 %v277_v13  ;;  %562 = vmatmul.mubr.bf16.gmra.mxu1 %v293_v14 }
  0x55   : > { %818 = vmatprep.mubr.msk.bf16.mxu0 %vm377_vm0, %v280_v15  ;;  %826 = vmatprep.mubr.msk.bf16.mxu1 %vm377_vm0, %v296_v16 }
  0x5c   : > { %506 = vmatmul.mubr.bf16.gmra.mxu0 %v279_v25  ;;  %570 = vmatmul.mubr.bf16.gmra.mxu1 %v295_v26 }
  0x5d   : > { %819 = vmatprep.mubr.msk.bf16.mxu0 %vm377_vm0, %v282_v27  ;;  %827 = vmatprep.mubr.msk.bf16.mxu1 %vm377_vm0, %v298_v28 }
  0x64   : > { %514 = vmatmul.mubr.bf16.gmra.mxu0 %v281_v37  ;;  %578 = vmatmul.mubr.bf16.gmra.mxu1 %v297_v38 }
  0x65   : > { %820 = vmatprep.mubr.msk.bf16.mxu0 %vm377_vm0, %v284_v39  ;;  %828 = vmatprep.mubr.msk.bf16.mxu1 %vm377_vm0, %v300_v40 }
  0x6c   : > { %522 = vmatmul.mubr.bf16.gmra.mxu0 %v283_v45  ;;  %586 = vmatmul.mubr.bf16.gmra.mxu1 %v299_v46 }
  0xf4   : > { %v467_v48 = vpop.f32.mrf.mxu0  ;;  %v531_v50 = vpop.f32.mrf.mxu1 }
  0xf5   : > { %v601_v51 = vmul.f32 %v1058_v47, %v467_v48  ;;  %v617_v52 = vmul.f32 %v1058_v47, %v531_v50 }
  0xf6   : > { %v469_v53 = vpop.f32.mrf.mxu0  ;;  %v533_v54 = vpop.f32.mrf.mxu1 }
  0xf7   : > { %v640_v55 = vadd.f32 %v1063_v49, %v601_v51  ;;  %v656_v56 = vadd.f32 %v1063_v49, %v617_v52 }
  0xf8   : > { %v470_v57 = vpop.f32.mrf.mxu0  ;;  %v534_v58 = vpop.f32.mrf.mxu1 }
  0xf9   : > { %v672_v59 = vmax.f32 %v640_v55, 0.0  ;;  %v688_v60 = vmax.f32 %v656_v56, 0.0  ;;  %v602_v61 = vmul.f32 %v1058_v47, %v470_v57  ;;  %v618_v62 = vmul.f32 %v1058_v47, %v534_v58 }
  0xfa   : > { %v472_v63 = vpop.f32.mrf.mxu0  ;;  %v536_v0 = vpop.f32.mrf.mxu1 }
  0xfb   : > { %705 = vst.msk [vmem:[%s1073_s25] sm:$0xff] %vm704_vm3, %v672_v59  ;;  %721 = vst.msk [vmem:[%s1073_s25 + $0x80] sm:$0xff] %vm704_vm3, %v688_v60  ;;  %v641_v1 = vadd.f32 %v1063_v49, %v602_v61  ;;  %v657_v2 = vadd.f32 %v1063_v49, %v618_v62 }
  0xfc   : > { %v475_v3 = vpop.f32.mrf.mxu0  ;;  %v539_v4 = vpop.f32.mrf.mxu1 }
  0xfd   : > { %v673_v5 = vmax.f32 %v641_v1, 0.0  ;;  %v689_v6 = vmax.f32 %v657_v2, 0.0  ;;  %v603_v7 = vmul.f32 %v1058_v47, %v475_v3  ;;  %v619_v8 = vmul.f32 %v1058_v47, %v539_v4 }
  0xfe   : > { %v477_v9 = vpop.f32.mrf.mxu0  ;;  %v541_v10 = vpop.f32.mrf.mxu1 }
  0xff   : > { %706 = vst.msk [vmem:[%s1073_s25 + $0x8] sm:$0xff] %vm704_vm3, %v673_v5  ;;  %722 = vst.msk [vmem:[%s1073_s25 + $0x88] sm:$0xff] %vm704_vm3, %v689_v6  ;;  %v642_v11 = vadd.f32 %v1063_v49, %v603_v7  ;;  %v658_v12 = vadd.f32 %v1063_v49, %v619_v8 }
 0x100   : > { %v478_v13 = vpop.f32.mrf.mxu0  ;;  %v542_v14 = vpop.f32.mrf.mxu1 }
 0x101   : > { %v674_v15 = vmax.f32 %v642_v11, 0.0  ;;  %v690_v16 = vmax.f32 %v658_v12, 0.0  ;;  %v604_v17 = vmul.f32 %v1058_v47, %v478_v13  ;;  %v620_v18 = vmul.f32 %v1058_v47, %v542_v14 }
 0x102   : > { %v480_v19 = vpop.f32.mrf.mxu0  ;;  %v544_v20 = vpop.f32.mrf.mxu1 }
 0x103   : > { %707 = vst.msk [vmem:[%s1073_s25 + $0x10] sm:$0xff] %vm704_vm3, %v674_v15  ;;  %723 = vst.msk [vmem:[%s1073_s25 + $0x90] sm:$0xff] %vm704_vm3, %v690_v16  ;;  %v643_v21 = vadd.f32 %v1063_v49, %v604_v17  ;;  %v659_v22 = vadd.f32 %v1063_v49, %v620_v18 }
 0x104   : > { %v483_v23 = vpop.f32.mrf.mxu0  ;;  %v547_v24 = vpop.f32.mrf.mxu1 }
 0x105   : > { %v675_v25 = vmax.f32 %v643_v21, 0.0  ;;  %v691_v26 = vmax.f32 %v659_v22, 0.0  ;;  %v605_v27 = vmul.f32 %v1058_v47, %v483_v23  ;;  %v621_v28 = vmul.f32 %v1058_v47, %v547_v24 }
 0x106   : > { %v485_v29 = vpop.f32.mrf.mxu0  ;;  %v549_v30 = vpop.f32.mrf.mxu1 }
 0x107   : > { %708 = vst.msk [vmem:[%s1073_s25 + $0x18] sm:$0xff] %vm704_vm3, %v675_v25  ;;  %724 = vst.msk [vmem:[%s1073_s25 + $0x98] sm:$0xff] %vm704_vm3, %v691_v26  ;;  %v644_v31 = vadd.f32 %v1063_v49, %v605_v27  ;;  %v660_v32 = vadd.f32 %v1063_v49, %v621_v28 }
 0x108   : > { %v486_v33 = vpop.f32.mrf.mxu0  ;;  %v550_v34 = vpop.f32.mrf.mxu1 }
 0x109   : > { %v676_v35 = vmax.f32 %v644_v31, 0.0  ;;  %v692_v36 = vmax.f32 %v660_v32, 0.0  ;;  %v606_v37 = vmul.f32 %v1058_v47, %v486_v33  ;;  %v622_v38 = vmul.f32 %v1058_v47, %v550_v34 }
 0x10a   : > { %v488_v39 = vpop.f32.mrf.mxu0  ;;  %v552_v40 = vpop.f32.mrf.mxu1 }
 0x10b   : > { %709 = vst.msk [vmem:[%s1073_s25 + $0x20] sm:$0xff] %vm704_vm3, %v676_v35  ;;  %725 = vst.msk [vmem:[%s1073_s25 + $0xa0] sm:$0xff] %vm704_vm3, %v692_v36  ;;  %v645_v41 = vadd.f32 %v1063_v49, %v606_v37  ;;  %v661_v42 = vadd.f32 %v1063_v49, %v622_v38 }
 0x10c   : > { %v491_v43 = vpop.f32.mrf.mxu0  ;;  %v555_v44 = vpop.f32.mrf.mxu1 }
 0x10d   : > { %v677_v45 = vmax.f32 %v645_v41, 0.0  ;;  %v693_v46 = vmax.f32 %v661_v42, 0.0  ;;  %v607_v48 = vmul.f32 %v1058_v47, %v491_v43  ;;  %v623_v50 = vmul.f32 %v1058_v47, %v555_v44 }
 0x10e   : > { %v493_v51 = vpop.f32.mrf.mxu0  ;;  %v557_v52 = vpop.f32.mrf.mxu1 }
 0x10f   : > { %710 = vst.msk [vmem:[%s1073_s25 + $0x28] sm:$0xff] %vm704_vm3, %v677_v45  ;;  %726 = vst.msk [vmem:[%s1073_s25 + $0xa8] sm:$0xff] %vm704_vm3, %v693_v46  ;;  %v646_v53 = vadd.f32 %v1063_v49, %v607_v48  ;;  %v662_v54 = vadd.f32 %v1063_v49, %v623_v50 }
 0x110   : > { %v494_v55 = vpop.f32.mrf.mxu0  ;;  %v558_v56 = vpop.f32.mrf.mxu1 }
 0x111   : > { %v678_v57 = vmax.f32 %v646_v53, 0.0  ;;  %v694_v58 = vmax.f32 %v662_v54, 0.0  ;;  %v608_v59 = vmul.f32 %v1058_v47, %v494_v55  ;;  %v624_v60 = vmul.f32 %v1058_v47, %v558_v56 }
 0x112   : > { %v496_v61 = vpop.f32.mrf.mxu0  ;;  %v560_v62 = vpop.f32.mrf.mxu1 }
 0x113   : > { %711 = vst.msk [vmem:[%s1073_s25 + $0x30] sm:$0xff] %vm704_vm3, %v678_v57  ;;  %727 = vst.msk [vmem:[%s1073_s25 + $0xb0] sm:$0xff] %vm704_vm3, %v694_v58  ;;  %v647_v63 = vadd.f32 %v1063_v49, %v608_v59  ;;  %v663_v0 = vadd.f32 %v1063_v49, %v624_v60 }
 0x114   : > { %v499_v1 = vpop.f32.mrf.mxu0  ;;  %v563_v2 = vpop.f32.mrf.mxu1 }
 0x115   : > { %v679_v3 = vmax.f32 %v647_v63, 0.0  ;;  %v695_v4 = vmax.f32 %v663_v0, 0.0  ;;  %v609_v5 = vmul.f32 %v1058_v47, %v499_v1  ;;  %v625_v6 = vmul.f32 %v1058_v47, %v563_v2 }
 0x116   : > { %v501_v7 = vpop.f32.mrf.mxu0  ;;  %v565_v8 = vpop.f32.mrf.mxu1 }
 0x117   : > { %712 = vst.msk [vmem:[%s1073_s25 + $0x38] sm:$0xff] %vm704_vm3, %v679_v3  ;;  %728 = vst.msk [vmem:[%s1073_s25 + $0xb8] sm:$0xff] %vm704_vm3, %v695_v4  ;;  %v648_v9 = vadd.f32 %v1063_v49, %v609_v5  ;;  %v664_v10 = vadd.f32 %v1063_v49, %v625_v6 }
 0x118   : > { %v502_v11 = vpop.f32.mrf.mxu0  ;;  %v566_v12 = vpop.f32.mrf.mxu1 }
 0x119   : > { %v680_v13 = vmax.f32 %v648_v9, 0.0  ;;  %v696_v14 = vmax.f32 %v664_v10, 0.0  ;;  %v610_v15 = vmul.f32 %v1058_v47, %v502_v11  ;;  %v626_v16 = vmul.f32 %v1058_v47, %v566_v12 }
 0x11a   : > { %v504_v17 = vpop.f32.mrf.mxu0  ;;  %v568_v18 = vpop.f32.mrf.mxu1 }
 0x11b   : > { %713 = vst.msk [vmem:[%s1073_s25 + $0x40] sm:$0xff] %vm704_vm3, %v680_v13  ;;  %729 = vst.msk [vmem:[%s1073_s25 + $0xc0] sm:$0xff] %vm704_vm3, %v696_v14  ;;  %v649_v19 = vadd.f32 %v1063_v49, %v610_v15  ;;  %v665_v20 = vadd.f32 %v1063_v49, %v626_v16 }
 0x11c   : > { %v507_v21 = vpop.f32.mrf.mxu0  ;;  %v571_v22 = vpop.f32.mrf.mxu1 }
 0x11d   : > { %v681_v23 = vmax.f32 %v649_v19, 0.0  ;;  %v697_v24 = vmax.f32 %v665_v20, 0.0  ;;  %v611_v25 = vmul.f32 %v1058_v47, %v507_v21  ;;  %v627_v26 = vmul.f32 %v1058_v47, %v571_v22 }
 0x11e   : > { %v509_v27 = vpop.f32.mrf.mxu0  ;;  %v573_v28 = vpop.f32.mrf.mxu1 }
 0x11f   : > { %714 = vst.msk [vmem:[%s1073_s25 + $0x48] sm:$0xff] %vm704_vm3, %v681_v23  ;;  %730 = vst.msk [vmem:[%s1073_s25 + $0xc8] sm:$0xff] %vm704_vm3, %v697_v24  ;;  %v650_v29 = vadd.f32 %v1063_v49, %v611_v25  ;;  %v666_v30 = vadd.f32 %v1063_v49, %v627_v26 }
 0x120   : > { %v510_v31 = vpop.f32.mrf.mxu0  ;;  %v574_v32 = vpop.f32.mrf.mxu1 }
 0x121   : > { %v682_v33 = vmax.f32 %v650_v29, 0.0  ;;  %v698_v34 = vmax.f32 %v666_v30, 0.0  ;;  %v612_v35 = vmul.f32 %v1058_v47, %v510_v31  ;;  %v628_v36 = vmul.f32 %v1058_v47, %v574_v32 }
 0x122   : > { %v512_v37 = vpop.f32.mrf.mxu0  ;;  %v576_v38 = vpop.f32.mrf.mxu1 }
 0x123   : > { %715 = vst.msk [vmem:[%s1073_s25 + $0x50] sm:$0xff] %vm704_vm3, %v682_v33  ;;  %731 = vst.msk [vmem:[%s1073_s25 + $0xd0] sm:$0xff] %vm704_vm3, %v698_v34  ;;  %v651_v39 = vadd.f32 %v1063_v49, %v612_v35  ;;  %v667_v40 = vadd.f32 %v1063_v49, %v628_v36 }
 0x124   : > { %v515_v41 = vpop.f32.mrf.mxu0  ;;  %v579_v42 = vpop.f32.mrf.mxu1 }
 0x125   : > { %v683_v43 = vmax.f32 %v651_v39, 0.0  ;;  %v699_v44 = vmax.f32 %v667_v40, 0.0  ;;  %v613_v45 = vmul.f32 %v1058_v47, %v515_v41  ;;  %v629_v46 = vmul.f32 %v1058_v47, %v579_v42 }
 0x126   : > { %v517_v48 = vpop.f32.mrf.mxu0  ;;  %v581_v50 = vpop.f32.mrf.mxu1 }
 0x127   : > { %716 = vst.msk [vmem:[%s1073_s25 + $0x58] sm:$0xff] %vm704_vm3, %v683_v43  ;;  %732 = vst.msk [vmem:[%s1073_s25 + $0xd8] sm:$0xff] %vm704_vm3, %v699_v44  ;;  %v652_v51 = vadd.f32 %v1063_v49, %v613_v45  ;;  %v668_v52 = vadd.f32 %v1063_v49, %v629_v46 }
 0x128   : > { %v518_v53 = vpop.f32.mrf.mxu0  ;;  %v582_v54 = vpop.f32.mrf.mxu1 }
 0x129   : > { %v684_v55 = vmax.f32 %v652_v51, 0.0  ;;  %v700_v56 = vmax.f32 %v668_v52, 0.0  ;;  %v614_v57 = vmul.f32 %v1058_v47, %v518_v53  ;;  %v630_v58 = vmul.f32 %v1058_v47, %v582_v54 }
 0x12a   : > { %v520_v59 = vpop.f32.mrf.mxu0  ;;  %v584_v60 = vpop.f32.mrf.mxu1 }
 0x12b   : > { %717 = vst.msk [vmem:[%s1073_s25 + $0x60] sm:$0xff] %vm704_vm3, %v684_v55  ;;  %733 = vst.msk [vmem:[%s1073_s25 + $0xe0] sm:$0xff] %vm704_vm3, %v700_v56  ;;  %v653_v61 = vadd.f32 %v1063_v49, %v614_v57  ;;  %v669_v62 = vadd.f32 %v1063_v49, %v630_v58 }
 0x12c   : > { %v523_v63 = vpop.f32.mrf.mxu0  ;;  %v587_v0 = vpop.f32.mrf.mxu1 }
 0x12d   : > { %v685_v1 = vmax.f32 %v653_v61, 0.0  ;;  %v701_v2 = vmax.f32 %v669_v62, 0.0  ;;  %v615_v3 = vmul.f32 %v1058_v47, %v523_v63  ;;  %v631_v4 = vmul.f32 %v1058_v47, %v587_v0 }
 0x12e   : > { %v525_v5 = vpop.f32.mrf.mxu0  ;;  %v589_v6 = vpop.f32.mrf.mxu1 }
 0x12f   : > { %718 = vst.msk [vmem:[%s1073_s25 + $0x68] sm:$0xff] %vm704_vm3, %v685_v1  ;;  %734 = vst.msk [vmem:[%s1073_s25 + $0xe8] sm:$0xff] %vm704_vm3, %v701_v2  ;;  %v654_v7 = vadd.f32 %v1063_v49, %v615_v3  ;;  %v670_v8 = vadd.f32 %v1063_v49, %v631_v4 }
 0x130   : > { %v526_v9 = vpop.f32.mrf.mxu0  ;;  %v590_v10 = vpop.f32.mrf.mxu1 }
 0x131   : > { %v686_v11 = vmax.f32 %v654_v7, 0.0  ;;  %v702_v12 = vmax.f32 %v670_v8, 0.0  ;;  %v616_v13 = vmul.f32 %v1058_v47, %v526_v9  ;;  %v632_v14 = vmul.f32 %v1058_v47, %v590_v10 }
 0x132   : > { %v528_v15 = vpop.f32.mrf.mxu0  ;;  %v592_v16 = vpop.f32.mrf.mxu1 }
 0x133   : > { %719 = vst.msk [vmem:[%s1073_s25 + $0x70] sm:$0xff] %vm704_vm3, %v686_v11  ;;  %735 = vst.msk [vmem:[%s1073_s25 + $0xf0] sm:$0xff] %vm704_vm3, %v702_v12  ;;  %v655_v17 = vadd.f32 %v1063_v49, %v616_v13  ;;  %v671_v18 = vadd.f32 %v1063_v49, %v632_v14 }
 0x135   : > { %v687_v19 = vmax.f32 %v655_v17, 0.0  ;;  %v703_v20 = vmax.f32 %v671_v18, 0.0 }
 0x137   : > { %720 = vst.msk [vmem:[%s1073_s25 + $0x78] sm:$0xff] %vm704_vm3, %v687_v19  ;;  %736 = vst.msk [vmem:[%s1073_s25 + $0xf8] sm:$0xff] %vm704_vm3, %v703_v20 }
 0x138 PF: > { %s14_s15 = sadd.s32 1, %s880_s15  }
 0x139   : > { %p11_p4 = scmp.ge.s32.totalorder %s14_s15, 4  }
 0x13b   :  { %13 = sbr.rel (!%p11_p4) target bundleno = 1 (0x1), region = 66 }

// kernel: densenet169_forward.203
= control target key start
LH: loop header
LB: loop body
LE: loop exit
PB: predicated region body
PF: predicated region fallthrough
CT: control target
= control target key end

     0   :  { %vm304_vm0 = vcmask 523264   ;;  %s871_s0 = inlined_call_operand.vmem [shape: f32[128,64], index: 0, kind: input, shape index: {}]   ;;  %s872_s1 = inlined_call_operand.vmem [shape: f32[128,64], index: 1, kind: input, shape index: {}]   ;;  %s873_s2 = inlined_call_operand.vmem [shape: f32[128,64], index: 2, kind: input, shape index: {}]   ;;  %s874_s3 = inlined_call_operand.vmem [shape: f32[128,64], index: 3, kind: input, shape index: {}]   ;;  %s875_s4 = inlined_call_operand.vmem [shape: f32[128,64], index: 4, kind: input, shape index: {}]   ;;  %s876_s5 = inlined_call_operand.vmem [shape: f32[128,64], index: 5, kind: input, shape index: {}]   ;;  %s877_s6 = inlined_call_operand.vmem [shape: f32[128,64], index: 6, kind: input, shape index: {}]   ;;  %s878_s7 = inlined_call_operand.vmem [shape: f32[128,64], index: 7, kind: input, shape index: {}]   ;;  %s879_s8 = inlined_call_operand.vmem [shape: f32[128,64], index: 8, kind: input, shape index: {}]   ;;  %s880_s9 = inlined_call_operand.vmem [shape: f32[128,64], index: 9, kind: output, shape index: {}]  }
   0x1   :  { %v32_v0 = vld [vmem:[%s871_s0] sm:$0xff]  ;;  %v33_v6 = vld [vmem:[%s871_s0 + $0x8] sm:$0xff]  ;;  %v34_v15 = vld [vmem:[%s871_s0 + $0x10] sm:$0xff] }
   0x2   :  { %v48_v1 = vld [vmem:[%s872_s1] sm:$0xff]  ;;  %v49_v7 = vld [vmem:[%s872_s1 + $0x8] sm:$0xff]  ;;  %v50_v16 = vld [vmem:[%s872_s1 + $0x10] sm:$0xff] }
   0x3   :  { %v80_v2 = vld [vmem:[%s873_s2] sm:$0xff]  ;;  %v64_v3 = vmax.f32 %v32_v0, %v48_v1  ;;  %v81_v8 = vld [vmem:[%s873_s2 + $0x8] sm:$0xff]  ;;  %v65_v10 = vmax.f32 %v33_v6, %v49_v7  ;;  %v82_v17 = vld [vmem:[%s873_s2 + $0x10] sm:$0xff]  ;;  %v66_v20 = vmax.f32 %v34_v15, %v50_v16 }
   0x4   :  { %v112_v4 = vld [vmem:[%s874_s3] sm:$0xff]  ;;  %v113_v13 = vld [vmem:[%s874_s3 + $0x8] sm:$0xff]  ;;  %v114_v24 = vld [vmem:[%s874_s3 + $0x10] sm:$0xff] }
   0x5   :  { %v96_v5 = vmax.f32 %v64_v3, %v80_v2  ;;  %v144_v9 = vld [vmem:[%s875_s4] sm:$0xff]  ;;  %v97_v14 = vmax.f32 %v65_v10, %v81_v8  ;;  %v145_v19 = vld [vmem:[%s875_s4 + $0x8] sm:$0xff]  ;;  %v98_v26 = vmax.f32 %v66_v20, %v82_v17  ;;  %v35_v27 = vld [vmem:[%s871_s0 + $0x18] sm:$0xff] }
   0x6   :  { %v176_v12 = vld [vmem:[%s876_s5] sm:$0xff]  ;;  %v177_v23 = vld [vmem:[%s876_s5 + $0x8] sm:$0xff]  ;;  %v51_v28 = vld [vmem:[%s872_s1 + $0x18] sm:$0xff] }
   0x7   :  { %v128_v11 = vmax.f32 %v96_v5, %v112_v4  ;;  %v208_v21 = vld [vmem:[%s877_s6] sm:$0xff]  ;;  %v129_v22 = vmax.f32 %v97_v14, %v113_v13  ;;  %v83_v29 = vld [vmem:[%s873_s2 + $0x18] sm:$0xff]  ;;  %v146_v33 = vld [vmem:[%s875_s4 + $0x10] sm:$0xff]  ;;  %v67_v34 = vmax.f32 %v35_v27, %v51_v28  ;;  %v130_v37 = vmax.f32 %v98_v26, %v114_v24 }
   0x8   :  { %v240_v30 = vld [vmem:[%s878_s7] sm:$0xff]  ;;  %v209_v36 = vld [vmem:[%s877_s6 + $0x8] sm:$0xff]  ;;  %v178_v38 = vld [vmem:[%s876_s5 + $0x10] sm:$0xff] }
   0x9   :  { %v160_v18 = vmax.f32 %v128_v11, %v144_v9  ;;  %v272_v31 = vld [vmem:[%s879_s8] sm:$0xff]  ;;  %v161_v32 = vmax.f32 %v129_v22, %v145_v19  ;;  %v115_v39 = vld [vmem:[%s874_s3 + $0x18] sm:$0xff]  ;;  %v99_v41 = vmax.f32 %v67_v34, %v83_v29  ;;  %v241_v46 = vld [vmem:[%s878_s7 + $0x8] sm:$0xff]  ;;  %v162_v48 = vmax.f32 %v130_v37, %v146_v33 }
   0xa   :  { %v36_v42 = vld [vmem:[%s871_s0 + $0x20] sm:$0xff]  ;;  %v273_v47 = vld [vmem:[%s879_s8 + $0x8] sm:$0xff]  ;;  %v147_v49 = vld [vmem:[%s875_s4 + $0x18] sm:$0xff] }
   0xb   :  { %v192_v25 = vmax.f32 %v160_v18, %v176_v12  ;;  %v193_v40 = vmax.f32 %v161_v32, %v177_v23  ;;  %v52_v43 = vld [vmem:[%s872_s1 + $0x20] sm:$0xff]  ;;  %v210_v52 = vld [vmem:[%s877_s6 + $0x10] sm:$0xff]  ;;  %v131_v53 = vmax.f32 %v99_v41, %v115_v39  ;;  %v179_v54 = vld [vmem:[%s876_s5 + $0x18] sm:$0xff]  ;;  %v194_v57 = vmax.f32 %v162_v48, %v178_v38 }
   0xc   :  { %v84_v44 = vld [vmem:[%s873_s2 + $0x20] sm:$0xff]  ;;  %v68_v50 = vmax.f32 %v36_v42, %v52_v43  ;;  %v37_v59 = vld [vmem:[%s871_s0 + $0x28] sm:$0xff]  ;;  %v242_v63 = vld [vmem:[%s878_s7 + $0x10] sm:$0xff] }
   0xd   :  { %v224_v35 = vmax.f32 %v192_v25, %v208_v21  ;;  %v225_v51 = vmax.f32 %v193_v40, %v209_v36  ;;  %v116_v55 = vld [vmem:[%s874_s3 + $0x20] sm:$0xff]  ;;  %v53_v60 = vld [vmem:[%s872_s1 + $0x28] sm:$0xff]  ;;  %v274_v0 = vld [vmem:[%s879_s8 + $0x10] sm:$0xff]  ;;  %v163_v1 = vmax.f32 %v131_v53, %v147_v49  ;;  %v226_v4 = vmax.f32 %v194_v57, %v210_v52 }
   0xe   :  { %v100_v58 = vmax.f32 %v68_v50, %v84_v44  ;;  %v85_v61 = vld [vmem:[%s873_s2 + $0x28] sm:$0xff]  ;;  %v148_v2 = vld [vmem:[%s875_s4 + $0x20] sm:$0xff]  ;;  %v69_v3 = vmax.f32 %v37_v59, %v53_v60  ;;  %v211_v5 = vld [vmem:[%s877_s6 + $0x18] sm:$0xff] }
   0xf   :  { %v256_v45 = vmax.f32 %v224_v35, %v240_v30  ;;  %v257_v62 = vmax.f32 %v225_v51, %v241_v46  ;;  %v180_v7 = vld [vmem:[%s876_s5 + $0x20] sm:$0xff]  ;;  %v117_v8 = vld [vmem:[%s874_s3 + $0x28] sm:$0xff]  ;;  %v195_v10 = vmax.f32 %v163_v1, %v179_v54  ;;  %v38_v12 = vld [vmem:[%s871_s0 + $0x30] sm:$0xff]  ;;  %v258_v15 = vmax.f32 %v226_v4, %v242_v63 }
  0x10   :  { %v132_v6 = vmax.f32 %v100_v58, %v116_v55  ;;  %v101_v11 = vmax.f32 %v69_v3, %v85_v61  ;;  %v54_v13 = vld [vmem:[%s872_s1 + $0x30] sm:$0xff]  ;;  %v243_v16 = vld [vmem:[%s878_s7 + $0x18] sm:$0xff]  ;;  %v149_v19 = vld [vmem:[%s875_s4 + $0x28] sm:$0xff] }
  0x11   :  { %v288_v56 = vmax.f32 %v256_v45, %v272_v31  ;;  %v289_v9 = vmax.f32 %v257_v62, %v273_v47  ;;  %v86_v14 = vld [vmem:[%s873_s2 + $0x30] sm:$0xff]  ;;  %v275_v17 = vld [vmem:[%s879_s8 + $0x18] sm:$0xff]  ;;  %v70_v20 = vmax.f32 %v38_v12, %v54_v13  ;;  %v227_v21 = vmax.f32 %v195_v10, %v211_v5  ;;  %v212_v22 = vld [vmem:[%s877_s6 + $0x20] sm:$0xff] }
  0x12   :  { %v164_v18 = vmax.f32 %v132_v6, %v148_v2  ;;  %v133_v23 = vmax.f32 %v101_v11, %v117_v8  ;;  %v181_v24 = vld [vmem:[%s876_s5 + $0x28] sm:$0xff]  ;;  %v118_v25 = vld [vmem:[%s874_s3 + $0x30] sm:$0xff]  ;;  %v290_v26 = vmax.f32 %v258_v15, %v274_v0  ;;  %v39_v29 = vld [vmem:[%s871_s0 + $0x38] sm:$0xff] }
  0x13   :  { %305 = vst.msk [vmem:[%s880_s9] sm:$0xff] %vm304_vm0, %v288_v56  ;;  %306 = vst.msk [vmem:[%s880_s9 + $0x8] sm:$0xff] %vm304_vm0, %v289_v9  ;;  %v102_v28 = vmax.f32 %v70_v20, %v86_v14  ;;  %v55_v30 = vld [vmem:[%s872_s1 + $0x38] sm:$0xff]  ;;  %v259_v32 = vmax.f32 %v227_v21, %v243_v16  ;;  %v244_v33 = vld [vmem:[%s878_s7 + $0x20] sm:$0xff] }
  0x14   :  { %v196_v27 = vmax.f32 %v164_v18, %v180_v7  ;;  %v87_v31 = vld [vmem:[%s873_s2 + $0x38] sm:$0xff]  ;;  %v276_v34 = vld [vmem:[%s879_s8 + $0x20] sm:$0xff]  ;;  %v165_v35 = vmax.f32 %v133_v23, %v149_v19  ;;  %v150_v36 = vld [vmem:[%s875_s4 + $0x30] sm:$0xff]  ;;  %v71_v37 = vmax.f32 %v39_v29, %v55_v30  ;;  %307 = vst.msk [vmem:[%s880_s9 + $0x10] sm:$0xff] %vm304_vm0, %v290_v26 }
  0x15   :  { %v213_v39 = vld [vmem:[%s877_s6 + $0x28] sm:$0xff]  ;;  %v134_v40 = vmax.f32 %v102_v28, %v118_v25  ;;  %v182_v41 = vld [vmem:[%s876_s5 + $0x30] sm:$0xff]  ;;  %v119_v42 = vld [vmem:[%s874_s3 + $0x38] sm:$0xff]  ;;  %v291_v43 = vmax.f32 %v259_v32, %v275_v17 }
  0x16   :  { %v228_v38 = vmax.f32 %v196_v27, %v212_v22  ;;  %v197_v44 = vmax.f32 %v165_v35, %v181_v24  ;;  %v103_v45 = vmax.f32 %v71_v37, %v87_v31  ;;  %v40_v46 = vld [vmem:[%s871_s0 + $0x40] sm:$0xff]  ;;  %v245_v50 = vld [vmem:[%s878_s7 + $0x28] sm:$0xff]  ;;  %v151_v53 = vld [vmem:[%s875_s4 + $0x38] sm:$0xff] }
  0x17   :  { %v56_v47 = vld [vmem:[%s872_s1 + $0x40] sm:$0xff]  ;;  %v277_v51 = vld [vmem:[%s879_s8 + $0x28] sm:$0xff]  ;;  %v166_v52 = vmax.f32 %v134_v40, %v150_v36  ;;  %308 = vst.msk [vmem:[%s880_s9 + $0x18] sm:$0xff] %vm304_vm0, %v291_v43  ;;  %v214_v56 = vld [vmem:[%s877_s6 + $0x30] sm:$0xff] }
  0x18   :  { %v88_v48 = vld [vmem:[%s873_s2 + $0x40] sm:$0xff]  ;;  %v260_v49 = vmax.f32 %v228_v38, %v244_v33  ;;  %v72_v54 = vmax.f32 %v40_v46, %v56_v47  ;;  %v229_v55 = vmax.f32 %v197_v44, %v213_v39  ;;  %v135_v57 = vmax.f32 %v103_v45, %v119_v42  ;;  %v183_v58 = vld [vmem:[%s876_s5 + $0x38] sm:$0xff]  ;;  %v41_v63 = vld [vmem:[%s871_s0 + $0x48] sm:$0xff] }
  0x19   :  { %v120_v59 = vld [vmem:[%s874_s3 + $0x40] sm:$0xff]  ;;  %v198_v61 = vmax.f32 %v166_v52, %v182_v41  ;;  %v57_v0 = vld [vmem:[%s872_s1 + $0x48] sm:$0xff]  ;;  %v246_v3 = vld [vmem:[%s878_s7 + $0x30] sm:$0xff] }
  0x1a   :  { %v292_v60 = vmax.f32 %v260_v49, %v276_v34  ;;  %v104_v62 = vmax.f32 %v72_v54, %v88_v48  ;;  %v89_v1 = vld [vmem:[%s873_s2 + $0x48] sm:$0xff]  ;;  %v261_v2 = vmax.f32 %v229_v55, %v245_v50  ;;  %v278_v4 = vld [vmem:[%s879_s8 + $0x30] sm:$0xff]  ;;  %v167_v5 = vmax.f32 %v135_v57, %v151_v53  ;;  %v152_v6 = vld [vmem:[%s875_s4 + $0x40] sm:$0xff] }
  0x1b   :  { %v73_v7 = vmax.f32 %v41_v63, %v57_v0  ;;  %v230_v8 = vmax.f32 %v198_v61, %v214_v56  ;;  %v215_v9 = vld [vmem:[%s877_s6 + $0x38] sm:$0xff]  ;;  %v184_v11 = vld [vmem:[%s876_s5 + $0x40] sm:$0xff]  ;;  %v121_v12 = vld [vmem:[%s874_s3 + $0x48] sm:$0xff] }
  0x1c   :  { %309 = vst.msk [vmem:[%s880_s9 + $0x20] sm:$0xff] %vm304_vm0, %v292_v60  ;;  %v136_v10 = vmax.f32 %v104_v62, %v120_v59  ;;  %v293_v13 = vmax.f32 %v261_v2, %v277_v51  ;;  %v199_v14 = vmax.f32 %v167_v5, %v183_v58  ;;  %v42_v16 = vld [vmem:[%s871_s0 + $0x50] sm:$0xff]  ;;  %v247_v20 = vld [vmem:[%s878_s7 + $0x38] sm:$0xff]  ;;  %v153_v23 = vld [vmem:[%s875_s4 + $0x48] sm:$0xff] }
  0x1d   :  { %v105_v15 = vmax.f32 %v73_v7, %v89_v1  ;;  %v58_v17 = vld [vmem:[%s872_s1 + $0x50] sm:$0xff]  ;;  %v262_v19 = vmax.f32 %v230_v8, %v246_v3  ;;  %v279_v21 = vld [vmem:[%s879_s8 + $0x38] sm:$0xff]  ;;  %v216_v26 = vld [vmem:[%s877_s6 + $0x40] sm:$0xff] }
  0x1e   :  { %v90_v18 = vld [vmem:[%s873_s2 + $0x50] sm:$0xff]  ;;  %v168_v22 = vmax.f32 %v136_v10, %v152_v6  ;;  %v74_v24 = vmax.f32 %v42_v16, %v58_v17  ;;  %310 = vst.msk [vmem:[%s880_s9 + $0x28] sm:$0xff] %vm304_vm0, %v293_v13  ;;  %v231_v25 = vmax.f32 %v199_v14, %v215_v9  ;;  %v185_v28 = vld [vmem:[%s876_s5 + $0x48] sm:$0xff]  ;;  %v43_v33 = vld [vmem:[%s871_s0 + $0x58] sm:$0xff] }
  0x1f   :  { %v137_v27 = vmax.f32 %v105_v15, %v121_v12  ;;  %v122_v29 = vld [vmem:[%s874_s3 + $0x50] sm:$0xff]  ;;  %v294_v30 = vmax.f32 %v262_v19, %v278_v4  ;;  %v59_v34 = vld [vmem:[%s872_s1 + $0x58] sm:$0xff]  ;;  %v248_v37 = vld [vmem:[%s878_s7 + $0x40] sm:$0xff] }
  0x20   :  { %v200_v31 = vmax.f32 %v168_v22, %v184_v11  ;;  %v106_v32 = vmax.f32 %v74_v24, %v90_v18  ;;  %v91_v35 = vld [vmem:[%s873_s2 + $0x58] sm:$0xff]  ;;  %v263_v36 = vmax.f32 %v231_v25, %v247_v20  ;;  %v280_v38 = vld [vmem:[%s879_s8 + $0x40] sm:$0xff]  ;;  %v154_v40 = vld [vmem:[%s875_s4 + $0x50] sm:$0xff]  ;;  %v75_v41 = vmax.f32 %v43_v33, %v59_v34 }
  0x21   :  { %v169_v39 = vmax.f32 %v137_v27, %v153_v23  ;;  %311 = vst.msk [vmem:[%s880_s9 + $0x30] sm:$0xff] %vm304_vm0, %v294_v30  ;;  %v217_v43 = vld [vmem:[%s877_s6 + $0x48] sm:$0xff]  ;;  %v186_v45 = vld [vmem:[%s876_s5 + $0x50] sm:$0xff]  ;;  %v123_v46 = vld [vmem:[%s874_s3 + $0x58] sm:$0xff] }
  0x22   :  { %v232_v42 = vmax.f32 %v200_v31, %v216_v26  ;;  %v138_v44 = vmax.f32 %v106_v32, %v122_v29  ;;  %v295_v47 = vmax.f32 %v263_v36, %v279_v21  ;;  %v107_v49 = vmax.f32 %v75_v41, %v91_v35  ;;  %v44_v50 = vld [vmem:[%s871_s0 + $0x60] sm:$0xff]  ;;  %v249_v54 = vld [vmem:[%s878_s7 + $0x48] sm:$0xff]  ;;  %v155_v57 = vld [vmem:[%s875_s4 + $0x58] sm:$0xff] }
  0x23   :  { %v201_v48 = vmax.f32 %v169_v39, %v185_v28  ;;  %v60_v51 = vld [vmem:[%s872_s1 + $0x60] sm:$0xff]  ;;  %v281_v55 = vld [vmem:[%s879_s8 + $0x48] sm:$0xff]  ;;  %v218_v60 = vld [vmem:[%s877_s6 + $0x50] sm:$0xff] }
  0x24   :  { %v92_v52 = vld [vmem:[%s873_s2 + $0x60] sm:$0xff]  ;;  %v264_v53 = vmax.f32 %v232_v42, %v248_v37  ;;  %v170_v56 = vmax.f32 %v138_v44, %v154_v40  ;;  %v76_v58 = vmax.f32 %v44_v50, %v60_v51  ;;  %312 = vst.msk [vmem:[%s880_s9 + $0x38] sm:$0xff] %vm304_vm0, %v295_v47  ;;  %v139_v61 = vmax.f32 %v107_v49, %v123_v46  ;;  %v187_v62 = vld [vmem:[%s876_s5 + $0x58] sm:$0xff]  ;;  %v45_v3 = vld [vmem:[%s871_s0 + $0x68] sm:$0xff] }
  0x25   :  { %v233_v59 = vmax.f32 %v201_v48, %v217_v43  ;;  %v124_v63 = vld [vmem:[%s874_s3 + $0x60] sm:$0xff]  ;;  %v61_v4 = vld [vmem:[%s872_s1 + $0x68] sm:$0xff]  ;;  %v250_v7 = vld [vmem:[%s878_s7 + $0x50] sm:$0xff] }
  0x26   :  { %v296_v0 = vmax.f32 %v264_v53, %v280_v38  ;;  %v202_v1 = vmax.f32 %v170_v56, %v186_v45  ;;  %v108_v2 = vmax.f32 %v76_v58, %v92_v52  ;;  %v93_v5 = vld [vmem:[%s873_s2 + $0x68] sm:$0xff]  ;;  %v282_v8 = vld [vmem:[%s879_s8 + $0x50] sm:$0xff]  ;;  %v171_v9 = vmax.f32 %v139_v61, %v155_v57  ;;  %v156_v10 = vld [vmem:[%s875_s4 + $0x60] sm:$0xff] }
  0x27   :  { %v265_v6 = vmax.f32 %v233_v59, %v249_v54  ;;  %v77_v11 = vmax.f32 %v45_v3, %v61_v4  ;;  %v219_v13 = vld [vmem:[%s877_s6 + $0x58] sm:$0xff]  ;;  %v188_v15 = vld [vmem:[%s876_s5 + $0x60] sm:$0xff]  ;;  %v125_v16 = vld [vmem:[%s874_s3 + $0x68] sm:$0xff] }
  0x28   :  { %313 = vst.msk [vmem:[%s880_s9 + $0x40] sm:$0xff] %vm304_vm0, %v296_v0  ;;  %v234_v12 = vmax.f32 %v202_v1, %v218_v60  ;;  %v140_v14 = vmax.f32 %v108_v2, %v124_v63  ;;  %v203_v18 = vmax.f32 %v171_v9, %v187_v62  ;;  %v46_v20 = vld [vmem:[%s871_s0 + $0x70] sm:$0xff]  ;;  %v251_v24 = vld [vmem:[%s878_s7 + $0x58] sm:$0xff]  ;;  %v157_v27 = vld [vmem:[%s875_s4 + $0x68] sm:$0xff] }
  0x29   :  { %v297_v17 = vmax.f32 %v265_v6, %v281_v55  ;;  %v109_v19 = vmax.f32 %v77_v11, %v93_v5  ;;  %v62_v21 = vld [vmem:[%s872_s1 + $0x70] sm:$0xff]  ;;  %v283_v25 = vld [vmem:[%s879_s8 + $0x58] sm:$0xff]  ;;  %v220_v30 = vld [vmem:[%s877_s6 + $0x60] sm:$0xff] }
  0x2a   :  { %v94_v22 = vld [vmem:[%s873_s2 + $0x70] sm:$0xff]  ;;  %v266_v23 = vmax.f32 %v234_v12, %v250_v7  ;;  %v172_v26 = vmax.f32 %v140_v14, %v156_v10  ;;  %v78_v28 = vmax.f32 %v46_v20, %v62_v21  ;;  %v235_v29 = vmax.f32 %v203_v18, %v219_v13  ;;  %v189_v32 = vld [vmem:[%s876_s5 + $0x68] sm:$0xff]  ;;  %v47_v37 = vld [vmem:[%s871_s0 + $0x78] sm:$0xff] }
  0x2b   :  { %314 = vst.msk [vmem:[%s880_s9 + $0x48] sm:$0xff] %vm304_vm0, %v297_v17  ;;  %v141_v31 = vmax.f32 %v109_v19, %v125_v16  ;;  %v126_v33 = vld [vmem:[%s874_s3 + $0x70] sm:$0xff]  ;;  %v63_v38 = vld [vmem:[%s872_s1 + $0x78] sm:$0xff]  ;;  %v252_v41 = vld [vmem:[%s878_s7 + $0x60] sm:$0xff] }
  0x2c   :  { %v298_v34 = vmax.f32 %v266_v23, %v282_v8  ;;  %v204_v35 = vmax.f32 %v172_v26, %v188_v15  ;;  %v110_v36 = vmax.f32 %v78_v28, %v94_v22  ;;  %v95_v39 = vld [vmem:[%s873_s2 + $0x78] sm:$0xff]  ;;  %v267_v40 = vmax.f32 %v235_v29, %v251_v24  ;;  %v158_v43 = vld [vmem:[%s875_s4 + $0x70] sm:$0xff]  ;;  %v221_v46 = vld [vmem:[%s877_s6 + $0x68] sm:$0xff] }
  0x2d   :  { %v173_v42 = vmax.f32 %v141_v31, %v157_v27  ;;  %v79_v44 = vmax.f32 %v47_v37, %v63_v38  ;;  %v127_v48 = vld [vmem:[%s874_s3 + $0x78] sm:$0xff]  ;;  %v284_v50 = vld [vmem:[%s879_s8 + $0x60] sm:$0xff]  ;;  %v190_v52 = vld [vmem:[%s876_s5 + $0x70] sm:$0xff] }
  0x2e   :  { %315 = vst.msk [vmem:[%s880_s9 + $0x50] sm:$0xff] %vm304_vm0, %v298_v34  ;;  %v236_v45 = vmax.f32 %v204_v35, %v220_v30  ;;  %v142_v47 = vmax.f32 %v110_v36, %v126_v33  ;;  %v299_v49 = vmax.f32 %v267_v40, %v283_v25  ;;  %v253_v55 = vld [vmem:[%s878_s7 + $0x68] sm:$0xff]  ;;  %v159_v57 = vld [vmem:[%s875_s4 + $0x78] sm:$0xff]  ;;  %v222_v59 = vld [vmem:[%s877_s6 + $0x70] sm:$0xff] }
  0x2f   :  { %v205_v51 = vmax.f32 %v173_v42, %v189_v32  ;;  %v111_v53 = vmax.f32 %v79_v44, %v95_v39  ;;  %v285_v62 = vld [vmem:[%s879_s8 + $0x68] sm:$0xff]  ;;  %v191_v0 = vld [vmem:[%s876_s5 + $0x78] sm:$0xff]  ;;  %v254_v2 = vld [vmem:[%s878_s7 + $0x70] sm:$0xff] }
  0x30   :  { %v268_v54 = vmax.f32 %v236_v45, %v252_v41  ;;  %v174_v56 = vmax.f32 %v142_v47, %v158_v43  ;;  %316 = vst.msk [vmem:[%s880_s9 + $0x58] sm:$0xff] %vm304_vm0, %v299_v49  ;;  %v223_v5 = vld [vmem:[%s877_s6 + $0x78] sm:$0xff]  ;;  %v286_v7 = vld [vmem:[%s879_s8 + $0x70] sm:$0xff] }
  0x31   :  { %v237_v58 = vmax.f32 %v205_v51, %v221_v46  ;;  %v143_v60 = vmax.f32 %v111_v53, %v127_v48  ;;  %v255_v10 = vld [vmem:[%s878_s7 + $0x78] sm:$0xff] }
  0x32   :  { %v300_v61 = vmax.f32 %v268_v54, %v284_v50  ;;  %v206_v63 = vmax.f32 %v174_v56, %v190_v52  ;;  %v287_v13 = vld [vmem:[%s879_s8 + $0x78] sm:$0xff] }
  0x33   :  { %v269_v1 = vmax.f32 %v237_v58, %v253_v55  ;;  %v175_v3 = vmax.f32 %v143_v60, %v159_v57 }
  0x34   :  { %317 = vst.msk [vmem:[%s880_s9 + $0x60] sm:$0xff] %vm304_vm0, %v300_v61  ;;  %v238_v4 = vmax.f32 %v206_v63, %v222_v59 }
  0x35   :  { %v301_v6 = vmax.f32 %v269_v1, %v285_v62  ;;  %v207_v8 = vmax.f32 %v175_v3, %v191_v0 }
  0x36   :  { %v270_v9 = vmax.f32 %v238_v4, %v254_v2 }
  0x37   :  { %318 = vst.msk [vmem:[%s880_s9 + $0x68] sm:$0xff] %vm304_vm0, %v301_v6  ;;  %v239_v11 = vmax.f32 %v207_v8, %v223_v5 }
  0x38   :  { %v302_v12 = vmax.f32 %v270_v9, %v286_v7 }
  0x39   :  { %v271_v14 = vmax.f32 %v239_v11, %v255_v10 }
  0x3a   :  { %319 = vst.msk [vmem:[%s880_s9 + $0x70] sm:$0xff] %vm304_vm0, %v302_v12 }
  0x3b   :  { %v303_v15 = vmax.f32 %v271_v14, %v287_v13 }
  0x3d   :  { %320 = vst.msk [vmem:[%s880_s9 + $0x78] sm:$0xff] %vm304_vm0, %v303_v15 }

// kernel: densenet169_forward.204
= control target key start
LH: loop header
LB: loop body
LE: loop exit
PB: predicated region body
PF: predicated region fallthrough
CT: control target
= control target key end

     0   :  { %v58_v5 = vlaneseq  ;;  %s960_s3 = inlined_call_operand.vmem [shape: bf16[256,128], index: 3, kind: input, shape index: {}]   ;;  %s961_s0 = inlined_call_operand.vmem [shape: f32[128,256], index: 0, kind: input, shape index: {}]   ;;  %s962_s1 = inlined_call_operand.vmem [shape: f32[1,256], index: 1, kind: input, shape index: {}]   ;;  %s963_s2 = inlined_call_operand.vmem [shape: f32[1,256], index: 2, kind: input, shape index: {}]   ;;  %s964_s4 = inlined_call_operand.vmem [shape: f32[1,128], index: 4, kind: input, shape index: {}]   ;;  %s965_s5 = inlined_call_operand.vmem [shape: f32[1,128], index: 5, kind: input, shape index: {}]   ;;  %s966_s6 = inlined_call_operand.vmem [shape: f32[128,128], index: 6, kind: output, shape index: {}]  }
   0x1   :  { %v597_v0 = vld [vmem:[%s960_s3 + $0x78] sm:$0xff]   ;;  %v599_v2 = vld [vmem:[%s960_s3 + $0x70] sm:$0xff]   ;;  %v601_v4 = vld [vmem:[%s960_s3 + $0x68] sm:$0xff]  }
   0x2   :  { %v598_v1 = vld [vmem:[%s960_s3 + $0x38] sm:$0xff]   ;;  %517 = vmatprep.subr.bf16.mxu0 %v597_v0  ;;  %581 = vmatprep.subr.bf16.mxu1 %v597_v0  ;;  %v600_v3 = vld [vmem:[%s960_s3 + $0x30] sm:$0xff]   ;;  %v602_v6 = vld [vmem:[%s960_s3 + $0x28] sm:$0xff]   ;;  %v59_v8 = vshrl.u32 %v58_v5, 7 }
   0x3   :  { %518 = vmatpush3.bf16.msra.mxu0 %v598_v1  ;;  %589 = vmatpush3.bf16.msra.mxu1 %v598_v1  ;;  %v603_v7 = vld [vmem:[%s960_s3 + $0x60] sm:$0xff]   ;;  %v605_v10 = vld [vmem:[%s960_s3 + $0x58] sm:$0xff]   ;;  %v607_v14 = vld [vmem:[%s960_s3 + $0x50] sm:$0xff]  }
   0x4   :  { %519 = vmatprep.subr.bf16.mxu0 %v599_v2  ;;  %582 = vmatprep.subr.bf16.mxu1 %v599_v2  ;;  %v604_v9 = vld [vmem:[%s960_s3 + $0x20] sm:$0xff]   ;;  %v60_v11 = vsub.s32 0, %v59_v8  ;;  %v64_v12 = vsub.s32 1, %v59_v8  ;;  %v606_v13 = vld [vmem:[%s960_s3 + $0x18] sm:$0xff]   ;;  %v25_v15 = vld [vmem:[%s961_s0 + $0x8] sm:$0xff] }
   0x5   :  { %v27_v16 = vld [vmem:[%s961_s0 + $0x18] sm:$0xff]  ;;  %v56_v17 = vld [vmem:[%s962_s1] sm:$0x3]  ;;  %v41_v21 = vld [vmem:[%s961_s0 + $0x88] sm:$0xff] }
   0x6   :  { %v690_v18 = vrot.slane %v56_v17, %v60_v11  ;;  %v692_v19 = vrot.slane %v56_v17, %v64_v12  ;;  %v100_v20 = vld [vmem:[%s963_s2] sm:$0x3]  ;;  %v43_v22 = vld [vmem:[%s961_s0 + $0x98] sm:$0xff]  ;;  %v26_v26 = vld [vmem:[%s961_s0 + $0x10] sm:$0xff] }
   0x7   :  { %520 = vmatpush3.bf16.msra.mxu0 %v600_v3  ;;  %590 = vmatpush3.bf16.msra.mxu1 %v600_v3  ;;  %v703_v23 = vrot.slane %v100_v20, %v60_v11  ;;  %v705_v24 = vrot.slane %v100_v20, %v64_v12  ;;  %v24_v25 = vld [vmem:[%s961_s0] sm:$0xff]  ;;  %v608_v28 = vld [vmem:[%s960_s3 + $0x10] sm:$0xff]   ;;  %v609_v33 = vld [vmem:[%s960_s3 + $0x48] sm:$0xff]  }
   0x8   :  { %521 = vmatprep.subr.bf16.mxu0 %v601_v4  ;;  %583 = vmatprep.subr.bf16.mxu1 %v601_v4  ;;  %v40_v27 = vld [vmem:[%s961_s0 + $0x80] sm:$0xff]  ;;  %v69_v29 = vmul.f32 %v692_v19, %v25_v15  ;;  %v71_v30 = vmul.f32 %v692_v19, %v27_v16  ;;  %v85_v31 = vmul.f32 %v692_v19, %v41_v21  ;;  %v42_v32 = vld [vmem:[%s961_s0 + $0x90] sm:$0xff]  ;;  %v29_v45 = vld [vmem:[%s961_s0 + $0x28] sm:$0xff] }
   0x9   :  { %v87_v34 = vmul.f32 %v692_v19, %v43_v22  ;;  %v68_v35 = vmul.f32 %v690_v18, %v24_v25  ;;  %v70_v36 = vmul.f32 %v690_v18, %v26_v26  ;;  %v84_v40 = vmul.f32 %v690_v18, %v40_v27  ;;  %v31_v46 = vld [vmem:[%s961_s0 + $0x38] sm:$0xff]  ;;  %v610_v47 = vld [vmem:[%s960_s3 + $0x8] sm:$0xff]   ;;  %v611_v53 = vld [vmem:[%s960_s3 + $0x40] sm:$0xff]  }
   0xa   :  { %v113_v37 = vadd.f32 %v705_v24, %v69_v29  ;;  %v115_v38 = vadd.f32 %v705_v24, %v71_v30  ;;  %v129_v39 = vadd.f32 %v705_v24, %v85_v31  ;;  %v86_v44 = vmul.f32 %v690_v18, %v42_v32  ;;  %v45_v52 = vld [vmem:[%s961_s0 + $0xa8] sm:$0xff]  ;;  %v47_v58 = vld [vmem:[%s961_s0 + $0xb8] sm:$0xff]  ;;  %v28_v63 = vld [vmem:[%s961_s0 + $0x20] sm:$0xff] }
   0xb   :  { %522 = vmatpush3.bf16.msra.mxu0 %v602_v6  ;;  %591 = vmatpush3.bf16.msra.mxu1 %v602_v6  ;;  %v131_v41 = vadd.f32 %v705_v24, %v87_v34  ;;  %v112_v42 = vadd.f32 %v703_v23, %v68_v35  ;;  %v114_v43 = vadd.f32 %v703_v23, %v70_v36  ;;  %v30_v4 = vld [vmem:[%s961_s0 + $0x30] sm:$0xff]  ;;  %v612_v5 = vld [vmem:[%s960_s3] sm:$0xff]   ;;  %v35_v21 = vld [vmem:[%s961_s0 + $0x58] sm:$0xff] }
   0xc   :  { %523 = vmatprep.subr.bf16.mxu0 %v603_v7  ;;  %584 = vmatprep.subr.bf16.mxu1 %v603_v7  ;;  %v145_v48 = vmax.f32 %v113_v37, 0.0  ;;  %v147_v49 = vmax.f32 %v115_v38, 0.0  ;;  %v161_v50 = vmax.f32 %v129_v39, 0.0  ;;  %v128_v51 = vadd.f32 %v703_v23, %v84_v40  ;;  %v32_v38 = vld [vmem:[%s961_s0 + $0x40] sm:$0xff] }
   0xd   :  { %v163_v54 = vmax.f32 %v131_v41, 0.0  ;;  %v144_v55 = vmax.f32 %v112_v42, 0.0  ;;  %v146_v56 = vmax.f32 %v114_v43, 0.0  ;;  %v130_v57 = vadd.f32 %v703_v23, %v86_v44  ;;  %v34_v43 = vld [vmem:[%s961_s0 + $0x50] sm:$0xff] }
   0xe   :  { %v177_v59 = vpack.c.bf16 %v147_v49, %v145_v48  ;;  %v160_v60 = vmax.f32 %v128_v51, 0.0  ;;  %v73_v61 = vmul.f32 %v692_v19, %v29_v45  ;;  %v75_v62 = vmul.f32 %v692_v19, %v31_v46  ;;  %v48_v48 = vld [vmem:[%s961_s0 + $0xc0] sm:$0xff]  ;;  %v50_v49 = vld [vmem:[%s961_s0 + $0xd0] sm:$0xff] }
   0xf   :  { %524 = vmatpush3.bf16.msra.mxu0 %v604_v9  ;;  %592 = vmatpush3.bf16.msra.mxu1 %v604_v9  ;;  %v185_v0 = vpack.c.bf16 %v163_v54, %v161_v50  ;;  %v176_v1 = vpack.c.bf16 %v146_v56, %v144_v55  ;;  %v162_v2 = vmax.f32 %v130_v57, 0.0  ;;  %v89_v3 = vmul.f32 %v692_v19, %v45_v52  ;;  %v44_v9 = vld [vmem:[%s961_s0 + $0xa0] sm:$0xff]  ;;  %v37_v54 = vld [vmem:[%s961_s0 + $0x68] sm:$0xff] }
  0x10   :  { %525 = vmatprep.subr.bf16.mxu0 %v605_v10  ;;  %585 = vmatprep.subr.bf16.mxu1 %v605_v10  ;;  %v117_v6 = vadd.f32 %v705_v24, %v73_v61  ;;  %v119_v7 = vadd.f32 %v705_v24, %v75_v62  ;;  %v91_v8 = vmul.f32 %v692_v19, %v47_v58  ;;  %v46_v10 = vld [vmem:[%s961_s0 + $0xb0] sm:$0xff] }
  0x11   :  { %v184_v11 = vpack.c.bf16 %v162_v2, %v160_v60  ;;  %v133_v12 = vadd.f32 %v705_v24, %v89_v3  ;;  %352 = vmatprep.mubr.bf16.mxu0 %v177_v59  ;;  %384 = vmatprep.mubr.bf16.mxu1 %v185_v0  ;;  %v74_v20 = vmul.f32 %v690_v18, %v30_v4  ;;  %v39_v59 = vld [vmem:[%s961_s0 + $0x78] sm:$0xff]  ;;  %v53_v0 = vld [vmem:[%s961_s0 + $0xe8] sm:$0xff] }
  0x12   :  { %v149_v15 = vmax.f32 %v117_v6, 0.0  ;;  %v151_v16 = vmax.f32 %v119_v7, 0.0  ;;  %v135_v17 = vadd.f32 %v705_v24, %v91_v8  ;;  %v88_v26 = vmul.f32 %v690_v18, %v44_v9 }
  0x13   :  { %526 = vmatpush3.bf16.msra.mxu0 %v606_v13  ;;  %593 = vmatpush3.bf16.msra.mxu1 %v606_v13  ;;  %v72_v13 = vmul.f32 %v690_v18, %v28_v63  ;;  %v165_v22 = vmax.f32 %v133_v12, 0.0  ;;  %v90_v27 = vmul.f32 %v690_v18, %v46_v10  ;;  %v118_v31 = vadd.f32 %v703_v23, %v74_v20  ;;  %v36_v10 = vld [vmem:[%s961_s0 + $0x60] sm:$0xff] }
  0x14   :  { %527 = vmatprep.subr.bf16.mxu0 %v607_v14  ;;  %586 = vmatprep.subr.bf16.mxu1 %v607_v14  ;;  %v33_v14 = vld [vmem:[%s961_s0 + $0x48] sm:$0xff]  ;;  %v179_v29 = vpack.c.bf16 %v151_v16, %v149_v15  ;;  %v167_v30 = vmax.f32 %v135_v17, 0.0  ;;  %v132_v35 = vadd.f32 %v703_v23, %v88_v26  ;;  %v79_v37 = vmul.f32 %v692_v19, %v35_v21  ;;  %v38_v15 = vld [vmem:[%s961_s0 + $0x70] sm:$0xff] }
  0x15   :  { %v116_v25 = vadd.f32 %v703_v23, %v72_v13  ;;  %v77_v32 = vmul.f32 %v692_v19, %v33_v14  ;;  %v134_v36 = vadd.f32 %v703_v23, %v90_v27  ;;  %v150_v40 = vmax.f32 %v118_v31, 0.0 }
  0x16   :  { %v187_v39 = vpack.c.bf16 %v167_v30, %v165_v22  ;;  %v164_v44 = vmax.f32 %v132_v35, 0.0  ;;  %v123_v46 = vadd.f32 %v705_v24, %v79_v37  ;;  %v78_v58 = vmul.f32 %v690_v18, %v34_v43  ;;  %v52_v22 = vld [vmem:[%s961_s0 + $0xe0] sm:$0xff] }
  0x17   :  { %528 = vmatpush3.bf16.msra.mxu0 %v608_v28  ;;  %594 = vmatpush3.bf16.msra.mxu1 %v608_v28  ;;  %v49_v28 = vld [vmem:[%s961_s0 + $0xc8] sm:$0xff]  ;;  %v148_v34 = vmax.f32 %v116_v25, 0.0  ;;  %v121_v41 = vadd.f32 %v705_v24, %v77_v32  ;;  %v166_v45 = vmax.f32 %v134_v36, 0.0  ;;  %v92_v62 = vmul.f32 %v690_v18, %v48_v48  ;;  %v54_v25 = vld [vmem:[%s961_s0 + $0xf0] sm:$0xff] }
  0x18   :  { %529 = vmatprep.subr.bf16.mxu0 %v609_v33  ;;  %587 = vmatprep.subr.bf16.mxu1 %v609_v33  ;;  %v51_v33 = vld [vmem:[%s961_s0 + $0xd8] sm:$0xff]  ;;  %v93_v42 = vmul.f32 %v692_v19, %v49_v28  ;;  %v155_v56 = vmax.f32 %v123_v46, 0.0  ;;  %v94_v63 = vmul.f32 %v690_v18, %v50_v49  ;;  %v122_v3 = vadd.f32 %v703_v23, %v78_v58 }
  0x19   :  { %v178_v50 = vpack.c.bf16 %v150_v40, %v148_v34  ;;  %v153_v51 = vmax.f32 %v121_v41, 0.0  ;;  %v186_v55 = vpack.c.bf16 %v166_v45, %v164_v44  ;;  %v81_v4 = vmul.f32 %v692_v19, %v37_v54 }
  0x1a   :  { %v137_v52 = vadd.f32 %v705_v24, %v93_v42  ;;  %v136_v7 = vadd.f32 %v703_v23, %v92_v62  ;;  %v138_v8 = vadd.f32 %v703_v23, %v94_v63  ;;  %v83_v9 = vmul.f32 %v692_v19, %v39_v59 }
  0x1b   :  { %530 = vmatpush3.bf16.msra.mxu0 %v610_v47  ;;  %595 = vmatpush3.bf16.msra.mxu1 %v610_v47  ;;  %v95_v47 = vmul.f32 %v692_v19, %v51_v33  ;;  %v154_v12 = vmax.f32 %v122_v3, 0.0  ;;  %v125_v13 = vadd.f32 %v705_v24, %v81_v4  ;;  %v97_v14 = vmul.f32 %v692_v19, %v53_v0 }
  0x1c   :  { %531 = vmatprep.subr.bf16.mxu0 %v611_v53  ;;  %588 = vmatprep.subr.bf16.mxu1 %v611_v53  ;;  %v76_v53 = vmul.f32 %v690_v18, %v32_v38  ;;  %v169_v60 = vmax.f32 %v137_v52, 0.0  ;;  %v168_v16 = vmax.f32 %v136_v7, 0.0  ;;  %v170_v17 = vmax.f32 %v138_v8, 0.0 }
  0x1d   :  { %v139_v57 = vadd.f32 %v705_v24, %v95_v47  ;;  %v127_v20 = vadd.f32 %v705_v24, %v83_v9  ;;  %v141_v26 = vadd.f32 %v705_v24, %v97_v14  ;;  %v80_v27 = vmul.f32 %v690_v18, %v36_v10 }
  0x1e   :  { %v120_v61 = vadd.f32 %v703_v23, %v76_v53  ;;  %v157_v28 = vmax.f32 %v125_v13, 0.0  ;;  %v82_v30 = vmul.f32 %v690_v18, %v38_v15  ;;  %v96_v32 = vmul.f32 %v690_v18, %v52_v22  ;;  %v878_v53 = vld [vmem:[%s965_s5] ss:$0 sm:$0xff] }
  0x1f   :  { %532 = vmatpush3.bf16.msra.mxu0 %v612_v5  ;;  %596 = vmatpush3.bf16.msra.mxu1 %v612_v5  ;;  %v171_v2 = vmax.f32 %v139_v57, 0.0  ;;  %v55_v5 = vld [vmem:[%s961_s0 + $0xf8] sm:$0xff]  ;;  %v173_v31 = vmax.f32 %v141_v26, 0.0  ;;  %v98_v33 = vmul.f32 %v690_v18, %v54_v25  ;;  %v188_v35 = vpack.c.bf16 %v170_v17, %v168_v16 }
  0x20   :  { %v152_v6 = vmax.f32 %v120_v61, 0.0  ;;  %v99_v21 = vmul.f32 %v692_v19, %v55_v5  ;;  %v124_v37 = vadd.f32 %v703_v23, %v80_v27  ;;  %v126_v38 = vadd.f32 %v703_v23, %v82_v30 }
  0x21   :  { %v142_v40 = vadd.f32 %v703_v23, %v98_v33 }
  0x22   :  { %353 = vmatmul.mubr.bf16.vlgmr.msra.gmra.mxu0 %v176_v1  ;;  %385 = vmatmul.mubr.bf16.vlgmr.msra.gmra.mxu1 %v184_v11  ;;  %v181_v1 = vpack.c.bf16 %v155_v56, %v153_v51  ;;  %v189_v11 = vpack.c.bf16 %v171_v2, %v169_v60  ;;  %v143_v19 = vadd.f32 %v705_v24, %v99_v21  ;;  %v156_v42 = vmax.f32 %v124_v37, 0.0 }
  0x23   :  { %360 = vmatprep.mubr.bf16.mxu0 %v179_v29  ;;  %392 = vmatprep.mubr.bf16.mxu1 %v187_v39  ;;  %v159_v29 = vmax.f32 %v127_v20, 0.0  ;;  %v180_v34 = vpack.c.bf16 %v154_v12, %v152_v6  ;;  %v140_v39 = vadd.f32 %v703_v23, %v96_v32  ;;  %v158_v43 = vmax.f32 %v126_v38, 0.0  ;;  %v873_v23 = vld [vmem:[%s964_s4] ss:$0 sm:$0xff] }
  0x24   :  { %v175_v36 = vmax.f32 %v143_v19, 0.0  ;;  %v174_v45 = vmax.f32 %v142_v40, 0.0 }
  0x25   :  { %v183_v41 = vpack.c.bf16 %v159_v29, %v157_v28  ;;  %v172_v44 = vmax.f32 %v140_v39, 0.0  ;;  %v182_v18 = vpack.c.bf16 %v158_v43, %v156_v42 }
  0x26   :  { %v191_v24 = vpack.c.bf16 %v175_v36, %v173_v31 }
  0x27   :  { %v190_v46 = vpack.c.bf16 %v174_v45, %v172_v44 }
  0x2a   :  { %361 = vmatmul.mubr.bf16.gmra.mxu0 %v178_v50  ;;  %393 = vmatmul.mubr.bf16.gmra.mxu1 %v186_v55 }
  0x2b   :  { %368 = vmatprep.mubr.bf16.mxu0 %v181_v1  ;;  %400 = vmatprep.mubr.bf16.mxu1 %v189_v11 }
  0x32   :  { %369 = vmatmul.mubr.bf16.gmra.mxu0 %v180_v34  ;;  %401 = vmatmul.mubr.bf16.gmra.mxu1 %v188_v35 }
  0x33   :  { %376 = vmatprep.mubr.bf16.mxu0 %v183_v41  ;;  %408 = vmatprep.mubr.bf16.mxu1 %v191_v24 }
  0x3a   :  { %377 = vmatmul.mubr.bf16.gmra.mxu0 %v182_v18  ;;  %409 = vmatmul.mubr.bf16.gmra.mxu1 %v190_v46 }
  0xe2   :  { %v533_v47 = vpop.f32.mrf.mxu0  ;;  %v557_v48 = vpop.f32.mrf.mxu1 }
  0xe4   :  { %v534_v49 = vpop.f32.mrf.mxu0  ;;  %v558_v50 = vpop.f32.mrf.mxu1 }
  0xe5   :  { %v535_v51 = vadd.f32 %v534_v49, %v533_v47  ;;  %v559_v52 = vadd.f32 %v558_v50, %v557_v48 }
  0xe6   :  { %v536_v54 = vpop.f32.mrf.mxu0  ;;  %v560_v55 = vpop.f32.mrf.mxu1 }
  0xe7   :  { %v424_v56 = vmul.f32 %v535_v51, %v873_v23  ;;  %v432_v57 = vmul.f32 %v559_v52, %v873_v23 }
  0xe8   :  { %v537_v58 = vpop.f32.mrf.mxu0  ;;  %v561_v59 = vpop.f32.mrf.mxu1 }
  0xe9   :  { %v447_v60 = vadd.f32 %v878_v53, %v424_v56  ;;  %v455_v61 = vadd.f32 %v878_v53, %v432_v57  ;;  %v538_v62 = vadd.f32 %v537_v58, %v536_v54  ;;  %v562_v63 = vadd.f32 %v561_v59, %v560_v55 }
  0xea   :  { %v539_v0 = vpop.f32.mrf.mxu0  ;;  %v563_v1 = vpop.f32.mrf.mxu1 }
  0xeb   :  { %v463_v2 = vmax.f32 %v447_v60, 0.0  ;;  %v471_v3 = vmax.f32 %v455_v61, 0.0  ;;  %v425_v4 = vmul.f32 %v538_v62, %v873_v23  ;;  %v433_v5 = vmul.f32 %v562_v63, %v873_v23 }
  0xec   :  { %v540_v6 = vpop.f32.mrf.mxu0  ;;  %v564_v7 = vpop.f32.mrf.mxu1 }
  0xed   :  { %479 = vst [vmem:[%s966_s6] sm:$0xff] %v463_v2  ;;  %487 = vst [vmem:[%s966_s6 + $0x40] sm:$0xff] %v471_v3  ;;  %v448_v8 = vadd.f32 %v878_v53, %v425_v4  ;;  %v456_v9 = vadd.f32 %v878_v53, %v433_v5  ;;  %v541_v10 = vadd.f32 %v540_v6, %v539_v0 }
  0xee   :  { %v565_v11 = vadd.f32 %v564_v7, %v563_v1  ;;  %v542_v12 = vpop.f32.mrf.mxu0  ;;  %v566_v13 = vpop.f32.mrf.mxu1 }
  0xef   :  { %v464_v14 = vmax.f32 %v448_v8, 0.0  ;;  %v472_v15 = vmax.f32 %v456_v9, 0.0  ;;  %v426_v16 = vmul.f32 %v541_v10, %v873_v23 }
  0xf0   :  { %v434_v17 = vmul.f32 %v565_v11, %v873_v23  ;;  %v543_v20 = vpop.f32.mrf.mxu0  ;;  %v567_v21 = vpop.f32.mrf.mxu1 }
  0xf1   :  { %480 = vst [vmem:[%s966_s6 + $0x8] sm:$0xff] %v464_v14  ;;  %488 = vst [vmem:[%s966_s6 + $0x48] sm:$0xff] %v472_v15  ;;  %v449_v22 = vadd.f32 %v878_v53, %v426_v16  ;;  %v544_v26 = vadd.f32 %v543_v20, %v542_v12  ;;  %v568_v27 = vadd.f32 %v567_v21, %v566_v13 }
  0xf2   :  { %v457_v25 = vadd.f32 %v878_v53, %v434_v17  ;;  %v545_v28 = vpop.f32.mrf.mxu0  ;;  %v569_v29 = vpop.f32.mrf.mxu1 }
  0xf3   :  { %v465_v19 = vmax.f32 %v449_v22, 0.0  ;;  %v427_v31 = vmul.f32 %v544_v26, %v873_v23  ;;  %v435_v32 = vmul.f32 %v568_v27, %v873_v23 }
  0xf4   :  { %v473_v30 = vmax.f32 %v457_v25, 0.0  ;;  %v546_v33 = vpop.f32.mrf.mxu0  ;;  %v570_v34 = vpop.f32.mrf.mxu1 }
  0xf5   :  { %481 = vst [vmem:[%s966_s6 + $0x10] sm:$0xff] %v465_v19  ;;  %v450_v35 = vadd.f32 %v878_v53, %v427_v31  ;;  %v458_v36 = vadd.f32 %v878_v53, %v435_v32  ;;  %v547_v37 = vadd.f32 %v546_v33, %v545_v28  ;;  %v571_v38 = vadd.f32 %v570_v34, %v569_v29 }
  0xf6   :  { %489 = vst [vmem:[%s966_s6 + $0x50] sm:$0xff] %v473_v30  ;;  %v548_v39 = vpop.f32.mrf.mxu0  ;;  %v572_v40 = vpop.f32.mrf.mxu1 }
  0xf7   :  { %v466_v41 = vmax.f32 %v450_v35, 0.0  ;;  %v474_v24 = vmax.f32 %v458_v36, 0.0  ;;  %v428_v42 = vmul.f32 %v547_v37, %v873_v23  ;;  %v436_v43 = vmul.f32 %v571_v38, %v873_v23 }
  0xf8   :  { %v549_v44 = vpop.f32.mrf.mxu0  ;;  %v573_v45 = vpop.f32.mrf.mxu1 }
  0xf9   :  { %482 = vst [vmem:[%s966_s6 + $0x18] sm:$0xff] %v466_v41  ;;  %490 = vst [vmem:[%s966_s6 + $0x58] sm:$0xff] %v474_v24  ;;  %v451_v18 = vadd.f32 %v878_v53, %v428_v42  ;;  %v459_v46 = vadd.f32 %v878_v53, %v436_v43  ;;  %v550_v47 = vadd.f32 %v549_v44, %v548_v39 }
  0xfa   :  { %v574_v48 = vadd.f32 %v573_v45, %v572_v40  ;;  %v551_v49 = vpop.f32.mrf.mxu0  ;;  %v575_v50 = vpop.f32.mrf.mxu1 }
  0xfb   :  { %v467_v51 = vmax.f32 %v451_v18, 0.0  ;;  %v475_v52 = vmax.f32 %v459_v46, 0.0  ;;  %v429_v54 = vmul.f32 %v550_v47, %v873_v23 }
  0xfc   :  { %v437_v55 = vmul.f32 %v574_v48, %v873_v23  ;;  %v552_v56 = vpop.f32.mrf.mxu0  ;;  %v576_v57 = vpop.f32.mrf.mxu1 }
  0xfd   :  { %483 = vst [vmem:[%s966_s6 + $0x20] sm:$0xff] %v467_v51  ;;  %491 = vst [vmem:[%s966_s6 + $0x60] sm:$0xff] %v475_v52  ;;  %v452_v58 = vadd.f32 %v878_v53, %v429_v54  ;;  %v553_v60 = vadd.f32 %v552_v56, %v551_v49  ;;  %v577_v61 = vadd.f32 %v576_v57, %v575_v50 }
  0xfe   :  { %v460_v59 = vadd.f32 %v878_v53, %v437_v55  ;;  %v554_v62 = vpop.f32.mrf.mxu0  ;;  %v578_v63 = vpop.f32.mrf.mxu1 }
  0xff   :  { %v468_v0 = vmax.f32 %v452_v58, 0.0  ;;  %v430_v2 = vmul.f32 %v553_v60, %v873_v23  ;;  %v438_v3 = vmul.f32 %v577_v61, %v873_v23 }
 0x100   :  { %v476_v1 = vmax.f32 %v460_v59, 0.0  ;;  %v555_v4 = vpop.f32.mrf.mxu0  ;;  %v579_v5 = vpop.f32.mrf.mxu1 }
 0x101   :  { %484 = vst [vmem:[%s966_s6 + $0x28] sm:$0xff] %v468_v0  ;;  %v453_v6 = vadd.f32 %v878_v53, %v430_v2  ;;  %v461_v7 = vadd.f32 %v878_v53, %v438_v3  ;;  %v556_v8 = vadd.f32 %v555_v4, %v554_v62  ;;  %v580_v9 = vadd.f32 %v579_v5, %v578_v63 }
 0x102   :  { %492 = vst [vmem:[%s966_s6 + $0x68] sm:$0xff] %v476_v1 }
 0x103   :  { %v469_v10 = vmax.f32 %v453_v6, 0.0  ;;  %v477_v11 = vmax.f32 %v461_v7, 0.0  ;;  %v431_v12 = vmul.f32 %v556_v8, %v873_v23  ;;  %v439_v13 = vmul.f32 %v580_v9, %v873_v23 }
 0x105   :  { %485 = vst [vmem:[%s966_s6 + $0x30] sm:$0xff] %v469_v10  ;;  %493 = vst [vmem:[%s966_s6 + $0x70] sm:$0xff] %v477_v11  ;;  %v454_v14 = vadd.f32 %v878_v53, %v431_v12  ;;  %v462_v15 = vadd.f32 %v878_v53, %v439_v13 }
 0x107   :  { %v470_v16 = vmax.f32 %v454_v14, 0.0  ;;  %v478_v17 = vmax.f32 %v462_v15, 0.0 }
 0x109   :  { %486 = vst [vmem:[%s966_s6 + $0x38] sm:$0xff] %v470_v16  ;;  %494 = vst [vmem:[%s966_s6 + $0x78] sm:$0xff] %v478_v17 }

// kernel: densenet169_forward.205
= control target key start
LH: loop header
LB: loop body
LE: loop exit
PB: predicated region body
PF: predicated region fallthrough
CT: control target
= control target key end

     0   :  { %vm1289_vm0 = vcmask 261120   ;;  %s2639_s1 = inlined_call_operand.vmem [shape: bf16[1152,32], index: 1, kind: input, shape index: {}]   ;;  %s2640_s0 = inlined_call_operand.vmem [shape: f32[128,1152], index: 0, kind: input, shape index: {}]   ;;  %s2641_s2 = inlined_call_operand.vmem [shape: f32[128,32], index: 2, kind: output, shape index: {}]  }
   0x1   :  { %v1702_v0 = vld [vmem:[%s2639_s1 + $0x78] sm:$0xff]   ;;  %v1706_v4 = vld [vmem:[%s2639_s1 + $0x70] sm:$0xff]   ;;  %v1710_v8 = vld [vmem:[%s2639_s1 + $0x68] sm:$0xff]  }
   0x2   :  { %v1703_v1 = vld [vmem:[%s2639_s1 + $0xf8] sm:$0xff]   ;;  %1382 = vmatprep.subr.bf16.mxu0 %v1702_v0  ;;  %v1707_v5 = vld [vmem:[%s2639_s1 + $0xf0] sm:$0xff]   ;;  %v1711_v9 = vld [vmem:[%s2639_s1 + $0xe8] sm:$0xff]  }
   0x3   :  { %v1704_v2 = vld [vmem:[%s2639_s1 + $0x38] sm:$0xff]   ;;  %1446 = vmatprep.subr.bf16.mxu1 %v1703_v1  ;;  %v1708_v6 = vld [vmem:[%s2639_s1 + $0x30] sm:$0xff]   ;;  %v1712_v10 = vld [vmem:[%s2639_s1 + $0x28] sm:$0xff]  }
   0x4   :  { %v1705_v3 = vld [vmem:[%s2639_s1 + $0xb8] sm:$0xff]   ;;  %1383 = vmatpush3.bf16.msra.mxu0 %v1704_v2  ;;  %v1709_v7 = vld [vmem:[%s2639_s1 + $0xb0] sm:$0xff]   ;;  %v1713_v11 = vld [vmem:[%s2639_s1 + $0xa8] sm:$0xff]  }
   0x5   :  { %1447 = vmatpush3.bf16.msra.mxu1 %v1705_v3  ;;  %1384 = vmatprep.subr.bf16.mxu0 %v1706_v4  ;;  %v1714_v12 = vld [vmem:[%s2639_s1 + $0x60] sm:$0xff]   ;;  %v1718_v16 = vld [vmem:[%s2639_s1 + $0x58] sm:$0xff]   ;;  %v1722_v20 = vld [vmem:[%s2639_s1 + $0x50] sm:$0xff]  }
   0x6   :  { %1448 = vmatprep.subr.bf16.mxu1 %v1707_v5  ;;  %v1715_v13 = vld [vmem:[%s2639_s1 + $0xe0] sm:$0xff]   ;;  %v1719_v17 = vld [vmem:[%s2639_s1 + $0xd8] sm:$0xff]   ;;  %v1723_v21 = vld [vmem:[%s2639_s1 + $0xd0] sm:$0xff]  }
   0x7   :  { %v1716_v14 = vld [vmem:[%s2639_s1 + $0x20] sm:$0xff]   ;;  %v1720_v18 = vld [vmem:[%s2639_s1 + $0x18] sm:$0xff]   ;;  %v1724_v22 = vld [vmem:[%s2639_s1 + $0x10] sm:$0xff]  }
   0x8   :  { %1385 = vmatpush3.bf16.msra.mxu0 %v1708_v6  ;;  %v1717_v15 = vld [vmem:[%s2639_s1 + $0xa0] sm:$0xff]   ;;  %v1721_v19 = vld [vmem:[%s2639_s1 + $0x98] sm:$0xff]   ;;  %v1725_v23 = vld [vmem:[%s2639_s1 + $0x90] sm:$0xff]  }
   0x9   :  { %1449 = vmatpush3.bf16.msra.mxu1 %v1709_v7  ;;  %1386 = vmatprep.subr.bf16.mxu0 %v1710_v8  ;;  %v1726_v24 = vld [vmem:[%s2639_s1 + $0x48] sm:$0xff]   ;;  %v1730_v28 = vld [vmem:[%s2639_s1 + $0x40] sm:$0xff]   ;;  %v22_v33 = vld [vmem:[%s2640_s0 + $0x50] sm:$0xff] }
   0xa   :  { %1450 = vmatprep.subr.bf16.mxu1 %v1711_v9  ;;  %v1727_v25 = vld [vmem:[%s2639_s1 + $0xc8] sm:$0xff]   ;;  %v1731_v29 = vld [vmem:[%s2639_s1 + $0xc0] sm:$0xff]   ;;  %v15_v34 = vld [vmem:[%s2640_s0 + $0x18] sm:$0xff] }
   0xb   :  { %v1728_v26 = vld [vmem:[%s2639_s1 + $0x8] sm:$0xff]   ;;  %v1732_v30 = vld [vmem:[%s2639_s1] sm:$0xff]   ;;  %v14_v41 = vld [vmem:[%s2640_s0 + $0x10] sm:$0xff] }
   0xc   :  { %1387 = vmatpush3.bf16.msra.mxu0 %v1712_v10  ;;  %v1729_v27 = vld [vmem:[%s2639_s1 + $0x88] sm:$0xff]   ;;  %v1733_v31 = vld [vmem:[%s2639_s1 + $0x80] sm:$0xff]   ;;  %v23_v42 = vld [vmem:[%s2640_s0 + $0x58] sm:$0xff] }
   0xd   :  { %1451 = vmatpush3.bf16.msra.mxu1 %v1713_v11  ;;  %1388 = vmatprep.subr.bf16.mxu0 %v1714_v12  ;;  %v13_v32 = vld [vmem:[%s2640_s0 + $0x8] sm:$0xff]  ;;  %v24_v36 = vld [vmem:[%s2640_s0 + $0x60] sm:$0xff]  ;;  %v158_v43 = vpack.c.bf16 %v23_v42, %v14_v41  ;;  %v1734_v44 = vld [vmem:[%s2639_s1 + $0x178] sm:$0xff]  }
   0xe   :  { %1452 = vmatprep.subr.bf16.mxu1 %v1715_v13  ;;  %v157_v35 = vpack.c.bf16 %v22_v33, %v13_v32  ;;  %v12_v37 = vld [vmem:[%s2640_s0] sm:$0xff]  ;;  %v21_v38 = vld [vmem:[%s2640_s0 + $0x48] sm:$0xff]  ;;  %v159_v39 = vpack.c.bf16 %v24_v36, %v15_v34  ;;  %v1735_v45 = vld [vmem:[%s2639_s1 + $0x1f8] sm:$0xff]  }
   0xf   :  { %v156_v40 = vpack.c.bf16 %v21_v38, %v12_v37  ;;  %v1736_v46 = vld [vmem:[%s2639_s1 + $0x138] sm:$0xff]   ;;  %v40_v49 = vld [vmem:[%s2640_s0 + $0xe0] sm:$0xff]  ;;  %v33_v50 = vld [vmem:[%s2640_s0 + $0xa8] sm:$0xff] }
  0x10   :  { %1389 = vmatpush3.bf16.msra.mxu0 %v1716_v14  ;;  %836 = vmatprep.mubr.bf16.mxu0 %v157_v35  ;;  %v1737_v47 = vld [vmem:[%s2639_s1 + $0x1b8] sm:$0xff]   ;;  %v42_v51 = vld [vmem:[%s2640_s0 + $0xf0] sm:$0xff]  ;;  %v32_v56 = vld [vmem:[%s2640_s0 + $0xa0] sm:$0xff] }
  0x11   :  { %1453 = vmatpush3.bf16.msra.mxu1 %v1717_v15  ;;  %1390 = vmatprep.subr.bf16.mxu0 %v1718_v16  ;;  %v31_v48 = vld [vmem:[%s2640_s0 + $0x98] sm:$0xff]  ;;  %v168_v53 = vpack.c.bf16 %v42_v51, %v33_v50  ;;  %v30_v54 = vld [vmem:[%s2640_s0 + $0x90] sm:$0xff]  ;;  %v41_v58 = vld [vmem:[%s2640_s0 + $0xe8] sm:$0xff] }
  0x12   :  { %1454 = vmatprep.subr.bf16.mxu1 %v1719_v17  ;;  %933 = vmatprep.mubr.bf16.mxu1 %v159_v39  ;;  %v166_v52 = vpack.c.bf16 %v40_v49, %v31_v48  ;;  %v39_v55 = vld [vmem:[%s2640_s0 + $0xd8] sm:$0xff]  ;;  %v167_v59 = vpack.c.bf16 %v41_v58, %v32_v56  ;;  %v1738_v60 = vld [vmem:[%s2639_s1 + $0x170] sm:$0xff]   ;;  %v49_v0 = vld [vmem:[%s2640_s0 + $0x128] sm:$0xff] }
  0x13   :  { %v165_v57 = vpack.c.bf16 %v39_v55, %v30_v54  ;;  %v1739_v61 = vld [vmem:[%s2639_s1 + $0x1f0] sm:$0xff]   ;;  %v51_v3 = vld [vmem:[%s2640_s0 + $0x138] sm:$0xff]  ;;  %v60_v4 = vld [vmem:[%s2640_s0 + $0x180] sm:$0xff] }
  0x14   :  { %1391 = vmatpush3.bf16.msra.mxu0 %v1720_v18  ;;  %v1740_v62 = vld [vmem:[%s2639_s1 + $0x130] sm:$0xff]   ;;  %v48_v5 = vld [vmem:[%s2640_s0 + $0x120] sm:$0xff]  ;;  %v177_v6 = vpack.c.bf16 %v60_v4, %v51_v3  ;;  %v57_v7 = vld [vmem:[%s2640_s0 + $0x168] sm:$0xff] }
  0x15   :  { %1455 = vmatpush3.bf16.msra.mxu1 %v1721_v19  ;;  %1392 = vmatprep.subr.bf16.mxu0 %v1722_v20  ;;  %v1741_v63 = vld [vmem:[%s2639_s1 + $0x1b0] sm:$0xff]   ;;  %v59_v9 = vld [vmem:[%s2640_s0 + $0x178] sm:$0xff]  ;;  %v174_v10 = vpack.c.bf16 %v57_v7, %v48_v5  ;;  %v1742_v11 = vld [vmem:[%s2639_s1 + $0x168] sm:$0xff]  }
  0x16   :  { %1456 = vmatprep.subr.bf16.mxu1 %v1723_v21  ;;  %v58_v1 = vld [vmem:[%s2640_s0 + $0x170] sm:$0xff]  ;;  %v1743_v13 = vld [vmem:[%s2639_s1 + $0x1e8] sm:$0xff]   ;;  %v67_v16 = vld [vmem:[%s2640_s0 + $0x1b8] sm:$0xff] }
  0x17   :  { %v175_v2 = vpack.c.bf16 %v58_v1, %v49_v0  ;;  %v50_v8 = vld [vmem:[%s2640_s0 + $0x130] sm:$0xff]  ;;  %v1744_v14 = vld [vmem:[%s2639_s1 + $0x128] sm:$0xff]   ;;  %v76_v17 = vld [vmem:[%s2640_s0 + $0x200] sm:$0xff] }
  0x18   :  { %1393 = vmatpush3.bf16.msra.mxu0 %v1724_v22  ;;  %v176_v12 = vpack.c.bf16 %v59_v9, %v50_v8  ;;  %v1745_v15 = vld [vmem:[%s2639_s1 + $0x1a8] sm:$0xff]   ;;  %v184_v19 = vpack.c.bf16 %v76_v17, %v67_v16  ;;  %v78_v20 = vld [vmem:[%s2640_s0 + $0x210] sm:$0xff]  ;;  %v75_v22 = vld [vmem:[%s2640_s0 + $0x1f8] sm:$0xff] }
  0x19   :  { %1457 = vmatpush3.bf16.msra.mxu1 %v1725_v23  ;;  %1394 = vmatprep.subr.bf16.mxu0 %v1726_v24  ;;  %v69_v18 = vld [vmem:[%s2640_s0 + $0x1c8] sm:$0xff]  ;;  %v66_v21 = vld [vmem:[%s2640_s0 + $0x1b0] sm:$0xff]  ;;  %v68_v24 = vld [vmem:[%s2640_s0 + $0x1c0] sm:$0xff] }
  0x1a   :  { %1458 = vmatprep.subr.bf16.mxu1 %v1727_v25  ;;  %v186_v23 = vpack.c.bf16 %v78_v20, %v69_v18  ;;  %v77_v25 = vld [vmem:[%s2640_s0 + $0x208] sm:$0xff]  ;;  %v94_v33 = vld [vmem:[%s2640_s0 + $0x290] sm:$0xff]  ;;  %v87_v34 = vld [vmem:[%s2640_s0 + $0x258] sm:$0xff] }
  0x1b   :  { %v85_v32 = vld [vmem:[%s2640_s0 + $0x248] sm:$0xff]  ;;  %v96_v35 = vld [vmem:[%s2640_s0 + $0x2a0] sm:$0xff]  ;;  %v95_v41 = vld [vmem:[%s2640_s0 + $0x298] sm:$0xff] }
  0x1c   :  { %1395 = vmatpush3.bf16.msra.mxu0 %v1728_v26  ;;  %v1746_v26 = vld [vmem:[%s2639_s1 + $0x160] sm:$0xff]   ;;  %v193_v36 = vpack.c.bf16 %v94_v33, %v85_v32  ;;  %v195_v37 = vpack.c.bf16 %v96_v35, %v87_v34  ;;  %v93_v39 = vld [vmem:[%s2640_s0 + $0x288] sm:$0xff]  ;;  %v1750_v42 = vld [vmem:[%s2639_s1 + $0x158] sm:$0xff]  }
  0x1d   :  { %1459 = vmatpush3.bf16.msra.mxu1 %v1729_v27  ;;  %1396 = vmatprep.subr.bf16.mxu0 %v1730_v28  ;;  %v183_v27 = vpack.c.bf16 %v75_v22, %v66_v21  ;;  %v1747_v28 = vld [vmem:[%s2639_s1 + $0x1e0] sm:$0xff]   ;;  %v103_v48 = vld [vmem:[%s2640_s0 + $0x2d8] sm:$0xff]  ;;  %v105_v51 = vld [vmem:[%s2640_s0 + $0x2e8] sm:$0xff] }
  0x1e   :  { %1460 = vmatprep.subr.bf16.mxu1 %v1731_v29  ;;  %v185_v29 = vpack.c.bf16 %v77_v25, %v68_v24  ;;  %v84_v38 = vld [vmem:[%s2640_s0 + $0x240] sm:$0xff]  ;;  %v102_v54 = vld [vmem:[%s2640_s0 + $0x2d0] sm:$0xff]  ;;  %v111_v55 = vld [vmem:[%s2640_s0 + $0x318] sm:$0xff] }
  0x1f   :  { %v112_v49 = vld [vmem:[%s2640_s0 + $0x320] sm:$0xff]  ;;  %v1754_v58 = vld [vmem:[%s2639_s1 + $0x150] sm:$0xff]   ;;  %v123_v1 = vld [vmem:[%s2640_s0 + $0x378] sm:$0xff] }
  0x20   :  { %1397 = vmatpush3.bf16.msra.mxu0 %v1732_v30  ;;  %v1748_v30 = vld [vmem:[%s2639_s1 + $0x120] sm:$0xff]   ;;  %v202_v50 = vpack.c.bf16 %v112_v49, %v103_v48  ;;  %v130_v0 = vld [vmem:[%s2640_s0 + $0x3b0] sm:$0xff]  ;;  %v129_v7 = vld [vmem:[%s2640_s0 + $0x3a8] sm:$0xff] }
  0x21   :  { %1461 = vmatpush3.bf16.msra.mxu1 %v1733_v31  ;;  %1510 = vmatprep.subr.bf16.mxu0 %v1734_v44  ;;  %v1749_v31 = vld [vmem:[%s2639_s1 + $0x1a0] sm:$0xff]   ;;  %v192_v44 = vpack.c.bf16 %v93_v39, %v84_v38  ;;  %v1758_v8 = vld [vmem:[%s2639_s1 + $0x148] sm:$0xff]   ;;  %v122_v9 = vld [vmem:[%s2640_s0 + $0x370] sm:$0xff] }
  0x22   :  { %1574 = vmatprep.subr.bf16.mxu1 %v1735_v45  ;;  %v1752_v45 = vld [vmem:[%s2639_s1 + $0x118] sm:$0xff]   ;;  %v104_v56 = vld [vmem:[%s2640_s0 + $0x2e0] sm:$0xff]  ;;  %v141_v16 = vld [vmem:[%s2640_s0 + $0x408] sm:$0xff] }
  0x23   :  { %837 = vmatmul.mubr.bf16.vlgmr.msra.gmra.mxu0 %v156_v40  ;;  %v86_v40 = vld [vmem:[%s2640_s0 + $0x250] sm:$0xff]  ;;  %v132_v4 = vld [vmem:[%s2640_s0 + $0x3c0] sm:$0xff]  ;;  %v19_v32 = vld [vmem:[%s2640_s0 + $0x38] sm:$0xff] }
  0x24   :  { %934 = vmatmul.mubr.bf16.vlgmr.msra.gmra.mxu1 %v158_v43  ;;  %1511 = vmatpush3.bf16.msra.mxu0 %v1736_v46  ;;  %v1751_v43 = vld [vmem:[%s2639_s1 + $0x1d8] sm:$0xff]   ;;  %v194_v46 = vpack.c.bf16 %v95_v41, %v86_v40  ;;  %v213_v5 = vpack.c.bf16 %v132_v4, %v123_v1  ;;  %v150_v17 = vld [vmem:[%s2640_s0 + $0x450] sm:$0xff]  ;;  %v1762_v22 = vld [vmem:[%s2639_s1 + $0x140] sm:$0xff]  }
  0x25   :  { %1575 = vmatpush3.bf16.msra.mxu1 %v1737_v47  ;;  %844 = vmatprep.mubr.bf16.mxu0 %v166_v52  ;;  %v1753_v47 = vld [vmem:[%s2639_s1 + $0x198] sm:$0xff]   ;;  %v114_v52 = vld [vmem:[%s2640_s0 + $0x330] sm:$0xff]  ;;  %v222_v21 = vpack.c.bf16 %v150_v17, %v141_v16  ;;  %v1763_v24 = vld [vmem:[%s2639_s1 + $0x1c0] sm:$0xff]  }
  0x26   :  { %941 = vmatprep.mubr.bf16.mxu1 %v168_v53  ;;  %1512 = vmatprep.subr.bf16.mxu0 %v1738_v60  ;;  %v204_v53 = vpack.c.bf16 %v114_v52, %v105_v51  ;;  %v1756_v60 = vld [vmem:[%s2639_s1 + $0x110] sm:$0xff]   ;;  %v1764_v25 = vld [vmem:[%s2639_s1 + $0x100] sm:$0xff]   ;;  %v1766_v35 = vld [vmem:[%s2639_s1 + $0x238] sm:$0xff]  }
  0x27   :  { %1576 = vmatprep.subr.bf16.mxu1 %v1739_v61  ;;  %v1757_v61 = vld [vmem:[%s2639_s1 + $0x190] sm:$0xff]   ;;  %v28_v33 = vld [vmem:[%s2640_s0 + $0x80] sm:$0xff]  ;;  %v25_v40 = vld [vmem:[%s2640_s0 + $0x68] sm:$0xff] }
  0x28   :  { %1513 = vmatpush3.bf16.msra.mxu0 %v1740_v62  ;;  %v201_v62 = vpack.c.bf16 %v111_v55, %v102_v54  ;;  %v163_v38 = vpack.c.bf16 %v28_v33, %v19_v32  ;;  %v16_v39 = vld [vmem:[%s2640_s0 + $0x20] sm:$0xff]  ;;  %v18_v41 = vld [vmem:[%s2640_s0 + $0x30] sm:$0xff]  ;;  %v45_v55 = vld [vmem:[%s2640_s0 + $0x108] sm:$0xff] }
  0x29   :  { %1577 = vmatpush3.bf16.msra.mxu1 %v1741_v63  ;;  %1514 = vmatprep.subr.bf16.mxu0 %v1742_v11  ;;  %v121_v63 = vld [vmem:[%s2640_s0 + $0x368] sm:$0xff]  ;;  %v1767_v51 = vld [vmem:[%s2639_s1 + $0x230] sm:$0xff]   ;;  %v36_v54 = vld [vmem:[%s2640_s0 + $0xc0] sm:$0xff] }
  0x2a   :  { %1578 = vmatprep.subr.bf16.mxu1 %v1743_v13  ;;  %v211_v3 = vpack.c.bf16 %v130_v0, %v121_v63  ;;  %v1759_v11 = vld [vmem:[%s2639_s1 + $0x1c8] sm:$0xff]   ;;  %v34_v52 = vld [vmem:[%s2640_s0 + $0xb0] sm:$0xff]  ;;  %v1769_v1 = vld [vmem:[%s2639_s1 + $0x220] sm:$0xff]  }
  0x2b   :  { %845 = vmatmul.mubr.bf16.gmra.mxu0 %v165_v57  ;;  %v113_v57 = vld [vmem:[%s2640_s0 + $0x328] sm:$0xff]  ;;  %v54_v4 = vld [vmem:[%s2640_s0 + $0x150] sm:$0xff]  ;;  %v79_v17 = vld [vmem:[%s2640_s0 + $0x218] sm:$0xff] }
  0x2c   :  { %942 = vmatmul.mubr.bf16.gmra.mxu1 %v167_v59  ;;  %852 = vmatprep.mubr.bf16.mxu0 %v175_v2  ;;  %v1755_v59 = vld [vmem:[%s2639_s1 + $0x1d0] sm:$0xff]   ;;  %v203_v2 = vpack.c.bf16 %v113_v57, %v104_v56  ;;  %v1761_v13 = vld [vmem:[%s2639_s1 + $0x188] sm:$0xff]   ;;  %v99_v33 = vld [vmem:[%s2640_s0 + $0x2b8] sm:$0xff] }
  0x2d   :  { %949 = vmatprep.mubr.bf16.mxu1 %v177_v6  ;;  %1515 = vmatpush3.bf16.msra.mxu0 %v1744_v14  ;;  %v120_v6 = vld [vmem:[%s2640_s0 + $0x360] sm:$0xff]  ;;  %v139_v14 = vld [vmem:[%s2640_s0 + $0x3f8] sm:$0xff]  ;;  %v53_v56 = vld [vmem:[%s2640_s0 + $0x148] sm:$0xff] }
  0x2e   :  { %1579 = vmatpush3.bf16.msra.mxu1 %v1745_v15  ;;  %1516 = vmatprep.subr.bf16.mxu0 %v1746_v26  ;;  %v148_v15 = vld [vmem:[%s2640_s0 + $0x440] sm:$0xff]  ;;  %v210_v18 = vpack.c.bf16 %v129_v7, %v120_v6  ;;  %v147_v26 = vld [vmem:[%s2640_s0 + $0x438] sm:$0xff]  ;;  %v62_v57 = vld [vmem:[%s2640_s0 + $0x190] sm:$0xff] }
  0x2f   :  { %1580 = vmatprep.subr.bf16.mxu1 %v1747_v28  ;;  %v220_v20 = vpack.c.bf16 %v148_v15, %v139_v14  ;;  %v1765_v28 = vld [vmem:[%s2639_s1 + $0x180] sm:$0xff]   ;;  %v179_v63 = vpack.c.bf16 %v62_v57, %v53_v56  ;;  %v71_v6 = vld [vmem:[%s2640_s0 + $0x1d8] sm:$0xff]  ;;  %v1771_v15 = vld [vmem:[%s2639_s1 + $0x210] sm:$0xff]  }
  0x30   :  { %v80_v7 = vld [vmem:[%s2640_s0 + $0x220] sm:$0xff]  ;;  %v70_v16 = vld [vmem:[%s2640_s0 + $0x1d0] sm:$0xff]  ;;  %v135_v57 = vld [vmem:[%s2640_s0 + $0x3d8] sm:$0xff] }
  0x31   :  { %1517 = vmatpush3.bf16.msra.mxu0 %v1748_v30  ;;  %v17_v30 = vld [vmem:[%s2640_s0 + $0x28] sm:$0xff]  ;;  %v90_v32 = vld [vmem:[%s2640_s0 + $0x270] sm:$0xff] }
  0x32   :  { %1581 = vmatpush3.bf16.msra.mxu1 %v1749_v31  ;;  %1518 = vmatprep.subr.bf16.mxu0 %v1750_v42  ;;  %v26_v31 = vld [vmem:[%s2640_s0 + $0x70] sm:$0xff]  ;;  %v27_v42 = vld [vmem:[%s2640_s0 + $0x78] sm:$0xff] }
  0x33   :  { %853 = vmatmul.mubr.bf16.gmra.mxu0 %v174_v10  ;;  %1582 = vmatprep.subr.bf16.mxu1 %v1751_v43  ;;  %v131_v10 = vld [vmem:[%s2640_s0 + $0x3b8] sm:$0xff]  ;;  %v162_v48 = vpack.c.bf16 %v27_v42, %v18_v41  ;;  %v106_v42 = vld [vmem:[%s2640_s0 + $0x2f0] sm:$0xff] }
  0x34   :  { %950 = vmatmul.mubr.bf16.gmra.mxu1 %v176_v12  ;;  %860 = vmatprep.mubr.bf16.mxu0 %v184_v19  ;;  %v1760_v12 = vld [vmem:[%s2639_s1 + $0x108] sm:$0xff]   ;;  %v212_v19 = vpack.c.bf16 %v131_v10, %v122_v9  ;;  %v35_v43 = vld [vmem:[%s2640_s0 + $0xb8] sm:$0xff]  ;;  %v82_v9 = vld [vmem:[%s2640_s0 + $0x230] sm:$0xff] }
  0x35   :  { %957 = vmatprep.mubr.bf16.mxu1 %v186_v23  ;;  %1519 = vmatpush3.bf16.msra.mxu0 %v1752_v45  ;;  %v138_v23 = vld [vmem:[%s2640_s0 + $0x3f0] sm:$0xff]  ;;  %v160_v45 = vpack.c.bf16 %v25_v40, %v16_v39  ;;  %v1770_v10 = vld [vmem:[%s2639_s1 + $0x218] sm:$0xff]   ;;  %v198_v39 = vpack.c.bf16 %v99_v33, %v90_v32 }
  0x36   :  { %1583 = vmatpush3.bf16.msra.mxu1 %v1753_v47  ;;  %1520 = vmatprep.subr.bf16.mxu0 %v1754_v58  ;;  %v219_v34 = vpack.c.bf16 %v147_v26, %v138_v23  ;;  %v46_v47 = vld [vmem:[%s2640_s0 + $0x110] sm:$0xff]  ;;  %v1768_v58 = vld [vmem:[%s2639_s1 + $0x228] sm:$0xff]   ;;  %v100_v23 = vld [vmem:[%s2640_s0 + $0x2c0] sm:$0xff] }
  0x37   :  { %1584 = vmatprep.subr.bf16.mxu1 %v1755_v59  ;;  %v55_v59 = vld [vmem:[%s2640_s0 + $0x158] sm:$0xff]  ;;  %v126_v56 = vld [vmem:[%s2640_s0 + $0x390] sm:$0xff] }
  0x39   :  { %1521 = vmatpush3.bf16.msra.mxu0 %v1756_v60  ;;  %v64_v60 = vld [vmem:[%s2640_s0 + $0x1a0] sm:$0xff] }
  0x3a   :  { %1585 = vmatpush3.bf16.msra.mxu1 %v1757_v61  ;;  %1522 = vmatprep.subr.bf16.mxu0 %v1758_v8  ;;  %v181_v0 = vpack.c.bf16 %v64_v60, %v55_v59  ;;  %v73_v8 = vld [vmem:[%s2640_s0 + $0x1e8] sm:$0xff]  ;;  %v152_v59 = vld [vmem:[%s2640_s0 + $0x460] sm:$0xff] }
  0x3b   :  { %861 = vmatmul.mubr.bf16.gmra.mxu0 %v183_v27  ;;  %1586 = vmatprep.subr.bf16.mxu1 %v1759_v11  ;;  %v140_v27 = vld [vmem:[%s2640_s0 + $0x400] sm:$0xff]  ;;  %v190_v14 = vpack.c.bf16 %v82_v9, %v73_v8  ;;  %v145_v60 = vld [vmem:[%s2640_s0 + $0x428] sm:$0xff] }
  0x3c   :  { %958 = vmatmul.mubr.bf16.gmra.mxu1 %v185_v29  ;;  %868 = vmatprep.mubr.bf16.mxu0 %v193_v36  ;;  %v149_v29 = vld [vmem:[%s2640_s0 + $0x448] sm:$0xff]  ;;  %v92_v8 = vld [vmem:[%s2640_s0 + $0x280] sm:$0xff] }
  0x3d   :  { %965 = vmatprep.mubr.bf16.mxu1 %v195_v37  ;;  %1523 = vmatpush3.bf16.msra.mxu0 %v1760_v12  ;;  %v221_v36 = vpack.c.bf16 %v149_v29, %v140_v27  ;;  %v161_v37 = vpack.c.bf16 %v26_v31, %v17_v30  ;;  %v1773_v29 = vld [vmem:[%s2639_s1 + $0x200] sm:$0xff]   ;;  %v97_v31 = vld [vmem:[%s2640_s0 + $0x2a8] sm:$0xff] }
  0x3e   :  { %1587 = vmatpush3.bf16.msra.mxu1 %v1761_v13  ;;  %1524 = vmatprep.subr.bf16.mxu0 %v1762_v22  ;;  %v188_v13 = vpack.c.bf16 %v80_v7, %v71_v6  ;;  %v91_v22 = vld [vmem:[%s2640_s0 + $0x278] sm:$0xff]  ;;  %v88_v30 = vld [vmem:[%s2640_s0 + $0x260] sm:$0xff]  ;;  %v29_v7 = vld [vmem:[%s2640_s0 + $0x88] sm:$0xff] }
  0x3f   :  { %1588 = vmatprep.subr.bf16.mxu1 %v1763_v24  ;;  %v1772_v24 = vld [vmem:[%s2639_s1 + $0x208] sm:$0xff]   ;;  %v20_v6 = vld [vmem:[%s2640_s0 + $0x40] sm:$0xff] }
  0x40   :  { %v101_v9 = vld [vmem:[%s2640_s0 + $0x2c8] sm:$0xff] }
  0x41   :  { %1525 = vmatpush3.bf16.msra.mxu0 %v1764_v25  ;;  %v187_v25 = vpack.c.bf16 %v79_v17, %v70_v16  ;;  %v110_v16 = vld [vmem:[%s2640_s0 + $0x310] sm:$0xff]  ;;  %v119_v17 = vld [vmem:[%s2640_s0 + $0x358] sm:$0xff] }
  0x42   :  { %1589 = vmatpush3.bf16.msra.mxu1 %v1765_v28  ;;  %1654 = vmatprep.subr.bf16.mxu0 %v1766_v35  ;;  %v199_v28 = vpack.c.bf16 %v100_v23, %v91_v22  ;;  %v209_v23 = vpack.c.bf16 %v119_v17, %v110_v16 }
  0x43   :  { %869 = vmatmul.mubr.bf16.gmra.mxu0 %v192_v44  ;;  %1686 = vmatprep.subr.bf16.mxu1 %v1766_v35  ;;  %v44_v44 = vld [vmem:[%s2640_s0 + $0x100] sm:$0xff] }
  0x44   :  { %966 = vmatmul.mubr.bf16.gmra.mxu1 %v194_v46  ;;  %876 = vmatprep.mubr.bf16.mxu0 %v202_v50  ;;  %v37_v46 = vld [vmem:[%s2640_s0 + $0xc8] sm:$0xff]  ;;  %v170_v49 = vpack.c.bf16 %v44_v44, %v35_v43  ;;  %v115_v43 = vld [vmem:[%s2640_s0 + $0x338] sm:$0xff]  ;;  %v108_v44 = vld [vmem:[%s2640_s0 + $0x300] sm:$0xff] }
  0x45   :  { %973 = vmatprep.mubr.bf16.mxu1 %v204_v53  ;;  %v172_v50 = vpack.c.bf16 %v46_v47, %v37_v46  ;;  %v43_v53 = vld [vmem:[%s2640_s0 + $0xf8] sm:$0xff]  ;;  %v125_v46 = vld [vmem:[%s2640_s0 + $0x388] sm:$0xff]  ;;  %v134_v47 = vld [vmem:[%s2640_s0 + $0x3d0] sm:$0xff] }
  0x46   :  { %v169_v61 = vpack.c.bf16 %v43_v53, %v34_v52  ;;  %v215_v52 = vpack.c.bf16 %v134_v47, %v125_v46 }
  0x4b   :  { %877 = vmatmul.mubr.bf16.gmra.mxu0 %v201_v62  ;;  %v171_v62 = vpack.c.bf16 %v45_v55, %v36_v54  ;;  %v124_v54 = vld [vmem:[%s2640_s0 + $0x380] sm:$0xff]  ;;  %v133_v55 = vld [vmem:[%s2640_s0 + $0x3c8] sm:$0xff] }
  0x4c   :  { %974 = vmatmul.mubr.bf16.gmra.mxu1 %v203_v2  ;;  %884 = vmatprep.mubr.bf16.mxu0 %v211_v3  ;;  %v52_v2 = vld [vmem:[%s2640_s0 + $0x140] sm:$0xff]  ;;  %v61_v3 = vld [vmem:[%s2640_s0 + $0x188] sm:$0xff] }
  0x4d   :  { %981 = vmatprep.mubr.bf16.mxu1 %v213_v5  ;;  %v63_v5 = vld [vmem:[%s2640_s0 + $0x198] sm:$0xff]  ;;  %v178_v11 = vpack.c.bf16 %v61_v3, %v52_v2  ;;  %v142_v2 = vld [vmem:[%s2640_s0 + $0x410] sm:$0xff] }
  0x4e   :  { %v180_v12 = vpack.c.bf16 %v63_v5, %v54_v4  ;;  %v151_v3 = vld [vmem:[%s2640_s0 + $0x458] sm:$0xff]  ;;  %v144_v4 = vld [vmem:[%s2640_s0 + $0x420] sm:$0xff]  ;;  %v153_v5 = vld [vmem:[%s2640_s0 + $0x468] sm:$0xff] }
  0x53   :  { %885 = vmatmul.mubr.bf16.gmra.mxu0 %v210_v18  ;;  %v72_v18 = vld [vmem:[%s2640_s0 + $0x1e0] sm:$0xff] }
  0x54   :  { %982 = vmatmul.mubr.bf16.gmra.mxu1 %v212_v19  ;;  %892 = vmatprep.mubr.bf16.mxu0 %v220_v20  ;;  %v81_v19 = vld [vmem:[%s2640_s0 + $0x228] sm:$0xff] }
  0x55   :  { %989 = vmatprep.mubr.bf16.mxu1 %v222_v21  ;;  %v89_v20 = vld [vmem:[%s2640_s0 + $0x268] sm:$0xff]  ;;  %v98_v21 = vld [vmem:[%s2640_s0 + $0x2b0] sm:$0xff]  ;;  %v189_v26 = vpack.c.bf16 %v81_v19, %v72_v18  ;;  %v56_v18 = vld [vmem:[%s2640_s0 + $0x160] sm:$0xff] }
  0x56   :  { %v197_v27 = vpack.c.bf16 %v98_v21, %v89_v20  ;;  %v65_v19 = vld [vmem:[%s2640_s0 + $0x1a8] sm:$0xff]  ;;  %v128_v20 = vld [vmem:[%s2640_s0 + $0x3a0] sm:$0xff] }
  0x57   :  { %v137_v21 = vld [vmem:[%s2640_s0 + $0x3e8] sm:$0xff] }
  0x5b   :  { %893 = vmatmul.mubr.bf16.gmra.mxu0 %v219_v34  ;;  %v107_v34 = vld [vmem:[%s2640_s0 + $0x2f8] sm:$0xff] }
  0x5c   :  { %990 = vmatmul.mubr.bf16.gmra.mxu1 %v221_v36  ;;  %1030 = vmatprep.mubr.bf16.mxu0 %v161_v37  ;;  %v109_v36 = vld [vmem:[%s2640_s0 + $0x308] sm:$0xff]  ;;  %v118_v37 = vld [vmem:[%s2640_s0 + $0x350] sm:$0xff] }
  0x5d   :  { %1127 = vmatprep.mubr.bf16.mxu1 %v163_v38  ;;  %v196_v38 = vpack.c.bf16 %v97_v31, %v88_v30  ;;  %v208_v41 = vpack.c.bf16 %v118_v37, %v109_v36 }
  0x63   :  { %1031 = vmatmul.mubr.bf16.vlgmr.msra.gmra.mxu0 %v160_v45  ;;  %v117_v45 = vld [vmem:[%s2640_s0 + $0x348] sm:$0xff] }
  0x64   :  { %1128 = vmatmul.mubr.bf16.vlgmr.msra.gmra.mxu1 %v162_v48  ;;  %1655 = vmatpush3.bf16.msra.mxu0 %v1766_v35  ;;  %v127_v48 = vld [vmem:[%s2640_s0 + $0x398] sm:$0xff] }
  0x65   :  { %1694 = vmatpush3.bf16.msra.mxu1 %v1766_v35  ;;  %1038 = vmatprep.mubr.bf16.mxu0 %v170_v49  ;;  %v116_v35 = vld [vmem:[%s2640_s0 + $0x340] sm:$0xff] }
  0x66   :  { %1135 = vmatprep.mubr.bf16.mxu1 %v172_v50  ;;  %1656 = vmatprep.subr.bf16.mxu0 %v1767_v51  ;;  %v206_v40 = vpack.c.bf16 %v116_v35, %v107_v34  ;;  %v136_v49 = vld [vmem:[%s2640_s0 + $0x3e0] sm:$0xff]  ;;  %v205_v50 = vpack.c.bf16 %v115_v43, %v106_v42 }
  0x67   :  { %1687 = vmatprep.subr.bf16.mxu1 %v1767_v51  ;;  %v217_v53 = vpack.c.bf16 %v136_v49, %v127_v48 }
  0x68   :  { %1657 = vmatpush3.bf16.msra.mxu0 %v1767_v51 }
  0x69   :  { %1695 = vmatpush3.bf16.msra.mxu1 %v1767_v51  ;;  %1658 = vmatprep.subr.bf16.mxu0 %v1768_v58  ;;  %v207_v51 = vpack.c.bf16 %v117_v45, %v108_v44 }
  0x6a   :  { %1688 = vmatprep.subr.bf16.mxu1 %v1768_v58 }
  0x6b   :  { %1039 = vmatmul.mubr.bf16.gmra.mxu0 %v169_v61  ;;  %v154_v61 = vld [vmem:[%s2640_s0 + $0x470] sm:$0xff] }
  0x6c   :  { %1136 = vmatmul.mubr.bf16.gmra.mxu1 %v171_v62  ;;  %1046 = vmatprep.mubr.bf16.mxu0 %v179_v63  ;;  %v214_v62 = vpack.c.bf16 %v133_v55, %v124_v54  ;;  %v216_v63 = vpack.c.bf16 %v135_v57, %v126_v56 }
  0x6d   :  { %1143 = vmatprep.mubr.bf16.mxu1 %v181_v0  ;;  %1659 = vmatpush3.bf16.msra.mxu0 %v1768_v58 }
  0x6e   :  { %1696 = vmatpush3.bf16.msra.mxu1 %v1768_v58  ;;  %1660 = vmatprep.subr.bf16.mxu0 %v1769_v1  ;;  %v143_v58 = vld [vmem:[%s2640_s0 + $0x418] sm:$0xff] }
  0x6f   :  { %1689 = vmatprep.subr.bf16.mxu1 %v1769_v1  ;;  %v224_v0 = vpack.c.bf16 %v152_v59, %v143_v58 }
  0x71   :  { %1661 = vmatpush3.bf16.msra.mxu0 %v1769_v1 }
  0x72   :  { %1697 = vmatpush3.bf16.msra.mxu1 %v1769_v1  ;;  %1662 = vmatprep.subr.bf16.mxu0 %v1770_v10  ;;  %v226_v1 = vpack.c.bf16 %v154_v61, %v145_v60 }
  0x73   :  { %1047 = vmatmul.mubr.bf16.gmra.mxu0 %v178_v11  ;;  %1690 = vmatprep.subr.bf16.mxu1 %v1770_v10  ;;  %v225_v11 = vpack.c.bf16 %v153_v5, %v144_v4 }
  0x74   :  { %1144 = vmatmul.mubr.bf16.gmra.mxu1 %v180_v12  ;;  %1054 = vmatprep.mubr.bf16.mxu0 %v188_v13  ;;  %v164_v12 = vpack.c.bf16 %v29_v7, %v20_v6  ;;  %v200_v13 = vpack.c.bf16 %v101_v9, %v92_v8 }
  0x75   :  { %1151 = vmatprep.mubr.bf16.mxu1 %v190_v14  ;;  %1663 = vmatpush3.bf16.msra.mxu0 %v1770_v10  ;;  %v38_v14 = vld [vmem:[%s2640_s0 + $0xd0] sm:$0xff] }
  0x76   :  { %1698 = vmatpush3.bf16.msra.mxu1 %v1770_v10  ;;  %1664 = vmatprep.subr.bf16.mxu0 %v1771_v15  ;;  %v223_v10 = vpack.c.bf16 %v151_v3, %v142_v2 }
  0x77   :  { %1691 = vmatprep.subr.bf16.mxu1 %v1771_v15 }
  0x79   :  { %1665 = vmatpush3.bf16.msra.mxu0 %v1771_v15 }
  0x7a   :  { %1699 = vmatpush3.bf16.msra.mxu1 %v1771_v15  ;;  %1666 = vmatprep.subr.bf16.mxu0 %v1772_v24  ;;  %v47_v15 = vld [vmem:[%s2640_s0 + $0x118] sm:$0xff] }
  0x7b   :  { %1055 = vmatmul.mubr.bf16.gmra.mxu0 %v187_v25  ;;  %1692 = vmatprep.subr.bf16.mxu1 %v1772_v24  ;;  %v173_v22 = vpack.c.bf16 %v47_v15, %v38_v14  ;;  %v218_v25 = vpack.c.bf16 %v137_v21, %v128_v20 }
  0x7c   :  { %1152 = vmatmul.mubr.bf16.gmra.mxu1 %v189_v26  ;;  %1062 = vmatprep.mubr.bf16.mxu0 %v197_v27  ;;  %v74_v26 = vld [vmem:[%s2640_s0 + $0x1f0] sm:$0xff]  ;;  %v83_v27 = vld [vmem:[%s2640_s0 + $0x238] sm:$0xff] }
  0x7d   :  { %1159 = vmatprep.mubr.bf16.mxu1 %v199_v28  ;;  %1667 = vmatpush3.bf16.msra.mxu0 %v1772_v24  ;;  %v146_v28 = vld [vmem:[%s2640_s0 + $0x430] sm:$0xff]  ;;  %v191_v30 = vpack.c.bf16 %v83_v27, %v74_v26 }
  0x7e   :  { %1700 = vmatpush3.bf16.msra.mxu1 %v1772_v24  ;;  %1668 = vmatprep.subr.bf16.mxu0 %v1773_v29  ;;  %v182_v24 = vpack.c.bf16 %v65_v19, %v56_v18 }
  0x7f   :  { %1693 = vmatprep.subr.bf16.mxu1 %v1773_v29 }
  0x81   :  { %1669 = vmatpush3.bf16.msra.mxu0 %v1773_v29 }
  0x82   :  { %1701 = vmatpush3.bf16.msra.mxu1 %v1773_v29  ;;  %v155_v29 = vld [vmem:[%s2640_s0 + $0x478] sm:$0xff] }
  0x83   :  { %1063 = vmatmul.mubr.bf16.gmra.mxu0 %v196_v38  ;;  %v227_v31 = vpack.c.bf16 %v155_v29, %v146_v28 }
  0x84   :  { %1160 = vmatmul.mubr.bf16.gmra.mxu1 %v198_v39  ;;  %1070 = vmatprep.mubr.bf16.mxu0 %v206_v40 }
  0x85   :  { %1167 = vmatprep.mubr.bf16.mxu1 %v208_v41 }
  0x8b   :  { %1071 = vmatmul.mubr.bf16.gmra.mxu0 %v205_v50 }
  0x8c   :  { %1168 = vmatmul.mubr.bf16.gmra.mxu1 %v207_v51  ;;  %1078 = vmatprep.mubr.bf16.mxu0 %v215_v52 }
  0x8d   :  { %1175 = vmatprep.mubr.bf16.mxu1 %v217_v53 }
  0x93   :  { %1079 = vmatmul.mubr.bf16.gmra.mxu0 %v214_v62 }
  0x94   :  { %1176 = vmatmul.mubr.bf16.gmra.mxu1 %v216_v63  ;;  %1086 = vmatprep.mubr.bf16.mxu0 %v224_v0 }
  0x95   :  { %1183 = vmatprep.mubr.bf16.mxu1 %v226_v1 }
  0x9b   :  { %1087 = vmatmul.mubr.bf16.gmra.mxu0 %v223_v10 }
  0x9c   :  { %1184 = vmatmul.mubr.bf16.gmra.mxu1 %v225_v11  ;;  %1670 = vmatprep.mubr.bf16.mxu0 %v164_v12 }
  0x9d   :  { %1678 = vmatprep.mubr.bf16.mxu1 %v200_v13 }
  0xa3   :  { %1671 = vmatmul.mubr.bf16.vlgmr.msra.gmra.mxu0 %v173_v22 }
  0xa4   :  { %1679 = vmatmul.mubr.bf16.vlgmr.msra.gmra.mxu1 %v209_v23  ;;  %1674 = vmatprep.mubr.bf16.mxu0 %v182_v24 }
  0xa5   :  { %1682 = vmatprep.mubr.bf16.mxu1 %v218_v25 }
  0xab   :  { %1675 = vmatmul.mubr.bf16.gmra.mxu0 %v191_v30 }
  0xac   :  { %1683 = vmatmul.mubr.bf16.gmra.mxu1 %v227_v31 }
  0xe3   :  { %v1398_v32 = vpop.f32.mrf.mxu0 }
  0xe4   :  { %v1462_v33 = vpop.f32.mrf.mxu1 }
  0xe5   :  { %v1399_v34 = vpop.f32.mrf.mxu0 }
  0xe6   :  { %v1400_v35 = vadd.f32 %v1399_v34, %v1398_v32  ;;  %v1463_v36 = vpop.f32.mrf.mxu1 }
  0xe7   :  { %v1464_v37 = vadd.f32 %v1463_v36, %v1462_v33  ;;  %v1401_v38 = vpop.f32.mrf.mxu0 }
  0xe8   :  { %v1465_v39 = vpop.f32.mrf.mxu1 }
  0xe9   :  { %v2437_v40 = vadd.f32 %v1464_v37, %v1400_v35  ;;  %v1402_v41 = vpop.f32.mrf.mxu0 }
  0xea   :  { %v1403_v42 = vadd.f32 %v1402_v41, %v1401_v38  ;;  %v1466_v43 = vpop.f32.mrf.mxu1 }
  0xeb   :  { %v1467_v44 = vadd.f32 %v1466_v43, %v1465_v39  ;;  %v1404_v45 = vpop.f32.mrf.mxu0 }
  0xec   :  { %v1468_v46 = vpop.f32.mrf.mxu1 }
  0xed   :  { %v2439_v47 = vadd.f32 %v1467_v44, %v1403_v42  ;;  %v1405_v48 = vpop.f32.mrf.mxu0 }
  0xee   :  { %v1406_v49 = vadd.f32 %v1405_v48, %v1404_v45  ;;  %v1469_v50 = vpop.f32.mrf.mxu1 }
  0xef   :  { %v1470_v51 = vadd.f32 %v1469_v50, %v1468_v46  ;;  %v1407_v52 = vpop.f32.mrf.mxu0 }
  0xf0   :  { %v1471_v53 = vpop.f32.mrf.mxu1 }
  0xf1   :  { %v2441_v54 = vadd.f32 %v1470_v51, %v1406_v49  ;;  %v1408_v55 = vpop.f32.mrf.mxu0 }
  0xf2   :  { %v1409_v56 = vadd.f32 %v1408_v55, %v1407_v52  ;;  %v1472_v57 = vpop.f32.mrf.mxu1 }
  0xf3   :  { %v1473_v58 = vadd.f32 %v1472_v57, %v1471_v53  ;;  %v1410_v59 = vpop.f32.mrf.mxu0 }
  0xf4   :  { %v1474_v60 = vpop.f32.mrf.mxu1 }
  0xf5   :  { %v2443_v61 = vadd.f32 %v1473_v58, %v1409_v56  ;;  %v1411_v62 = vpop.f32.mrf.mxu0 }
  0xf6   :  { %v1412_v63 = vadd.f32 %v1411_v62, %v1410_v59  ;;  %v1475_v0 = vpop.f32.mrf.mxu1 }
  0xf7   :  { %v1476_v1 = vadd.f32 %v1475_v0, %v1474_v60  ;;  %v1413_v2 = vpop.f32.mrf.mxu0 }
  0xf8   :  { %v1477_v3 = vpop.f32.mrf.mxu1 }
  0xf9   :  { %v2445_v4 = vadd.f32 %v1476_v1, %v1412_v63  ;;  %v1414_v5 = vpop.f32.mrf.mxu0 }
  0xfa   :  { %v1415_v6 = vadd.f32 %v1414_v5, %v1413_v2  ;;  %v1478_v7 = vpop.f32.mrf.mxu1 }
  0xfb   :  { %v1479_v8 = vadd.f32 %v1478_v7, %v1477_v3  ;;  %v1416_v9 = vpop.f32.mrf.mxu0 }
  0xfc   :  { %v1480_v10 = vpop.f32.mrf.mxu1 }
  0xfd   :  { %v2447_v11 = vadd.f32 %v1479_v8, %v1415_v6  ;;  %v1417_v12 = vpop.f32.mrf.mxu0 }
  0xfe   :  { %v1418_v13 = vadd.f32 %v1417_v12, %v1416_v9  ;;  %v1481_v14 = vpop.f32.mrf.mxu1 }
  0xff   :  { %2642 = vst [vmem:[#allocation2_spill] sm:$0xff] %v2447_v11  ;;  %v1482_v15 = vadd.f32 %v1481_v14, %v1480_v10  ;;  %v1419_v16 = vpop.f32.mrf.mxu0 }
 0x100   :  { %v1483_v17 = vpop.f32.mrf.mxu1 }
 0x101   :  { %v2449_v18 = vadd.f32 %v1482_v15, %v1418_v13  ;;  %v1420_v19 = vpop.f32.mrf.mxu0 }
 0x102   :  { %v1421_v20 = vadd.f32 %v1420_v19, %v1419_v16  ;;  %v1484_v21 = vpop.f32.mrf.mxu1 }
 0x103   :  { %v1485_v22 = vadd.f32 %v1484_v21, %v1483_v17  ;;  %v1422_v23 = vpop.f32.mrf.mxu0 }
 0x104   :  { %v1486_v24 = vpop.f32.mrf.mxu1 }
 0x105   :  { %v2451_v25 = vadd.f32 %v1485_v22, %v1421_v20  ;;  %v1423_v26 = vpop.f32.mrf.mxu0 }
 0x106   :  { %v1424_v27 = vadd.f32 %v1423_v26, %v1422_v23  ;;  %v1487_v28 = vpop.f32.mrf.mxu1 }
 0x107   :  { %2643 = vst [vmem:[#allocation3_spill] sm:$0xff] %v2451_v25  ;;  %v1488_v29 = vadd.f32 %v1487_v28, %v1486_v24  ;;  %v1425_v30 = vpop.f32.mrf.mxu0 }
 0x108   :  { %v1489_v31 = vpop.f32.mrf.mxu1 }
 0x109   :  { %v2453_v32 = vadd.f32 %v1488_v29, %v1424_v27  ;;  %v1426_v33 = vpop.f32.mrf.mxu0 }
 0x10a   :  { %v1427_v34 = vadd.f32 %v1426_v33, %v1425_v30  ;;  %v1490_v35 = vpop.f32.mrf.mxu1 }
 0x10b   :  { %v1491_v36 = vadd.f32 %v1490_v35, %v1489_v31  ;;  %v1428_v37 = vpop.f32.mrf.mxu0 }
 0x10c   :  { %v1492_v38 = vpop.f32.mrf.mxu1 }
 0x10d   :  { %v2455_v39 = vadd.f32 %v1491_v36, %v1427_v34  ;;  %v1429_v41 = vpop.f32.mrf.mxu0 }
 0x10e   :  { %v1430_v42 = vadd.f32 %v1429_v41, %v1428_v37  ;;  %v1493_v43 = vpop.f32.mrf.mxu1 }
 0x10f   :  { %v1494_v44 = vadd.f32 %v1493_v43, %v1492_v38  ;;  %v1431_v45 = vpop.f32.mrf.mxu0 }
 0x110   :  { %v1495_v46 = vpop.f32.mrf.mxu1 }
 0x111   :  { %v2457_v48 = vadd.f32 %v1494_v44, %v1430_v42  ;;  %v1432_v49 = vpop.f32.mrf.mxu0 }
 0x112   :  { %v1433_v50 = vadd.f32 %v1432_v49, %v1431_v45  ;;  %v1496_v51 = vpop.f32.mrf.mxu1 }
 0x113   :  { %v1497_v52 = vadd.f32 %v1496_v51, %v1495_v46  ;;  %v1434_v53 = vpop.f32.mrf.mxu0 }
 0x114   :  { %v1498_v55 = vpop.f32.mrf.mxu1 }
 0x115   :  { %v2459_v56 = vadd.f32 %v1497_v52, %v1433_v50  ;;  %v1435_v57 = vpop.f32.mrf.mxu0 }
 0x116   :  { %v1436_v58 = vadd.f32 %v1435_v57, %v1434_v53  ;;  %v1499_v59 = vpop.f32.mrf.mxu1 }
 0x117   :  { %v1500_v60 = vadd.f32 %v1499_v59, %v1498_v55  ;;  %v1437_v62 = vpop.f32.mrf.mxu0 }
 0x118   :  { %v1501_v63 = vpop.f32.mrf.mxu1 }
 0x119   :  { %v2461_v0 = vadd.f32 %v1500_v60, %v1436_v58  ;;  %v1438_v1 = vpop.f32.mrf.mxu0 }
 0x11a   :  { %v1439_v2 = vadd.f32 %v1438_v1, %v1437_v62  ;;  %v1502_v3 = vpop.f32.mrf.mxu1 }
 0x11b   :  { %2644 = vst [vmem:[#allocation4_spill] sm:$0xff] %v2461_v0  ;;  %v1503_v5 = vadd.f32 %v1502_v3, %v1501_v63  ;;  %v1440_v6 = vpop.f32.mrf.mxu0 }
 0x11c   :  { %v1504_v7 = vpop.f32.mrf.mxu1 }
 0x11d   :  { %v2463_v8 = vadd.f32 %v1503_v5, %v1439_v2  ;;  %v1441_v9 = vpop.f32.mrf.mxu0 }
 0x11e   :  { %v1442_v10 = vadd.f32 %v1441_v9, %v1440_v6  ;;  %v1505_v12 = vpop.f32.mrf.mxu1 }
 0x11f   :  { %2645 = vst [vmem:[#allocation5_spill] sm:$0xff] %v2463_v8  ;;  %v1506_v13 = vadd.f32 %v1505_v12, %v1504_v7  ;;  %v1443_v14 = vpop.f32.mrf.mxu0 }
 0x120   :  { %v1507_v15 = vpop.f32.mrf.mxu1 }
 0x121   :  { %v2465_v16 = vadd.f32 %v1506_v13, %v1442_v10  ;;  %v1444_v17 = vpop.f32.mrf.mxu0 }
 0x122   :  { %v1445_v19 = vadd.f32 %v1444_v17, %v1443_v14  ;;  %v1508_v20 = vpop.f32.mrf.mxu1 }
 0x123   :  { %2646 = vst [vmem:[#allocation6_spill] sm:$0xff] %v2465_v16  ;;  %v1509_v21 = vadd.f32 %v1508_v20, %v1507_v15  ;;  %v1526_v22 = vpop.f32.mrf.mxu0 }
 0x124   :  { %v2467_v23 = vpop.f32.mrf.mxu1 }
 0x125   :  { %v2469_v24 = vadd.f32 %v1509_v21, %v1445_v19  ;;  %v1527_v26 = vpop.f32.mrf.mxu0 }
 0x126   :  { %v2471_v27 = vpop.f32.mrf.mxu1 }
 0x127   :  { %2647 = vst [vmem:[#allocation7_spill] sm:$0xff] %v2469_v24  ;;  %v1529_v28 = vpop.f32.mrf.mxu0  ;;  %v1528_v24 = vadd.f32 %v1527_v26, %v1526_v22  ;;  %v1592_v26 = vadd.f32 %v2471_v27, %v2467_v23 }
 0x128   :  { %v2473_v29 = vpop.f32.mrf.mxu1 }
 0x129   :  { %v1530_v30 = vpop.f32.mrf.mxu0 }
 0x12a   :  { %v2475_v31 = vpop.f32.mrf.mxu1 }
 0x12b   :  { %v1532_v33 = vpop.f32.mrf.mxu0 }
 0x12c   :  { %v2477_v34 = vpop.f32.mrf.mxu1 }
 0x12d   :  { %v1533_v35 = vpop.f32.mrf.mxu0 }
 0x12e   :  { %v2479_v36 = vpop.f32.mrf.mxu1 }
 0x12f   :  { %v1535_v37 = vpop.f32.mrf.mxu0 }
 0x130   :  { %v2481_v38 = vpop.f32.mrf.mxu1 }
 0x131   :  { %v1536_v41 = vpop.f32.mrf.mxu0 }
 0x132   :  { %v2483_v42 = vpop.f32.mrf.mxu1 }
 0x133   :  { %v1538_v43 = vpop.f32.mrf.mxu0 }
 0x134   :  { %v2485_v44 = vpop.f32.mrf.mxu1 }
 0x135   :  { %2648 = vst [vmem:[#allocation8_spill] sm:$0xff] %v2485_v44  ;;  %v1539_v45 = vpop.f32.mrf.mxu0  ;;  %v1534_v44 = vadd.f32 %v1533_v35, %v1532_v33 }
 0x136   :  { %v2487_v46 = vpop.f32.mrf.mxu1 }
 0x137   :  { %2649 = vst [vmem:[#allocation9_spill] sm:$0xff] %v2487_v46  ;;  %v2489_v49 = vpop.f32.mrf.mxu0  ;;  %v1531_v46 = vadd.f32 %v1530_v30, %v1529_v28  ;;  %v1595_v28 = vadd.f32 %v2475_v31, %v2473_v29 }
 0x138   :  { %2650 = vst [vmem:[#allocation10_spill] sm:$0xff] %v2489_v49  ;;  %v2491_v50 = vpop.f32.mrf.mxu1 }
 0x139   :  { %2651 = vst [vmem:[#allocation11_spill] sm:$0xff] %v2491_v50  ;;  %v2493_v51 = vpop.f32.mrf.mxu0 }
 0x13a   :  { %2652 = vst [vmem:[#allocation12_spill] sm:$0xff] %v2493_v51  ;;  %v2495_v52 = vpop.f32.mrf.mxu1  ;;  %v1537_v51 = vadd.f32 %v1536_v41, %v1535_v37  ;;  %v1540_v37 = vadd.f32 %v1539_v45, %v1538_v43 }
 0x13b   :  { %2653 = vst [vmem:[#allocation13_spill] sm:$0xff] %v2495_v52  ;;  %v1544_v53 = vpop.f32.mrf.mxu0 }
 0x13c   :  { %v2497_v55 = vpop.f32.mrf.mxu1 }
 0x13d   :  { %2654 = vst [vmem:[#allocation14_spill] sm:$0xff] %v2497_v55  ;;  %v1545_v57 = vpop.f32.mrf.mxu0 }
 0x13e   :  { %v2499_v58 = vpop.f32.mrf.mxu1  ;;  %v1546_v29 = vadd.f32 %v1545_v57, %v1544_v53  ;;  %v2662_v57 = vld [vmem:[#allocation6_spill] sm:$0xff] }
 0x13f   :  { %2655 = vst [vmem:[#allocation15_spill] sm:$0xff] %v2499_v58  ;;  %v2501_v59 = vpop.f32.mrf.mxu0 }
 0x140   :  { %v2503_v60 = vpop.f32.mrf.mxu1 }
 0x141   :  { %2656 = vst [vmem:[#allocation16_spill] sm:$0xff] %v2503_v60  ;;  %v2505_v62 = vpop.f32.mrf.mxu0 }
 0x142   :  { %v2507_v63 = vpop.f32.mrf.mxu1 }
 0x143   :  { %2657 = vst [vmem:[#allocation17_spill] sm:$0xff] %v2507_v63  ;;  %v1550_v1 = vpop.f32.mrf.mxu0 }
 0x144   :  { %v1614_v2 = vpop.f32.mrf.mxu1 }
 0x145   :  { %v1551_v3 = vpop.f32.mrf.mxu0 }
 0x146   :  { %v1615_v5 = vpop.f32.mrf.mxu1  ;;  %v1552_v16 = vadd.f32 %v1551_v3, %v1550_v1 }
 0x147   :  { %v1553_v6 = vpop.f32.mrf.mxu0 }
 0x148   :  { %v2509_v7 = vpop.f32.mrf.mxu1 }
 0x149   :  { %v1554_v9 = vpop.f32.mrf.mxu0 }
 0x14a   :  { %v2511_v10 = vpop.f32.mrf.mxu1 }
 0x14b   :  { %v1556_v12 = vpop.f32.mrf.mxu0 }
 0x14c   :  { %v1620_v13 = vpop.f32.mrf.mxu1 }
 0x14d   :  { %v1557_v14 = vpop.f32.mrf.mxu0 }
 0x14e   :  { %v1621_v15 = vpop.f32.mrf.mxu1  ;;  %v1558_v58 = vadd.f32 %v1557_v14, %v1556_v12  ;;  %v2667_v14 = vld [vmem:[#allocation4_spill] sm:$0xff] }
 0x14f   :  { %v1559_v17 = vpop.f32.mrf.mxu0 }
 0x150   :  { %v1623_v19 = vpop.f32.mrf.mxu1  ;;  %v1073_v30 = vadd.f32 %v1558_v58, %v2457_v48  ;;  %v1601_v48 = vadd.f32 %v2483_v42, %v2481_v38 }
 0x151   :  { %v1560_v20 = vpop.f32.mrf.mxu0 }
 0x152   :  { %v1624_v21 = vpop.f32.mrf.mxu1  ;;  %v1561_v33 = vadd.f32 %v1560_v20, %v1559_v17 }
 0x153   :  { %v1562_v52 = vpop.f32.mrf.mxu0  ;;  %v1625_v3 = vadd.f32 %v1624_v21, %v1623_v19 }
 0x154   :  { %v2513_v50 = vpop.f32.mrf.mxu1 }
 0x155   :  { %2658 = vst [vmem:[#allocation18_spill] sm:$0xff] %v2513_v50  ;;  %v1563_v8 = vpop.f32.mrf.mxu0  ;;  %v1033_v50 = vadd.f32 %v1528_v24, %v2437_v40  ;;  %v1598_v40 = vadd.f32 %v2479_v36, %v2477_v34  ;;  %v1044_v24 = vadd.f32 %v1537_v51, %v2443_v61  ;;  %v1616_v34 = vadd.f32 %v1615_v5, %v1614_v2  ;;  %v2665_v5 = vld [vmem:[#allocation14_spill] sm:$0xff] }
 0x156   :  { %v2515_v63 = vpop.f32.mrf.mxu1  ;;  %v1076_v61 = vadd.f32 %v1561_v33, %v2459_v56  ;;  %v1049_v51 = vadd.f32 %v1540_v37, %v2445_v4  ;;  %v1549_v56 = vadd.f32 %v2505_v62, %v2501_v59  ;;  %v2663_v62 = vld [vmem:[#allocation10_spill] sm:$0xff] }
 0x157   :  { %2659 = vst [vmem:[#allocation19_spill] sm:$0xff] %v2515_v63  ;;  %v2517_v60 = vpop.f32.mrf.mxu0  ;;  %v1130_v27 = vadd.f32 %v1592_v26, %v1033_v50  ;;  %v1141_v50 = vadd.f32 %v1601_v48, %v1044_v24 }
 0x158   :  { %2660 = vst [vmem:[#allocation20_spill] sm:$0xff] %v2517_v60  ;;  %v2519_v11 = vpop.f32.mrf.mxu1  ;;  %v1036_v60 = vadd.f32 %v1531_v46, %v2439_v47  ;;  %v1555_v47 = vadd.f32 %v1554_v9, %v1553_v6  ;;  %v1564_v6 = vadd.f32 %v1563_v8, %v1562_v52 }
 0x159   :  { %2661 = vst [vmem:[#allocation21_spill] sm:$0xff] %v2519_v11  ;;  %v2521_v25 = vpop.f32.mrf.mxu0  ;;  %v1041_v11 = vadd.f32 %v1534_v44, %v2441_v54  ;;  %v1065_v54 = vadd.f32 %v1552_v16, %v2453_v32  ;;  %v1622_v44 = vadd.f32 %v1621_v15, %v1620_v13 }
 0x15a   :  { %v2523_v0 = vpop.f32.mrf.mxu1  ;;  %v1133_v58 = vadd.f32 %v1595_v28, %v1036_v60  ;;  %v1068_v32 = vadd.f32 %v1555_v47, %v2455_v39  ;;  %v1173_v60 = vadd.f32 %v1625_v3, %v1076_v61  ;;  %v1081_v15 = vadd.f32 %v1564_v6, %v2667_v14  ;;  %v2669_v28 = vld [vmem:[#allocation8_spill] sm:$0xff]  ;;  %v2677_v61 = vld [vmem:[#allocation17_spill] sm:$0xff] }
 0x15b   :  { %v1568_v55 = vpop.f32.mrf.mxu0  ;;  %v1138_v46 = vadd.f32 %v1598_v40, %v1041_v11  ;;  %v1170_v45 = vadd.f32 %v1622_v44, %v1073_v30  ;;  %v1162_v53 = vadd.f32 %v1616_v34, %v1065_v54  ;;  %v1057_v11 = vadd.f32 %v1546_v29, %v2449_v18  ;;  %v2670_v30 = vld [vmem:[#allocation9_spill] sm:$0xff]  ;;  %v2674_v54 = vld [vmem:[#allocation7_spill] sm:$0xff]  ;;  %v2675_v29 = vld [vmem:[#allocation2_spill] sm:$0xff] }
 0x15c   :  { %v2525_v49 = vpop.f32.mrf.mxu1  ;;  %v1604_v33 = vadd.f32 %v2670_v30, %v2669_v28  ;;  %v2676_v34 = vld [vmem:[#allocation16_spill] sm:$0xff] }
 0x15d   :  { %v1569_v63 = vpop.f32.mrf.mxu0 }
 0x15e   :  { %v1633_v22 = vpop.f32.mrf.mxu1  ;;  %v1570_v36 = vadd.f32 %v1569_v63, %v1568_v55  ;;  %v1619_v55 = vadd.f32 %v2511_v10, %v2509_v7  ;;  %v2664_v63 = vld [vmem:[#allocation12_spill] sm:$0xff]  ;;  %v2666_v7 = vld [vmem:[#allocation15_spill] sm:$0xff] }
 0x15f   :  { %v1571_v35 = vpop.f32.mrf.mxu0  ;;  %v1543_v2 = vadd.f32 %v2664_v63, %v2663_v62  ;;  %v1610_v9 = vadd.f32 %v2666_v7, %v2665_v5  ;;  %v2668_v17 = vld [vmem:[#allocation20_spill] sm:$0xff]  ;;  %v1634_v20 = vadd.f32 %v1633_v22, %v2525_v49  ;;  %v2672_v22 = vld [vmem:[#allocation18_spill] sm:$0xff]  ;;  %v2673_v37 = vld [vmem:[#allocation19_spill] sm:$0xff] }
 0x160   :  { %v2538_v41 = vpop.f32.mrf.mxu1  ;;  %v1089_v8 = vadd.f32 %v1570_v36, %v2662_v57  ;;  %v1165_v13 = vadd.f32 %v1619_v55, %v1068_v32  ;;  %v1567_v19 = vadd.f32 %v2521_v25, %v2668_v17  ;;  %v1628_v47 = vadd.f32 %v2673_v37, %v2672_v22  ;;  %v2678_v32 = vld [vmem:[#allocation5_spill] sm:$0xff] }
 0x161   :  { %v1572_v23 = vpop.f32.mrf.mxu0  ;;  %v1154_v49 = vadd.f32 %v1610_v9, %v1057_v11 }
 0x162   :  { %v1636_v31 = vpop.f32.mrf.mxu1  ;;  %v1573_v52 = vadd.f32 %v1572_v23, %v1571_v35  ;;  %v2671_v35 = vld [vmem:[#allocation3_spill] sm:$0xff]  ;;  %v1186_v48 = vadd.f32 %v1634_v20, %v1089_v8  ;;  %v1178_v6 = vadd.f32 %v1628_v47, %v1081_v15 }
 0x163   :  { %v1672_v43 = vpop.f32.mrf.mxu0  ;;  %v1060_v40 = vadd.f32 %v1549_v56, %v2671_v35 }
 0x164   :  { %v1235_v16 = vadd.f32 %v1672_v43, %v1138_v46  ;;  %v1680_v1 = vpop.f32.mrf.mxu1  ;;  %v1092_v44 = vadd.f32 %v1573_v52, %v2674_v54  ;;  %v1052_v46 = vadd.f32 %v1543_v2, %v2675_v29 }
 0x165   :  { %v1267_v38 = vadd.f32 %v1680_v1, %v1170_v45  ;;  %v1226_v42 = vpop.f32.mrf.mxu0  ;;  %v1146_v45 = vadd.f32 %v1604_v33, %v1049_v51  ;;  %v1637_v1 = vadd.f32 %v1636_v31, %v2538_v41  ;;  %v2681_v41 = vld [vmem:[#allocation21_spill] sm:$0xff] }
 0x166   :  { %1292 = vst.msk [vmem:[%s2641_s2 + $0x10] sm:$0xff] %vm1289_vm0, %v1235_v16  ;;  %v1227_v4 = vadd.f32 %v1226_v42, %v1130_v27  ;;  %v1258_v39 = vpop.f32.mrf.mxu1  ;;  %v1084_v16 = vadd.f32 %v1567_v19, %v2678_v32  ;;  %v2680_v42 = vld [vmem:[#allocation13_spill] sm:$0xff]  ;;  %v1631_v31 = vadd.f32 %v2523_v0, %v2681_v41 }
 0x167   :  { %1300 = vst.msk [vmem:[%s2641_s2 + $0x50] sm:$0xff] %vm1289_vm0, %v1267_v38  ;;  %v1259_v18 = vadd.f32 %v1258_v39, %v1162_v53  ;;  %v1673_v59 = vpop.f32.mrf.mxu0  ;;  %v2679_v38 = vld [vmem:[#allocation11_spill] sm:$0xff]  ;;  %v1189_v39 = vadd.f32 %v1637_v1, %v1092_v44 }
 0x168   :  { %1290 = vst.msk [vmem:[%s2641_s2] sm:$0xff] %vm1289_vm0, %v1227_v4  ;;  %v1238_v10 = vadd.f32 %v1673_v59, %v1141_v50  ;;  %v1681_v12 = vpop.f32.mrf.mxu1  ;;  %v1607_v53 = vadd.f32 %v2680_v42, %v2679_v38  ;;  %v1181_v59 = vadd.f32 %v1631_v31, %v1084_v16 }
 0x169   :  { %1298 = vst.msk [vmem:[%s2641_s2 + $0x40] sm:$0xff] %vm1289_vm0, %v1259_v18  ;;  %v1270_v21 = vadd.f32 %v1681_v12, %v1173_v60  ;;  %v1229_v26 = vpop.f32.mrf.mxu0 }
 0x16a   :  { %1293 = vst.msk [vmem:[%s2641_s2 + $0x18] sm:$0xff] %vm1289_vm0, %v1238_v10  ;;  %v1230_v25 = vadd.f32 %v1229_v26, %v1133_v58  ;;  %v1261_v24 = vpop.f32.mrf.mxu1  ;;  %v1613_v58 = vadd.f32 %v2677_v61, %v2676_v34  ;;  %v1149_v52 = vadd.f32 %v1607_v53, %v1052_v46 }
 0x16b   :  { %1301 = vst.msk [vmem:[%s2641_s2 + $0x58] sm:$0xff] %vm1289_vm0, %v1270_v21  ;;  %v1262_v23 = vadd.f32 %v1261_v24, %v1165_v13  ;;  %v1676_v27 = vpop.f32.mrf.mxu0 }
 0x16c   :  { %1291 = vst.msk [vmem:[%s2641_s2 + $0x8] sm:$0xff] %vm1289_vm0, %v1230_v25  ;;  %v1251_v36 = vadd.f32 %v1676_v27, %v1154_v49  ;;  %v1684_v43 = vpop.f32.mrf.mxu1  ;;  %v1157_v56 = vadd.f32 %v1613_v58, %v1060_v40 }
 0x16d   :  { %1299 = vst.msk [vmem:[%s2641_s2 + $0x48] sm:$0xff] %vm1289_vm0, %v1262_v23  ;;  %v1283_v50 = vadd.f32 %v1684_v43, %v1186_v48  ;;  %v1242_v3 = vpop.f32.mrf.mxu0 }
 0x16e   :  { %1296 = vst.msk [vmem:[%s2641_s2 + $0x30] sm:$0xff] %vm1289_vm0, %v1251_v36  ;;  %v1243_v51 = vadd.f32 %v1242_v3, %v1146_v45  ;;  %v1274_v11 = vpop.f32.mrf.mxu1 }
 0x16f   :  { %1304 = vst.msk [vmem:[%s2641_s2 + $0x70] sm:$0xff] %vm1289_vm0, %v1283_v50  ;;  %v1275_v55 = vadd.f32 %v1274_v11, %v1178_v6  ;;  %v1677_v4 = vpop.f32.mrf.mxu0 }
 0x170   :  { %1294 = vst.msk [vmem:[%s2641_s2 + $0x20] sm:$0xff] %vm1289_vm0, %v1243_v51  ;;  %v1254_v57 = vadd.f32 %v1677_v4, %v1157_v56  ;;  %v1685_v8 = vpop.f32.mrf.mxu1 }
 0x171   :  { %1302 = vst.msk [vmem:[%s2641_s2 + $0x60] sm:$0xff] %vm1289_vm0, %v1275_v55  ;;  %v1286_v0 = vadd.f32 %v1685_v8, %v1189_v39  ;;  %v1245_v18 = vpop.f32.mrf.mxu0 }
 0x172   :  { %1297 = vst.msk [vmem:[%s2641_s2 + $0x38] sm:$0xff] %vm1289_vm0, %v1254_v57  ;;  %v1246_v60 = vadd.f32 %v1245_v18, %v1149_v52  ;;  %v1277_v62 = vpop.f32.mrf.mxu1 }
 0x173   :  { %1305 = vst.msk [vmem:[%s2641_s2 + $0x78] sm:$0xff] %vm1289_vm0, %v1286_v0  ;;  %v1278_v63 = vadd.f32 %v1277_v62, %v1181_v59 }
 0x174   :  { %1295 = vst.msk [vmem:[%s2641_s2 + $0x28] sm:$0xff] %vm1289_vm0, %v1246_v60 }
 0x175   :  { %1303 = vst.msk [vmem:[%s2641_s2 + $0x68] sm:$0xff] %vm1289_vm0, %v1278_v63 }

// kernel: densenet169_forward.216
= control target key start
LH: loop header
LB: loop body
LE: loop exit
PB: predicated region body
PF: predicated region fallthrough
CT: control target
= control target key end

     0   :  { %v38_v5 = vlaneseq  ;;  %s750_s6 = inlined_call_operand.vmem [shape: bf16[256,128], index: 6, kind: input, shape index: {}]   ;;  %s751_s0 = inlined_call_operand.vmem [shape: f32[32,256], index: 0, kind: input, shape index: {}]   ;;  %s752_s4 = inlined_call_operand.vmem [shape: f32[1,256], index: 4, kind: input, shape index: {}]   ;;  %s753_s5 = inlined_call_operand.vmem [shape: f32[1,256], index: 5, kind: input, shape index: {}]   ;;  %s754_s1 = inlined_call_operand.vmem [shape: f32[32,256], index: 1, kind: input, shape index: {}]   ;;  %s755_s2 = inlined_call_operand.vmem [shape: f32[32,256], index: 2, kind: input, shape index: {}]   ;;  %s756_s3 = inlined_call_operand.vmem [shape: f32[32,256], index: 3, kind: input, shape index: {}]   ;;  %s757_s7 = inlined_call_operand.vmem [shape: f32[32,128], index: 7, kind: output, shape index: {}]  }
   0x1   :  { %v460_v0 = vld [vmem:[%s750_s6 + $0x78] sm:$0xff]   ;;  %v462_v2 = vld [vmem:[%s750_s6 + $0x70] sm:$0xff]   ;;  %v464_v4 = vld [vmem:[%s750_s6 + $0x68] sm:$0xff]  }
   0x2   :  { %v461_v1 = vld [vmem:[%s750_s6 + $0x38] sm:$0xff]   ;;  %416 = vmatprep.subr.bf16.mxu0 %v460_v0  ;;  %444 = vmatprep.subr.bf16.mxu1 %v460_v0  ;;  %v463_v3 = vld [vmem:[%s750_s6 + $0x30] sm:$0xff]   ;;  %v465_v6 = vld [vmem:[%s750_s6 + $0x28] sm:$0xff]   ;;  %v39_v8 = vshrl.u32 %v38_v5, 7 }
   0x3   :  { %417 = vmatpush3.bf16.msra.mxu0 %v461_v1  ;;  %452 = vmatpush3.bf16.msra.mxu1 %v461_v1  ;;  %v466_v7 = vld [vmem:[%s750_s6 + $0x60] sm:$0xff]   ;;  %v468_v10 = vld [vmem:[%s750_s6 + $0x58] sm:$0xff]   ;;  %v470_v14 = vld [vmem:[%s750_s6 + $0x50] sm:$0xff]  }
   0x4   :  { %418 = vmatprep.subr.bf16.mxu0 %v462_v2  ;;  %445 = vmatprep.subr.bf16.mxu1 %v462_v2  ;;  %v467_v9 = vld [vmem:[%s750_s6 + $0x20] sm:$0xff]   ;;  %v44_v11 = vsub.s32 1, %v39_v8  ;;  %v469_v12 = vld [vmem:[%s750_s6 + $0x18] sm:$0xff]   ;;  %v40_v13 = vsub.s32 0, %v39_v8  ;;  %v30_v17 = vld [vmem:[%s751_s0 + $0x8] sm:$0xff] }
   0x5   :  { %v27_v15 = vld [vmem:[%s752_s4] sm:$0x3]  ;;  %v32_v18 = vld [vmem:[%s751_s0 + $0x18] sm:$0xff]  ;;  %v84_v21 = vld [vmem:[%s754_s1 + $0x8] sm:$0xff] }
   0x6   :  { %v28_v16 = vld [vmem:[%s753_s5] sm:$0x3]  ;;  %v561_v19 = vrot.slane %v27_v15, %v44_v11  ;;  %v86_v22 = vld [vmem:[%s754_s1 + $0x18] sm:$0xff]  ;;  %v571_v23 = vrot.slane %v27_v15, %v40_v13  ;;  %v124_v25 = vld [vmem:[%s755_s2 + $0x8] sm:$0xff] }
   0x7   :  { %419 = vmatpush3.bf16.msra.mxu0 %v463_v3  ;;  %453 = vmatpush3.bf16.msra.mxu1 %v463_v3  ;;  %v563_v20 = vrot.slane %v28_v16, %v44_v11  ;;  %v573_v24 = vrot.slane %v28_v16, %v40_v13  ;;  %v126_v26 = vld [vmem:[%s755_s2 + $0x18] sm:$0xff]  ;;  %v164_v27 = vld [vmem:[%s756_s3 + $0x8] sm:$0xff]  ;;  %v471_v28 = vld [vmem:[%s750_s6 + $0x10] sm:$0xff]  }
   0x8   :  { %420 = vmatprep.subr.bf16.mxu0 %v464_v4  ;;  %446 = vmatprep.subr.bf16.mxu1 %v464_v4  ;;  %v49_v29 = vmul.f32 %v561_v19, %v30_v17  ;;  %v51_v30 = vmul.f32 %v561_v19, %v32_v18  ;;  %v92_v31 = vmul.f32 %v84_v21, %v561_v19  ;;  %v166_v32 = vld [vmem:[%s756_s3 + $0x18] sm:$0xff]  ;;  %v472_v33 = vld [vmem:[%s750_s6 + $0x48] sm:$0xff]   ;;  %v474_v54 = vld [vmem:[%s750_s6 + $0x40] sm:$0xff]  }
   0x9   :  { %v94_v34 = vmul.f32 %v86_v22, %v561_v19  ;;  %v132_v35 = vmul.f32 %v124_v25, %v561_v19  ;;  %v134_v36 = vmul.f32 %v126_v26, %v561_v19  ;;  %v172_v40 = vmul.f32 %v164_v27, %v561_v19  ;;  %v34_v45 = vld [vmem:[%s751_s0 + $0x28] sm:$0xff]  ;;  %v36_v46 = vld [vmem:[%s751_s0 + $0x38] sm:$0xff]  ;;  %v475_v4 = vld [vmem:[%s750_s6] sm:$0xff]  }
   0xa   :  { %v68_v37 = vadd.f32 %v563_v20, %v49_v29  ;;  %v70_v38 = vadd.f32 %v563_v20, %v51_v30  ;;  %v100_v39 = vadd.f32 %v92_v31, %v563_v20  ;;  %v174_v44 = vmul.f32 %v166_v32, %v561_v19  ;;  %v473_v47 = vld [vmem:[%s750_s6 + $0x8] sm:$0xff]   ;;  %v90_v53 = vld [vmem:[%s754_s1 + $0x38] sm:$0xff]  ;;  %v29_v26 = vld [vmem:[%s751_s0] sm:$0xff] }
   0xb   :  { %421 = vmatpush3.bf16.msra.mxu0 %v465_v6  ;;  %454 = vmatpush3.bf16.msra.mxu1 %v465_v6  ;;  %v102_v41 = vadd.f32 %v94_v34, %v563_v20  ;;  %v140_v42 = vadd.f32 %v132_v35, %v563_v20  ;;  %v142_v43 = vadd.f32 %v134_v36, %v563_v20  ;;  %v88_v52 = vld [vmem:[%s754_s1 + $0x28] sm:$0xff]  ;;  %v130_v8 = vld [vmem:[%s755_s2 + $0x38] sm:$0xff]  ;;  %v31_v31 = vld [vmem:[%s751_s0 + $0x10] sm:$0xff] }
   0xc   :  { %422 = vmatprep.subr.bf16.mxu0 %v466_v7  ;;  %447 = vmatprep.subr.bf16.mxu1 %v466_v7  ;;  %v76_v48 = vmax.f32 %v68_v37, 0.0  ;;  %v78_v49 = vmax.f32 %v70_v38, 0.0  ;;  %v108_v50 = vmax.f32 %v100_v39, 0.0  ;;  %v180_v51 = vadd.f32 %v172_v40, %v563_v20  ;;  %v128_v3 = vld [vmem:[%s755_s2 + $0x28] sm:$0xff]  ;;  %v170_v13 = vld [vmem:[%s756_s3 + $0x38] sm:$0xff]  ;;  %v83_v32 = vld [vmem:[%s754_s1] sm:$0xff] }
   0xd   :  { %v110_v55 = vmax.f32 %v102_v41, 0.0  ;;  %v148_v56 = vmax.f32 %v140_v42, 0.0  ;;  %v150_v57 = vmax.f32 %v142_v43, 0.0  ;;  %v182_v58 = vadd.f32 %v174_v44, %v563_v20  ;;  %v85_v40 = vld [vmem:[%s754_s1 + $0x10] sm:$0xff] }
   0xe   :  { %v116_v59 = vadd.f32 %v108_v50, %v76_v48  ;;  %v188_v60 = vmax.f32 %v180_v51, 0.0  ;;  %v53_v61 = vmul.f32 %v561_v19, %v34_v45  ;;  %v55_v62 = vmul.f32 %v561_v19, %v36_v46  ;;  %v123_v45 = vld [vmem:[%s755_s2] sm:$0xff] }
   0xf   :  { %423 = vmatpush3.bf16.msra.mxu0 %v467_v9  ;;  %455 = vmatpush3.bf16.msra.mxu1 %v467_v9  ;;  %v118_v63 = vadd.f32 %v110_v55, %v78_v49  ;;  %v190_v0 = vmax.f32 %v182_v58, 0.0  ;;  %v96_v1 = vmul.f32 %v88_v52, %v561_v19  ;;  %v98_v2 = vmul.f32 %v90_v53, %v561_v19 }
  0x10   :  { %424 = vmatprep.subr.bf16.mxu0 %v468_v10  ;;  %448 = vmatprep.subr.bf16.mxu1 %v468_v10  ;;  %v156_v5 = vadd.f32 %v148_v56, %v116_v59  ;;  %v72_v6 = vadd.f32 %v563_v20, %v53_v61  ;;  %v74_v7 = vadd.f32 %v563_v20, %v55_v62  ;;  %v165_v59 = vld [vmem:[%s756_s3 + $0x10] sm:$0xff] }
  0x11   :  { %v158_v9 = vadd.f32 %v150_v57, %v118_v63  ;;  %v104_v10 = vadd.f32 %v96_v1, %v563_v20  ;;  %v106_v11 = vadd.f32 %v98_v2, %v563_v20  ;;  %v136_v17 = vmul.f32 %v128_v3, %v561_v19 }
  0x12   :  { %v80_v15 = vmax.f32 %v72_v6, 0.0  ;;  %v82_v16 = vmax.f32 %v74_v7, 0.0  ;;  %v138_v25 = vmul.f32 %v130_v8, %v561_v19  ;;  %v178_v30 = vmul.f32 %v170_v13, %v561_v19 }
  0x13   :  { %425 = vmatpush3.bf16.msra.mxu0 %v469_v12  ;;  %456 = vmatpush3.bf16.msra.mxu1 %v469_v12  ;;  %v168_v12 = vld [vmem:[%s756_s3 + $0x28] sm:$0xff]  ;;  %v198_v18 = vadd.f32 %v190_v0, %v158_v9  ;;  %v112_v21 = vmax.f32 %v104_v10, 0.0  ;;  %v114_v22 = vmax.f32 %v106_v11, 0.0  ;;  %v50_v43 = vmul.f32 %v571_v23, %v31_v31  ;;  %v33_v0 = vld [vmem:[%s751_s0 + $0x20] sm:$0xff] }
  0x14   :  { %426 = vmatprep.subr.bf16.mxu0 %v470_v14  ;;  %449 = vmatprep.subr.bf16.mxu1 %v470_v14  ;;  %v196_v14 = vadd.f32 %v188_v60, %v156_v5  ;;  %v176_v29 = vmul.f32 %v168_v12, %v561_v19  ;;  %v146_v36 = vadd.f32 %v138_v25, %v563_v20  ;;  %v35_v5 = vld [vmem:[%s751_s0 + $0x30] sm:$0xff]  ;;  %v87_v10 = vld [vmem:[%s754_s1 + $0x20] sm:$0xff] }
  0x15   :  { %v120_v34 = vadd.f32 %v112_v21, %v80_v15  ;;  %v122_v35 = vadd.f32 %v114_v22, %v82_v16  ;;  %v186_v39 = vadd.f32 %v178_v30, %v563_v20  ;;  %v48_v19 = vmul.f32 %v571_v23, %v29_v26  ;;  %v89_v15 = vld [vmem:[%s754_s1 + $0x30] sm:$0xff]  ;;  %v127_v22 = vld [vmem:[%s755_s2 + $0x20] sm:$0xff] }
  0x16   :  { %v204_v27 = vmul.f32 0.25, %v196_v14  ;;  %v184_v38 = vadd.f32 %v176_v29, %v563_v20  ;;  %v154_v42 = vmax.f32 %v146_v36, 0.0  ;;  %v91_v44 = vmul.f32 %v83_v32, %v571_v23  ;;  %v129_v29 = vld [vmem:[%s755_s2 + $0x30] sm:$0xff] }
  0x17   :  { %427 = vmatpush3.bf16.msra.mxu0 %v471_v28  ;;  %457 = vmatpush3.bf16.msra.mxu1 %v471_v28  ;;  %v144_v28 = vadd.f32 %v136_v17, %v563_v20  ;;  %v125_v20 = vld [vmem:[%s755_s2 + $0x10] sm:$0xff]  ;;  %v194_v48 = vmax.f32 %v186_v39, 0.0  ;;  %v67_v49 = vadd.f32 %v573_v24, %v48_v19  ;;  %v69_v51 = vadd.f32 %v573_v24, %v50_v43 }
  0x18   :  { %428 = vmatprep.subr.bf16.mxu0 %v472_v33  ;;  %450 = vmatprep.subr.bf16.mxu1 %v472_v33  ;;  %v206_v33 = vmul.f32 0.25, %v198_v18  ;;  %v162_v50 = vadd.f32 %v154_v42, %v122_v35  ;;  %v93_v52 = vmul.f32 %v85_v40, %v571_v23  ;;  %v99_v53 = vadd.f32 %v91_v44, %v573_v24  ;;  %v169_v39 = vld [vmem:[%s756_s3 + $0x30] sm:$0xff] }
  0x19   :  { %v152_v37 = vmax.f32 %v144_v28, 0.0  ;;  %v75_v56 = vmax.f32 %v67_v49, 0.0  ;;  %v131_v57 = vmul.f32 %v123_v45, %v571_v23  ;;  %v133_v58 = vmul.f32 %v125_v20, %v571_v23 }
  0x1a   :  { %v212_v41 = vpack.c.bf16 %v206_v33, %v204_v27  ;;  %v202_v60 = vadd.f32 %v194_v48, %v162_v50  ;;  %v77_v61 = vmax.f32 %v69_v51, 0.0  ;;  %v101_v62 = vadd.f32 %v93_v52, %v573_v24 }
  0x1b   :  { %429 = vmatpush3.bf16.msra.mxu0 %v473_v47  ;;  %458 = vmatpush3.bf16.msra.mxu1 %v473_v47  ;;  %v160_v46 = vadd.f32 %v152_v37, %v120_v34  ;;  %v192_v47 = vmax.f32 %v184_v38, 0.0  ;;  %v107_v63 = vmax.f32 %v99_v53, 0.0  ;;  %v139_v2 = vadd.f32 %v131_v57, %v573_v24  ;;  %v167_v34 = vld [vmem:[%s756_s3 + $0x20] sm:$0xff] }
  0x1c   :  { %430 = vmatprep.subr.bf16.mxu0 %v474_v54  ;;  %451 = vmatprep.subr.bf16.mxu1 %v474_v54  ;;  %v163_v54 = vld [vmem:[%s756_s3] sm:$0xff]  ;;  %v141_v3 = vadd.f32 %v133_v58, %v573_v24  ;;  %v210_v6 = vmul.f32 0.25, %v202_v60  ;;  %v109_v7 = vmax.f32 %v101_v62, 0.0  ;;  %v173_v9 = vmul.f32 %v165_v59, %v571_v23 }
  0x1d   :  { %375 = vmatprep.mubr.bf16.mxu0 %v212_v41  ;;  %v200_v55 = vadd.f32 %v192_v47, %v160_v46  ;;  %v115_v8 = vadd.f32 %v107_v63, %v75_v56  ;;  %v147_v11 = vmax.f32 %v139_v2, 0.0  ;;  %v52_v14 = vmul.f32 %v571_v23, %v33_v0 }
  0x1e   :  { %v149_v12 = vmax.f32 %v141_v3, 0.0  ;;  %v117_v17 = vadd.f32 %v109_v7, %v77_v61  ;;  %v181_v18 = vadd.f32 %v173_v9, %v573_v24  ;;  %v54_v21 = vmul.f32 %v571_v23, %v35_v5 }
  0x1f   :  { %431 = vmatpush3.bf16.msra.mxu0 %v475_v4  ;;  %459 = vmatpush3.bf16.msra.mxu1 %v475_v4  ;;  %v208_v1 = vmul.f32 0.25, %v200_v55  ;;  %v171_v4 = vmul.f32 %v163_v54, %v571_v23  ;;  %v155_v25 = vadd.f32 %v147_v11, %v115_v8  ;;  %v71_v27 = vadd.f32 %v573_v24, %v52_v14 }
  0x20   :  { %v95_v28 = vmul.f32 %v87_v10, %v571_v23  ;;  %v157_v30 = vadd.f32 %v149_v12, %v117_v17  ;;  %v189_v31 = vmax.f32 %v181_v18, 0.0  ;;  %v73_v32 = vadd.f32 %v573_v24, %v54_v21 }
  0x21   :  { %v179_v13 = vadd.f32 %v171_v4, %v573_v24  ;;  %v214_v16 = vpack.c.bf16 %v210_v6, %v208_v1  ;;  %v97_v33 = vmul.f32 %v89_v15, %v571_v23  ;;  %v79_v36 = vmax.f32 %v71_v27, 0.0 }
  0x22   :  { %v103_v37 = vadd.f32 %v95_v28, %v573_v24  ;;  %v135_v38 = vmul.f32 %v127_v22, %v571_v23  ;;  %v197_v19 = vadd.f32 %v189_v31, %v157_v30  ;;  %v81_v40 = vmax.f32 %v73_v32, 0.0 }
  0x23   :  { %v187_v26 = vmax.f32 %v179_v13, 0.0  ;;  %383 = vmatprep.mubr.bf16.mxu1 %v214_v16  ;;  %v105_v41 = vadd.f32 %v97_v33, %v573_v24  ;;  %v137_v42 = vmul.f32 %v129_v29, %v571_v23  ;;  %v175_v20 = vmul.f32 %v167_v34, %v571_v23 }
  0x24   :  { %v111_v44 = vmax.f32 %v103_v37, 0.0  ;;  %v143_v45 = vadd.f32 %v135_v38, %v573_v24  ;;  %v205_v46 = vmul.f32 0.25, %v197_v19  ;;  %v177_v49 = vmul.f32 %v169_v39, %v571_v23 }
  0x25   :  { %v195_v35 = vadd.f32 %v187_v26, %v155_v25  ;;  %v113_v47 = vmax.f32 %v105_v41, 0.0  ;;  %v145_v48 = vadd.f32 %v137_v42, %v573_v24  ;;  %v183_v52 = vadd.f32 %v175_v20, %v573_v24 }
  0x26   :  { %v119_v50 = vadd.f32 %v111_v44, %v79_v36  ;;  %v151_v51 = vmax.f32 %v143_v45, 0.0  ;;  %v185_v56 = vadd.f32 %v177_v49, %v573_v24 }
  0x27   :  { %v203_v43 = vmul.f32 0.25, %v195_v35  ;;  %v121_v54 = vadd.f32 %v113_v47, %v81_v40  ;;  %v153_v55 = vmax.f32 %v145_v48, 0.0  ;;  %v191_v58 = vmax.f32 %v183_v52, 0.0 }
  0x28   :  { %v159_v57 = vadd.f32 %v151_v51, %v119_v50  ;;  %v193_v60 = vmax.f32 %v185_v56, 0.0 }
  0x29   :  { %v211_v53 = vpack.c.bf16 %v205_v46, %v203_v43  ;;  %v161_v59 = vadd.f32 %v153_v55, %v121_v54 }
  0x2a   :  { %v199_v61 = vadd.f32 %v191_v58, %v159_v57 }
  0x2b   :  { %376 = vmatmul.mubr.bf16.vlgmr.msra.gmra.mxu0 %v211_v53  ;;  %v201_v62 = vadd.f32 %v193_v60, %v161_v59 }
  0x2c   :  { %v207_v63 = vmul.f32 0.25, %v199_v61 }
  0x2d   :  { %v209_v0 = vmul.f32 0.25, %v201_v62 }
  0x2f   :  { %v213_v1 = vpack.c.bf16 %v209_v0, %v207_v63 }
  0x31   :  { %384 = vmatmul.mubr.bf16.vlgmr.msra.gmra.mxu1 %v213_v1 }
  0xeb   :  { %v432_v23 = vpop.f32.mrf.mxu0 }
  0xed   :  { %v433_v2 = vpop.f32.mrf.mxu0 }
  0xee   :  { %v434_v3 = vadd.f32 %v433_v2, %v432_v23 }
  0xef   :  { %v435_v4 = vpop.f32.mrf.mxu0 }
  0xf0   :  { %392 = vst [vmem:[%s757_s7] sm:$0xff] %v434_v3 }
  0xf1   :  { %v436_v24 = vpop.f32.mrf.mxu0  ;;  %v438_v6 = vpop.f32.mrf.mxu1 }
  0xf2   :  { %v437_v5 = vadd.f32 %v436_v24, %v435_v4 }
  0xf3   :  { %v439_v7 = vpop.f32.mrf.mxu1 }
  0xf4   :  { %393 = vst [vmem:[%s757_s7 + $0x8] sm:$0xff] %v437_v5  ;;  %v440_v8 = vadd.f32 %v439_v7, %v438_v6 }
  0xf5   :  { %v441_v9 = vpop.f32.mrf.mxu1 }
  0xf6   :  { %394 = vst [vmem:[%s757_s7 + $0x10] sm:$0xff] %v440_v8 }
  0xf7   :  { %v442_v10 = vpop.f32.mrf.mxu1 }
  0xf8   :  { %v443_v11 = vadd.f32 %v442_v10, %v441_v9 }
  0xfa   :  { %395 = vst [vmem:[%s757_s7 + $0x18] sm:$0xff] %v443_v11 }

// kernel: densenet169_forward.217
= control target key start
LH: loop header
LB: loop body
LE: loop exit
PB: predicated region body
PF: predicated region fallthrough
CT: control target
= control target key end

     0   :  { %v42_v19 = vlaneseq  ;;  %s865_s3 = inlined_call_operand.vmem [shape: bf16[512,128], index: 3, kind: input, shape index: {}]   ;;  %s866_s0 = inlined_call_operand.vmem [shape: f32[32,512], index: 0, kind: input, shape index: {}]   ;;  %s867_s1 = inlined_call_operand.vmem [shape: f32[1,512], index: 1, kind: input, shape index: {}]   ;;  %s868_s2 = inlined_call_operand.vmem [shape: f32[1,512], index: 2, kind: input, shape index: {}]   ;;  %s869_s4 = inlined_call_operand.vmem [shape: f32[1,128], index: 4, kind: input, shape index: {}]   ;;  %s870_s5 = inlined_call_operand.vmem [shape: f32[1,128], index: 5, kind: input, shape index: {}]   ;;  %s871_s6 = inlined_call_operand.vmem [shape: f32[32,128], index: 6, kind: output, shape index: {}]  }
   0x1   :  { %v618_v0 = vld [vmem:[%s865_s3 + $0x78] sm:$0xff]   ;;  %v622_v4 = vld [vmem:[%s865_s3 + $0x70] sm:$0xff]   ;;  %v626_v8 = vld [vmem:[%s865_s3 + $0x68] sm:$0xff]  }
   0x2   :  { %v619_v1 = vld [vmem:[%s865_s3 + $0xf8] sm:$0xff]   ;;  %562 = vmatprep.subr.bf16.mxu0 %v618_v0  ;;  %v623_v5 = vld [vmem:[%s865_s3 + $0xf0] sm:$0xff]   ;;  %v627_v9 = vld [vmem:[%s865_s3 + $0xe8] sm:$0xff]   ;;  %v43_v24 = vshrl.u32 %v42_v19, 7 }
   0x3   :  { %v620_v2 = vld [vmem:[%s865_s3 + $0x38] sm:$0xff]   ;;  %590 = vmatprep.subr.bf16.mxu1 %v619_v1  ;;  %v624_v6 = vld [vmem:[%s865_s3 + $0x30] sm:$0xff]   ;;  %v628_v10 = vld [vmem:[%s865_s3 + $0x28] sm:$0xff]  }
   0x4   :  { %v621_v3 = vld [vmem:[%s865_s3 + $0xb8] sm:$0xff]   ;;  %563 = vmatpush3.bf16.msra.mxu0 %v620_v2  ;;  %v625_v7 = vld [vmem:[%s865_s3 + $0xb0] sm:$0xff]   ;;  %v629_v11 = vld [vmem:[%s865_s3 + $0xa8] sm:$0xff]   ;;  %v48_v29 = vsub.s32 1, %v43_v24  ;;  %v56_v31 = vsub.s32 3, %v43_v24  ;;  %v44_v33 = vsub.s32 0, %v43_v24 }
   0x5   :  { %591 = vmatpush3.bf16.msra.mxu1 %v621_v3  ;;  %564 = vmatprep.subr.bf16.mxu0 %v622_v4  ;;  %v630_v12 = vld [vmem:[%s865_s3 + $0x60] sm:$0xff]   ;;  %v634_v16 = vld [vmem:[%s865_s3 + $0x58] sm:$0xff]   ;;  %v638_v21 = vld [vmem:[%s865_s3 + $0x50] sm:$0xff]   ;;  %v52_v35 = vsub.s32 2, %v43_v24 }
   0x6   :  { %592 = vmatprep.subr.bf16.mxu1 %v623_v5  ;;  %v631_v13 = vld [vmem:[%s865_s3 + $0xe0] sm:$0xff]   ;;  %v635_v17 = vld [vmem:[%s865_s3 + $0xd8] sm:$0xff]   ;;  %v639_v22 = vld [vmem:[%s865_s3 + $0xd0] sm:$0xff]  }
   0x7   :  { %v632_v14 = vld [vmem:[%s865_s3 + $0x20] sm:$0xff]   ;;  %v636_v18 = vld [vmem:[%s865_s3 + $0x18] sm:$0xff]   ;;  %v640_v23 = vld [vmem:[%s865_s3 + $0x10] sm:$0xff]  }
   0x8   :  { %565 = vmatpush3.bf16.msra.mxu0 %v624_v6  ;;  %v633_v15 = vld [vmem:[%s865_s3 + $0xa0] sm:$0xff]   ;;  %v637_v20 = vld [vmem:[%s865_s3 + $0x98] sm:$0xff]   ;;  %v641_v25 = vld [vmem:[%s865_s3 + $0x90] sm:$0xff]  }
   0x9   :  { %593 = vmatpush3.bf16.msra.mxu1 %v625_v7  ;;  %566 = vmatprep.subr.bf16.mxu0 %v626_v8  ;;  %v642_v26 = vld [vmem:[%s865_s3 + $0x48] sm:$0xff]   ;;  %v646_v32 = vld [vmem:[%s865_s3 + $0x40] sm:$0xff]   ;;  %v27_v43 = vld [vmem:[%s866_s0 + $0x18] sm:$0xff] }
   0xa   :  { %594 = vmatprep.subr.bf16.mxu1 %v627_v9  ;;  %v643_v27 = vld [vmem:[%s865_s3 + $0xc8] sm:$0xff]   ;;  %v647_v34 = vld [vmem:[%s865_s3 + $0xc0] sm:$0xff]   ;;  %v31_v44 = vld [vmem:[%s866_s0 + $0x38] sm:$0xff] }
   0xb   :  { %v644_v28 = vld [vmem:[%s865_s3 + $0x8] sm:$0xff]   ;;  %v648_v36 = vld [vmem:[%s865_s3] sm:$0xff]   ;;  %v26_v53 = vld [vmem:[%s866_s0 + $0x10] sm:$0xff] }
   0xc   :  { %567 = vmatpush3.bf16.msra.mxu0 %v628_v10  ;;  %v645_v30 = vld [vmem:[%s865_s3 + $0x88] sm:$0xff]   ;;  %v649_v37 = vld [vmem:[%s865_s3 + $0x80] sm:$0xff]   ;;  %v30_v59 = vld [vmem:[%s866_s0 + $0x30] sm:$0xff] }
   0xd   :  { %595 = vmatpush3.bf16.msra.mxu1 %v629_v11  ;;  %568 = vmatprep.subr.bf16.mxu0 %v630_v12  ;;  %v25_v38 = vld [vmem:[%s866_s0 + $0x8] sm:$0xff]  ;;  %v40_v40 = vld [vmem:[%s867_s1] sm:$0xf] }
   0xe   :  { %596 = vmatprep.subr.bf16.mxu1 %v631_v13  ;;  %v29_v39 = vld [vmem:[%s866_s0 + $0x28] sm:$0xff]  ;;  %v49_v41 = vrot.slane %v40_v40, %v48_v29  ;;  %v78_v42 = vld [vmem:[%s868_s2] sm:$0xf]  ;;  %v57_v45 = vrot.slane %v40_v40, %v56_v31  ;;  %v45_v46 = vrot.slane %v40_v40, %v44_v33  ;;  %v799_v47 = vrot.slane %v40_v40, %v52_v35 }
   0xf   :  { %v87_v48 = vrot.slane %v78_v42, %v48_v29  ;;  %v95_v49 = vrot.slane %v78_v42, %v56_v31  ;;  %v24_v50 = vld [vmem:[%s866_s0] sm:$0xff]  ;;  %v83_v52 = vrot.slane %v78_v42, %v44_v33  ;;  %v810_v54 = vrot.slane %v78_v42, %v52_v35  ;;  %v33_v8 = vld [vmem:[%s866_s0 + $0x48] sm:$0xff] }
  0x10   :  { %569 = vmatpush3.bf16.msra.mxu0 %v632_v14  ;;  %v28_v51 = vld [vmem:[%s866_s0 + $0x20] sm:$0xff]  ;;  %v63_v55 = vmul.f32 %v49_v41, %v25_v38  ;;  %v67_v56 = vmul.f32 %v49_v41, %v29_v39  ;;  %v65_v57 = vmul.f32 %v57_v45, %v27_v43  ;;  %v69_v58 = vmul.f32 %v57_v45, %v31_v44  ;;  %v37_v9 = vld [vmem:[%s866_s0 + $0x68] sm:$0xff]  ;;  %v35_v14 = vld [vmem:[%s866_s0 + $0x58] sm:$0xff] }
  0x11   :  { %597 = vmatpush3.bf16.msra.mxu1 %v633_v15  ;;  %570 = vmatprep.subr.bf16.mxu0 %v634_v16  ;;  %v62_v60 = vmul.f32 %v45_v46, %v24_v50  ;;  %v66_v61 = vmul.f32 %v45_v46, %v28_v51  ;;  %v64_v62 = vmul.f32 %v799_v47, %v26_v53  ;;  %v39_v15 = vld [vmem:[%s866_s0 + $0x78] sm:$0xff] }
  0x12   :  { %598 = vmatprep.subr.bf16.mxu1 %v635_v17  ;;  %v68_v63 = vmul.f32 %v799_v47, %v30_v59  ;;  %v101_v0 = vadd.f32 %v87_v48, %v63_v55  ;;  %v105_v1 = vadd.f32 %v87_v48, %v67_v56  ;;  %v103_v2 = vadd.f32 %v95_v49, %v65_v57 }
  0x13   :  { %v107_v3 = vadd.f32 %v95_v49, %v69_v58  ;;  %v100_v4 = vadd.f32 %v83_v52, %v62_v60  ;;  %v104_v5 = vadd.f32 %v83_v52, %v66_v61  ;;  %v102_v6 = vadd.f32 %v810_v54, %v64_v62 }
  0x14   :  { %571 = vmatpush3.bf16.msra.mxu0 %v636_v18  ;;  %v106_v7 = vadd.f32 %v810_v54, %v68_v63  ;;  %v117_v10 = vmax.f32 %v101_v0, 0.0  ;;  %v121_v11 = vmax.f32 %v105_v1, 0.0  ;;  %v119_v12 = vmax.f32 %v103_v2, 0.0  ;;  %v560_v63 = vld [vmem:[%s869_s4] ss:$0 sm:$0xff] }
  0x15   :  { %599 = vmatpush3.bf16.msra.mxu1 %v637_v20  ;;  %572 = vmatprep.subr.bf16.mxu0 %v638_v21  ;;  %v123_v13 = vmax.f32 %v107_v3, 0.0  ;;  %v116_v16 = vmax.f32 %v100_v4, 0.0  ;;  %v120_v17 = vmax.f32 %v104_v5, 0.0  ;;  %v118_v18 = vmax.f32 %v102_v6, 0.0  ;;  %v32_v20 = vld [vmem:[%s866_s0 + $0x40] sm:$0xff] }
  0x16   :  { %600 = vmatprep.subr.bf16.mxu1 %v639_v22  ;;  %v122_v19 = vmax.f32 %v106_v7, 0.0  ;;  %v133_v21 = vpack.c.bf16 %v121_v11, %v117_v10  ;;  %v75_v24 = vmul.f32 %v49_v41, %v37_v9  ;;  %v77_v29 = vmul.f32 %v57_v45, %v39_v15  ;;  %v561_v2 = vld [vmem:[%s870_s5] ss:$0 sm:$0xff] }
  0x17   :  { %v135_v22 = vpack.c.bf16 %v123_v13, %v119_v12  ;;  %v70_v33 = vmul.f32 %v45_v46, %v32_v20 }
  0x18   :  { %573 = vmatpush3.bf16.msra.mxu0 %v640_v23  ;;  %v71_v23 = vmul.f32 %v49_v41, %v33_v8  ;;  %428 = vmatprep.mubr.bf16.mxu0 %v133_v21 }
  0x19   :  { %601 = vmatpush3.bf16.msra.mxu1 %v641_v25  ;;  %574 = vmatprep.subr.bf16.mxu0 %v642_v26  ;;  %v36_v25 = vld [vmem:[%s866_s0 + $0x60] sm:$0xff]  ;;  %v132_v26 = vpack.c.bf16 %v120_v17, %v116_v16  ;;  %v108_v40 = vadd.f32 %v83_v52, %v70_v33 }
  0x1a   :  { %602 = vmatprep.subr.bf16.mxu1 %v643_v27  ;;  %v134_v27 = vpack.c.bf16 %v122_v19, %v118_v18  ;;  %477 = vmatprep.mubr.bf16.mxu1 %v135_v22  ;;  %v109_v31 = vadd.f32 %v87_v48, %v71_v23 }
  0x1b   :  { %v124_v50 = vmax.f32 %v108_v40, 0.0 }
  0x1c   :  { %575 = vmatpush3.bf16.msra.mxu0 %v644_v28  ;;  %v73_v28 = vmul.f32 %v57_v45, %v35_v14  ;;  %v125_v38 = vmax.f32 %v109_v31, 0.0 }
  0x1d   :  { %603 = vmatpush3.bf16.msra.mxu1 %v645_v30  ;;  %576 = vmatprep.subr.bf16.mxu0 %v646_v32  ;;  %v34_v30 = vld [vmem:[%s866_s0 + $0x50] sm:$0xff]  ;;  %v113_v32 = vadd.f32 %v87_v48, %v75_v24 }
  0x1e   :  { %604 = vmatprep.subr.bf16.mxu1 %v647_v34  ;;  %v38_v34 = vld [vmem:[%s866_s0 + $0x70] sm:$0xff]  ;;  %v111_v35 = vadd.f32 %v95_v49, %v73_v28  ;;  %v72_v41 = vmul.f32 %v799_v47, %v34_v30 }
  0x1f   :  { %v129_v39 = vmax.f32 %v113_v32, 0.0  ;;  %v76_v45 = vmul.f32 %v799_v47, %v38_v34 }
  0x20   :  { %577 = vmatpush3.bf16.msra.mxu0 %v648_v36  ;;  %v115_v36 = vadd.f32 %v95_v49, %v77_v29  ;;  %v127_v42 = vmax.f32 %v111_v35, 0.0  ;;  %v110_v51 = vadd.f32 %v810_v54, %v72_v41 }
  0x21   :  { %605 = vmatpush3.bf16.msra.mxu1 %v649_v37  ;;  %v74_v37 = vmul.f32 %v45_v46, %v36_v25  ;;  %v137_v48 = vpack.c.bf16 %v129_v39, %v125_v38  ;;  %v114_v56 = vadd.f32 %v810_v54, %v76_v45 }
  0x22   :  { %v131_v43 = vmax.f32 %v115_v36, 0.0  ;;  %v126_v46 = vmax.f32 %v110_v51, 0.0 }
  0x23   :  { %429 = vmatmul.mubr.bf16.vlgmr.msra.gmra.mxu0 %v132_v26  ;;  %v112_v44 = vadd.f32 %v83_v52, %v74_v37  ;;  %v130_v57 = vmax.f32 %v114_v56, 0.0 }
  0x24   :  { %478 = vmatmul.mubr.bf16.vlgmr.msra.gmra.mxu1 %v134_v27  ;;  %v139_v53 = vpack.c.bf16 %v131_v43, %v127_v42  ;;  %436 = vmatprep.mubr.bf16.mxu0 %v137_v48 }
  0x25   :  { %v128_v55 = vmax.f32 %v112_v44, 0.0  ;;  %v138_v58 = vpack.c.bf16 %v130_v57, %v126_v46 }
  0x26   :  { %485 = vmatprep.mubr.bf16.mxu1 %v139_v53 }
  0x27   :  { %v136_v49 = vpack.c.bf16 %v128_v55, %v124_v50 }
  0x2b   :  { %437 = vmatmul.mubr.bf16.gmra.mxu0 %v136_v49 }
  0x2c   :  { %486 = vmatmul.mubr.bf16.gmra.mxu1 %v138_v58 }
  0xe3   :  { %v578_v59 = vpop.f32.mrf.mxu0 }
  0xe4   :  { %v606_v52 = vpop.f32.mrf.mxu1 }
  0xe5   :  { %v579_v60 = vpop.f32.mrf.mxu0 }
  0xe6   :  { %v607_v47 = vpop.f32.mrf.mxu1  ;;  %v580_v61 = vadd.f32 %v579_v60, %v578_v59 }
  0xe7   :  { %v608_v62 = vadd.f32 %v607_v47, %v606_v52  ;;  %v581_v0 = vpop.f32.mrf.mxu0 }
  0xe8   :  { %v609_v54 = vpop.f32.mrf.mxu1 }
  0xe9   :  { %v480_v1 = vadd.f32 %v608_v62, %v580_v61  ;;  %v582_v3 = vpop.f32.mrf.mxu0 }
  0xea   :  { %v610_v4 = vpop.f32.mrf.mxu1  ;;  %v583_v6 = vadd.f32 %v582_v3, %v581_v0 }
  0xeb   :  { %v501_v5 = vmul.f32 %v560_v63, %v480_v1  ;;  %v611_v7 = vadd.f32 %v610_v4, %v609_v54  ;;  %v584_v8 = vpop.f32.mrf.mxu0 }
  0xec   :  { %v612_v11 = vpop.f32.mrf.mxu1 }
  0xed   :  { %v512_v9 = vadd.f32 %v561_v2, %v501_v5  ;;  %v483_v10 = vadd.f32 %v611_v7, %v583_v6  ;;  %v585_v12 = vpop.f32.mrf.mxu0 }
  0xee   :  { %v586_v15 = vadd.f32 %v585_v12, %v584_v8  ;;  %v613_v16 = vpop.f32.mrf.mxu1 }
  0xef   :  { %v516_v13 = vmax.f32 %v512_v9, 0.0  ;;  %v502_v14 = vmul.f32 %v560_v63, %v483_v10  ;;  %v587_v17 = vpop.f32.mrf.mxu0  ;;  %v614_v19 = vadd.f32 %v613_v16, %v612_v11 }
  0xf0   :  { %v615_v20 = vpop.f32.mrf.mxu1 }
  0xf1   :  { %520 = vst [vmem:[%s871_s6] sm:$0xff] %v516_v13  ;;  %v513_v18 = vadd.f32 %v561_v2, %v502_v14  ;;  %v588_v21 = vpop.f32.mrf.mxu0  ;;  %v488_v23 = vadd.f32 %v614_v19, %v586_v15 }
  0xf2   :  { %v589_v24 = vadd.f32 %v588_v21, %v587_v17  ;;  %v616_v25 = vpop.f32.mrf.mxu1 }
  0xf3   :  { %v517_v22 = vmax.f32 %v513_v18, 0.0  ;;  %v503_v26 = vmul.f32 %v560_v63, %v488_v23  ;;  %v617_v27 = vadd.f32 %v616_v25, %v615_v20 }
  0xf5   :  { %521 = vst [vmem:[%s871_s6 + $0x8] sm:$0xff] %v517_v22  ;;  %v514_v28 = vadd.f32 %v561_v2, %v503_v26  ;;  %v491_v29 = vadd.f32 %v617_v27, %v589_v24 }
  0xf7   :  { %v518_v30 = vmax.f32 %v514_v28, 0.0  ;;  %v504_v31 = vmul.f32 %v560_v63, %v491_v29 }
  0xf9   :  { %522 = vst [vmem:[%s871_s6 + $0x10] sm:$0xff] %v518_v30  ;;  %v515_v32 = vadd.f32 %v561_v2, %v504_v31 }
  0xfb   :  { %v519_v33 = vmax.f32 %v515_v32, 0.0 }
  0xfd   :  { %523 = vst [vmem:[%s871_s6 + $0x18] sm:$0xff] %v519_v33 }

// kernel: densenet169_forward.218
= control target key start
LH: loop header
LB: loop body
LE: loop exit
PB: predicated region body
PF: predicated region fallthrough
CT: control target
= control target key end

     0   :  { %vm887_vm0 = vcmask 261120   ;;  %s1537_s1 = inlined_call_operand.vmem [shape: bf16[1152,32], index: 1, kind: input, shape index: {}]   ;;  %s1538_s0 = inlined_call_operand.vmem [shape: f32[32,1152], index: 0, kind: input, shape index: {}]   ;;  %s1539_s2 = inlined_call_operand.vmem [shape: f32[32,32], index: 2, kind: output, shape index: {}]  }
   0x1   :  { %v1110_v0 = vld [vmem:[%s1537_s1 + $0x78] sm:$0xff]   ;;  %v1114_v4 = vld [vmem:[%s1537_s1 + $0x70] sm:$0xff]   ;;  %v1118_v8 = vld [vmem:[%s1537_s1 + $0x68] sm:$0xff]  }
   0x2   :  { %v1111_v1 = vld [vmem:[%s1537_s1 + $0xf8] sm:$0xff]   ;;  %968 = vmatprep.subr.bf16.mxu0 %v1110_v0  ;;  %v1115_v5 = vld [vmem:[%s1537_s1 + $0xf0] sm:$0xff]   ;;  %v1119_v9 = vld [vmem:[%s1537_s1 + $0xe8] sm:$0xff]  }
   0x3   :  { %v1112_v2 = vld [vmem:[%s1537_s1 + $0x38] sm:$0xff]   ;;  %996 = vmatprep.subr.bf16.mxu1 %v1111_v1  ;;  %v1116_v6 = vld [vmem:[%s1537_s1 + $0x30] sm:$0xff]   ;;  %v1120_v10 = vld [vmem:[%s1537_s1 + $0x28] sm:$0xff]  }
   0x4   :  { %v1113_v3 = vld [vmem:[%s1537_s1 + $0xb8] sm:$0xff]   ;;  %969 = vmatpush3.bf16.msra.mxu0 %v1112_v2  ;;  %v1117_v7 = vld [vmem:[%s1537_s1 + $0xb0] sm:$0xff]   ;;  %v1121_v11 = vld [vmem:[%s1537_s1 + $0xa8] sm:$0xff]  }
   0x5   :  { %997 = vmatpush3.bf16.msra.mxu1 %v1113_v3  ;;  %970 = vmatprep.subr.bf16.mxu0 %v1114_v4  ;;  %v1122_v12 = vld [vmem:[%s1537_s1 + $0x60] sm:$0xff]   ;;  %v1126_v16 = vld [vmem:[%s1537_s1 + $0x58] sm:$0xff]   ;;  %v1130_v20 = vld [vmem:[%s1537_s1 + $0x50] sm:$0xff]  }
   0x6   :  { %998 = vmatprep.subr.bf16.mxu1 %v1115_v5  ;;  %v1123_v13 = vld [vmem:[%s1537_s1 + $0xe0] sm:$0xff]   ;;  %v1127_v17 = vld [vmem:[%s1537_s1 + $0xd8] sm:$0xff]   ;;  %v1131_v21 = vld [vmem:[%s1537_s1 + $0xd0] sm:$0xff]  }
   0x7   :  { %v1124_v14 = vld [vmem:[%s1537_s1 + $0x20] sm:$0xff]   ;;  %v1128_v18 = vld [vmem:[%s1537_s1 + $0x18] sm:$0xff]   ;;  %v1132_v22 = vld [vmem:[%s1537_s1 + $0x10] sm:$0xff]  }
   0x8   :  { %971 = vmatpush3.bf16.msra.mxu0 %v1116_v6  ;;  %v1125_v15 = vld [vmem:[%s1537_s1 + $0xa0] sm:$0xff]   ;;  %v1129_v19 = vld [vmem:[%s1537_s1 + $0x98] sm:$0xff]   ;;  %v1133_v23 = vld [vmem:[%s1537_s1 + $0x90] sm:$0xff]  }
   0x9   :  { %999 = vmatpush3.bf16.msra.mxu1 %v1117_v7  ;;  %972 = vmatprep.subr.bf16.mxu0 %v1118_v8  ;;  %v1134_v24 = vld [vmem:[%s1537_s1 + $0x48] sm:$0xff]   ;;  %v1138_v28 = vld [vmem:[%s1537_s1 + $0x40] sm:$0xff]   ;;  %v22_v33 = vld [vmem:[%s1538_s0 + $0x50] sm:$0xff] }
   0xa   :  { %1000 = vmatprep.subr.bf16.mxu1 %v1119_v9  ;;  %v1135_v25 = vld [vmem:[%s1537_s1 + $0xc8] sm:$0xff]   ;;  %v1139_v29 = vld [vmem:[%s1537_s1 + $0xc0] sm:$0xff]   ;;  %v15_v34 = vld [vmem:[%s1538_s0 + $0x18] sm:$0xff] }
   0xb   :  { %v1136_v26 = vld [vmem:[%s1537_s1 + $0x8] sm:$0xff]   ;;  %v1140_v30 = vld [vmem:[%s1537_s1] sm:$0xff]   ;;  %v14_v41 = vld [vmem:[%s1538_s0 + $0x10] sm:$0xff] }
   0xc   :  { %973 = vmatpush3.bf16.msra.mxu0 %v1120_v10  ;;  %v1137_v27 = vld [vmem:[%s1537_s1 + $0x88] sm:$0xff]   ;;  %v1141_v31 = vld [vmem:[%s1537_s1 + $0x80] sm:$0xff]   ;;  %v23_v42 = vld [vmem:[%s1538_s0 + $0x58] sm:$0xff] }
   0xd   :  { %1001 = vmatpush3.bf16.msra.mxu1 %v1121_v11  ;;  %974 = vmatprep.subr.bf16.mxu0 %v1122_v12  ;;  %v13_v32 = vld [vmem:[%s1538_s0 + $0x8] sm:$0xff]  ;;  %v24_v36 = vld [vmem:[%s1538_s0 + $0x60] sm:$0xff]  ;;  %v50_v43 = vpack.c.bf16 %v23_v42, %v14_v41  ;;  %v1142_v44 = vld [vmem:[%s1537_s1 + $0x178] sm:$0xff]  }
   0xe   :  { %1002 = vmatprep.subr.bf16.mxu1 %v1123_v13  ;;  %v49_v35 = vpack.c.bf16 %v22_v33, %v13_v32  ;;  %v12_v37 = vld [vmem:[%s1538_s0] sm:$0xff]  ;;  %v21_v38 = vld [vmem:[%s1538_s0 + $0x48] sm:$0xff]  ;;  %v51_v39 = vpack.c.bf16 %v24_v36, %v15_v34  ;;  %v1143_v45 = vld [vmem:[%s1537_s1 + $0x138] sm:$0xff]  }
   0xf   :  { %v48_v40 = vpack.c.bf16 %v21_v38, %v12_v37  ;;  %v1144_v46 = vld [vmem:[%s1537_s1 + $0x1f8] sm:$0xff]   ;;  %v1146_v48 = vld [vmem:[%s1537_s1 + $0x170] sm:$0xff]   ;;  %v1150_v52 = vld [vmem:[%s1537_s1 + $0x168] sm:$0xff]  }
  0x10   :  { %975 = vmatpush3.bf16.msra.mxu0 %v1124_v14  ;;  %674 = vmatprep.mubr.bf16.mxu0 %v49_v35  ;;  %v1145_v47 = vld [vmem:[%s1537_s1 + $0x1b8] sm:$0xff]   ;;  %v1147_v49 = vld [vmem:[%s1537_s1 + $0x130] sm:$0xff]   ;;  %v1151_v53 = vld [vmem:[%s1537_s1 + $0x128] sm:$0xff]  }
  0x11   :  { %1003 = vmatpush3.bf16.msra.mxu1 %v1125_v15  ;;  %976 = vmatprep.subr.bf16.mxu0 %v1126_v16  ;;  %v1148_v50 = vld [vmem:[%s1537_s1 + $0x1f0] sm:$0xff]   ;;  %v1152_v54 = vld [vmem:[%s1537_s1 + $0x1e8] sm:$0xff]   ;;  %v1154_v56 = vld [vmem:[%s1537_s1 + $0x160] sm:$0xff]  }
  0x12   :  { %1004 = vmatprep.subr.bf16.mxu1 %v1127_v17  ;;  %723 = vmatprep.mubr.bf16.mxu1 %v51_v39  ;;  %v1149_v51 = vld [vmem:[%s1537_s1 + $0x1b0] sm:$0xff]   ;;  %v1153_v55 = vld [vmem:[%s1537_s1 + $0x1a8] sm:$0xff]   ;;  %v1155_v57 = vld [vmem:[%s1537_s1 + $0x120] sm:$0xff]  }
  0x13   :  { %v1156_v58 = vld [vmem:[%s1537_s1 + $0x1e0] sm:$0xff]   ;;  %v1158_v60 = vld [vmem:[%s1537_s1 + $0x158] sm:$0xff]   ;;  %v33_v0 = vld [vmem:[%s1538_s0 + $0xa8] sm:$0xff] }
  0x14   :  { %977 = vmatpush3.bf16.msra.mxu0 %v1128_v18  ;;  %v1157_v59 = vld [vmem:[%s1537_s1 + $0x1a0] sm:$0xff]   ;;  %v1159_v61 = vld [vmem:[%s1537_s1 + $0x118] sm:$0xff]   ;;  %v42_v1 = vld [vmem:[%s1538_s0 + $0xf0] sm:$0xff] }
  0x15   :  { %1005 = vmatpush3.bf16.msra.mxu1 %v1129_v19  ;;  %978 = vmatprep.subr.bf16.mxu0 %v1130_v20  ;;  %v31_v62 = vld [vmem:[%s1538_s0 + $0x98] sm:$0xff]  ;;  %v40_v63 = vld [vmem:[%s1538_s0 + $0xe0] sm:$0xff]  ;;  %v60_v3 = vpack.c.bf16 %v42_v1, %v33_v0  ;;  %v30_v5 = vld [vmem:[%s1538_s0 + $0x90] sm:$0xff] }
  0x16   :  { %1006 = vmatprep.subr.bf16.mxu1 %v1131_v21  ;;  %v58_v2 = vpack.c.bf16 %v40_v63, %v31_v62  ;;  %v1160_v4 = vld [vmem:[%s1537_s1 + $0x1d8] sm:$0xff]   ;;  %v32_v7 = vld [vmem:[%s1538_s0 + $0xa0] sm:$0xff]  ;;  %v41_v9 = vld [vmem:[%s1538_s0 + $0xe8] sm:$0xff] }
  0x17   :  { %v39_v6 = vld [vmem:[%s1538_s0 + $0xd8] sm:$0xff]  ;;  %v59_v10 = vpack.c.bf16 %v41_v9, %v32_v7  ;;  %v1162_v12 = vld [vmem:[%s1537_s1 + $0x150] sm:$0xff]   ;;  %v1166_v16 = vld [vmem:[%s1537_s1 + $0x148] sm:$0xff]  }
  0x18   :  { %979 = vmatpush3.bf16.msra.mxu0 %v1132_v22  ;;  %v57_v8 = vpack.c.bf16 %v39_v6, %v30_v5  ;;  %v1161_v11 = vld [vmem:[%s1537_s1 + $0x198] sm:$0xff]   ;;  %v1163_v13 = vld [vmem:[%s1537_s1 + $0x110] sm:$0xff]   ;;  %v1167_v17 = vld [vmem:[%s1537_s1 + $0x108] sm:$0xff]  }
  0x19   :  { %1007 = vmatpush3.bf16.msra.mxu1 %v1133_v23  ;;  %980 = vmatprep.subr.bf16.mxu0 %v1134_v24  ;;  %v1164_v14 = vld [vmem:[%s1537_s1 + $0x1d0] sm:$0xff]   ;;  %v1168_v18 = vld [vmem:[%s1537_s1 + $0x1c8] sm:$0xff]   ;;  %v1170_v20 = vld [vmem:[%s1537_s1 + $0x140] sm:$0xff]  }
  0x1a   :  { %1008 = vmatprep.subr.bf16.mxu1 %v1135_v25  ;;  %v1165_v15 = vld [vmem:[%s1537_s1 + $0x190] sm:$0xff]   ;;  %v1169_v19 = vld [vmem:[%s1537_s1 + $0x188] sm:$0xff]   ;;  %v1171_v21 = vld [vmem:[%s1537_s1 + $0x100] sm:$0xff]  }
  0x1b   :  { %v1172_v22 = vld [vmem:[%s1537_s1 + $0x1c0] sm:$0xff]   ;;  %v17_v23 = vld [vmem:[%s1538_s0 + $0x28] sm:$0xff]  ;;  %v26_v24 = vld [vmem:[%s1538_s0 + $0x70] sm:$0xff] }
  0x1c   :  { %981 = vmatpush3.bf16.msra.mxu0 %v1136_v26  ;;  %v53_v25 = vpack.c.bf16 %v26_v24, %v17_v23  ;;  %v1173_v26 = vld [vmem:[%s1537_s1 + $0x180] sm:$0xff]   ;;  %v18_v33 = vld [vmem:[%s1538_s0 + $0x30] sm:$0xff]  ;;  %v27_v34 = vld [vmem:[%s1538_s0 + $0x78] sm:$0xff] }
  0x1d   :  { %1009 = vmatpush3.bf16.msra.mxu1 %v1137_v27  ;;  %982 = vmatprep.subr.bf16.mxu0 %v1138_v28  ;;  %v16_v27 = vld [vmem:[%s1538_s0 + $0x20] sm:$0xff]  ;;  %v25_v28 = vld [vmem:[%s1538_s0 + $0x68] sm:$0xff]  ;;  %v54_v36 = vpack.c.bf16 %v27_v34, %v18_v33  ;;  %v1175_v37 = vld [vmem:[%s1537_s1 + $0x230] sm:$0xff]  }
  0x1e   :  { %1010 = vmatprep.subr.bf16.mxu1 %v1139_v29  ;;  %v52_v29 = vpack.c.bf16 %v25_v28, %v16_v27  ;;  %v28_v32 = vld [vmem:[%s1538_s0 + $0x80] sm:$0xff]  ;;  %v35_v38 = vld [vmem:[%s1538_s0 + $0xb8] sm:$0xff] }
  0x1f   :  { %v44_v39 = vld [vmem:[%s1538_s0 + $0x100] sm:$0xff]  ;;  %v43_v42 = vld [vmem:[%s1538_s0 + $0xf8] sm:$0xff] }
  0x20   :  { %983 = vmatpush3.bf16.msra.mxu0 %v1140_v30  ;;  %v1174_v30 = vld [vmem:[%s1537_s1 + $0x238] sm:$0xff]   ;;  %v62_v41 = vpack.c.bf16 %v44_v39, %v35_v38 }
  0x21   :  { %1011 = vmatpush3.bf16.msra.mxu1 %v1141_v31  ;;  %1024 = vmatprep.subr.bf16.mxu0 %v1142_v44  ;;  %v19_v31 = vld [vmem:[%s1538_s0 + $0x38] sm:$0xff]  ;;  %v37_v44 = vld [vmem:[%s1538_s0 + $0xc8] sm:$0xff] }
  0x22   :  { %1052 = vmatprep.subr.bf16.mxu1 %v1144_v46  ;;  %v55_v35 = vpack.c.bf16 %v28_v32, %v19_v31 }
  0x23   :  { %675 = vmatmul.mubr.bf16.vlgmr.msra.gmra.mxu0 %v48_v40  ;;  %v34_v40 = vld [vmem:[%s1538_s0 + $0xb0] sm:$0xff] }
  0x24   :  { %724 = vmatmul.mubr.bf16.vlgmr.msra.gmra.mxu1 %v50_v43  ;;  %1025 = vmatpush3.bf16.msra.mxu0 %v1143_v45  ;;  %v1176_v43 = vld [vmem:[%s1537_s1 + $0x228] sm:$0xff]   ;;  %v46_v45 = vld [vmem:[%s1538_s0 + $0x110] sm:$0xff]  ;;  %v61_v46 = vpack.c.bf16 %v43_v42, %v34_v40 }
  0x25   :  { %1053 = vmatpush3.bf16.msra.mxu1 %v1145_v47  ;;  %1026 = vmatprep.subr.bf16.mxu0 %v1146_v48  ;;  %v64_v47 = vpack.c.bf16 %v46_v45, %v37_v44  ;;  %v36_v48 = vld [vmem:[%s1538_s0 + $0xc0] sm:$0xff] }
  0x26   :  { %1054 = vmatprep.subr.bf16.mxu1 %v1148_v50  ;;  %682 = vmatprep.mubr.bf16.mxu0 %v58_v2  ;;  %v1177_v50 = vld [vmem:[%s1537_s1 + $0x220] sm:$0xff]  }
  0x27   :  { %731 = vmatprep.mubr.bf16.mxu1 %v60_v3 }
  0x28   :  { %1027 = vmatpush3.bf16.msra.mxu0 %v1147_v49  ;;  %v45_v49 = vld [vmem:[%s1538_s0 + $0x108] sm:$0xff] }
  0x29   :  { %1055 = vmatpush3.bf16.msra.mxu1 %v1149_v51  ;;  %1028 = vmatprep.subr.bf16.mxu0 %v1150_v52  ;;  %v63_v51 = vpack.c.bf16 %v45_v49, %v36_v48  ;;  %v20_v52 = vld [vmem:[%s1538_s0 + $0x40] sm:$0xff] }
  0x2a   :  { %1056 = vmatprep.subr.bf16.mxu1 %v1152_v54  ;;  %v29_v54 = vld [vmem:[%s1538_s0 + $0x88] sm:$0xff] }
  0x2b   :  { %683 = vmatmul.mubr.bf16.gmra.mxu0 %v57_v8 }
  0x2c   :  { %1029 = vmatpush3.bf16.msra.mxu0 %v1151_v53  ;;  %732 = vmatmul.mubr.bf16.gmra.mxu1 %v59_v10  ;;  %v1178_v53 = vld [vmem:[%s1537_s1 + $0x218] sm:$0xff]  }
  0x2d   :  { %1057 = vmatpush3.bf16.msra.mxu1 %v1153_v55  ;;  %1030 = vmatprep.subr.bf16.mxu0 %v1154_v56  ;;  %v56_v55 = vpack.c.bf16 %v29_v54, %v20_v52  ;;  %v1179_v56 = vld [vmem:[%s1537_s1 + $0x210] sm:$0xff]  }
  0x2e   :  { %1058 = vmatprep.subr.bf16.mxu1 %v1156_v58  ;;  %772 = vmatprep.mubr.bf16.mxu0 %v53_v25  ;;  %v1181_v58 = vld [vmem:[%s1537_s1 + $0x200] sm:$0xff]  }
  0x2f   :  { %821 = vmatprep.mubr.bf16.mxu1 %v55_v35 }
  0x30   :  { %1031 = vmatpush3.bf16.msra.mxu0 %v1155_v57  ;;  %v1180_v57 = vld [vmem:[%s1537_s1 + $0x208] sm:$0xff]  }
  0x31   :  { %1059 = vmatpush3.bf16.msra.mxu1 %v1157_v59  ;;  %1032 = vmatprep.subr.bf16.mxu0 %v1158_v60  ;;  %v38_v59 = vld [vmem:[%s1538_s0 + $0xd0] sm:$0xff]  ;;  %v47_v60 = vld [vmem:[%s1538_s0 + $0x118] sm:$0xff] }
  0x32   :  { %1060 = vmatprep.subr.bf16.mxu1 %v1160_v4 }
  0x34   :  { %1033 = vmatpush3.bf16.msra.mxu0 %v1159_v61  ;;  %v65_v61 = vpack.c.bf16 %v47_v60, %v38_v59 }
  0x35   :  { %1061 = vmatpush3.bf16.msra.mxu1 %v1161_v11  ;;  %1034 = vmatprep.subr.bf16.mxu0 %v1162_v12 }
  0x36   :  { %1062 = vmatprep.subr.bf16.mxu1 %v1164_v14 }
  0x38   :  { %1035 = vmatpush3.bf16.msra.mxu0 %v1163_v13 }
  0x39   :  { %1063 = vmatpush3.bf16.msra.mxu1 %v1165_v15  ;;  %1036 = vmatprep.subr.bf16.mxu0 %v1166_v16 }
  0x3a   :  { %1064 = vmatprep.subr.bf16.mxu1 %v1168_v18 }
  0x3c   :  { %1037 = vmatpush3.bf16.msra.mxu0 %v1167_v17 }
  0x3d   :  { %1065 = vmatpush3.bf16.msra.mxu1 %v1169_v19  ;;  %1038 = vmatprep.subr.bf16.mxu0 %v1170_v20 }
  0x3e   :  { %1066 = vmatprep.subr.bf16.mxu1 %v1172_v22 }
  0x40   :  { %1039 = vmatpush3.bf16.msra.mxu0 %v1171_v21 }
  0x41   :  { %1067 = vmatpush3.bf16.msra.mxu1 %v1173_v26  ;;  %1090 = vmatprep.subr.bf16.mxu0 %v1174_v30 }
  0x43   :  { %773 = vmatmul.mubr.bf16.vlgmr.msra.gmra.mxu0 %v52_v29 }
  0x44   :  { %1091 = vmatpush3.bf16.msra.mxu0 %v1174_v30  ;;  %822 = vmatmul.mubr.bf16.vlgmr.msra.gmra.mxu1 %v54_v36 }
  0x45   :  { %1092 = vmatprep.subr.bf16.mxu0 %v1175_v37  ;;  %780 = vmatprep.mubr.bf16.mxu0 %v62_v41 }
  0x46   :  { %829 = vmatprep.mubr.bf16.mxu1 %v64_v47 }
  0x48   :  { %1093 = vmatpush3.bf16.msra.mxu0 %v1175_v37 }
  0x49   :  { %1094 = vmatprep.subr.bf16.mxu0 %v1176_v43 }
  0x4b   :  { %781 = vmatmul.mubr.bf16.gmra.mxu0 %v61_v46 }
  0x4c   :  { %1095 = vmatpush3.bf16.msra.mxu0 %v1176_v43  ;;  %830 = vmatmul.mubr.bf16.gmra.mxu1 %v63_v51 }
  0x4d   :  { %1096 = vmatprep.subr.bf16.mxu0 %v1177_v50  ;;  %1106 = vmatprep.mubr.bf16.mxu0 %v56_v55 }
  0x50   :  { %1097 = vmatpush3.bf16.msra.mxu0 %v1177_v50 }
  0x51   :  { %1098 = vmatprep.subr.bf16.mxu0 %v1178_v53 }
  0x54   :  { %1099 = vmatpush3.bf16.msra.mxu0 %v1178_v53 }
  0x55   :  { %1100 = vmatprep.subr.bf16.mxu0 %v1179_v56 }
  0x58   :  { %1101 = vmatpush3.bf16.msra.mxu0 %v1179_v56 }
  0x59   :  { %1102 = vmatprep.subr.bf16.mxu0 %v1180_v57 }
  0x5c   :  { %1103 = vmatpush3.bf16.msra.mxu0 %v1180_v57 }
  0x5d   :  { %1104 = vmatprep.subr.bf16.mxu0 %v1181_v58 }
  0x60   :  { %1105 = vmatpush3.bf16.msra.mxu0 %v1181_v58 }
  0x63   :  { %1107 = vmatmul.mubr.bf16.vlgmr.msra.gmra.mxu0 %v65_v61 }
  0xe3   :  { %v984_v62 = vpop.f32.mrf.mxu0 }
  0xe4   :  { %v1012_v63 = vpop.f32.mrf.mxu1 }
  0xe5   :  { %v985_v0 = vpop.f32.mrf.mxu0 }
  0xe6   :  { %v1013_v1 = vpop.f32.mrf.mxu1  ;;  %v986_v29 = vadd.f32 %v985_v0, %v984_v62 }
  0xe7   :  { %v987_v2 = vpop.f32.mrf.mxu0  ;;  %v1014_v30 = vadd.f32 %v1013_v1, %v1012_v63 }
  0xe8   :  { %v1015_v3 = vpop.f32.mrf.mxu1 }
  0xe9   :  { %v988_v4 = vpop.f32.mrf.mxu0  ;;  %v726_v38 = vadd.f32 %v1014_v30, %v986_v29 }
  0xea   :  { %v1016_v6 = vpop.f32.mrf.mxu1  ;;  %v989_v39 = vadd.f32 %v988_v4, %v987_v2 }
  0xeb   :  { %v990_v5 = vpop.f32.mrf.mxu0  ;;  %v1017_v40 = vadd.f32 %v1016_v6, %v1015_v3 }
  0xec   :  { %v1018_v7 = vpop.f32.mrf.mxu1 }
  0xed   :  { %v991_v8 = vpop.f32.mrf.mxu0  ;;  %v729_v49 = vadd.f32 %v1017_v40, %v989_v39 }
  0xee   :  { %v1019_v9 = vpop.f32.mrf.mxu1  ;;  %v992_v27 = vadd.f32 %v991_v8, %v990_v5 }
  0xef   :  { %v993_v10 = vpop.f32.mrf.mxu0  ;;  %v1020_v28 = vadd.f32 %v1019_v9, %v1018_v7 }
  0xf0   :  { %v1021_v11 = vpop.f32.mrf.mxu1 }
  0xf1   :  { %v994_v12 = vpop.f32.mrf.mxu0  ;;  %v734_v34 = vadd.f32 %v1020_v28, %v992_v27 }
  0xf2   :  { %v1022_v14 = vpop.f32.mrf.mxu1  ;;  %v995_v35 = vadd.f32 %v994_v12, %v993_v10 }
  0xf3   :  { %v1023_v36 = vadd.f32 %v1022_v14, %v1021_v11 }
  0xf5   :  { %v737_v45 = vadd.f32 %v1023_v36, %v995_v35 }
 0x103   :  { %v1040_v13 = vpop.f32.mrf.mxu0 }
 0x104   :  { %v1068_v16 = vpop.f32.mrf.mxu1 }
 0x105   :  { %v1041_v15 = vpop.f32.mrf.mxu0 }
 0x106   :  { %v1069_v18 = vpop.f32.mrf.mxu1  ;;  %v1042_v37 = vadd.f32 %v1041_v15, %v1040_v13 }
 0x107   :  { %v1043_v17 = vpop.f32.mrf.mxu0  ;;  %v1070_v47 = vadd.f32 %v1069_v18, %v1068_v16 }
 0x108   :  { %v1071_v20 = vpop.f32.mrf.mxu1  ;;  %v775_v46 = vadd.f32 %v1042_v37, %v726_v38 }
 0x109   :  { %v1044_v19 = vpop.f32.mrf.mxu0 }
 0x10a   :  { %v1072_v22 = vpop.f32.mrf.mxu1  ;;  %v1045_v48 = vadd.f32 %v1044_v19, %v1043_v17  ;;  %v824_v57 = vadd.f32 %v1070_v47, %v775_v46 }
 0x10b   :  { %v1046_v21 = vpop.f32.mrf.mxu0  ;;  %v1073_v55 = vadd.f32 %v1072_v22, %v1071_v20 }
 0x10c   :  { %v1074_v24 = vpop.f32.mrf.mxu1  ;;  %v778_v54 = vadd.f32 %v1045_v48, %v729_v49 }
 0x10d   :  { %v1047_v23 = vpop.f32.mrf.mxu0 }
 0x10e   :  { %v1075_v26 = vpop.f32.mrf.mxu1  ;;  %v1048_v31 = vadd.f32 %v1047_v23, %v1046_v21  ;;  %v827_v63 = vadd.f32 %v1073_v55, %v778_v54 }
 0x10f   :  { %v1049_v25 = vpop.f32.mrf.mxu0  ;;  %v1076_v42 = vadd.f32 %v1075_v26, %v1074_v24 }
 0x110   :  { %v1077_v33 = vpop.f32.mrf.mxu1  ;;  %v783_v41 = vadd.f32 %v1048_v31, %v734_v34 }
 0x111   :  { %v1050_v32 = vpop.f32.mrf.mxu0 }
 0x112   :  { %v1051_v43 = vadd.f32 %v1050_v32, %v1049_v25  ;;  %v1078_v44 = vpop.f32.mrf.mxu1  ;;  %v832_v52 = vadd.f32 %v1076_v42, %v783_v41 }
 0x113   :  { %v1079_v51 = vadd.f32 %v1078_v44, %v1077_v33 }
 0x114   :  { %v786_v50 = vadd.f32 %v1051_v43, %v737_v45 }
 0x116   :  { %v835_v60 = vadd.f32 %v1079_v51, %v786_v50 }
 0x123   :  { %v1108_v53 = vpop.f32.mrf.mxu0 }
 0x124   :  { %v881_v56 = vadd.f32 %v1108_v53, %v832_v52 }
 0x125   :  { %v872_v58 = vpop.f32.mrf.mxu0 }
 0x126   :  { %890 = vst.msk [vmem:[%s1539_s2 + $0x10] sm:$0xff] %vm887_vm0, %v881_v56  ;;  %v873_v59 = vadd.f32 %v872_v58, %v824_v57 }
 0x127   :  { %v1109_v61 = vpop.f32.mrf.mxu0 }
 0x128   :  { %888 = vst.msk [vmem:[%s1539_s2] sm:$0xff] %vm887_vm0, %v873_v59  ;;  %v884_v62 = vadd.f32 %v1109_v61, %v835_v60 }
 0x129   :  { %v875_v0 = vpop.f32.mrf.mxu0 }
 0x12a   :  { %891 = vst.msk [vmem:[%s1539_s2 + $0x18] sm:$0xff] %vm887_vm0, %v884_v62  ;;  %v876_v1 = vadd.f32 %v875_v0, %v827_v63 }
 0x12c   :  { %889 = vst.msk [vmem:[%s1539_s2 + $0x8] sm:$0xff] %vm887_vm0, %v876_v1 }

// kernel: densenet169_forward.241
= control target key start
LH: loop header
LB: loop body
LE: loop exit
PB: predicated region body
PF: predicated region fallthrough
CT: control target
= control target key end

     0   :  { %v33_v34 = vlaneseq  ;;  %s1106_s6 = inlined_call_operand.vmem [shape: bf16[512,256], index: 6, kind: input, shape index: {}]   ;;  %s1107_s4 = inlined_call_operand.vmem [shape: f32[1,512], index: 4, kind: input, shape index: {}]   ;;  %s1108_s0 = inlined_call_operand.vmem [shape: f32[8,512], index: 0, kind: input, shape index: {}]   ;;  %s1109_s1 = inlined_call_operand.vmem [shape: f32[8,512], index: 1, kind: input, shape index: {}]   ;;  %s1110_s5 = inlined_call_operand.vmem [shape: f32[1,512], index: 5, kind: input, shape index: {}]   ;;  %s1111_s2 = inlined_call_operand.vmem [shape: f32[8,512], index: 2, kind: input, shape index: {}]   ;;  %s1112_s3 = inlined_call_operand.vmem [shape: f32[8,512], index: 3, kind: input, shape index: {}]   ;;  %s1113_s7 = inlined_call_operand.vmem [shape: f32[8,256], index: 7, kind: output, shape index: {}]  }
   0x1   :  { %v690_v0 = vld [vmem:[%s1106_s6 + $0x74] ss:$8 sps:$4 sm:$0xff]   ;;  %v694_v2 = vld [vmem:[%s1106_s6 + $0x70] ss:$8 sps:$4 sm:$0xff]   ;;  %v696_v4 = vld [vmem:[%s1106_s6 + $0x64] ss:$8 sps:$4 sm:$0xff]  }
   0x2   :  { %v692_v1 = vld [vmem:[%s1106_s6 + $0x174] ss:$8 sps:$4 sm:$0xff]   ;;  %538 = vmatprep.subr.bf16.mxu0 %v690_v0  ;;  %v695_v3 = vld [vmem:[%s1106_s6 + $0x170] ss:$8 sps:$4 sm:$0xff]   ;;  %v698_v5 = vld [vmem:[%s1106_s6 + $0x164] ss:$8 sps:$4 sm:$0xff]  }
   0x3   :  { %579 = vmatprep.subr.bf16.mxu1 %v692_v1  ;;  %539 = vmatpush1.bf16.msra.mxu0 %v694_v2  ;;  %v700_v6 = vld [vmem:[%s1106_s6 + $0x60] ss:$8 sps:$4 sm:$0xff]   ;;  %v702_v8 = vld [vmem:[%s1106_s6 + $0x54] ss:$8 sps:$4 sm:$0xff]   ;;  %v706_v10 = vld [vmem:[%s1106_s6 + $0x50] ss:$8 sps:$4 sm:$0xff]  }
   0x4   :  { %580 = vmatpush1.bf16.msra.mxu1 %v695_v3  ;;  %540 = vmatprep.subr.bf16.mxu0 %v696_v4  ;;  %v701_v7 = vld [vmem:[%s1106_s6 + $0x160] ss:$8 sps:$4 sm:$0xff]   ;;  %v704_v9 = vld [vmem:[%s1106_s6 + $0x154] ss:$8 sps:$4 sm:$0xff]   ;;  %v707_v11 = vld [vmem:[%s1106_s6 + $0x150] ss:$8 sps:$4 sm:$0xff]  }
   0x5   :  { %581 = vmatprep.subr.bf16.mxu1 %v698_v5  ;;  %v708_v12 = vld [vmem:[%s1106_s6 + $0x44] ss:$8 sps:$4 sm:$0xff]   ;;  %v712_v14 = vld [vmem:[%s1106_s6 + $0x40] ss:$8 sps:$4 sm:$0xff]   ;;  %v714_v16 = vld [vmem:[%s1106_s6 + $0x34] ss:$8 sps:$4 sm:$0xff]  }
   0x6   :  { %v710_v13 = vld [vmem:[%s1106_s6 + $0x144] ss:$8 sps:$4 sm:$0xff]   ;;  %v713_v15 = vld [vmem:[%s1106_s6 + $0x140] ss:$8 sps:$4 sm:$0xff]   ;;  %v716_v17 = vld [vmem:[%s1106_s6 + $0x134] ss:$8 sps:$4 sm:$0xff]  }
   0x7   :  { %541 = vmatpush1.bf16.msra.mxu0 %v700_v6  ;;  %v718_v18 = vld [vmem:[%s1106_s6 + $0x30] ss:$8 sps:$4 sm:$0xff]   ;;  %v720_v20 = vld [vmem:[%s1106_s6 + $0x24] ss:$8 sps:$4 sm:$0xff]   ;;  %v724_v22 = vld [vmem:[%s1106_s6 + $0x20] ss:$8 sps:$4 sm:$0xff]  }
   0x8   :  { %582 = vmatpush1.bf16.msra.mxu1 %v701_v7  ;;  %542 = vmatprep.subr.bf16.mxu0 %v702_v8  ;;  %v719_v19 = vld [vmem:[%s1106_s6 + $0x130] ss:$8 sps:$4 sm:$0xff]   ;;  %v722_v21 = vld [vmem:[%s1106_s6 + $0x124] ss:$8 sps:$4 sm:$0xff]   ;;  %v725_v23 = vld [vmem:[%s1106_s6 + $0x120] ss:$8 sps:$4 sm:$0xff]  }
   0x9   :  { %583 = vmatprep.subr.bf16.mxu1 %v704_v9  ;;  %v726_v24 = vld [vmem:[%s1106_s6 + $0x14] ss:$8 sps:$4 sm:$0xff]   ;;  %v730_v26 = vld [vmem:[%s1106_s6 + $0x10] ss:$8 sps:$4 sm:$0xff]   ;;  %v732_v28 = vld [vmem:[%s1106_s6 + $0x4] ss:$8 sps:$4 sm:$0xff]  }
   0xa   :  { %v728_v25 = vld [vmem:[%s1106_s6 + $0x114] ss:$8 sps:$4 sm:$0xff]   ;;  %v731_v27 = vld [vmem:[%s1106_s6 + $0x110] ss:$8 sps:$4 sm:$0xff]   ;;  %v734_v29 = vld [vmem:[%s1106_s6 + $0x104] ss:$8 sps:$4 sm:$0xff]  }
   0xb   :  { %543 = vmatpush1.bf16.msra.mxu0 %v706_v10  ;;  %v736_v30 = vld [vmem:[%s1106_s6] ss:$8 sps:$4 sm:$0xff]   ;;  %v738_v32 = vld [vmem:[%s1106_s6 + $0xf4] ss:$8 sps:$4 sm:$0xff]   ;;  %v742_v35 = vld [vmem:[%s1106_s6 + $0xf0] ss:$8 sps:$4 sm:$0xff]  }
   0xc   :  { %584 = vmatpush1.bf16.msra.mxu1 %v707_v11  ;;  %544 = vmatprep.subr.bf16.mxu0 %v708_v12  ;;  %v737_v31 = vld [vmem:[%s1106_s6 + $0x100] ss:$8 sps:$4 sm:$0xff]   ;;  %v740_v33 = vld [vmem:[%s1106_s6 + $0x1f4] ss:$8 sps:$4 sm:$0xff]   ;;  %v743_v36 = vld [vmem:[%s1106_s6 + $0x1f0] ss:$8 sps:$4 sm:$0xff]  }
   0xd   :  { %585 = vmatprep.subr.bf16.mxu1 %v710_v13  ;;  %v744_v37 = vld [vmem:[%s1106_s6 + $0xe4] ss:$8 sps:$4 sm:$0xff]   ;;  %v940_v39 = vshrl.u32 %v33_v34, 7  ;;  %v748_v40 = vld [vmem:[%s1106_s6 + $0xe0] ss:$8 sps:$4 sm:$0xff]   ;;  %v31_v3 = vld [vmem:[%s1108_s0 + $0x18] sm:$0xff] }
   0xe   :  { %v746_v38 = vld [vmem:[%s1106_s6 + $0x1e4] ss:$8 sps:$4 sm:$0xff]   ;;  %v749_v41 = vld [vmem:[%s1106_s6 + $0x1e0] ss:$8 sps:$4 sm:$0xff]   ;;  %v750_v42 = vld [vmem:[%s1106_s6 + $0xd4] ss:$8 sps:$4 sm:$0xff]  }
   0xf   :  { %545 = vmatpush1.bf16.msra.mxu0 %v712_v14  ;;  %v752_v43 = vld [vmem:[%s1106_s6 + $0x1d4] ss:$8 sps:$4 sm:$0xff]   ;;  %v39_v44 = vsub.s32 1, %v940_v39  ;;  %v47_v45 = vsub.s32 3, %v940_v39  ;;  %v754_v46 = vld [vmem:[%s1106_s6 + $0xd0] ss:$8 sps:$4 sm:$0xff]  }
  0x10   :  { %586 = vmatpush1.bf16.msra.mxu1 %v713_v15  ;;  %546 = vmatprep.subr.bf16.mxu0 %v714_v16  ;;  %v755_v47 = vld [vmem:[%s1106_s6 + $0x1d0] ss:$8 sps:$4 sm:$0xff]   ;;  %v35_v48 = vsub.s32 0, %v940_v39  ;;  %v43_v49 = vsub.s32 2, %v940_v39  ;;  %v756_v50 = vld [vmem:[%s1106_s6 + $0xc4] ss:$8 sps:$4 sm:$0xff]  }
  0x11   :  { %587 = vmatprep.subr.bf16.mxu1 %v716_v17  ;;  %v758_v51 = vld [vmem:[%s1106_s6 + $0x1c4] ss:$8 sps:$4 sm:$0xff]   ;;  %v760_v52 = vld [vmem:[%s1106_s6 + $0xc0] ss:$8 sps:$4 sm:$0xff]   ;;  %v762_v55 = vld [vmem:[%s1106_s6 + $0xb4] ss:$8 sps:$4 sm:$0xff]  }
  0x12   :  { %v761_v53 = vld [vmem:[%s1106_s6 + $0x1c0] ss:$8 sps:$4 sm:$0xff]   ;;  %v764_v56 = vld [vmem:[%s1106_s6 + $0x1b4] ss:$8 sps:$4 sm:$0xff]   ;;  %v766_v16 = vld [vmem:[%s1106_s6 + $0xb0] ss:$8 sps:$4 sm:$0xff]  }
  0x13   :  { %547 = vmatpush1.bf16.msra.mxu0 %v718_v18  ;;  %v26_v54 = vld [vmem:[%s1107_s4] sm:$0xf]  ;;  %v29_v58 = vld [vmem:[%s1108_s0 + $0x8] sm:$0xff]  ;;  %v89_v9 = vld [vmem:[%s1109_s1 + $0x18] sm:$0xff] }
  0x14   :  { %588 = vmatpush1.bf16.msra.mxu1 %v719_v19  ;;  %548 = vmatprep.subr.bf16.mxu0 %v720_v20  ;;  %v988_v57 = vld [vmem:[%s1110_s5] sm:$0xf]  ;;  %v40_v59 = vrot.slane %v26_v54, %v39_v44  ;;  %v87_v60 = vld [vmem:[%s1109_s1 + $0x8] sm:$0xff]  ;;  %v48_v61 = vrot.slane %v26_v54, %v47_v45  ;;  %v36_v62 = vrot.slane %v26_v54, %v35_v48  ;;  %v109_v10 = vld [vmem:[%s1111_s2 + $0x18] sm:$0xff] }
  0x15   :  { %589 = vmatprep.subr.bf16.mxu1 %v722_v21  ;;  %v998_v63 = vrot.slane %v26_v54, %v43_v49  ;;  %v65_v0 = vrot.slane %v988_v57, %v39_v44  ;;  %v107_v1 = vld [vmem:[%s1111_s2 + $0x8] sm:$0xff]  ;;  %v73_v4 = vrot.slane %v988_v57, %v47_v45  ;;  %v1012_v5 = vrot.slane %v988_v57, %v35_v48  ;;  %v129_v11 = vld [vmem:[%s1112_s3 + $0x18] sm:$0xff]  ;;  %v126_v34 = vld [vmem:[%s1112_s3] sm:$0xff] }
  0x16   :  { %v127_v2 = vld [vmem:[%s1112_s3 + $0x8] sm:$0xff]  ;;  %v54_v6 = vmul.f32 %v40_v59, %v29_v58  ;;  %v91_v7 = vmul.f32 %v87_v60, %v40_v59  ;;  %v111_v8 = vmul.f32 %v107_v1, %v40_v59  ;;  %v56_v13 = vmul.f32 %v48_v61, %v31_v3  ;;  %v767_v17 = vld [vmem:[%s1106_s6 + $0x1b0] ss:$8 sps:$4 sm:$0xff]  }
  0x17   :  { %549 = vmatpush1.bf16.msra.mxu0 %v724_v22  ;;  %v131_v12 = vmul.f32 %v127_v2, %v40_v59  ;;  %v93_v14 = vmul.f32 %v89_v9, %v48_v61  ;;  %v113_v15 = vmul.f32 %v109_v10, %v48_v61  ;;  %v768_v18 = vld [vmem:[%s1106_s6 + $0xa4] ss:$8 sps:$4 sm:$0xff]   ;;  %v133_v22 = vmul.f32 %v129_v11, %v48_v61  ;;  %v30_v44 = vld [vmem:[%s1108_s0 + $0x10] sm:$0xff]  ;;  %v772_v45 = vld [vmem:[%s1106_s6 + $0xa0] ss:$8 sps:$4 sm:$0xff]  }
  0x18   :  { %590 = vmatpush1.bf16.msra.mxu1 %v725_v23  ;;  %550 = vmatprep.subr.bf16.mxu0 %v726_v24  ;;  %v79_v19 = vadd.f32 %v65_v0, %v54_v6  ;;  %v95_v20 = vadd.f32 %v91_v7, %v65_v0  ;;  %v115_v21 = vadd.f32 %v111_v8, %v65_v0  ;;  %v770_v23 = vld [vmem:[%s1106_s6 + $0x1a4] ss:$8 sps:$4 sm:$0xff]   ;;  %v88_v58 = vld [vmem:[%s1109_s1 + $0x10] sm:$0xff] }
  0x19   :  { %591 = vmatprep.subr.bf16.mxu1 %v728_v25  ;;  %v135_v24 = vadd.f32 %v131_v12, %v65_v0  ;;  %v81_v25 = vadd.f32 %v73_v4, %v56_v13  ;;  %v108_v0 = vld [vmem:[%s1111_s2 + $0x10] sm:$0xff]  ;;  %v92_v39 = vmul.f32 %v88_v58, %v998_v63 }
  0x1a   :  { %v128_v6 = vld [vmem:[%s1112_s3 + $0x10] sm:$0xff] }
  0x1b   :  { %551 = vmatpush1.bf16.msra.mxu0 %v730_v26  ;;  %v97_v26 = vadd.f32 %v93_v14, %v73_v4  ;;  %v779_v7 = vld [vmem:[%s1106_s6 + $0x190] ss:$8 sps:$4 sm:$0xff]   ;;  %v112_v14 = vmul.f32 %v108_v0, %v998_v63 }
  0x1c   :  { %592 = vmatpush1.bf16.msra.mxu1 %v731_v27  ;;  %552 = vmatprep.subr.bf16.mxu0 %v732_v28  ;;  %v28_v27 = vld [vmem:[%s1108_s0] sm:$0xff] }
  0x1d   :  { %593 = vmatprep.subr.bf16.mxu1 %v734_v29  ;;  %v86_v28 = vld [vmem:[%s1109_s1] sm:$0xff]  ;;  %v83_v29 = vmax.f32 %v79_v19, 0.0 }
  0x1f   :  { %553 = vmatpush1.bf16.msra.mxu0 %v736_v30  ;;  %v99_v30 = vmax.f32 %v95_v20, 0.0 }
  0x20   :  { %594 = vmatpush1.bf16.msra.mxu1 %v737_v31  ;;  %554 = vmatprep.subr.bf16.mxu0 %v738_v32  ;;  %v119_v31 = vmax.f32 %v115_v21, 0.0  ;;  %v117_v32 = vadd.f32 %v113_v15, %v73_v4 }
  0x21   :  { %595 = vmatprep.subr.bf16.mxu1 %v740_v33  ;;  %v106_v33 = vld [vmem:[%s1111_s2] sm:$0xff] }
  0x23   :  { %555 = vmatpush2.bf16.msra.mxu0 %v742_v35  ;;  %v139_v35 = vmax.f32 %v135_v24, 0.0 }
  0x24   :  { %596 = vmatpush2.bf16.msra.mxu1 %v743_v36  ;;  %556 = vmatprep.subr.bf16.mxu0 %v744_v37  ;;  %v85_v36 = vmax.f32 %v81_v25, 0.0  ;;  %v101_v37 = vmax.f32 %v97_v26, 0.0 }
  0x25   :  { %597 = vmatprep.subr.bf16.mxu1 %v746_v38  ;;  %v137_v38 = vadd.f32 %v133_v22, %v73_v4  ;;  %v69_v4 = vrot.slane %v988_v57, %v43_v49  ;;  %v780_v49 = vld [vmem:[%s1106_s6 + $0x84] ss:$8 sps:$4 sm:$0xff]   ;;  %v784_v22 = vld [vmem:[%s1106_s6 + $0x80] ss:$8 sps:$4 sm:$0xff]  }
  0x26   :  { %v782_v57 = vld [vmem:[%s1106_s6 + $0x184] ss:$8 sps:$4 sm:$0xff]  }
  0x27   :  { %557 = vmatpush2.bf16.msra.mxu0 %v748_v40  ;;  %v103_v40 = vadd.f32 %v99_v30, %v83_v29  ;;  %v141_v48 = vmax.f32 %v137_v38, 0.0  ;;  %v116_v21 = vadd.f32 %v112_v14, %v69_v4 }
  0x28   :  { %598 = vmatpush2.bf16.msra.mxu1 %v749_v41  ;;  %558 = vmatprep.subr.bf16.mxu0 %v750_v42  ;;  %v121_v41 = vmax.f32 %v117_v32, 0.0  ;;  %v53_v42 = vmul.f32 %v36_v62, %v28_v27 }
  0x29   :  { %599 = vmatprep.subr.bf16.mxu1 %v752_v43  ;;  %v90_v43 = vmul.f32 %v86_v28, %v36_v62  ;;  %v123_v54 = vadd.f32 %v119_v31, %v103_v40  ;;  %v120_v27 = vmax.f32 %v116_v21, 0.0 }
  0x2b   :  { %559 = vmatpush2.bf16.msra.mxu0 %v754_v46  ;;  %v773_v46 = vld [vmem:[%s1106_s6 + $0x1a0] ss:$8 sps:$4 sm:$0xff]   ;;  %v143_v1 = vadd.f32 %v139_v35, %v123_v54 }
  0x2c   :  { %600 = vmatpush2.bf16.msra.mxu1 %v755_v47  ;;  %560 = vmatprep.subr.bf16.mxu0 %v756_v50  ;;  %v105_v47 = vadd.f32 %v101_v37, %v85_v36  ;;  %v110_v50 = vmul.f32 %v106_v33, %v36_v62 }
  0x2d   :  { %601 = vmatprep.subr.bf16.mxu1 %v758_v51  ;;  %v130_v51 = vmul.f32 %v126_v34, %v36_v62  ;;  %v55_v62 = vmul.f32 %v998_v63, %v30_v44  ;;  %v147_v11 = vmul.f32 0.25, %v143_v1 }
  0x2e   :  { %v125_v59 = vadd.f32 %v121_v41, %v105_v47  ;;  %v114_v60 = vadd.f32 %v110_v50, %v1012_v5 }
  0x2f   :  { %561 = vmatpush2.bf16.msra.mxu0 %v760_v52  ;;  %v774_v52 = vld [vmem:[%s1106_s6 + $0x94] ss:$8 sps:$4 sm:$0xff]   ;;  %v134_v61 = vadd.f32 %v130_v51, %v1012_v5  ;;  %v80_v13 = vadd.f32 %v69_v4, %v55_v62 }
  0x30   :  { %602 = vmatpush2.bf16.msra.mxu1 %v761_v53  ;;  %562 = vmatprep.subr.bf16.mxu0 %v762_v55  ;;  %v776_v53 = vld [vmem:[%s1106_s6 + $0x194] ss:$8 sps:$4 sm:$0xff]   ;;  %v78_v55 = vadd.f32 %v1012_v5, %v53_v42  ;;  %v145_v8 = vadd.f32 %v141_v48, %v125_v59  ;;  %v118_v9 = vmax.f32 %v114_v60, 0.0 }
  0x31   :  { %603 = vmatprep.subr.bf16.mxu1 %v764_v56  ;;  %v94_v56 = vadd.f32 %v90_v43, %v1012_v5  ;;  %v778_v5 = vld [vmem:[%s1106_s6 + $0x90] ss:$8 sps:$4 sm:$0xff]   ;;  %v138_v10 = vmax.f32 %v134_v61, 0.0  ;;  %v84_v20 = vmax.f32 %v80_v13, 0.0 }
  0x32   :  { %v82_v2 = vmax.f32 %v78_v55, 0.0  ;;  %v149_v15 = vmul.f32 0.25, %v145_v8 }
  0x33   :  { %563 = vmatpush2.bf16.msra.mxu0 %v766_v16  ;;  %v98_v3 = vmax.f32 %v94_v56, 0.0  ;;  %v96_v16 = vadd.f32 %v92_v39, %v69_v4 }
  0x34   :  { %604 = vmatpush2.bf16.msra.mxu1 %v767_v17  ;;  %564 = vmatprep.subr.bf16.mxu0 %v768_v18  ;;  %v132_v17 = vmul.f32 %v128_v6, %v998_v63  ;;  %v151_v18 = vpack.c.bf16 %v147_v11, %v147_v11  ;;  %v153_v24 = vpack.c.bf16 %v149_v15, %v149_v15 }
  0x35   :  { %605 = vmatprep.subr.bf16.mxu1 %v770_v23  ;;  %v102_v12 = vadd.f32 %v98_v3, %v82_v2  ;;  %v785_v23 = vld [vmem:[%s1106_s6 + $0x180] ss:$8 sps:$4 sm:$0xff]   ;;  %v100_v25 = vmax.f32 %v96_v16, 0.0 }
  0x36   :  { %v136_v26 = vadd.f32 %v132_v17, %v69_v4  ;;  %570 = vmatprep.mubr.bf16.mxu0 %v151_v18  ;;  %611 = vmatprep.mubr.bf16.mxu1 %v153_v24 }
  0x37   :  { %565 = vmatpush2.bf16.msra.mxu0 %v772_v45  ;;  %v122_v19 = vadd.f32 %v118_v9, %v102_v12  ;;  %v104_v28 = vadd.f32 %v100_v25, %v84_v20 }
  0x38   :  { %606 = vmatpush2.bf16.msra.mxu1 %v773_v46  ;;  %566 = vmatprep.subr.bf16.mxu0 %v774_v52  ;;  %v140_v29 = vmax.f32 %v136_v26, 0.0 }
  0x39   :  { %607 = vmatprep.subr.bf16.mxu1 %v776_v53  ;;  %v142_v63 = vadd.f32 %v138_v10, %v122_v19  ;;  %v124_v31 = vadd.f32 %v120_v27, %v104_v28 }
  0x3b   :  { %567 = vmatpush2.bf16.msra.mxu0 %v778_v5  ;;  %v146_v30 = vmul.f32 0.25, %v142_v63  ;;  %v144_v33 = vadd.f32 %v140_v29, %v124_v31 }
  0x3c   :  { %608 = vmatpush2.bf16.msra.mxu1 %v779_v7  ;;  %568 = vmatprep.subr.bf16.mxu0 %v780_v49 }
  0x3d   :  { %609 = vmatprep.subr.bf16.mxu1 %v782_v57  ;;  %v150_v32 = vpack.c.bf16 %v146_v30, %v146_v30  ;;  %v148_v34 = vmul.f32 0.25, %v144_v33 }
  0x3f   :  { %569 = vmatpush2.bf16.msra.mxu0 %v784_v22  ;;  %v152_v35 = vpack.c.bf16 %v148_v34, %v148_v34 }
  0x40   :  { %610 = vmatpush2.bf16.msra.mxu1 %v785_v23 }
  0x42   :  { %571 = vmatmul.mubr.bf16.vlgmr.msra.gmra.mxu0 %v150_v32 }
  0x43   :  { %612 = vmatmul.mubr.bf16.vlgmr.msra.gmra.mxu1 %v152_v35 }
 0x102   :  { %v572_v36 = vpop.f32.mrf.mxu0 }
 0x103   :  { %v613_v40 = vpop.f32.mrf.mxu1 }
 0x104   :  { %v574_v37 = vpop.f32.mrf.mxu0  ;;  %v614_v41 = vadd.f32 %v613_v40, %v572_v36 }
 0x105   :  { %v615_v43 = vpop.f32.mrf.mxu1 }
 0x106   :  { %v576_v38 = vpop.f32.mrf.mxu0  ;;  %620 = vst [vmem:[%s1113_s7] sm:$0xff] %v614_v41  ;;  %v616_v44 = vadd.f32 %v615_v43, %v574_v37 }
 0x107   :  { %v617_v45 = vpop.f32.mrf.mxu1 }
 0x108   :  { %v577_v42 = vpop.f32.mrf.mxu0  ;;  %621 = vst [vmem:[%s1113_s7 + $0x8] sm:$0xff] %v616_v44 }
 0x109   :  { %v618_v46 = vpop.f32.mrf.mxu1 }

// kernel: densenet169_forward.242
= control target key start
LH: loop header
LB: loop body
LE: loop exit
PB: predicated region body
PF: predicated region fallthrough
CT: control target
= control target key end

     0   :  { %v38_v20 = vlaneseq  ;;  %s1684_s3 = inlined_call_operand.vmem [shape: bf16[1280,128], index: 3, kind: input, shape index: {}]   ;;  %s1685_s0 = inlined_call_operand.vmem [shape: f32[8,1280], index: 0, kind: input, shape index: {}]   ;;  %s1686_s1 = inlined_call_operand.vmem [shape: f32[1,1280], index: 1, kind: input, shape index: {}]   ;;  %s1687_s2 = inlined_call_operand.vmem [shape: f32[1,1280], index: 2, kind: input, shape index: {}]   ;;  %s1688_s4 = inlined_call_operand.vmem [shape: f32[1,128], index: 4, kind: input, shape index: {}]   ;;  %s1689_s5 = inlined_call_operand.vmem [shape: f32[1,128], index: 5, kind: input, shape index: {}]   ;;  %s1690_s6 = inlined_call_operand.vmem [shape: f32[8,128], index: 6, kind: output, shape index: {}]  }
   0x1   :  { %v1236_v0 = vld [vmem:[%s1684_s3 + $0x78] sm:$0xff]   ;;  %v1240_v4 = vld [vmem:[%s1684_s3 + $0x70] sm:$0xff]   ;;  %v1244_v8 = vld [vmem:[%s1684_s3 + $0x68] sm:$0xff]  }
   0x2   :  { %v1237_v1 = vld [vmem:[%s1684_s3 + $0xf8] sm:$0xff]   ;;  %1126 = vmatprep.subr.bf16.mxu0 %v1236_v0  ;;  %v1241_v5 = vld [vmem:[%s1684_s3 + $0xf0] sm:$0xff]   ;;  %v1245_v9 = vld [vmem:[%s1684_s3 + $0xe8] sm:$0xff]   ;;  %v1423_v25 = vshrl.u32 %v38_v20, 7 }
   0x3   :  { %v1238_v2 = vld [vmem:[%s1684_s3 + $0x38] sm:$0xff]   ;;  %1148 = vmatprep.subr.bf16.mxu1 %v1237_v1  ;;  %v1242_v6 = vld [vmem:[%s1684_s3 + $0x30] sm:$0xff]   ;;  %v1246_v10 = vld [vmem:[%s1684_s3 + $0x28] sm:$0xff]  }
   0x4   :  { %v1239_v3 = vld [vmem:[%s1684_s3 + $0xb8] sm:$0xff]   ;;  %1127 = vmatpush3.bf16.msra.mxu0 %v1238_v2  ;;  %v1243_v7 = vld [vmem:[%s1684_s3 + $0xb0] sm:$0xff]   ;;  %v1247_v11 = vld [vmem:[%s1684_s3 + $0xa8] sm:$0xff]   ;;  %v1438_v30 = vsub.s32 1, %v1423_v25  ;;  %v52_v32 = vsub.s32 3, %v1423_v25  ;;  %v1448_v34 = vsub.s32 0, %v1423_v25 }
   0x5   :  { %1149 = vmatpush3.bf16.msra.mxu1 %v1239_v3  ;;  %1128 = vmatprep.subr.bf16.mxu0 %v1240_v4  ;;  %v1248_v12 = vld [vmem:[%s1684_s3 + $0x60] sm:$0xff]   ;;  %v1252_v16 = vld [vmem:[%s1684_s3 + $0x58] sm:$0xff]   ;;  %v1256_v21 = vld [vmem:[%s1684_s3 + $0x50] sm:$0xff]   ;;  %v48_v36 = vsub.s32 2, %v1423_v25 }
   0x6   :  { %1150 = vmatprep.subr.bf16.mxu1 %v1241_v5  ;;  %v1249_v13 = vld [vmem:[%s1684_s3 + $0xe0] sm:$0xff]   ;;  %v1253_v17 = vld [vmem:[%s1684_s3 + $0xd8] sm:$0xff]   ;;  %v1257_v22 = vld [vmem:[%s1684_s3 + $0xd0] sm:$0xff]  }
   0x7   :  { %v1250_v14 = vld [vmem:[%s1684_s3 + $0x20] sm:$0xff]   ;;  %v1254_v18 = vld [vmem:[%s1684_s3 + $0x18] sm:$0xff]   ;;  %v1258_v23 = vld [vmem:[%s1684_s3 + $0x10] sm:$0xff]  }
   0x8   :  { %1129 = vmatpush3.bf16.msra.mxu0 %v1242_v6  ;;  %v1251_v15 = vld [vmem:[%s1684_s3 + $0xa0] sm:$0xff]   ;;  %v1255_v19 = vld [vmem:[%s1684_s3 + $0x98] sm:$0xff]   ;;  %v1259_v24 = vld [vmem:[%s1684_s3 + $0x90] sm:$0xff]  }
   0x9   :  { %1151 = vmatpush3.bf16.msra.mxu1 %v1243_v7  ;;  %1130 = vmatprep.subr.bf16.mxu0 %v1244_v8  ;;  %v1260_v26 = vld [vmem:[%s1684_s3 + $0x48] sm:$0xff]   ;;  %v1264_v31 = vld [vmem:[%s1684_s3 + $0x40] sm:$0xff]   ;;  %v27_v43 = vld [vmem:[%s1685_s0 + $0x18] sm:$0xff] }
   0xa   :  { %1152 = vmatprep.subr.bf16.mxu1 %v1245_v9  ;;  %v1261_v27 = vld [vmem:[%s1684_s3 + $0xc8] sm:$0xff]   ;;  %v1265_v33 = vld [vmem:[%s1684_s3 + $0xc0] sm:$0xff]   ;;  %v26_v47 = vld [vmem:[%s1685_s0 + $0x10] sm:$0xff] }
   0xb   :  { %v1262_v28 = vld [vmem:[%s1684_s3 + $0x8] sm:$0xff]   ;;  %v1266_v35 = vld [vmem:[%s1684_s3] sm:$0xff]   ;;  %v1268_v52 = vld [vmem:[%s1684_s3 + $0x178] sm:$0xff]  }
   0xc   :  { %1131 = vmatpush3.bf16.msra.mxu0 %v1246_v10  ;;  %v1263_v29 = vld [vmem:[%s1684_s3 + $0x88] sm:$0xff]   ;;  %v1267_v37 = vld [vmem:[%s1684_s3 + $0x80] sm:$0xff]   ;;  %v1270_v57 = vld [vmem:[%s1684_s3 + $0x1f8] sm:$0xff]  }
   0xd   :  { %1153 = vmatpush3.bf16.msra.mxu1 %v1247_v11  ;;  %1132 = vmatprep.subr.bf16.mxu0 %v1248_v12  ;;  %v25_v38 = vld [vmem:[%s1685_s0 + $0x8] sm:$0xff]  ;;  %v1463_v39 = vld [vmem:[%s1686_s1] sm:$0xff]  ;;  %v1269_v0 = vld [vmem:[%s1684_s3 + $0x138] sm:$0xff]  }
   0xe   :  { %1154 = vmatprep.subr.bf16.mxu1 %v1249_v13  ;;  %v1468_v40 = vld [vmem:[%s1687_s2] sm:$0xff]  ;;  %v45_v41 = vrot.slane %v1463_v39, %v1438_v30  ;;  %v53_v44 = vrot.slane %v1463_v39, %v52_v32  ;;  %v41_v48 = vrot.slane %v1463_v39, %v1448_v34  ;;  %v49_v50 = vrot.slane %v1463_v39, %v48_v36  ;;  %v1271_v3 = vld [vmem:[%s1684_s3 + $0x1b8] sm:$0xff]   ;;  %v1272_v4 = vld [vmem:[%s1684_s3 + $0x170] sm:$0xff]  }
   0xf   :  { %v109_v42 = vrot.slane %v1468_v40, %v1438_v30  ;;  %v117_v45 = vrot.slane %v1468_v40, %v52_v32  ;;  %v24_v46 = vld [vmem:[%s1685_s0] sm:$0xff]  ;;  %v105_v49 = vrot.slane %v1468_v40, %v1448_v34  ;;  %v113_v51 = vrot.slane %v1468_v40, %v48_v36  ;;  %v1274_v9 = vld [vmem:[%s1684_s3 + $0x1f0] sm:$0xff]   ;;  %v1276_v12 = vld [vmem:[%s1684_s3 + $0x168] sm:$0xff]  }
  0x10   :  { %1133 = vmatpush3.bf16.msra.mxu0 %v1250_v14  ;;  %v89_v53 = vmul.f32 %v45_v41, %v25_v38  ;;  %v91_v54 = vmul.f32 %v53_v44, %v27_v43  ;;  %v88_v55 = vmul.f32 %v41_v48, %v24_v46  ;;  %v90_v56 = vmul.f32 %v49_v50, %v26_v47  ;;  %v1273_v10 = vld [vmem:[%s1684_s3 + $0x130] sm:$0xff]   ;;  %v1278_v13 = vld [vmem:[%s1684_s3 + $0x1e8] sm:$0xff]   ;;  %v1284_v20 = vld [vmem:[%s1684_s3 + $0x158] sm:$0xff]  }
  0x11   :  { %1155 = vmatpush3.bf16.msra.mxu1 %v1251_v15  ;;  %1134 = vmatprep.subr.bf16.mxu0 %v1252_v16  ;;  %v1275_v11 = vld [vmem:[%s1684_s3 + $0x1b0] sm:$0xff]   ;;  %v1277_v14 = vld [vmem:[%s1684_s3 + $0x128] sm:$0xff]   ;;  %v1280_v16 = vld [vmem:[%s1684_s3 + $0x160] sm:$0xff]  }
  0x12   :  { %1156 = vmatprep.subr.bf16.mxu1 %v1253_v17  ;;  %v153_v58 = vadd.f32 %v109_v42, %v89_v53  ;;  %v155_v59 = vadd.f32 %v117_v45, %v91_v54  ;;  %v152_v60 = vadd.f32 %v105_v49, %v88_v55  ;;  %v154_v61 = vadd.f32 %v113_v51, %v90_v56  ;;  %v1279_v15 = vld [vmem:[%s1684_s3 + $0x1a8] sm:$0xff]   ;;  %v1282_v17 = vld [vmem:[%s1684_s3 + $0x1e0] sm:$0xff]   ;;  %v31_v55 = vld [vmem:[%s1685_s0 + $0x38] sm:$0xff] }
  0x13   :  { %v1292_v32 = vld [vmem:[%s1684_s3 + $0x148] sm:$0xff]   ;;  %v1296_v44 = vld [vmem:[%s1684_s3 + $0x140] sm:$0xff]  }
  0x14   :  { %1135 = vmatpush3.bf16.msra.mxu0 %v1254_v18  ;;  %v163_v62 = vmax.f32 %v153_v58, 0.0  ;;  %v165_v63 = vmax.f32 %v155_v59, 0.0  ;;  %v162_v1 = vmax.f32 %v152_v60, 0.0  ;;  %v164_v2 = vmax.f32 %v154_v61, 0.0  ;;  %v1281_v18 = vld [vmem:[%s1684_s3 + $0x120] sm:$0xff]   ;;  %v1293_v38 = vld [vmem:[%s1684_s3 + $0x108] sm:$0xff]  }
  0x15   :  { %1157 = vmatpush3.bf16.msra.mxu1 %v1255_v19  ;;  %1136 = vmatprep.subr.bf16.mxu0 %v1256_v21  ;;  %v1283_v19 = vld [vmem:[%s1684_s3 + $0x1a0] sm:$0xff]   ;;  %v1286_v21 = vld [vmem:[%s1684_s3 + $0x1d8] sm:$0xff]   ;;  %v1295_v42 = vld [vmem:[%s1684_s3 + $0x188] sm:$0xff]  }
  0x16   :  { %1158 = vmatprep.subr.bf16.mxu1 %v1257_v22  ;;  %v173_v5 = vpack.c.bf16 %v163_v62, %v163_v62  ;;  %v175_v6 = vpack.c.bf16 %v165_v63, %v165_v63  ;;  %v172_v7 = vpack.c.bf16 %v162_v1, %v162_v1  ;;  %v174_v8 = vpack.c.bf16 %v164_v2, %v164_v2  ;;  %v1285_v22 = vld [vmem:[%s1684_s3 + $0x118] sm:$0xff]   ;;  %v1298_v47 = vld [vmem:[%s1684_s3 + $0x1c0] sm:$0xff]   ;;  %v30_v59 = vld [vmem:[%s1685_s0 + $0x30] sm:$0xff] }
  0x17   :  { %v28_v49 = vld [vmem:[%s1685_s0 + $0x20] sm:$0xff]  ;;  %v1300_v61 = vld [vmem:[%s1684_s3 + $0x278] sm:$0xff]  }
  0x18   :  { %1137 = vmatpush3.bf16.msra.mxu0 %v1258_v23  ;;  %854 = vmatprep.mubr.bf16.mxu0 %v173_v5  ;;  %v1287_v23 = vld [vmem:[%s1684_s3 + $0x198] sm:$0xff]   ;;  %v1297_v51 = vld [vmem:[%s1684_s3 + $0x100] sm:$0xff]  }
  0x19   :  { %1159 = vmatpush3.bf16.msra.mxu1 %v1259_v24  ;;  %1138 = vmatprep.subr.bf16.mxu0 %v1260_v26  ;;  %v1288_v24 = vld [vmem:[%s1684_s3 + $0x150] sm:$0xff]  }
  0x1a   :  { %1160 = vmatprep.subr.bf16.mxu1 %v1261_v27  ;;  %894 = vmatprep.mubr.bf16.mxu1 %v175_v6  ;;  %v1290_v26 = vld [vmem:[%s1684_s3 + $0x1d0] sm:$0xff]   ;;  %v60_v27 = vsub.s32 5, %v1423_v25 }
  0x1b   :  { %v1302_v6 = vld [vmem:[%s1684_s3 + $0x270] sm:$0xff]  }
  0x1c   :  { %1139 = vmatpush3.bf16.msra.mxu0 %v1262_v28  ;;  %v1289_v28 = vld [vmem:[%s1684_s3 + $0x110] sm:$0xff]   ;;  %v61_v36 = vrot.slane %v1463_v39, %v60_v27  ;;  %v125_v43 = vrot.slane %v1468_v40, %v60_v27 }
  0x1d   :  { %1161 = vmatpush3.bf16.msra.mxu1 %v1263_v29  ;;  %1140 = vmatprep.subr.bf16.mxu0 %v1264_v31  ;;  %v56_v29 = vsub.s32 4, %v1423_v25  ;;  %v1291_v31 = vld [vmem:[%s1684_s3 + $0x190] sm:$0xff]  }
  0x1e   :  { %1162 = vmatprep.subr.bf16.mxu1 %v1265_v33  ;;  %v68_v33 = vsub.s32 7, %v1423_v25 }
  0x1f   :  { %v57_v41 = vrot.slane %v1463_v39, %v56_v29  ;;  %v121_v45 = vrot.slane %v1468_v40, %v56_v29  ;;  %v1311_v29 = vld [vmem:[%s1684_s3 + $0x210] sm:$0xff]  }
  0x20   :  { %1141 = vmatpush3.bf16.msra.mxu0 %v1266_v35  ;;  %v1294_v35 = vld [vmem:[%s1684_s3 + $0x1c8] sm:$0xff]   ;;  %v69_v46 = vrot.slane %v1463_v39, %v68_v33  ;;  %v133_v53 = vrot.slane %v1468_v40, %v68_v33 }
  0x21   :  { %1163 = vmatpush3.bf16.msra.mxu1 %v1267_v37  ;;  %1170 = vmatprep.subr.bf16.mxu0 %v1268_v52  ;;  %v64_v37 = vsub.s32 6, %v1423_v25  ;;  %v29_v25 = vld [vmem:[%s1685_s0 + $0x28] sm:$0xff]  ;;  %v92_v52 = vmul.f32 %v57_v41, %v28_v49 }
  0x22   :  { %1192 = vmatprep.subr.bf16.mxu1 %v1270_v57  ;;  %v93_v48 = vmul.f32 %v61_v36, %v29_v25  ;;  %v95_v58 = vmul.f32 %v69_v46, %v31_v55  ;;  %v1313_v33 = vld [vmem:[%s1684_s3 + $0x208] sm:$0xff]  }
  0x23   :  { %855 = vmatmul.mubr.bf16.vlgmr.msra.gmra.mxu0 %v172_v7  ;;  %v65_v50 = vrot.slane %v1463_v39, %v64_v37  ;;  %v129_v56 = vrot.slane %v1468_v40, %v64_v37  ;;  %v1299_v39 = vld [vmem:[%s1684_s3 + $0x180] sm:$0xff]   ;;  %v156_v57 = vadd.f32 %v121_v45, %v92_v52 }
  0x24   :  { %895 = vmatmul.mubr.bf16.vlgmr.msra.gmra.mxu1 %v174_v8  ;;  %1171 = vmatpush3.bf16.msra.mxu0 %v1269_v0  ;;  %v157_v54 = vadd.f32 %v125_v43, %v93_v48  ;;  %v159_v63 = vadd.f32 %v133_v53, %v95_v58  ;;  %v1315_v37 = vld [vmem:[%s1684_s3 + $0x200] sm:$0xff]  }
  0x25   :  { %1193 = vmatpush3.bf16.msra.mxu1 %v1271_v3  ;;  %1172 = vmatprep.subr.bf16.mxu0 %v1272_v4  ;;  %v94_v40 = vmul.f32 %v65_v50, %v30_v59  ;;  %v166_v62 = vmax.f32 %v156_v57, 0.0  ;;  %v1301_v4 = vld [vmem:[%s1684_s3 + $0x238] sm:$0xff]  }
  0x26   :  { %1194 = vmatprep.subr.bf16.mxu1 %v1274_v9  ;;  %v167_v60 = vmax.f32 %v157_v54, 0.0  ;;  %v169_v3 = vmax.f32 %v159_v63, 0.0  ;;  %v1303_v9 = vld [vmem:[%s1684_s3 + $0x230] sm:$0xff]  }
  0x27   :  { %v158_v1 = vadd.f32 %v129_v56, %v94_v40  ;;  %v176_v2 = vpack.c.bf16 %v166_v62, %v166_v62 }
  0x28   :  { %1173 = vmatpush3.bf16.msra.mxu0 %v1273_v10  ;;  %v177_v0 = vpack.c.bf16 %v167_v60, %v167_v60  ;;  %v179_v7 = vpack.c.bf16 %v169_v3, %v169_v3  ;;  %v1304_v10 = vld [vmem:[%s1684_s3 + $0x268] sm:$0xff]   ;;  %v1125_v3 = vld [vmem:[%s1689_s5] ss:$0 sm:$0xff] }
  0x29   :  { %1195 = vmatpush3.bf16.msra.mxu1 %v1275_v11  ;;  %1174 = vmatprep.subr.bf16.mxu0 %v1276_v12  ;;  %v168_v5 = vmax.f32 %v158_v1, 0.0  ;;  %v1305_v11 = vld [vmem:[%s1684_s3 + $0x228] sm:$0xff]   ;;  %v1306_v12 = vld [vmem:[%s1684_s3 + $0x260] sm:$0xff]  }
  0x2a   :  { %1196 = vmatprep.subr.bf16.mxu1 %v1278_v13  ;;  %934 = vmatprep.mubr.bf16.mxu0 %v177_v0  ;;  %v33_v13 = vld [vmem:[%s1685_s0 + $0x48] sm:$0xff]  ;;  %v1124_v0 = vld [vmem:[%s1688_s4] ss:$0 sm:$0xff] }
  0x2b   :  { %v178_v8 = vpack.c.bf16 %v168_v5, %v168_v5  ;;  %974 = vmatprep.mubr.bf16.mxu1 %v179_v7 }
  0x2c   :  { %1175 = vmatpush3.bf16.msra.mxu0 %v1277_v14  ;;  %v35_v14 = vld [vmem:[%s1686_s1 + $0x8] sm:$0x3] }
  0x2d   :  { %1197 = vmatpush3.bf16.msra.mxu1 %v1279_v15  ;;  %1176 = vmatprep.subr.bf16.mxu0 %v1280_v16  ;;  %v99_v15 = vld [vmem:[%s1687_s2 + $0x8] sm:$0x3]  ;;  %v32_v16 = vld [vmem:[%s1685_s0 + $0x40] sm:$0xff] }
  0x2e   :  { %1198 = vmatprep.subr.bf16.mxu1 %v1282_v17  ;;  %v1307_v17 = vld [vmem:[%s1684_s3 + $0x220] sm:$0xff]  }
  0x30   :  { %1177 = vmatpush3.bf16.msra.mxu0 %v1281_v18  ;;  %v73_v18 = vrot.slane %v35_v14, %v1448_v34 }
  0x31   :  { %1199 = vmatpush3.bf16.msra.mxu1 %v1283_v19  ;;  %1178 = vmatprep.subr.bf16.mxu0 %v1284_v20  ;;  %v77_v19 = vrot.slane %v35_v14, %v1438_v30  ;;  %v137_v20 = vrot.slane %v99_v15, %v1448_v34  ;;  %v1310_v34 = vld [vmem:[%s1684_s3 + $0x250] sm:$0xff]  }
  0x32   :  { %1200 = vmatprep.subr.bf16.mxu1 %v1286_v21  ;;  %v141_v21 = vrot.slane %v99_v15, %v1438_v30 }
  0x34   :  { %1179 = vmatpush3.bf16.msra.mxu0 %v1285_v22  ;;  %v1308_v22 = vld [vmem:[%s1684_s3 + $0x258] sm:$0xff]  }
  0x35   :  { %1201 = vmatpush3.bf16.msra.mxu1 %v1287_v23  ;;  %1180 = vmatprep.subr.bf16.mxu0 %v1288_v24  ;;  %v97_v23 = vmul.f32 %v77_v19, %v33_v13  ;;  %v96_v24 = vmul.f32 %v73_v18, %v32_v16 }
  0x36   :  { %1202 = vmatprep.subr.bf16.mxu1 %v1290_v26  ;;  %v1309_v26 = vld [vmem:[%s1684_s3 + $0x218] sm:$0xff]  }
  0x37   :  { %v161_v27 = vadd.f32 %v141_v21, %v97_v23 }
  0x38   :  { %1181 = vmatpush3.bf16.msra.mxu0 %v1289_v28  ;;  %v160_v28 = vadd.f32 %v137_v20, %v96_v24 }
  0x39   :  { %1203 = vmatpush3.bf16.msra.mxu1 %v1291_v31  ;;  %1182 = vmatprep.subr.bf16.mxu0 %v1292_v32  ;;  %v171_v30 = vmax.f32 %v161_v27, 0.0  ;;  %v1312_v32 = vld [vmem:[%s1684_s3 + $0x248] sm:$0xff]  }
  0x3a   :  { %1204 = vmatprep.subr.bf16.mxu1 %v1294_v35  ;;  %v1314_v35 = vld [vmem:[%s1684_s3 + $0x240] sm:$0xff]   ;;  %v170_v36 = vmax.f32 %v160_v28, 0.0 }
  0x3b   :  { %v181_v31 = vpack.c.bf16 %v171_v30, %v171_v30 }
  0x3c   :  { %1183 = vmatpush3.bf16.msra.mxu0 %v1293_v38  ;;  %v180_v38 = vpack.c.bf16 %v170_v36, %v170_v36 }
  0x3d   :  { %1205 = vmatpush3.bf16.msra.mxu1 %v1295_v42  ;;  %1184 = vmatprep.subr.bf16.mxu0 %v1296_v44 }
  0x3e   :  { %1206 = vmatprep.subr.bf16.mxu1 %v1298_v47 }
  0x40   :  { %1185 = vmatpush3.bf16.msra.mxu0 %v1297_v51 }
  0x41   :  { %1207 = vmatpush3.bf16.msra.mxu1 %v1299_v39  ;;  %1214 = vmatprep.subr.bf16.mxu0 %v1300_v61 }
  0x43   :  { %935 = vmatmul.mubr.bf16.vlgmr.msra.gmra.mxu0 %v176_v2 }
  0x44   :  { %1215 = vmatpush3.bf16.msra.mxu0 %v1301_v4  ;;  %975 = vmatmul.mubr.bf16.vlgmr.msra.gmra.mxu1 %v178_v8 }
  0x45   :  { %1216 = vmatprep.subr.bf16.mxu0 %v1302_v6  ;;  %1014 = vmatprep.mubr.bf16.mxu0 %v181_v31 }
  0x48   :  { %1217 = vmatpush3.bf16.msra.mxu0 %v1303_v9 }
  0x49   :  { %1218 = vmatprep.subr.bf16.mxu0 %v1304_v10 }
  0x4c   :  { %1219 = vmatpush3.bf16.msra.mxu0 %v1305_v11 }
  0x4d   :  { %1220 = vmatprep.subr.bf16.mxu0 %v1306_v12 }
  0x50   :  { %1221 = vmatpush3.bf16.msra.mxu0 %v1307_v17 }
  0x51   :  { %1222 = vmatprep.subr.bf16.mxu0 %v1308_v22 }
  0x54   :  { %1223 = vmatpush3.bf16.msra.mxu0 %v1309_v26 }
  0x55   :  { %1224 = vmatprep.subr.bf16.mxu0 %v1310_v34 }
  0x58   :  { %1225 = vmatpush3.bf16.msra.mxu0 %v1311_v29 }
  0x59   :  { %1226 = vmatprep.subr.bf16.mxu0 %v1312_v32 }
  0x5c   :  { %1227 = vmatpush3.bf16.msra.mxu0 %v1313_v33 }
  0x5d   :  { %1228 = vmatprep.subr.bf16.mxu0 %v1314_v35 }
  0x60   :  { %1229 = vmatpush3.bf16.msra.mxu0 %v1315_v37 }
  0x63   :  { %1015 = vmatmul.mubr.bf16.vlgmr.msra.gmra.mxu0 %v180_v38 }
  0xe3   :  { %v1142_v41 = vpop.f32.mrf.mxu0 }
  0xe4   :  { %v1164_v42 = vpop.f32.mrf.mxu1 }
  0xe5   :  { %v1143_v43 = vpop.f32.mrf.mxu0 }
  0xe6   :  { %v1165_v44 = vpop.f32.mrf.mxu1  ;;  %v1144_v56 = vadd.f32 %v1143_v43, %v1142_v41 }
  0xe7   :  { %v1145_v25 = vpop.f32.mrf.mxu0  ;;  %v1166_v39 = vadd.f32 %v1165_v44, %v1164_v42 }
  0xe8   :  { %v1167_v45 = vpop.f32.mrf.mxu1 }
  0xe9   :  { %v1146_v46 = vpop.f32.mrf.mxu0  ;;  %v897_v58 = vadd.f32 %v1166_v39, %v1144_v56 }
  0xea   :  { %v1168_v47 = vpop.f32.mrf.mxu1 }
 0x103   :  { %v1186_v48 = vpop.f32.mrf.mxu0 }
 0x104   :  { %v1208_v50 = vpop.f32.mrf.mxu1 }
 0x105   :  { %v1187_v49 = vpop.f32.mrf.mxu0 }
 0x106   :  { %v1209_v52 = vpop.f32.mrf.mxu1  ;;  %v1188_v57 = vadd.f32 %v1187_v49, %v1186_v48 }
 0x107   :  { %v1189_v51 = vpop.f32.mrf.mxu0  ;;  %v1210_v60 = vadd.f32 %v1209_v52, %v1208_v50 }
 0x108   :  { %v1211_v54 = vpop.f32.mrf.mxu1  ;;  %v937_v59 = vadd.f32 %v1188_v57, %v897_v58 }
 0x109   :  { %v1190_v53 = vpop.f32.mrf.mxu0 }
 0x10a   :  { %v1212_v55 = vpop.f32.mrf.mxu1  ;;  %v977_v62 = vadd.f32 %v1210_v60, %v937_v59 }
 0x123   :  { %v1230_v61 = vpop.f32.mrf.mxu0 }
 0x125   :  { %v1231_v40 = vpop.f32.mrf.mxu0 }
 0x126   :  { %v1232_v63 = vadd.f32 %v1231_v40, %v1230_v61 }
 0x127   :  { %v1233_v1 = vpop.f32.mrf.mxu0 }
 0x128   :  { %v1017_v2 = vadd.f32 %v1232_v63, %v977_v62 }
 0x129   :  { %v1234_v4 = vpop.f32.mrf.mxu0 }
 0x12a   :  { %v1029_v5 = vmul.f32 %v1124_v0, %v1017_v2 }
 0x12c   :  { %v1037_v6 = vadd.f32 %v1125_v3, %v1029_v5 }
 0x12e   :  { %v1038_v7 = vmax.f32 %v1037_v6, 0.0 }
 0x130   :  { %1039 = vst [vmem:[%s1690_s6] sm:$0xff] %v1038_v7 }

// kernel: densenet169_forward.243
= control target key start
LH: loop header
LB: loop body
LE: loop exit
PB: predicated region body
PF: predicated region fallthrough
CT: control target
= control target key end

     0   :  { %vm1076_vm0 = vmmov 0   ;;  %vm806_vm1 = vcmask 261120   ;;  %s1338_s1 = inlined_call_operand.vmem [shape: bf16[1152,32], index: 1, kind: input, shape index: {}]   ;;  %s1339_s0 = inlined_call_operand.vmem [shape: f32[8,1152], index: 0, kind: input, shape index: {}]   ;;  %s1340_s2 = inlined_call_operand.vmem [shape: f32[8,32], index: 2, kind: output, shape index: {}]  }
   0x1   :  { %v1003_v0 = vld [vmem:[%s1338_s1 + $0x78] sm:$0xff]   ;;  %v1007_v4 = vld [vmem:[%s1338_s1 + $0x70] sm:$0xff]   ;;  %v1011_v8 = vld [vmem:[%s1338_s1 + $0x68] sm:$0xff]  }
   0x2   :  { %v1004_v1 = vld [vmem:[%s1338_s1 + $0xf8] sm:$0xff]   ;;  %884 = vmatprep.subr.bf16.mxu0 %v1003_v0  ;;  %v1008_v5 = vld [vmem:[%s1338_s1 + $0xf0] sm:$0xff]   ;;  %v1012_v9 = vld [vmem:[%s1338_s1 + $0xe8] sm:$0xff]  }
   0x3   :  { %v1005_v2 = vld [vmem:[%s1338_s1 + $0x38] sm:$0xff]   ;;  %906 = vmatprep.subr.bf16.mxu1 %v1004_v1  ;;  %v1009_v6 = vld [vmem:[%s1338_s1 + $0x30] sm:$0xff]   ;;  %v1013_v10 = vld [vmem:[%s1338_s1 + $0x28] sm:$0xff]  }
   0x4   :  { %v1006_v3 = vld [vmem:[%s1338_s1 + $0xb8] sm:$0xff]   ;;  %885 = vmatpush3.bf16.msra.mxu0 %v1005_v2  ;;  %v1010_v7 = vld [vmem:[%s1338_s1 + $0xb0] sm:$0xff]   ;;  %v1014_v11 = vld [vmem:[%s1338_s1 + $0xa8] sm:$0xff]  }
   0x5   :  { %907 = vmatpush3.bf16.msra.mxu1 %v1006_v3  ;;  %886 = vmatprep.subr.bf16.mxu0 %v1007_v4  ;;  %v1015_v12 = vld [vmem:[%s1338_s1 + $0x60] sm:$0xff]   ;;  %v1019_v16 = vld [vmem:[%s1338_s1 + $0x58] sm:$0xff]   ;;  %v1023_v20 = vld [vmem:[%s1338_s1 + $0x50] sm:$0xff]  }
   0x6   :  { %908 = vmatprep.subr.bf16.mxu1 %v1008_v5  ;;  %v1016_v13 = vld [vmem:[%s1338_s1 + $0xe0] sm:$0xff]   ;;  %v1020_v17 = vld [vmem:[%s1338_s1 + $0xd8] sm:$0xff]   ;;  %v1024_v21 = vld [vmem:[%s1338_s1 + $0xd0] sm:$0xff]  }
   0x7   :  { %v1017_v14 = vld [vmem:[%s1338_s1 + $0x20] sm:$0xff]   ;;  %v1021_v18 = vld [vmem:[%s1338_s1 + $0x18] sm:$0xff]   ;;  %v1025_v22 = vld [vmem:[%s1338_s1 + $0x10] sm:$0xff]  }
   0x8   :  { %887 = vmatpush3.bf16.msra.mxu0 %v1009_v6  ;;  %v1018_v15 = vld [vmem:[%s1338_s1 + $0xa0] sm:$0xff]   ;;  %v1022_v19 = vld [vmem:[%s1338_s1 + $0x98] sm:$0xff]   ;;  %v1026_v23 = vld [vmem:[%s1338_s1 + $0x90] sm:$0xff]  }
   0x9   :  { %909 = vmatpush3.bf16.msra.mxu1 %v1010_v7  ;;  %888 = vmatprep.subr.bf16.mxu0 %v1011_v8  ;;  %v1027_v24 = vld [vmem:[%s1338_s1 + $0x48] sm:$0xff]   ;;  %v1031_v28 = vld [vmem:[%s1338_s1 + $0x40] sm:$0xff]   ;;  %v15_v33 = vld [vmem:[%s1339_s0 + $0x18] sm:$0xff] }
   0xa   :  { %910 = vmatprep.subr.bf16.mxu1 %v1012_v9  ;;  %v1028_v25 = vld [vmem:[%s1338_s1 + $0xc8] sm:$0xff]   ;;  %v1032_v29 = vld [vmem:[%s1338_s1 + $0xc0] sm:$0xff]   ;;  %v24_v36 = vpack.c.bf16 %v15_v33, %v15_v33  ;;  %v14_v38 = vld [vmem:[%s1339_s0 + $0x10] sm:$0xff] }
   0xb   :  { %v1029_v26 = vld [vmem:[%s1338_s1 + $0x8] sm:$0xff]   ;;  %v1033_v30 = vld [vmem:[%s1338_s1] sm:$0xff]   ;;  %v23_v39 = vpack.c.bf16 %v14_v38, %v14_v38  ;;  %v1035_v40 = vld [vmem:[%s1338_s1 + $0x178] sm:$0xff]  }
   0xc   :  { %889 = vmatpush3.bf16.msra.mxu0 %v1013_v10  ;;  %v1030_v27 = vld [vmem:[%s1338_s1 + $0x88] sm:$0xff]   ;;  %v1034_v31 = vld [vmem:[%s1338_s1 + $0x80] sm:$0xff]   ;;  %678 = vmatprep.mubr.bf16.mxu1 %v24_v36  ;;  %v1036_v41 = vld [vmem:[%s1338_s1 + $0x138] sm:$0xff]  }
   0xd   :  { %911 = vmatpush3.bf16.msra.mxu1 %v1014_v11  ;;  %890 = vmatprep.subr.bf16.mxu0 %v1015_v12  ;;  %v13_v32 = vld [vmem:[%s1339_s0 + $0x8] sm:$0xff]  ;;  %v12_v34 = vld [vmem:[%s1339_s0] sm:$0xff]  ;;  %v1037_v42 = vld [vmem:[%s1338_s1 + $0x1f8] sm:$0xff]  }
   0xe   :  { %912 = vmatprep.subr.bf16.mxu1 %v1016_v13  ;;  %v22_v35 = vpack.c.bf16 %v13_v32, %v13_v32  ;;  %v21_v37 = vpack.c.bf16 %v12_v34, %v12_v34  ;;  %v1038_v43 = vld [vmem:[%s1338_s1 + $0x1b8] sm:$0xff]   ;;  %v1039_v44 = vld [vmem:[%s1338_s1 + $0x170] sm:$0xff]   ;;  %v1043_v48 = vld [vmem:[%s1338_s1 + $0x168] sm:$0xff]  }
   0xf   :  { %v1040_v45 = vld [vmem:[%s1338_s1 + $0x130] sm:$0xff]   ;;  %v1044_v49 = vld [vmem:[%s1338_s1 + $0x128] sm:$0xff]   ;;  %v1047_v52 = vld [vmem:[%s1338_s1 + $0x160] sm:$0xff]  }
  0x10   :  { %891 = vmatpush3.bf16.msra.mxu0 %v1017_v14  ;;  %638 = vmatprep.mubr.bf16.mxu0 %v22_v35  ;;  %v1041_v46 = vld [vmem:[%s1338_s1 + $0x1f0] sm:$0xff]   ;;  %v1045_v50 = vld [vmem:[%s1338_s1 + $0x1e8] sm:$0xff]   ;;  %v1048_v53 = vld [vmem:[%s1338_s1 + $0x120] sm:$0xff]  }
  0x11   :  { %913 = vmatpush3.bf16.msra.mxu1 %v1018_v15  ;;  %892 = vmatprep.subr.bf16.mxu0 %v1019_v16  ;;  %v1042_v47 = vld [vmem:[%s1338_s1 + $0x1b0] sm:$0xff]   ;;  %v1046_v51 = vld [vmem:[%s1338_s1 + $0x1a8] sm:$0xff]   ;;  %v1049_v54 = vld [vmem:[%s1338_s1 + $0x1e0] sm:$0xff]   ;;  %v1075_v16 = vmov 0.0  }
  0x12   :  { %914 = vmatprep.subr.bf16.mxu1 %v1020_v17  ;;  %v1050_v55 = vld [vmem:[%s1338_s1 + $0x1a0] sm:$0xff]   ;;  %v1051_v56 = vld [vmem:[%s1338_s1 + $0x158] sm:$0xff]   ;;  %v1055_v60 = vld [vmem:[%s1338_s1 + $0x150] sm:$0xff]  }
  0x13   :  { %v1052_v57 = vld [vmem:[%s1338_s1 + $0x118] sm:$0xff]   ;;  %v1056_v61 = vld [vmem:[%s1338_s1 + $0x110] sm:$0xff]   ;;  %v1059_v0 = vld [vmem:[%s1338_s1 + $0x148] sm:$0xff]  }
  0x14   :  { %893 = vmatpush3.bf16.msra.mxu0 %v1021_v18  ;;  %v1053_v58 = vld [vmem:[%s1338_s1 + $0x1d8] sm:$0xff]   ;;  %v1057_v62 = vld [vmem:[%s1338_s1 + $0x1d0] sm:$0xff]   ;;  %v1060_v1 = vld [vmem:[%s1338_s1 + $0x108] sm:$0xff]  }
  0x15   :  { %915 = vmatpush3.bf16.msra.mxu1 %v1022_v19  ;;  %894 = vmatprep.subr.bf16.mxu0 %v1023_v20  ;;  %v1054_v59 = vld [vmem:[%s1338_s1 + $0x198] sm:$0xff]   ;;  %v1058_v63 = vld [vmem:[%s1338_s1 + $0x190] sm:$0xff]   ;;  %v1061_v2 = vld [vmem:[%s1338_s1 + $0x1c8] sm:$0xff]  }
  0x16   :  { %916 = vmatprep.subr.bf16.mxu1 %v1024_v21  ;;  %v1062_v3 = vld [vmem:[%s1338_s1 + $0x188] sm:$0xff]   ;;  %v1063_v4 = vld [vmem:[%s1338_s1 + $0x140] sm:$0xff]   ;;  %v19_v12 = vld [vmem:[%s1339_s0 + $0x38] sm:$0xff] }
  0x17   :  { %v1064_v5 = vld [vmem:[%s1338_s1 + $0x100] sm:$0xff]   ;;  %v17_v7 = vld [vmem:[%s1339_s0 + $0x28] sm:$0xff]  ;;  %v28_v13 = vpack.c.bf16 %v19_v12, %v19_v12  ;;  %v1067_v14 = vld [vmem:[%s1338_s1 + $0x238] sm:$0xff]  }
  0x18   :  { %895 = vmatpush3.bf16.msra.mxu0 %v1025_v22  ;;  %v1065_v6 = vld [vmem:[%s1338_s1 + $0x1c0] sm:$0xff]   ;;  %v26_v8 = vpack.c.bf16 %v17_v7, %v17_v7  ;;  %v18_v15 = vld [vmem:[%s1339_s0 + $0x30] sm:$0xff]  ;;  %v1069_v19 = vld [vmem:[%s1338_s1 + $0x228] sm:$0xff]  }
  0x19   :  { %917 = vmatpush3.bf16.msra.mxu1 %v1026_v23  ;;  %896 = vmatprep.subr.bf16.mxu0 %v1027_v24  ;;  %v1066_v9 = vld [vmem:[%s1338_s1 + $0x180] sm:$0xff]   ;;  %v27_v17 = vpack.c.bf16 %v18_v15, %v18_v15  ;;  %v1068_v18 = vld [vmem:[%s1338_s1 + $0x230] sm:$0xff]   ;;  %v1071_v21 = vld [vmem:[%s1338_s1 + $0x218] sm:$0xff]  }
  0x1a   :  { %918 = vmatprep.subr.bf16.mxu1 %v1028_v25  ;;  %v16_v10 = vld [vmem:[%s1339_s0 + $0x20] sm:$0xff]  ;;  %v1072_v22 = vld [vmem:[%s1338_s1 + $0x210] sm:$0xff]   ;;  %v1073_v23 = vld [vmem:[%s1338_s1 + $0x208] sm:$0xff]  }
  0x1b   :  { %v25_v11 = vpack.c.bf16 %v16_v10, %v16_v10  ;;  %v1070_v20 = vld [vmem:[%s1338_s1 + $0x220] sm:$0xff]  }
  0x1c   :  { %897 = vmatpush3.bf16.msra.mxu0 %v1029_v26  ;;  %v1074_v24 = vld [vmem:[%s1338_s1 + $0x200] sm:$0xff]  }
  0x1d   :  { %919 = vmatpush3.bf16.msra.mxu1 %v1030_v27  ;;  %898 = vmatprep.subr.bf16.mxu0 %v1031_v28  ;;  %v20_v25 = vld [vmem:[%s1339_s0 + $0x40] sm:$0xff] }
  0x1e   :  { %920 = vmatprep.subr.bf16.mxu1 %v1032_v29  ;;  %v29_v26 = vpack.c.bf16 %v20_v25, %v20_v25 }
  0x20   :  { %899 = vmatpush3.bf16.msra.mxu0 %v1033_v30 }
  0x21   :  { %921 = vmatpush3.bf16.msra.mxu1 %v1034_v31  ;;  %928 = vmatprep.subr.bf16.mxu0 %v1035_v40 }
  0x22   :  { %950 = vmatprep.subr.bf16.mxu1 %v1037_v42 }
  0x23   :  { %639 = vmatmul.mubr.bf16.vlgmr.msra.gmra.mxu0 %v21_v37 }
  0x24   :  { %679 = vmatmul.mubr.bf16.vlgmr.msra.gmra.mxu1 %v23_v39  ;;  %929 = vmatpush3.bf16.msra.mxu0 %v1036_v41 }
  0x25   :  { %951 = vmatpush3.bf16.msra.mxu1 %v1038_v43  ;;  %930 = vmatprep.subr.bf16.mxu0 %v1039_v44 }
  0x26   :  { %952 = vmatprep.subr.bf16.mxu1 %v1041_v46  ;;  %718 = vmatprep.mubr.bf16.mxu0 %v26_v8 }
  0x27   :  { %758 = vmatprep.mubr.bf16.mxu1 %v28_v13 }
  0x28   :  { %931 = vmatpush3.bf16.msra.mxu0 %v1040_v45 }
  0x29   :  { %953 = vmatpush3.bf16.msra.mxu1 %v1042_v47  ;;  %932 = vmatprep.subr.bf16.mxu0 %v1043_v48 }
  0x2a   :  { %954 = vmatprep.subr.bf16.mxu1 %v1045_v50 }
  0x2c   :  { %933 = vmatpush3.bf16.msra.mxu0 %v1044_v49 }
  0x2d   :  { %955 = vmatpush3.bf16.msra.mxu1 %v1046_v51  ;;  %934 = vmatprep.subr.bf16.mxu0 %v1047_v52 }
  0x2e   :  { %956 = vmatprep.subr.bf16.mxu1 %v1049_v54 }
  0x30   :  { %935 = vmatpush3.bf16.msra.mxu0 %v1048_v53 }
  0x31   :  { %957 = vmatpush3.bf16.msra.mxu1 %v1050_v55  ;;  %936 = vmatprep.subr.bf16.mxu0 %v1051_v56 }
  0x32   :  { %958 = vmatprep.subr.bf16.mxu1 %v1053_v58 }
  0x34   :  { %937 = vmatpush3.bf16.msra.mxu0 %v1052_v57 }
  0x35   :  { %959 = vmatpush3.bf16.msra.mxu1 %v1054_v59  ;;  %938 = vmatprep.subr.bf16.mxu0 %v1055_v60 }
  0x36   :  { %960 = vmatprep.subr.bf16.mxu1 %v1057_v62 }
  0x38   :  { %939 = vmatpush3.bf16.msra.mxu0 %v1056_v61 }
  0x39   :  { %961 = vmatpush3.bf16.msra.mxu1 %v1058_v63  ;;  %940 = vmatprep.subr.bf16.mxu0 %v1059_v0 }
  0x3a   :  { %962 = vmatprep.subr.bf16.mxu1 %v1061_v2 }
  0x3c   :  { %941 = vmatpush3.bf16.msra.mxu0 %v1060_v1 }
  0x3d   :  { %963 = vmatpush3.bf16.msra.mxu1 %v1062_v3  ;;  %942 = vmatprep.subr.bf16.mxu0 %v1063_v4 }
  0x3e   :  { %964 = vmatprep.subr.bf16.mxu1 %v1065_v6 }
  0x40   :  { %943 = vmatpush3.bf16.msra.mxu0 %v1064_v5 }
  0x41   :  { %965 = vmatpush3.bf16.msra.mxu1 %v1066_v9  ;;  %981 = vmatprep.subr.bf16.mxu0 %v1075_v16 }
  0x43   :  { %719 = vmatmul.mubr.bf16.vlgmr.msra.gmra.mxu0 %v25_v11 }
  0x44   :  { %982 = vmatpush3.bf16.msra.mxu0 %v1067_v14  ;;  %759 = vmatmul.mubr.bf16.vlgmr.msra.gmra.mxu1 %v27_v17 }
  0x45   :  { %983 = vmatprep.subr.bf16.mxu0 %v1075_v16  ;;  %997 = vmatprep.mubr.msk.bf16.mxu0 %vm1076_vm0, %v1075_v16 }
  0x48   :  { %984 = vmatpush3.bf16.msra.mxu0 %v1068_v18 }
  0x49   :  { %985 = vmatprep.subr.bf16.mxu0 %v1075_v16 }
  0x4c   :  { %986 = vmatpush3.bf16.msra.mxu0 %v1069_v19 }
  0x4d   :  { %987 = vmatprep.subr.bf16.mxu0 %v1075_v16 }
  0x50   :  { %988 = vmatpush3.bf16.msra.mxu0 %v1070_v20 }
  0x51   :  { %989 = vmatprep.subr.bf16.mxu0 %v1075_v16 }
  0x54   :  { %990 = vmatpush3.bf16.msra.mxu0 %v1071_v21 }
  0x55   :  { %991 = vmatprep.subr.bf16.mxu0 %v1075_v16 }
  0x58   :  { %992 = vmatpush3.bf16.msra.mxu0 %v1072_v22 }
  0x59   :  { %993 = vmatprep.subr.bf16.mxu0 %v1075_v16 }
  0x5c   :  { %994 = vmatpush3.bf16.msra.mxu0 %v1073_v23 }
  0x5d   :  { %995 = vmatprep.subr.bf16.mxu0 %v1075_v16 }
  0x60   :  { %996 = vmatpush3.bf16.msra.mxu0 %v1074_v24 }
  0x63   :  { %998 = vmatmul.mubr.bf16.vlgmr.msra.gmra.mxu0 %v29_v26 }
  0xe3   :  { %v900_v27 = vpop.f32.mrf.mxu0 }
  0xe4   :  { %v922_v28 = vpop.f32.mrf.mxu1 }
  0xe5   :  { %v901_v29 = vpop.f32.mrf.mxu0 }
  0xe6   :  { %v923_v30 = vpop.f32.mrf.mxu1  ;;  %v902_v43 = vadd.f32 %v901_v29, %v900_v27 }
  0xe7   :  { %v903_v31 = vpop.f32.mrf.mxu0  ;;  %v924_v44 = vadd.f32 %v923_v30, %v922_v28 }
  0xe8   :  { %v925_v32 = vpop.f32.mrf.mxu1 }
  0xe9   :  { %v904_v33 = vpop.f32.mrf.mxu0  ;;  %v681_v46 = vadd.f32 %v924_v44, %v902_v43 }
  0xea   :  { %v926_v34 = vpop.f32.mrf.mxu1 }
 0x103   :  { %v944_v35 = vpop.f32.mrf.mxu0 }
 0x104   :  { %v966_v36 = vpop.f32.mrf.mxu1 }
 0x105   :  { %v945_v37 = vpop.f32.mrf.mxu0 }
 0x106   :  { %v967_v38 = vpop.f32.mrf.mxu1  ;;  %v946_v45 = vadd.f32 %v945_v37, %v944_v35 }
 0x107   :  { %v947_v39 = vpop.f32.mrf.mxu0  ;;  %v968_v48 = vadd.f32 %v967_v38, %v966_v36 }
 0x108   :  { %v969_v40 = vpop.f32.mrf.mxu1  ;;  %v721_v47 = vadd.f32 %v946_v45, %v681_v46 }
 0x109   :  { %v948_v41 = vpop.f32.mrf.mxu0 }
 0x10a   :  { %v970_v42 = vpop.f32.mrf.mxu1  ;;  %v761_v49 = vadd.f32 %v968_v48, %v721_v47 }
 0x123   :  { %v800_v50 = vpop.f32.mrf.mxu0 }
 0x124   :  { %v801_v51 = vadd.f32 %v800_v50, %v761_v49 }
 0x125   :  { %v999_v52 = vpop.f32.mrf.mxu0 }
 0x126   :  { %807 = vst.msk [vmem:[%s1340_s2] sm:$0xff] %vm806_vm1, %v801_v51 }
 0x127   :  { %v803_v53 = vpop.f32.mrf.mxu0 }
 0x129   :  { %v1000_v54 = vpop.f32.mrf.mxu0 }

// kernel: densenet169_forward.307
= control target key start
LH: loop header
LB: loop body
LE: loop exit
PB: predicated region body
PF: predicated region fallthrough
CT: control target
= control target key end

     0   :  { %v1126_v22 = vmov 1983009808   ;;  %v22_v24 = vlaneseq  ;;  %vm1128_vm0 = vmmov 0   ;;  %vm853_vm1 = vcmask 254976   ;;  %s1378_s1 = inlined_call_operand.vmem [shape: bf16[1152,32], index: 1, kind: input, shape index: {}]   ;;  %s1379_s0 = inlined_call_operand.vmem [shape: f32[2,1152], index: 0, kind: input, shape index: {}]   ;;  %s1380_s2 = inlined_call_operand.vmem [shape: f32[2,32], index: 2, kind: output, shape index: {}]  }
   0x1   :  { %v1052_v0 = vld [vmem:[%s1378_s1 + $0x78] sm:$0xff]   ;;  %v1056_v4 = vld [vmem:[%s1378_s1 + $0x70] sm:$0xff]   ;;  %v1060_v8 = vld [vmem:[%s1378_s1 + $0x68] sm:$0xff]   ;;  %v20_v23 = vunpack.c.l.s4 %v1126_v22 }
   0x2   :  { %v1053_v1 = vld [vmem:[%s1378_s1 + $0xf8] sm:$0xff]   ;;  %932 = vmatprep.subr.bf16.mxu0 %v1052_v0  ;;  %v1057_v5 = vld [vmem:[%s1378_s1 + $0xf0] sm:$0xff]   ;;  %v1061_v9 = vld [vmem:[%s1378_s1 + $0xe8] sm:$0xff]   ;;  %v23_v30 = vshrl.u32 %v22_v24, 7 }
   0x3   :  { %v1054_v2 = vld [vmem:[%s1378_s1 + $0x38] sm:$0xff]   ;;  %954 = vmatprep.subr.bf16.mxu1 %v1053_v1  ;;  %v1058_v6 = vld [vmem:[%s1378_s1 + $0x30] sm:$0xff]   ;;  %v1062_v10 = vld [vmem:[%s1378_s1 + $0x28] sm:$0xff]   ;;  %v21_v29 = vunpack.c.0.s8 %v20_v23 }
   0x4   :  { %v1055_v3 = vld [vmem:[%s1378_s1 + $0xb8] sm:$0xff]   ;;  %933 = vmatpush3.bf16.msra.mxu0 %v1054_v2  ;;  %v1059_v7 = vld [vmem:[%s1378_s1 + $0xb0] sm:$0xff]   ;;  %v1063_v11 = vld [vmem:[%s1378_s1 + $0xa8] sm:$0xff]  }
   0x5   :  { %955 = vmatpush3.bf16.msra.mxu1 %v1055_v3  ;;  %934 = vmatprep.subr.bf16.mxu0 %v1056_v4  ;;  %v1064_v12 = vld [vmem:[%s1378_s1 + $0x60] sm:$0xff]   ;;  %v1068_v16 = vld [vmem:[%s1378_s1 + $0x58] sm:$0xff]   ;;  %v1072_v20 = vld [vmem:[%s1378_s1 + $0x50] sm:$0xff]   ;;  %v1234_v35 = vsub.s32 %v21_v29, %v23_v30 }
   0x6   :  { %956 = vmatprep.subr.bf16.mxu1 %v1057_v5  ;;  %v1065_v13 = vld [vmem:[%s1378_s1 + $0xe0] sm:$0xff]   ;;  %v1069_v17 = vld [vmem:[%s1378_s1 + $0xd8] sm:$0xff]   ;;  %v1073_v21 = vld [vmem:[%s1378_s1 + $0xd0] sm:$0xff]  }
   0x7   :  { %v1066_v14 = vld [vmem:[%s1378_s1 + $0x20] sm:$0xff]   ;;  %v1070_v18 = vld [vmem:[%s1378_s1 + $0x18] sm:$0xff]   ;;  %v1074_v25 = vld [vmem:[%s1378_s1 + $0x10] sm:$0xff]  }
   0x8   :  { %935 = vmatpush3.bf16.msra.mxu0 %v1058_v6  ;;  %v1067_v15 = vld [vmem:[%s1378_s1 + $0xa0] sm:$0xff]   ;;  %v1071_v19 = vld [vmem:[%s1378_s1 + $0x98] sm:$0xff]   ;;  %v1075_v26 = vld [vmem:[%s1378_s1 + $0x90] sm:$0xff]  }
   0x9   :  { %957 = vmatpush3.bf16.msra.mxu1 %v1059_v7  ;;  %936 = vmatprep.subr.bf16.mxu0 %v1060_v8  ;;  %v1076_v27 = vld [vmem:[%s1378_s1 + $0x48] sm:$0xff]   ;;  %v1080_v33 = vld [vmem:[%s1378_s1 + $0x40] sm:$0xff]   ;;  %v1085_v41 = vld [vmem:[%s1378_s1 + $0x178] sm:$0xff]  }
   0xa   :  { %958 = vmatprep.subr.bf16.mxu1 %v1061_v9  ;;  %v1077_v28 = vld [vmem:[%s1378_s1 + $0xc8] sm:$0xff]   ;;  %v1081_v34 = vld [vmem:[%s1378_s1 + $0xc0] sm:$0xff]   ;;  %v1087_v44 = vld [vmem:[%s1378_s1 + $0x1f8] sm:$0xff]  }
   0xb   :  { %v1078_v31 = vld [vmem:[%s1378_s1 + $0x8] sm:$0xff]   ;;  %v1082_v36 = vld [vmem:[%s1378_s1] sm:$0xff]   ;;  %v1086_v48 = vld [vmem:[%s1378_s1 + $0x138] sm:$0xff]  }
   0xc   :  { %937 = vmatpush3.bf16.msra.mxu0 %v1062_v10  ;;  %v1079_v32 = vld [vmem:[%s1378_s1 + $0x88] sm:$0xff]   ;;  %v1083_v37 = vld [vmem:[%s1378_s1 + $0x80] sm:$0xff]   ;;  %v1089_v50 = vld [vmem:[%s1378_s1 + $0x170] sm:$0xff]  }
   0xd   :  { %959 = vmatpush3.bf16.msra.mxu1 %v1063_v11  ;;  %938 = vmatprep.subr.bf16.mxu0 %v1064_v12  ;;  %v12_v38 = vld [vmem:[%s1379_s0] sm:$0xff]  ;;  %v1088_v52 = vld [vmem:[%s1378_s1 + $0x1b8] sm:$0xff]   ;;  %v1091_v53 = vld [vmem:[%s1378_s1 + $0x1f0] sm:$0xff]  }
   0xe   :  { %960 = vmatprep.subr.bf16.mxu1 %v1065_v13  ;;  %v25_v39 = vrot.slane %v12_v38, %v1234_v35  ;;  %v18_v40 = vcombine.high %v12_v38, %v12_v38  ;;  %v1090_v54 = vld [vmem:[%s1378_s1 + $0x130] sm:$0xff]   ;;  %v1093_v55 = vld [vmem:[%s1378_s1 + $0x168] sm:$0xff]   ;;  %v1097_v59 = vld [vmem:[%s1378_s1 + $0x160] sm:$0xff]  }
   0xf   :  { %v1092_v56 = vld [vmem:[%s1378_s1 + $0x1b0] sm:$0xff]   ;;  %v1095_v57 = vld [vmem:[%s1378_s1 + $0x1e8] sm:$0xff]   ;;  %v1099_v61 = vld [vmem:[%s1378_s1 + $0x1e0] sm:$0xff]  }
  0x10   :  { %939 = vmatpush3.bf16.msra.mxu0 %v1066_v14  ;;  %v33_v42 = vcombine.high %v25_v39, %v25_v39  ;;  %v32_v43 = vrot.slane %v18_v40, %v1234_v35  ;;  %v68_v45 = vpack.c.bf16 %v25_v39, %v25_v39  ;;  %v1094_v58 = vld [vmem:[%s1378_s1 + $0x128] sm:$0xff]   ;;  %v1098_v62 = vld [vmem:[%s1378_s1 + $0x120] sm:$0xff]   ;;  %v1101_v63 = vld [vmem:[%s1378_s1 + $0x158] sm:$0xff]  }
  0x11   :  { %961 = vmatpush3.bf16.msra.mxu1 %v1067_v15  ;;  %940 = vmatprep.subr.bf16.mxu0 %v1068_v16  ;;  %v1096_v60 = vld [vmem:[%s1378_s1 + $0x1a8] sm:$0xff]   ;;  %v1100_v0 = vld [vmem:[%s1378_s1 + $0x1a0] sm:$0xff]   ;;  %v1103_v1 = vld [vmem:[%s1378_s1 + $0x1d8] sm:$0xff]  }
  0x12   :  { %962 = vmatprep.subr.bf16.mxu1 %v1069_v17  ;;  %v69_v46 = vpack.c.bf16 %v33_v42, %v33_v42  ;;  %v34_v47 = vcombine.high %v32_v43, %v32_v43  ;;  %v70_v49 = vpack.c.bf16 %v32_v43, %v32_v43  ;;  %v1102_v2 = vld [vmem:[%s1378_s1 + $0x118] sm:$0xff]   ;;  %v1105_v3 = vld [vmem:[%s1378_s1 + $0x150] sm:$0xff]   ;;  %v1109_v7 = vld [vmem:[%s1378_s1 + $0x148] sm:$0xff]  }
  0x13   :  { %v1104_v4 = vld [vmem:[%s1378_s1 + $0x198] sm:$0xff]   ;;  %v1107_v5 = vld [vmem:[%s1378_s1 + $0x1d0] sm:$0xff]   ;;  %v1111_v9 = vld [vmem:[%s1378_s1 + $0x1c8] sm:$0xff]  }
  0x14   :  { %941 = vmatpush3.bf16.msra.mxu0 %v1070_v18  ;;  %685 = vmatprep.mubr.bf16.mxu0 %v69_v46  ;;  %v71_v51 = vpack.c.bf16 %v34_v47, %v34_v47  ;;  %v1106_v6 = vld [vmem:[%s1378_s1 + $0x110] sm:$0xff]   ;;  %v1110_v10 = vld [vmem:[%s1378_s1 + $0x108] sm:$0xff]   ;;  %v1113_v11 = vld [vmem:[%s1378_s1 + $0x140] sm:$0xff]  }
  0x15   :  { %963 = vmatpush3.bf16.msra.mxu1 %v1071_v19  ;;  %942 = vmatprep.subr.bf16.mxu0 %v1072_v20  ;;  %v1108_v8 = vld [vmem:[%s1378_s1 + $0x190] sm:$0xff]   ;;  %v1112_v12 = vld [vmem:[%s1378_s1 + $0x188] sm:$0xff]   ;;  %v1115_v14 = vld [vmem:[%s1378_s1 + $0x1c0] sm:$0xff]  }
  0x16   :  { %964 = vmatprep.subr.bf16.mxu1 %v1073_v21  ;;  %725 = vmatprep.mubr.bf16.mxu1 %v71_v51  ;;  %v13_v13 = vld [vmem:[%s1379_s0 + $0x8] sm:$0xff]  ;;  %v1114_v17 = vld [vmem:[%s1378_s1 + $0x100] sm:$0xff]   ;;  %v1118_v24 = vld [vmem:[%s1378_s1 + $0x238] sm:$0xff]  }
  0x17   :  { %v42_v15 = vrot.slane %v13_v13, %v1234_v35  ;;  %v35_v16 = vcombine.high %v13_v13, %v13_v13  ;;  %v1116_v20 = vld [vmem:[%s1378_s1 + $0x180] sm:$0xff]   ;;  %v1120_v29 = vld [vmem:[%s1378_s1 + $0x228] sm:$0xff]  }
  0x18   :  { %943 = vmatpush3.bf16.msra.mxu0 %v1074_v25  ;;  %v1127_v25 = vmov 0.0   ;;  %v1121_v30 = vld [vmem:[%s1378_s1 + $0x220] sm:$0xff]  }
  0x19   :  { %965 = vmatpush3.bf16.msra.mxu1 %v1075_v26  ;;  %944 = vmatprep.subr.bf16.mxu0 %v1076_v27  ;;  %v50_v18 = vcombine.high %v42_v15, %v42_v15  ;;  %v49_v19 = vrot.slane %v35_v16, %v1234_v35  ;;  %v72_v22 = vpack.c.bf16 %v42_v15, %v42_v15  ;;  %v859_v35 = vld.sshfl [vmem:[%s1379_s0 + $0x10] sm:$0x3 pattern:$0x76325410] }
  0x1a   :  { %966 = vmatprep.subr.bf16.mxu1 %v1077_v28  ;;  %v1119_v28 = vld [vmem:[%s1378_s1 + $0x230] sm:$0xff]  }
  0x1b   :  { %v73_v21 = vpack.c.bf16 %v50_v18, %v50_v18  ;;  %v51_v23 = vcombine.high %v49_v19, %v49_v19  ;;  %v74_v27 = vpack.c.bf16 %v49_v19, %v49_v19 }
  0x1c   :  { %945 = vmatpush3.bf16.msra.mxu0 %v1078_v31  ;;  %v1122_v31 = vld [vmem:[%s1378_s1 + $0x218] sm:$0xff]  }
  0x1d   :  { %967 = vmatpush3.bf16.msra.mxu1 %v1079_v32  ;;  %946 = vmatprep.subr.bf16.mxu0 %v1080_v33  ;;  %v75_v26 = vpack.c.bf16 %v51_v23, %v51_v23  ;;  %v1123_v32 = vld [vmem:[%s1378_s1 + $0x210] sm:$0xff]   ;;  %v1124_v33 = vld [vmem:[%s1378_s1 + $0x208] sm:$0xff]  }
  0x1e   :  { %968 = vmatprep.subr.bf16.mxu1 %v1081_v34  ;;  %v1125_v34 = vld [vmem:[%s1378_s1 + $0x200] sm:$0xff]  }
  0x20   :  { %947 = vmatpush3.bf16.msra.mxu0 %v1082_v36  ;;  %v76_v36 = vpack.c.bf16 %v859_v35, %v859_v35 }
  0x21   :  { %969 = vmatpush3.bf16.msra.mxu1 %v1083_v37  ;;  %976 = vmatprep.subr.bf16.mxu0 %v1085_v41 }
  0x22   :  { %998 = vmatprep.subr.bf16.mxu1 %v1087_v44 }
  0x23   :  { %686 = vmatmul.mubr.bf16.vlgmr.msra.gmra.mxu0 %v68_v45 }
  0x24   :  { %977 = vmatpush3.bf16.msra.mxu0 %v1086_v48  ;;  %726 = vmatmul.mubr.bf16.vlgmr.msra.gmra.mxu1 %v70_v49 }
  0x25   :  { %978 = vmatprep.subr.bf16.mxu0 %v1089_v50  ;;  %999 = vmatpush3.bf16.msra.mxu1 %v1088_v52 }
  0x26   :  { %1000 = vmatprep.subr.bf16.mxu1 %v1091_v53  ;;  %765 = vmatprep.mubr.bf16.mxu0 %v73_v21 }
  0x27   :  { %805 = vmatprep.mubr.bf16.mxu1 %v75_v26 }
  0x28   :  { %979 = vmatpush3.bf16.msra.mxu0 %v1090_v54 }
  0x29   :  { %980 = vmatprep.subr.bf16.mxu0 %v1093_v55  ;;  %1001 = vmatpush3.bf16.msra.mxu1 %v1092_v56 }
  0x2a   :  { %1002 = vmatprep.subr.bf16.mxu1 %v1095_v57 }
  0x2c   :  { %981 = vmatpush3.bf16.msra.mxu0 %v1094_v58 }
  0x2d   :  { %982 = vmatprep.subr.bf16.mxu0 %v1097_v59  ;;  %1003 = vmatpush3.bf16.msra.mxu1 %v1096_v60 }
  0x2e   :  { %1004 = vmatprep.subr.bf16.mxu1 %v1099_v61 }
  0x30   :  { %983 = vmatpush3.bf16.msra.mxu0 %v1098_v62 }
  0x31   :  { %984 = vmatprep.subr.bf16.mxu0 %v1101_v63  ;;  %1005 = vmatpush3.bf16.msra.mxu1 %v1100_v0 }
  0x32   :  { %1006 = vmatprep.subr.bf16.mxu1 %v1103_v1 }
  0x34   :  { %985 = vmatpush3.bf16.msra.mxu0 %v1102_v2 }
  0x35   :  { %986 = vmatprep.subr.bf16.mxu0 %v1105_v3  ;;  %1007 = vmatpush3.bf16.msra.mxu1 %v1104_v4 }
  0x36   :  { %1008 = vmatprep.subr.bf16.mxu1 %v1107_v5 }
  0x38   :  { %987 = vmatpush3.bf16.msra.mxu0 %v1106_v6 }
  0x39   :  { %988 = vmatprep.subr.bf16.mxu0 %v1109_v7  ;;  %1009 = vmatpush3.bf16.msra.mxu1 %v1108_v8 }
  0x3a   :  { %1010 = vmatprep.subr.bf16.mxu1 %v1111_v9 }
  0x3c   :  { %989 = vmatpush3.bf16.msra.mxu0 %v1110_v10 }
  0x3d   :  { %990 = vmatprep.subr.bf16.mxu0 %v1113_v11  ;;  %1011 = vmatpush3.bf16.msra.mxu1 %v1112_v12 }
  0x3e   :  { %1012 = vmatprep.subr.bf16.mxu1 %v1115_v14 }
  0x40   :  { %991 = vmatpush3.bf16.msra.mxu0 %v1114_v17 }
  0x41   :  { %1029 = vmatprep.subr.bf16.mxu0 %v1127_v25  ;;  %1013 = vmatpush3.bf16.msra.mxu1 %v1116_v20 }
  0x43   :  { %766 = vmatmul.mubr.bf16.vlgmr.msra.gmra.mxu0 %v72_v22 }
  0x44   :  { %1030 = vmatpush3.bf16.msra.mxu0 %v1118_v24  ;;  %1045 = vmatprep.mubr.msk.bf16.mxu0 %vm1128_vm0, %v1127_v25 }
  0x45   :  { %806 = vmatmul.mubr.bf16.vlgmr.msra.gmra.mxu1 %v74_v27  ;;  %1031 = vmatprep.subr.bf16.mxu0 %v1127_v25 }
  0x48   :  { %1032 = vmatpush3.bf16.msra.mxu0 %v1119_v28 }
  0x49   :  { %1033 = vmatprep.subr.bf16.mxu0 %v1127_v25 }
  0x4c   :  { %1034 = vmatpush3.bf16.msra.mxu0 %v1120_v29 }
  0x4d   :  { %1035 = vmatprep.subr.bf16.mxu0 %v1127_v25 }
  0x50   :  { %1036 = vmatpush3.bf16.msra.mxu0 %v1121_v30 }
  0x51   :  { %1037 = vmatprep.subr.bf16.mxu0 %v1127_v25 }
  0x54   :  { %1038 = vmatpush3.bf16.msra.mxu0 %v1122_v31 }
  0x55   :  { %1039 = vmatprep.subr.bf16.mxu0 %v1127_v25 }
  0x58   :  { %1040 = vmatpush3.bf16.msra.mxu0 %v1123_v32 }
  0x59   :  { %1041 = vmatprep.subr.bf16.mxu0 %v1127_v25 }
  0x5c   :  { %1042 = vmatpush3.bf16.msra.mxu0 %v1124_v33 }
  0x5d   :  { %1043 = vmatprep.subr.bf16.mxu0 %v1127_v25 }
  0x60   :  { %1044 = vmatpush3.bf16.msra.mxu0 %v1125_v34 }
  0x63   :  { %1046 = vmatmul.mubr.bf16.vlgmr.msra.gmra.mxu0 %v76_v36 }
  0xe3   :  { %v948_v37 = vpop.f32.mrf.mxu0 }
  0xe4   :  { %v970_v38 = vpop.f32.mrf.mxu1 }
  0xe5   :  { %v949_v39 = vpop.f32.mrf.mxu0 }
  0xe6   :  { %v971_v40 = vpop.f32.mrf.mxu1  ;;  %v950_v53 = vadd.f32 %v949_v39, %v948_v37 }
  0xe7   :  { %v951_v41 = vpop.f32.mrf.mxu0  ;;  %v972_v54 = vadd.f32 %v971_v40, %v970_v38 }
  0xe8   :  { %v973_v43 = vpop.f32.mrf.mxu1 }
  0xe9   :  { %v952_v42 = vpop.f32.mrf.mxu0  ;;  %v728_v56 = vadd.f32 %v972_v54, %v950_v53 }
  0xea   :  { %v974_v44 = vpop.f32.mrf.mxu1 }
 0x103   :  { %v992_v45 = vpop.f32.mrf.mxu0 }
 0x105   :  { %v993_v46 = vpop.f32.mrf.mxu0  ;;  %v1014_v47 = vpop.f32.mrf.mxu1 }
 0x106   :  { %v994_v55 = vadd.f32 %v993_v46, %v992_v45 }
 0x107   :  { %v995_v48 = vpop.f32.mrf.mxu0  ;;  %v1015_v49 = vpop.f32.mrf.mxu1 }
 0x108   :  { %v768_v57 = vadd.f32 %v994_v55, %v728_v56  ;;  %v1016_v58 = vadd.f32 %v1015_v49, %v1014_v47 }
 0x109   :  { %v996_v50 = vpop.f32.mrf.mxu0  ;;  %v1017_v51 = vpop.f32.mrf.mxu1 }
 0x10a   :  { %v808_v59 = vadd.f32 %v1016_v58, %v768_v57 }
 0x10b   :  { %v1018_v52 = vpop.f32.mrf.mxu1 }
 0x123   :  { %v847_v60 = vpop.f32.mrf.mxu0 }
 0x124   :  { %v848_v61 = vadd.f32 %v847_v60, %v808_v59 }
 0x125   :  { %v1047_v62 = vpop.f32.mrf.mxu0 }
 0x126   :  { %854 = vst.msk [vmem:[%s1380_s2] sm:$0x3] %vm853_vm1, %v848_v61 }
 0x127   :  { %v850_v63 = vpop.f32.mrf.mxu0 }
 0x129   :  { %v1048_v0 = vpop.f32.mrf.mxu0 }

// kernel: densenet169_forward.340
= control target key start
LH: loop header
LB: loop body
LE: loop exit
PB: predicated region body
PF: predicated region fallthrough
CT: control target
= control target key end

     0   :  { %v34_v19 = vlaneseq  ;;  %v1912_v45 = vmov 1983009808   ;;  %vm1914_vm0 = vmmov 0   ;;  %s2378_s0 = inlined_call_operand.vmem [shape: f32[2,1,1,9,128], index: 0, kind: input, shape index: {}, may-alias: {0,7}]   ;;  %s2379_s1 = inlined_call_operand.vmem [shape: f32[2,1664], index: 1, kind: input, shape index: {}]   ;;  %s2380_s2 = inlined_call_operand.vmem [shape: f32[1,1664], index: 2, kind: input, shape index: {}]   ;;  %s2381_s3 = inlined_call_operand.vmem [shape: f32[1,1664], index: 3, kind: input, shape index: {}]   ;;  %s2382_s4 = inlined_call_operand.vmem [shape: bf16[1664,128], index: 4, kind: input, shape index: {}]   ;;  %s2383_s5 = inlined_call_operand.vmem [shape: f32[1,128], index: 5, kind: input, shape index: {}]   ;;  %s2384_s6 = inlined_call_operand.vmem [shape: f32[1,128], index: 6, kind: input, shape index: {}]   ;;  %s2385_s7 = inlined_call_operand.vmem [shape: f32[2,1,1,9,128], index: 7, kind: output, shape index: {}, may-alias: {0,7}]  }
   0x1   :  { %v1808_v0 = vld [vmem:[%s2382_s4 + $0x78] sm:$0xff]   ;;  %v1812_v4 = vld [vmem:[%s2382_s4 + $0x70] sm:$0xff]   ;;  %v1816_v8 = vld [vmem:[%s2382_s4 + $0x68] sm:$0xff]   ;;  %v89_v46 = vunpack.c.l.s4 %v1912_v45 }
   0x2   :  { %v1809_v1 = vld [vmem:[%s2382_s4 + $0xf8] sm:$0xff]   ;;  %1644 = vmatprep.subr.bf16.mxu0 %v1808_v0  ;;  %v1813_v5 = vld [vmem:[%s2382_s4 + $0xf0] sm:$0xff]   ;;  %v1817_v9 = vld [vmem:[%s2382_s4 + $0xe8] sm:$0xff]   ;;  %v2024_v24 = vshrl.u32 %v34_v19, 7 }
   0x3   :  { %v1810_v2 = vld [vmem:[%s2382_s4 + $0x38] sm:$0xff]   ;;  %1666 = vmatprep.subr.bf16.mxu1 %v1809_v1  ;;  %v1814_v6 = vld [vmem:[%s2382_s4 + $0x30] sm:$0xff]   ;;  %v1818_v10 = vld [vmem:[%s2382_s4 + $0x28] sm:$0xff]   ;;  %v90_v54 = vunpack.c.0.s8 %v89_v46 }
   0x4   :  { %v1811_v3 = vld [vmem:[%s2382_s4 + $0xb8] sm:$0xff]   ;;  %1645 = vmatpush3.bf16.msra.mxu0 %v1810_v2  ;;  %v1815_v7 = vld [vmem:[%s2382_s4 + $0xb0] sm:$0xff]   ;;  %v1819_v11 = vld [vmem:[%s2382_s4 + $0xa8] sm:$0xff]   ;;  %v2039_v29 = vsub.s32 0, %v2024_v24  ;;  %v2045_v31 = vsub.s32 1, %v2024_v24  ;;  %v2051_v33 = vsub.s32 2, %v2024_v24 }
   0x5   :  { %1667 = vmatpush3.bf16.msra.mxu1 %v1811_v3  ;;  %1646 = vmatprep.subr.bf16.mxu0 %v1812_v4  ;;  %v1820_v12 = vld [vmem:[%s2382_s4 + $0x60] sm:$0xff]   ;;  %v1824_v16 = vld [vmem:[%s2382_s4 + $0x58] sm:$0xff]   ;;  %v1828_v21 = vld [vmem:[%s2382_s4 + $0x50] sm:$0xff]   ;;  %v2057_v35 = vsub.s32 3, %v2024_v24  ;;  %v2086_v57 = vsub.s32 %v90_v54, %v2024_v24  ;;  %v2096_v2 = vsub.s32 4, %v2024_v24  ;;  %v56_v3 = vsub.s32 5, %v2024_v24 }
   0x6   :  { %1668 = vmatprep.subr.bf16.mxu1 %v1813_v5  ;;  %v1821_v13 = vld [vmem:[%s2382_s4 + $0xe0] sm:$0xff]   ;;  %v1825_v17 = vld [vmem:[%s2382_s4 + $0xd8] sm:$0xff]   ;;  %v1829_v22 = vld [vmem:[%s2382_s4 + $0xd0] sm:$0xff]   ;;  %v60_v4 = vsub.s32 6, %v2024_v24  ;;  %v64_v5 = vsub.s32 7, %v2024_v24 }
   0x7   :  { %v1822_v14 = vld [vmem:[%s2382_s4 + $0x20] sm:$0xff]   ;;  %v1826_v18 = vld [vmem:[%s2382_s4 + $0x18] sm:$0xff]   ;;  %v1830_v23 = vld [vmem:[%s2382_s4 + $0x10] sm:$0xff]  }
   0x8   :  { %1647 = vmatpush3.bf16.msra.mxu0 %v1814_v6  ;;  %v1823_v15 = vld [vmem:[%s2382_s4 + $0xa0] sm:$0xff]   ;;  %v1827_v20 = vld [vmem:[%s2382_s4 + $0x98] sm:$0xff]   ;;  %v1831_v25 = vld [vmem:[%s2382_s4 + $0x90] sm:$0xff]  }
   0x9   :  { %1669 = vmatpush3.bf16.msra.mxu1 %v1815_v7  ;;  %1648 = vmatprep.subr.bf16.mxu0 %v1816_v8  ;;  %v1832_v26 = vld [vmem:[%s2382_s4 + $0x48] sm:$0xff]   ;;  %v1836_v32 = vld [vmem:[%s2382_s4 + $0x40] sm:$0xff]   ;;  %v1840_v44 = vld [vmem:[%s2382_s4 + $0x178] sm:$0xff]  }
   0xa   :  { %1670 = vmatprep.subr.bf16.mxu1 %v1817_v9  ;;  %v1833_v27 = vld [vmem:[%s2382_s4 + $0xc8] sm:$0xff]   ;;  %v1837_v34 = vld [vmem:[%s2382_s4 + $0xc0] sm:$0xff]   ;;  %v1842_v51 = vld [vmem:[%s2382_s4 + $0x1f8] sm:$0xff]  }
   0xb   :  { %v1834_v28 = vld [vmem:[%s2382_s4 + $0x8] sm:$0xff]   ;;  %v1838_v36 = vld [vmem:[%s2382_s4] sm:$0xff]  }
   0xc   :  { %1649 = vmatpush3.bf16.msra.mxu0 %v1818_v10  ;;  %v1835_v30 = vld [vmem:[%s2382_s4 + $0x88] sm:$0xff]   ;;  %v1839_v37 = vld [vmem:[%s2382_s4 + $0x80] sm:$0xff]  }
   0xd   :  { %1671 = vmatpush3.bf16.msra.mxu1 %v1819_v11  ;;  %1650 = vmatprep.subr.bf16.mxu0 %v1820_v12  ;;  %v30_v38 = vld [vmem:[%s2380_s2] sm:$0xff]  ;;  %v1850_v45 = vld [vmem:[%s2382_s4 + $0x1e8] sm:$0xff]  }
   0xe   :  { %1672 = vmatprep.subr.bf16.mxu1 %v1821_v13  ;;  %v152_v39 = vld [vmem:[%s2381_s3] sm:$0xff]  ;;  %v37_v40 = vrot.slane %v30_v38, %v2039_v29  ;;  %v41_v41 = vrot.slane %v30_v38, %v2045_v31  ;;  %v45_v42 = vrot.slane %v30_v38, %v2051_v33  ;;  %v49_v43 = vrot.slane %v30_v38, %v2057_v35 }
   0xf   :  { %v159_v47 = vrot.slane %v152_v39, %v2039_v29  ;;  %v163_v48 = vrot.slane %v152_v39, %v2045_v31  ;;  %v167_v49 = vrot.slane %v152_v39, %v2051_v33  ;;  %v171_v50 = vrot.slane %v152_v39, %v2057_v35  ;;  %v26_v62 = vld [vmem:[%s2379_s1] sm:$0xff] }
  0x10   :  { %1651 = vmatpush3.bf16.msra.mxu0 %v1822_v14  ;;  %v86_v52 = vcombine.low %v37_v40, %v41_v41  ;;  %v87_v53 = vcombine.low %v45_v42, %v49_v43  ;;  %v53_v8 = vrot.slane %v30_v38, %v2096_v2  ;;  %v57_v9 = vrot.slane %v30_v38, %v56_v3  ;;  %v1847_v40 = vld [vmem:[%s2382_s4 + $0x1b0] sm:$0xff]   ;;  %v1848_v41 = vld [vmem:[%s2382_s4 + $0x168] sm:$0xff]   ;;  %v1855_v54 = vld [vmem:[%s2382_s4 + $0x1a0] sm:$0xff]  }
  0x11   :  { %1673 = vmatpush3.bf16.msra.mxu1 %v1823_v15  ;;  %1652 = vmatprep.subr.bf16.mxu0 %v1824_v16  ;;  %v208_v55 = vcombine.low %v159_v47, %v163_v48  ;;  %v209_v56 = vcombine.low %v167_v49, %v171_v50  ;;  %v61_v10 = vrot.slane %v30_v38, %v60_v4  ;;  %v1851_v47 = vld [vmem:[%s2382_s4 + $0x1a8] sm:$0xff]   ;;  %v1852_v48 = vld [vmem:[%s2382_s4 + $0x160] sm:$0xff]  }
  0x12   :  { %1674 = vmatprep.subr.bf16.mxu1 %v1825_v17  ;;  %v94_v58 = vrot.slane %v86_v52, %v2086_v57  ;;  %v101_v59 = vrot.slane %v87_v53, %v2086_v57  ;;  %v65_v11 = vrot.slane %v30_v38, %v64_v5  ;;  %v175_v14 = vrot.slane %v152_v39, %v2096_v2  ;;  %v1853_v50 = vld [vmem:[%s2382_s4 + $0x120] sm:$0xff]  }
  0x13   :  { %v216_v60 = vrot.slane %v208_v55, %v2086_v57  ;;  %v223_v61 = vrot.slane %v209_v56, %v2086_v57  ;;  %v179_v15 = vrot.slane %v152_v39, %v56_v3  ;;  %v183_v16 = vrot.slane %v152_v39, %v60_v4  ;;  %v1854_v52 = vld [vmem:[%s2382_s4 + $0x1e0] sm:$0xff]   ;;  %v1856_v55 = vld [vmem:[%s2382_s4 + $0x158] sm:$0xff]   ;;  %v1862_v3 = vld [vmem:[%s2382_s4 + $0x1d0] sm:$0xff]  }
  0x14   :  { %1653 = vmatpush3.bf16.msra.mxu0 %v1826_v18  ;;  %v102_v63 = vcombine.low %v94_v58, %v101_v59  ;;  %v187_v17 = vrot.slane %v152_v39, %v64_v5  ;;  %v1857_v58 = vld [vmem:[%s2382_s4 + $0x118] sm:$0xff]  }
  0x15   :  { %1675 = vmatpush3.bf16.msra.mxu1 %v1827_v20  ;;  %1654 = vmatprep.subr.bf16.mxu0 %v1828_v21  ;;  %v224_v0 = vcombine.low %v216_v60, %v223_v61  ;;  %v1841_v21 = vld [vmem:[%s2382_s4 + $0x138] sm:$0xff]  }
  0x16   :  { %1676 = vmatprep.subr.bf16.mxu1 %v1829_v22  ;;  %v148_v1 = vmul.f32 %v102_v63, %v26_v62  ;;  %v103_v22 = vcombine.low %v53_v8, %v57_v9  ;;  %v1858_v59 = vld [vmem:[%s2382_s4 + $0x1d8] sm:$0xff]   ;;  %v1860_v62 = vld [vmem:[%s2382_s4 + $0x150] sm:$0xff]  }
  0x17   :  { %v1859_v61 = vld [vmem:[%s2382_s4 + $0x198] sm:$0xff]  }
  0x18   :  { %1655 = vmatpush3.bf16.msra.mxu0 %v1830_v23  ;;  %v270_v6 = vadd.f32 %v224_v0, %v148_v1  ;;  %v104_v23 = vcombine.low %v61_v10, %v65_v11  ;;  %v111_v38 = vrot.slane %v103_v22, %v2086_v57  ;;  %v1861_v1 = vld [vmem:[%s2382_s4 + $0x110] sm:$0xff]   ;;  %v1865_v10 = vld [vmem:[%s2382_s4 + $0x108] sm:$0xff]   ;;  %v1875_v22 = vld [vmem:[%s2382_s4 + $0x2b8] sm:$0xff]  }
  0x19   :  { %1677 = vmatpush3.bf16.msra.mxu1 %v1831_v25  ;;  %1656 = vmatprep.subr.bf16.mxu0 %v1832_v26  ;;  %v1843_v26 = vld [vmem:[%s2382_s4 + $0x1b8] sm:$0xff]   ;;  %v1866_v11 = vld [vmem:[%s2382_s4 + $0x1c8] sm:$0xff]  }
  0x1a   :  { %1678 = vmatprep.subr.bf16.mxu1 %v1833_v27  ;;  %v274_v7 = vmax.f32 %v270_v6, 0.0  ;;  %v118_v39 = vrot.slane %v104_v23, %v2086_v57  ;;  %v1863_v6 = vld [vmem:[%s2382_s4 + $0x190] sm:$0xff]  }
  0x1c   :  { %1657 = vmatpush3.bf16.msra.mxu0 %v1834_v28  ;;  %v289_v12 = vrot.slane %v274_v7, %v2086_v57  ;;  %v282_v13 = vcombine.high %v274_v7, %v274_v7  ;;  %v1844_v28 = vld [vmem:[%s2382_s4 + $0x170] sm:$0xff]   ;;  %v119_v46 = vcombine.low %v111_v38, %v118_v39  ;;  %v1864_v7 = vld [vmem:[%s2382_s4 + $0x148] sm:$0xff]   ;;  %v1886_v38 = vld [vmem:[%s2382_s4 + $0x2e0] sm:$0xff]  }
  0x1d   :  { %1679 = vmatpush3.bf16.msra.mxu1 %v1835_v30  ;;  %1658 = vmatprep.subr.bf16.mxu0 %v1836_v32  ;;  %v225_v30 = vcombine.low %v175_v14, %v179_v15  ;;  %v226_v32 = vcombine.low %v183_v16, %v187_v17  ;;  %v1868_v14 = vld [vmem:[%s2382_s4 + $0x140] sm:$0xff]   ;;  %v2252_v39 = vld [vmem:[%s2380_s2 + $0x8] sm:$0x1f] }
  0x1e   :  { %1680 = vmatprep.subr.bf16.mxu1 %v1837_v34  ;;  %v297_v18 = vcombine.high %v289_v12, %v289_v12  ;;  %v296_v19 = vrot.slane %v282_v13, %v2086_v57  ;;  %v353_v20 = vpack.c.bf16 %v289_v12, %v289_v12  ;;  %v1867_v13 = vld [vmem:[%s2382_s4 + $0x188] sm:$0xff]   ;;  %v1869_v15 = vld [vmem:[%s2382_s4 + $0x100] sm:$0xff]  }
  0x1f   :  { %v233_v42 = vrot.slane %v225_v30, %v2086_v57  ;;  %v240_v43 = vrot.slane %v226_v32, %v2086_v57  ;;  %v1870_v16 = vld [vmem:[%s2382_s4 + $0x1c0] sm:$0xff]   ;;  %v1881_v30 = vld [vmem:[%s2382_s4 + $0x228] sm:$0xff]  }
  0x20   :  { %1659 = vmatpush3.bf16.msra.mxu0 %v1838_v36  ;;  %v354_v24 = vpack.c.bf16 %v297_v18, %v297_v18  ;;  %v298_v25 = vcombine.high %v296_v19, %v296_v19  ;;  %v355_v27 = vpack.c.bf16 %v296_v19, %v296_v19  ;;  %v1845_v36 = vld [vmem:[%s2382_s4 + $0x130] sm:$0xff]   ;;  %v1871_v17 = vld [vmem:[%s2382_s4 + $0x180] sm:$0xff]   ;;  %v1872_v18 = vld [vmem:[%s2382_s4 + $0x278] sm:$0xff]  }
  0x21   :  { %1681 = vmatpush3.bf16.msra.mxu1 %v1839_v37  ;;  %1688 = vmatprep.subr.bf16.mxu0 %v1840_v44  ;;  %v1846_v37 = vld [vmem:[%s2382_s4 + $0x1f0] sm:$0xff]   ;;  %v1849_v44 = vld [vmem:[%s2382_s4 + $0x128] sm:$0xff]   ;;  %v241_v49 = vcombine.low %v233_v42, %v240_v43  ;;  %v1873_v19 = vld [vmem:[%s2382_s4 + $0x238] sm:$0xff]   ;;  %v77_v42 = vrot.slane %v2252_v39, %v2051_v33  ;;  %v81_v43 = vrot.slane %v2252_v39, %v2057_v35 }
  0x22   :  { %1710 = vmatprep.subr.bf16.mxu1 %v1842_v51  ;;  %1230 = vmatprep.mubr.bf16.mxu0 %v354_v24  ;;  %v356_v34 = vpack.c.bf16 %v298_v25, %v298_v25  ;;  %v27_v51 = vld [vmem:[%s2379_s1 + $0x8] sm:$0xff]  ;;  %v1876_v24 = vld [vmem:[%s2382_s4 + $0x270] sm:$0xff]  }
  0x23   :  { %1231 = vmatmul.mubr.bf16.vlgmr.msra.gmra.mxu0 %v353_v20  ;;  %v149_v53 = vmul.f32 %v119_v46, %v27_v51  ;;  %v1877_v25 = vld [vmem:[%s2382_s4 + $0x230] sm:$0xff]   ;;  %v1882_v32 = vld [vmem:[%s2382_s4 + $0x2e8] sm:$0xff]  }
  0x24   :  { %1270 = vmatprep.mubr.bf16.mxu1 %v356_v34  ;;  %1689 = vmatpush3.bf16.msra.mxu0 %v1841_v21  ;;  %v1874_v21 = vld [vmem:[%s2382_s4 + $0x2f8] sm:$0xff]   ;;  %v1883_v34 = vld [vmem:[%s2382_s4 + $0x2a8] sm:$0xff]  }
  0x25   :  { %1271 = vmatmul.mubr.bf16.vlgmr.msra.gmra.mxu1 %v355_v27  ;;  %1690 = vmatprep.subr.bf16.mxu0 %v1844_v28  ;;  %v271_v56 = vadd.f32 %v241_v49, %v149_v53  ;;  %v1879_v27 = vld [vmem:[%s2382_s4 + $0x2b0] sm:$0xff]   ;;  %v1880_v28 = vld [vmem:[%s2382_s4 + $0x268] sm:$0xff]  }
  0x26   :  { %1711 = vmatpush3.bf16.msra.mxu1 %v1843_v26  ;;  %v1878_v26 = vld [vmem:[%s2382_s4 + $0x2f0] sm:$0xff]  }
  0x27   :  { %1712 = vmatprep.subr.bf16.mxu1 %v1846_v37  ;;  %v275_v60 = vmax.f32 %v271_v56, 0.0  ;;  %v1885_v37 = vld [vmem:[%s2382_s4 + $0x220] sm:$0xff]  }
  0x28   :  { %1691 = vmatpush3.bf16.msra.mxu0 %v1845_v36  ;;  %v1884_v36 = vld [vmem:[%s2382_s4 + $0x260] sm:$0xff]  }
  0x29   :  { %1692 = vmatprep.subr.bf16.mxu0 %v1848_v41  ;;  %v306_v63 = vrot.slane %v275_v60, %v2086_v57  ;;  %v299_v0 = vcombine.high %v275_v60, %v275_v60  ;;  %v73_v41 = vrot.slane %v2252_v39, %v2045_v31 }
  0x2a   :  { %1713 = vmatpush3.bf16.msra.mxu1 %v1847_v40  ;;  %v69_v40 = vrot.slane %v2252_v39, %v2039_v29 }
  0x2b   :  { %1714 = vmatprep.subr.bf16.mxu1 %v1850_v45  ;;  %v314_v4 = vcombine.high %v306_v63, %v306_v63  ;;  %v313_v5 = vrot.slane %v299_v0, %v2086_v57  ;;  %v357_v20 = vpack.c.bf16 %v306_v63, %v306_v63  ;;  %v1887_v45 = vld [vmem:[%s2382_s4 + $0x2a0] sm:$0xff]   ;;  %v1894_v63 = vld [vmem:[%s2382_s4 + $0x2d0] sm:$0xff]  }
  0x2c   :  { %1693 = vmatpush3.bf16.msra.mxu0 %v1849_v44  ;;  %v2265_v44 = vld [vmem:[%s2381_s3 + $0x8] sm:$0x1f]  ;;  %v120_v51 = vcombine.low %v69_v40, %v73_v41 }
  0x2d   :  { %1694 = vmatprep.subr.bf16.mxu0 %v1852_v48  ;;  %v358_v8 = vpack.c.bf16 %v314_v4, %v314_v4  ;;  %v315_v9 = vcombine.high %v313_v5, %v313_v5  ;;  %v359_v23 = vpack.c.bf16 %v313_v5, %v313_v5  ;;  %v191_v46 = vrot.slane %v2265_v44, %v2039_v29  ;;  %v1889_v29 = vld [vmem:[%s2382_s4 + $0x218] sm:$0xff]   ;;  %v1895_v5 = vld [vmem:[%s2382_s4 + $0x290] sm:$0xff]   ;;  %v1910_v41 = vld [vmem:[%s2382_s4 + $0x308] sm:$0xff]  }
  0x2e   :  { %1715 = vmatpush3.bf16.msra.mxu1 %v1851_v47  ;;  %v195_v47 = vrot.slane %v2265_v44, %v2045_v31  ;;  %v199_v48 = vrot.slane %v2265_v44, %v2051_v33  ;;  %v203_v49 = vrot.slane %v2265_v44, %v2057_v35  ;;  %v1890_v33 = vld [vmem:[%s2382_s4 + $0x2d8] sm:$0xff]   ;;  %v128_v35 = vrot.slane %v120_v51, %v2086_v57 }
  0x2f   :  { %1716 = vmatprep.subr.bf16.mxu1 %v1854_v52  ;;  %1310 = vmatprep.mubr.bf16.mxu0 %v358_v8  ;;  %v360_v12 = vpack.c.bf16 %v315_v9, %v315_v9  ;;  %v121_v52 = vcombine.low %v77_v42, %v81_v43  ;;  %v1897_v8 = vld [vmem:[%s2382_s4 + $0x208] sm:$0xff]   ;;  %v1900_v9 = vld [vmem:[%s2382_s4 + $0x240] sm:$0xff]  }
  0x30   :  { %1695 = vmatpush3.bf16.msra.mxu0 %v1853_v50  ;;  %v1888_v50 = vld [vmem:[%s2382_s4 + $0x258] sm:$0xff]   ;;  %v242_v53 = vcombine.low %v191_v46, %v195_v47  ;;  %v243_v31 = vcombine.low %v199_v48, %v203_v49  ;;  %v1911_v43 = vld [vmem:[%s2382_s4 + $0x300] sm:$0xff]  }
  0x31   :  { %1696 = vmatprep.subr.bf16.mxu0 %v1856_v55  ;;  %1350 = vmatprep.mubr.bf16.mxu1 %v360_v12  ;;  %v28_v55 = vld [vmem:[%s2379_s1 + $0x10] sm:$0xff]  ;;  %v1899_v12 = vld [vmem:[%s2382_s4 + $0x288] sm:$0xff]  }
  0x32   :  { %1717 = vmatpush3.bf16.msra.mxu1 %v1855_v54  ;;  %v135_v54 = vrot.slane %v121_v52, %v2086_v57  ;;  %v250_v56 = vrot.slane %v242_v53, %v2086_v57 }
  0x33   :  { %1718 = vmatprep.subr.bf16.mxu1 %v1858_v59  ;;  %v1892_v59 = vld [vmem:[%s2382_s4 + $0x250] sm:$0xff]  }
  0x34   :  { %1697 = vmatpush3.bf16.msra.mxu0 %v1857_v58  ;;  %v257_v58 = vrot.slane %v243_v31, %v2086_v57  ;;  %v136_v60 = vcombine.low %v128_v35, %v135_v54 }
  0x35   :  { %1698 = vmatprep.subr.bf16.mxu0 %v1860_v62 }
  0x36   :  { %1719 = vmatpush3.bf16.msra.mxu1 %v1859_v61  ;;  %v1891_v61 = vld [vmem:[%s2382_s4 + $0x298] sm:$0xff]   ;;  %v258_v62 = vcombine.low %v250_v56, %v257_v58  ;;  %v150_v0 = vmul.f32 %v136_v60, %v28_v55 }
  0x37   :  { %1720 = vmatprep.subr.bf16.mxu1 %v1862_v3  ;;  %v1896_v3 = vld [vmem:[%s2382_s4 + $0x248] sm:$0xff]  }
  0x38   :  { %1699 = vmatpush3.bf16.msra.mxu0 %v1861_v1  ;;  %v1893_v1 = vld [vmem:[%s2382_s4 + $0x210] sm:$0xff]   ;;  %v272_v4 = vadd.f32 %v258_v62, %v150_v0 }
  0x39   :  { %1700 = vmatprep.subr.bf16.mxu0 %v1864_v7 }
  0x3a   :  { %1721 = vmatpush3.bf16.msra.mxu1 %v1863_v6  ;;  %v1898_v6 = vld [vmem:[%s2382_s4 + $0x2c8] sm:$0xff]   ;;  %v276_v7 = vmax.f32 %v272_v4, 0.0 }
  0x3b   :  { %1722 = vmatprep.subr.bf16.mxu1 %v1866_v11 }
  0x3c   :  { %1701 = vmatpush3.bf16.msra.mxu0 %v1865_v10  ;;  %v323_v10 = vrot.slane %v276_v7, %v2086_v57  ;;  %v316_v11 = vcombine.high %v276_v7, %v276_v7 }
  0x3d   :  { %1702 = vmatprep.subr.bf16.mxu0 %v1868_v14 }
  0x3e   :  { %1723 = vmatpush3.bf16.msra.mxu1 %v1867_v13  ;;  %v1902_v13 = vld [vmem:[%s2382_s4 + $0x2c0] sm:$0xff]   ;;  %v331_v14 = vcombine.high %v323_v10, %v323_v10 }
  0x3f   :  { %1724 = vmatprep.subr.bf16.mxu1 %v1870_v16  ;;  %v1901_v16 = vld [vmem:[%s2382_s4 + $0x200] sm:$0xff]  }
  0x40   :  { %1703 = vmatpush3.bf16.msra.mxu0 %v1869_v15  ;;  %v330_v15 = vrot.slane %v316_v11, %v2086_v57 }
  0x41   :  { %1732 = vmatprep.subr.bf16.mxu0 %v1872_v18 }
  0x42   :  { %1725 = vmatpush3.bf16.msra.mxu1 %v1871_v17  ;;  %v362_v17 = vpack.c.bf16 %v331_v14, %v331_v14  ;;  %v332_v18 = vcombine.high %v330_v15, %v330_v15  ;;  %v1641_v14 = vld [vmem:[%s2383_s5] ss:$0 sm:$0xff] }
  0x43   :  { %1311 = vmatmul.mubr.bf16.vlgmr.msra.gmra.mxu0 %v357_v20  ;;  %1754 = vmatprep.subr.bf16.mxu1 %v1874_v21  ;;  %v361_v20 = vpack.c.bf16 %v323_v10, %v323_v10 }
  0x44   :  { %1733 = vmatpush3.bf16.msra.mxu0 %v1873_v19  ;;  %v1903_v19 = vld [vmem:[%s2382_s4 + $0x280] sm:$0xff]   ;;  %1390 = vmatprep.mubr.bf16.mxu0 %v362_v17  ;;  %v364_v21 = vpack.c.bf16 %v332_v18, %v332_v18 }
  0x45   :  { %1351 = vmatmul.mubr.bf16.vlgmr.msra.gmra.mxu1 %v359_v23  ;;  %1734 = vmatprep.subr.bf16.mxu0 %v1876_v24  ;;  %v1913_v23 = vmov 0.0   ;;  %v363_v24 = vpack.c.bf16 %v330_v15, %v330_v15 }
  0x46   :  { %1755 = vmatpush3.bf16.msra.mxu1 %v1875_v22  ;;  %v1904_v22 = vld [vmem:[%s2382_s4 + $0x338] sm:$0xff]   ;;  %1430 = vmatprep.mubr.bf16.mxu1 %v364_v21 }
  0x47   :  { %1756 = vmatprep.subr.bf16.mxu1 %v1878_v26  ;;  %v85_v26 = vrot.slane %v2252_v39, %v2096_v2  ;;  %v1909_v39 = vld [vmem:[%s2382_s4 + $0x310] sm:$0xff]  }
  0x48   :  { %1735 = vmatpush3.bf16.msra.mxu0 %v1877_v25  ;;  %v1905_v25 = vld [vmem:[%s2382_s4 + $0x330] sm:$0xff]  }
  0x49   :  { %1736 = vmatprep.subr.bf16.mxu0 %v1880_v28  ;;  %v143_v28 = vrot.slane %v85_v26, %v2086_v57 }
  0x4a   :  { %1757 = vmatpush3.bf16.msra.mxu1 %v1879_v27  ;;  %v1906_v27 = vld [vmem:[%s2382_s4 + $0x328] sm:$0xff]  }
  0x4b   :  { %1758 = vmatprep.subr.bf16.mxu1 %v1882_v32  ;;  %v1907_v32 = vld [vmem:[%s2382_s4 + $0x320] sm:$0xff]  }
  0x4c   :  { %1737 = vmatpush3.bf16.msra.mxu0 %v1881_v30  ;;  %v207_v30 = vrot.slane %v2265_v44, %v2096_v2 }
  0x4d   :  { %1738 = vmatprep.subr.bf16.mxu0 %v1884_v36 }
  0x4e   :  { %1759 = vmatpush3.bf16.msra.mxu1 %v1883_v34  ;;  %v29_v34 = vld [vmem:[%s2379_s1 + $0x18] sm:$0x3] }
  0x4f   :  { %1760 = vmatprep.subr.bf16.mxu1 %v1886_v38  ;;  %v151_v36 = vmul.f32 %v143_v28, %v29_v34  ;;  %v1908_v38 = vld [vmem:[%s2382_s4 + $0x318] sm:$0xff]  }
  0x50   :  { %1739 = vmatpush3.bf16.msra.mxu0 %v1885_v37  ;;  %v265_v37 = vrot.slane %v207_v30, %v2086_v57 }
  0x51   :  { %1740 = vmatprep.subr.bf16.mxu0 %v1888_v50 }
  0x52   :  { %1761 = vmatpush3.bf16.msra.mxu1 %v1887_v45  ;;  %v273_v2 = vadd.f32 %v265_v37, %v151_v36 }
  0x53   :  { %1762 = vmatprep.subr.bf16.mxu1 %v1890_v33 }
  0x54   :  { %1741 = vmatpush3.bf16.msra.mxu0 %v1889_v29  ;;  %v277_v40 = vmax.f32 %v273_v2, 0.0 }
  0x55   :  { %1742 = vmatprep.subr.bf16.mxu0 %v1892_v59 }
  0x56   :  { %1763 = vmatpush3.bf16.msra.mxu1 %v1891_v61  ;;  %v339_v42 = vrot.slane %v277_v40, %v2086_v57 }
  0x57   :  { %1764 = vmatprep.subr.bf16.mxu1 %v1894_v63 }
  0x58   :  { %1743 = vmatpush3.bf16.msra.mxu0 %v1893_v1  ;;  %v365_v44 = vpack.c.bf16 %v339_v42, %v339_v42 }
  0x59   :  { %1744 = vmatprep.subr.bf16.mxu0 %v1896_v3 }
  0x5a   :  { %1765 = vmatpush3.bf16.msra.mxu1 %v1895_v5 }
  0x5b   :  { %1766 = vmatprep.subr.bf16.mxu1 %v1898_v6 }
  0x5c   :  { %1745 = vmatpush3.bf16.msra.mxu0 %v1897_v8 }
  0x5d   :  { %1746 = vmatprep.subr.bf16.mxu0 %v1900_v9 }
  0x5e   :  { %1767 = vmatpush3.bf16.msra.mxu1 %v1899_v12 }
  0x5f   :  { %1768 = vmatprep.subr.bf16.mxu1 %v1902_v13 }
  0x60   :  { %1747 = vmatpush3.bf16.msra.mxu0 %v1901_v16  ;;  %v1642_v16 = vld [vmem:[%s2384_s6] ss:$0 sm:$0xff] }
  0x61   :  { %1785 = vmatprep.subr.bf16.mxu0 %v1913_v23 }
  0x62   :  { %1769 = vmatpush3.bf16.msra.mxu1 %v1903_v19 }
  0x63   :  { %1391 = vmatmul.mubr.bf16.vlgmr.msra.gmra.mxu0 %v361_v20 }
  0x64   :  { %1786 = vmatpush3.bf16.msra.mxu0 %v1904_v22  ;;  %1801 = vmatprep.mubr.msk.bf16.mxu0 %vm1914_vm0, %v1913_v23 }
  0x65   :  { %1431 = vmatmul.mubr.bf16.vlgmr.msra.gmra.mxu1 %v363_v24  ;;  %1787 = vmatprep.subr.bf16.mxu0 %v1913_v23 }
  0x68   :  { %1788 = vmatpush3.bf16.msra.mxu0 %v1905_v25 }
  0x69   :  { %1789 = vmatprep.subr.bf16.mxu0 %v1913_v23 }
  0x6c   :  { %1790 = vmatpush3.bf16.msra.mxu0 %v1906_v27 }
  0x6d   :  { %1791 = vmatprep.subr.bf16.mxu0 %v1913_v23 }
  0x70   :  { %1792 = vmatpush3.bf16.msra.mxu0 %v1907_v32 }
  0x71   :  { %1793 = vmatprep.subr.bf16.mxu0 %v1913_v23 }
  0x74   :  { %1794 = vmatpush3.bf16.msra.mxu0 %v1908_v38 }
  0x75   :  { %1795 = vmatprep.subr.bf16.mxu0 %v1913_v23 }
  0x78   :  { %1796 = vmatpush3.bf16.msra.mxu0 %v1909_v39 }
  0x79   :  { %1797 = vmatprep.subr.bf16.mxu0 %v1913_v23 }
  0x7c   :  { %1798 = vmatpush3.bf16.msra.mxu0 %v1910_v41 }
  0x7d   :  { %1799 = vmatprep.subr.bf16.mxu0 %v1913_v23 }
  0x80   :  { %1800 = vmatpush3.bf16.msra.mxu0 %v1911_v43 }
  0x83   :  { %1802 = vmatmul.mubr.bf16.vlgmr.msra.gmra.mxu0 %v365_v44 }
  0xe3   :  { %v1660_v45 = vpop.f32.mrf.mxu0 }
  0xe5   :  { %v1682_v46 = vpop.f32.mrf.mxu1  ;;  %v1661_v47 = vpop.f32.mrf.mxu0 }
  0xe6   :  { %v1662_v48 = vadd.f32 %v1661_v47, %v1660_v45 }
  0xe7   :  { %v1683_v49 = vpop.f32.mrf.mxu1  ;;  %v1663_v50 = vpop.f32.mrf.mxu0 }
  0xe8   :  { %v1684_v51 = vadd.f32 %v1683_v49, %v1682_v46 }
  0xe9   :  { %v1664_v52 = vpop.f32.mrf.mxu0  ;;  %v1685_v29 = vpop.f32.mrf.mxu1 }
  0xea   :  { %v1273_v53 = vadd.f32 %v1684_v51, %v1662_v48 }
  0xeb   :  { %v1686_v57 = vpop.f32.mrf.mxu1 }
 0x103   :  { %v1704_v31 = vpop.f32.mrf.mxu0 }
 0x105   :  { %v1705_v33 = vpop.f32.mrf.mxu0  ;;  %v1726_v35 = vpop.f32.mrf.mxu1 }
 0x106   :  { %v1706_v5 = vadd.f32 %v1705_v33, %v1704_v31 }
 0x107   :  { %v1707_v54 = vpop.f32.mrf.mxu0  ;;  %v1727_v55 = vpop.f32.mrf.mxu1 }
 0x108   :  { %v1313_v6 = vadd.f32 %v1706_v5, %v1273_v53  ;;  %v1728_v7 = vadd.f32 %v1727_v55, %v1726_v35 }
 0x109   :  { %v1708_v56 = vpop.f32.mrf.mxu0  ;;  %v1729_v58 = vpop.f32.mrf.mxu1 }
 0x10a   :  { %v1353_v9 = vadd.f32 %v1728_v7, %v1313_v6 }
 0x10b   :  { %v1730_v59 = vpop.f32.mrf.mxu1 }
 0x123   :  { %v1748_v60 = vpop.f32.mrf.mxu0 }
 0x125   :  { %v1749_v61 = vpop.f32.mrf.mxu0  ;;  %v1770_v62 = vpop.f32.mrf.mxu1 }
 0x126   :  { %v1750_v8 = vadd.f32 %v1749_v61, %v1748_v60 }
 0x127   :  { %v1751_v63 = vpop.f32.mrf.mxu0  ;;  %v1771_v0 = vpop.f32.mrf.mxu1 }
 0x128   :  { %v1393_v10 = vadd.f32 %v1750_v8, %v1353_v9  ;;  %v1772_v11 = vadd.f32 %v1771_v0, %v1770_v62 }
 0x129   :  { %v1752_v1 = vpop.f32.mrf.mxu0  ;;  %v1773_v3 = vpop.f32.mrf.mxu1 }
 0x12a   :  { %v1433_v12 = vadd.f32 %v1772_v11, %v1393_v10 }
 0x12b   :  { %v1774_v4 = vpop.f32.mrf.mxu1 }
 0x143   :  { %v1472_v13 = vpop.f32.mrf.mxu0 }
 0x144   :  { %v1473_v15 = vadd.f32 %v1472_v13, %v1433_v12 }
 0x145   :  { %v1803_v17 = vpop.f32.mrf.mxu0 }
 0x146   :  { %v1485_v18 = vmul.f32 %v1641_v14, %v1473_v15 }
 0x147   :  { %v1475_v19 = vpop.f32.mrf.mxu0 }
 0x148   :  { %v1493_v20 = vadd.f32 %v1642_v16, %v1485_v18 }
 0x149   :  { %v1804_v21 = vpop.f32.mrf.mxu0 }
 0x14a   :  { %v1494_v22 = vmax.f32 %v1493_v20, 0.0 }
 0x14c   :  { %1495 = vst [vmem:[#allocation2] sm:$0x3] %v1494_v22 }
 0x153   :  { %v1514_v23 = vld [vmem:[#allocation2] sm:$0x3] }
 0x154   :  { %1643 = vst [vmem:[%s2385_s7 + $0x8] sm:$0x3] %v1514_v23 }

// kernel: densenet169_forward.306
= control target key start
LH: loop header
LB: loop body
LE: loop exit
PB: predicated region body
PF: predicated region fallthrough
CT: control target
= control target key end

     0   :  { %v36_v34 = vlaneseq  ;;  %v4609_v40 = vmov 1983009808   ;;  %s6049_s6 = inlined_call_operand.vmem [shape: bf16[1280,640], index: 6, kind: input, shape index: {}]   ;;  %s6050_s4 = inlined_call_operand.vmem [shape: f32[1,1280], index: 4, kind: input, shape index: {}]   ;;  %s6051_s5 = inlined_call_operand.vmem [shape: f32[1,1280], index: 5, kind: input, shape index: {}]   ;;  %s6052_s0 = inlined_call_operand.vmem [shape: f32[2,1280], index: 0, kind: input, shape index: {}]   ;;  %s6053_s1 = inlined_call_operand.vmem [shape: f32[2,1280], index: 1, kind: input, shape index: {}]   ;;  %s6054_s2 = inlined_call_operand.vmem [shape: f32[2,1280], index: 2, kind: input, shape index: {}]   ;;  %s6055_s3 = inlined_call_operand.vmem [shape: f32[2,1280], index: 3, kind: input, shape index: {}]   ;;  %s6056_s7 = inlined_call_operand.vmem [shape: f32[2,640], index: 7, kind: output, shape index: {}]  }
   0x1   :  { %v4049_v0 = vld [vmem:[%s6049_s6 + $0x11c] ss:$20 sps:$4 sm:$0xff]   ;;  %v4053_v2 = vld [vmem:[%s6049_s6 + $0x118] ss:$20 sps:$4 sm:$0xff]   ;;  %v4055_v4 = vld [vmem:[%s6049_s6 + $0xf4] ss:$20 sps:$4 sm:$0xff]   ;;  %v79_v41 = vunpack.c.l.s4 %v4609_v40 }
   0x2   :  { %v4051_v1 = vld [vmem:[%s6049_s6 + $0x39c] ss:$20 sps:$4 sm:$0xff]   ;;  %2890 = vmatprep.subr.bf16.mxu0 %v4049_v0  ;;  %v4054_v3 = vld [vmem:[%s6049_s6 + $0x398] ss:$20 sps:$4 sm:$0xff]   ;;  %v4057_v5 = vld [vmem:[%s6049_s6 + $0x374] ss:$20 sps:$4 sm:$0xff]  }
   0x3   :  { %2931 = vmatprep.subr.bf16.mxu1 %v4051_v1  ;;  %2891 = vmatpush1.bf16.msra.mxu0 %v4053_v2  ;;  %v4059_v6 = vld [vmem:[%s6049_s6 + $0xf0] ss:$20 sps:$4 sm:$0xff]   ;;  %v4061_v8 = vld [vmem:[%s6049_s6 + $0xcc] ss:$20 sps:$4 sm:$0xff]   ;;  %v4065_v10 = vld [vmem:[%s6049_s6 + $0xc8] ss:$20 sps:$4 sm:$0xff]   ;;  %v80_v48 = vunpack.c.0.s8 %v79_v41 }
   0x4   :  { %2932 = vmatpush1.bf16.msra.mxu1 %v4054_v3  ;;  %2892 = vmatprep.subr.bf16.mxu0 %v4055_v4  ;;  %v4060_v7 = vld [vmem:[%s6049_s6 + $0x370] ss:$20 sps:$4 sm:$0xff]   ;;  %v4063_v9 = vld [vmem:[%s6049_s6 + $0x34c] ss:$20 sps:$4 sm:$0xff]   ;;  %v4066_v11 = vld [vmem:[%s6049_s6 + $0x348] ss:$20 sps:$4 sm:$0xff]  }
   0x5   :  { %2933 = vmatprep.subr.bf16.mxu1 %v4057_v5  ;;  %v4067_v12 = vld [vmem:[%s6049_s6 + $0xa4] ss:$20 sps:$4 sm:$0xff]   ;;  %v4071_v14 = vld [vmem:[%s6049_s6 + $0xa0] ss:$20 sps:$4 sm:$0xff]   ;;  %v4073_v16 = vld [vmem:[%s6049_s6 + $0x7c] ss:$20 sps:$4 sm:$0xff]  }
   0x6   :  { %v4069_v13 = vld [vmem:[%s6049_s6 + $0x324] ss:$20 sps:$4 sm:$0xff]   ;;  %v4072_v15 = vld [vmem:[%s6049_s6 + $0x320] ss:$20 sps:$4 sm:$0xff]   ;;  %v4075_v17 = vld [vmem:[%s6049_s6 + $0x2fc] ss:$20 sps:$4 sm:$0xff]  }
   0x7   :  { %2893 = vmatpush1.bf16.msra.mxu0 %v4059_v6  ;;  %v4077_v18 = vld [vmem:[%s6049_s6 + $0x78] ss:$20 sps:$4 sm:$0xff]   ;;  %v4079_v20 = vld [vmem:[%s6049_s6 + $0x54] ss:$20 sps:$4 sm:$0xff]   ;;  %v4083_v22 = vld [vmem:[%s6049_s6 + $0x50] ss:$20 sps:$4 sm:$0xff]  }
   0x8   :  { %2934 = vmatpush1.bf16.msra.mxu1 %v4060_v7  ;;  %2894 = vmatprep.subr.bf16.mxu0 %v4061_v8  ;;  %v4078_v19 = vld [vmem:[%s6049_s6 + $0x2f8] ss:$20 sps:$4 sm:$0xff]   ;;  %v4081_v21 = vld [vmem:[%s6049_s6 + $0x2d4] ss:$20 sps:$4 sm:$0xff]   ;;  %v4084_v23 = vld [vmem:[%s6049_s6 + $0x2d0] ss:$20 sps:$4 sm:$0xff]  }
   0x9   :  { %2935 = vmatprep.subr.bf16.mxu1 %v4063_v9  ;;  %v4085_v24 = vld [vmem:[%s6049_s6 + $0x2c] ss:$20 sps:$4 sm:$0xff]   ;;  %v4089_v26 = vld [vmem:[%s6049_s6 + $0x28] ss:$20 sps:$4 sm:$0xff]   ;;  %v4091_v28 = vld [vmem:[%s6049_s6 + $0x4] ss:$20 sps:$4 sm:$0xff]  }
   0xa   :  { %v4087_v25 = vld [vmem:[%s6049_s6 + $0x2ac] ss:$20 sps:$4 sm:$0xff]   ;;  %v4090_v27 = vld [vmem:[%s6049_s6 + $0x2a8] ss:$20 sps:$4 sm:$0xff]   ;;  %v4093_v29 = vld [vmem:[%s6049_s6 + $0x284] ss:$20 sps:$4 sm:$0xff]  }
   0xb   :  { %2895 = vmatpush1.bf16.msra.mxu0 %v4065_v10  ;;  %v4095_v30 = vld [vmem:[%s6049_s6] ss:$20 sps:$4 sm:$0xff]   ;;  %v4097_v32 = vld [vmem:[%s6049_s6 + $0x25c] ss:$20 sps:$4 sm:$0xff]   ;;  %v4101_v35 = vld [vmem:[%s6049_s6 + $0x258] ss:$20 sps:$4 sm:$0xff]  }
   0xc   :  { %2936 = vmatpush1.bf16.msra.mxu1 %v4066_v11  ;;  %2896 = vmatprep.subr.bf16.mxu0 %v4067_v12  ;;  %v4096_v31 = vld [vmem:[%s6049_s6 + $0x280] ss:$20 sps:$4 sm:$0xff]   ;;  %v4099_v33 = vld [vmem:[%s6049_s6 + $0x4dc] ss:$20 sps:$4 sm:$0xff]   ;;  %v4102_v36 = vld [vmem:[%s6049_s6 + $0x4d8] ss:$20 sps:$4 sm:$0xff]  }
   0xd   :  { %2937 = vmatprep.subr.bf16.mxu1 %v4069_v13  ;;  %v4103_v37 = vld [vmem:[%s6049_s6 + $0x234] ss:$20 sps:$4 sm:$0xff]   ;;  %v4764_v39 = vshrl.u32 %v36_v34, 7  ;;  %v4107_v42 = vld [vmem:[%s6049_s6 + $0x230] ss:$20 sps:$4 sm:$0xff]  }
   0xe   :  { %v4105_v38 = vld [vmem:[%s6049_s6 + $0x4b4] ss:$20 sps:$4 sm:$0xff]   ;;  %v4108_v43 = vld [vmem:[%s6049_s6 + $0x4b0] ss:$20 sps:$4 sm:$0xff]   ;;  %v4109_v44 = vld [vmem:[%s6049_s6 + $0x20c] ss:$20 sps:$4 sm:$0xff]  }
   0xf   :  { %2897 = vmatpush1.bf16.msra.mxu0 %v4071_v14  ;;  %v4111_v45 = vld [vmem:[%s6049_s6 + $0x48c] ss:$20 sps:$4 sm:$0xff]   ;;  %v4779_v46 = vsub.s32 0, %v4764_v39  ;;  %v4782_v47 = vsub.s32 1, %v4764_v39  ;;  %v4113_v49 = vld [vmem:[%s6049_s6 + $0x208] ss:$20 sps:$4 sm:$0xff]   ;;  %v4804_v56 = vsub.s32 %v80_v48, %v4764_v39 }
  0x10   :  { %2938 = vmatpush1.bf16.msra.mxu1 %v4072_v15  ;;  %2898 = vmatprep.subr.bf16.mxu0 %v4073_v16  ;;  %v4114_v50 = vld [vmem:[%s6049_s6 + $0x488] ss:$20 sps:$4 sm:$0xff]   ;;  %v46_v51 = vsub.s32 2, %v4764_v39  ;;  %v50_v52 = vsub.s32 3, %v4764_v39  ;;  %v4115_v53 = vld [vmem:[%s6049_s6 + $0x1e4] ss:$20 sps:$4 sm:$0xff]  }
  0x11   :  { %2939 = vmatprep.subr.bf16.mxu1 %v4075_v17  ;;  %v4117_v54 = vld [vmem:[%s6049_s6 + $0x464] ss:$20 sps:$4 sm:$0xff]   ;;  %v4119_v62 = vld [vmem:[%s6049_s6 + $0x1e0] ss:$20 sps:$4 sm:$0xff]   ;;  %v4121_v3 = vld [vmem:[%s6049_s6 + $0x1bc] ss:$20 sps:$4 sm:$0xff]  }
  0x12   :  { %v4801_v55 = vld [vmem:[%s6050_s4] sm:$0xff]  ;;  %v4123_v4 = vld [vmem:[%s6049_s6 + $0x43c] ss:$20 sps:$4 sm:$0xff]   ;;  %v4125_v8 = vld [vmem:[%s6049_s6 + $0x1b8] ss:$20 sps:$4 sm:$0xff]  }
  0x13   :  { %2899 = vmatpush1.bf16.msra.mxu0 %v4077_v18  ;;  %v4809_v57 = vld [vmem:[%s6051_s5] sm:$0xff]  ;;  %v39_v58 = vrot.slane %v4801_v55, %v4779_v46  ;;  %v43_v59 = vrot.slane %v4801_v55, %v4782_v47  ;;  %v47_v60 = vrot.slane %v4801_v55, %v46_v51  ;;  %v51_v61 = vrot.slane %v4801_v55, %v50_v52  ;;  %v4126_v9 = vld [vmem:[%s6049_s6 + $0x438] ss:$20 sps:$4 sm:$0xff]   ;;  %v4127_v11 = vld [vmem:[%s6049_s6 + $0x194] ss:$20 sps:$4 sm:$0xff]  }
  0x14   :  { %2940 = vmatpush1.bf16.msra.mxu1 %v4078_v19  ;;  %2900 = vmatprep.subr.bf16.mxu0 %v4079_v20  ;;  %v4120_v63 = vld [vmem:[%s6049_s6 + $0x460] ss:$20 sps:$4 sm:$0xff]   ;;  %v129_v0 = vrot.slane %v4809_v57, %v4779_v46  ;;  %v133_v1 = vrot.slane %v4809_v57, %v4782_v47  ;;  %v137_v2 = vrot.slane %v4809_v57, %v46_v51  ;;  %v4138_v41 = vld [vmem:[%s6049_s6 + $0x3e8] ss:$20 sps:$4 sm:$0xff]  }
  0x15   :  { %2941 = vmatprep.subr.bf16.mxu1 %v4081_v21  ;;  %v76_v5 = vcombine.low %v39_v58, %v43_v59  ;;  %v77_v6 = vcombine.low %v47_v60, %v51_v61  ;;  %v141_v7 = vrot.slane %v4809_v57, %v50_v52  ;;  %v31_v12 = vld [vmem:[%s6052_s0] sm:$0xff]  ;;  %v4129_v19 = vld [vmem:[%s6049_s6 + $0x414] ss:$20 sps:$4 sm:$0xff]   ;;  %v4147_v51 = vld [vmem:[%s6049_s6 + $0x61c] ss:$20 sps:$4 sm:$0xff]  }
  0x16   :  { %v166_v10 = vcombine.low %v129_v0, %v133_v1  ;;  %v217_v17 = vld [vmem:[%s6053_s1] sm:$0xff]  ;;  %v58_v0 = vsub.s32 5, %v4764_v39  ;;  %v62_v1 = vsub.s32 6, %v4764_v39 }
  0x17   :  { %2901 = vmatpush1.bf16.msra.mxu0 %v4083_v22  ;;  %v84_v13 = vrot.slane %v76_v5, %v4804_v56  ;;  %v91_v14 = vrot.slane %v77_v6, %v4804_v56  ;;  %v167_v15 = vcombine.low %v137_v2, %v141_v7  ;;  %v232_v18 = vld [vmem:[%s6054_s2] sm:$0xff]  ;;  %v66_v2 = vsub.s32 7, %v4764_v39  ;;  %v4145_v5 = vld [vmem:[%s6049_s6 + $0x618] ss:$20 sps:$4 sm:$0xff]   ;;  %v4153_v7 = vld [vmem:[%s6049_s6 + $0x5f4] ss:$20 sps:$4 sm:$0xff]  }
  0x18   :  { %2942 = vmatpush1.bf16.msra.mxu1 %v4084_v23  ;;  %2902 = vmatprep.subr.bf16.mxu0 %v4085_v24  ;;  %v174_v16 = vrot.slane %v166_v10, %v4804_v56  ;;  %v247_v22 = vld [vmem:[%s6055_s3] sm:$0xff] }
  0x19   :  { %2943 = vmatprep.subr.bf16.mxu1 %v4087_v25  ;;  %v92_v20 = vcombine.low %v84_v13, %v91_v14  ;;  %v181_v21 = vrot.slane %v167_v15, %v4804_v56  ;;  %v4143_v48 = vld [vmem:[%s6049_s6 + $0x140] ss:$20 sps:$4 sm:$0xff]   ;;  %v67_v13 = vrot.slane %v4801_v55, %v66_v2  ;;  %v4151_v14 = vld [vmem:[%s6049_s6 + $0x5f0] ss:$20 sps:$4 sm:$0xff]  }
  0x1b   :  { %2903 = vmatpush1.bf16.msra.mxu0 %v4089_v26  ;;  %v121_v23 = vmul.f32 %v92_v20, %v31_v12  ;;  %v182_v24 = vcombine.low %v174_v16, %v181_v21  ;;  %v220_v25 = vmul.f32 %v217_v17, %v92_v20  ;;  %v235_v26 = vmul.f32 %v232_v18, %v92_v20  ;;  %v4159_v16 = vld [vmem:[%s6049_s6 + $0x5cc] ss:$20 sps:$4 sm:$0xff]  }
  0x1c   :  { %2944 = vmatpush1.bf16.msra.mxu1 %v4090_v27  ;;  %2904 = vmatprep.subr.bf16.mxu0 %v4091_v28  ;;  %v4131_v27 = vld [vmem:[%s6049_s6 + $0x190] ss:$20 sps:$4 sm:$0xff]   ;;  %v63_v12 = vrot.slane %v4801_v55, %v62_v1  ;;  %v149_v17 = vrot.slane %v4809_v57, %v58_v0  ;;  %v157_v18 = vrot.slane %v4809_v57, %v66_v2 }
  0x1d   :  { %2945 = vmatprep.subr.bf16.mxu1 %v4093_v29  ;;  %v4132_v28 = vld [vmem:[%s6049_s6 + $0x410] ss:$20 sps:$4 sm:$0xff]   ;;  %v250_v29 = vmul.f32 %v247_v22, %v92_v20  ;;  %v238_v34 = vadd.f32 %v235_v26, %v182_v24  ;;  %v4162_v20 = vld [vmem:[%s6049_s6 + $0x84c] ss:$20 sps:$4 sm:$0xff]   ;;  %v4160_v26 = vld [vmem:[%s6049_s6 + $0x848] ss:$20 sps:$4 sm:$0xff]  }
  0x1e   :  { %v94_v22 = vcombine.low %v63_v12, %v67_v13  ;;  %v4187_v12 = vld [vmem:[%s6049_s6 + $0x500] ss:$20 sps:$4 sm:$0xff]  }
  0x1f   :  { %2905 = vmatpush1.bf16.msra.mxu0 %v4095_v30  ;;  %v4133_v30 = vld [vmem:[%s6049_s6 + $0x16c] ss:$20 sps:$4 sm:$0xff]   ;;  %v241_v40 = vmax.f32 %v238_v34, 0.0 }
  0x20   :  { %2946 = vmatpush1.bf16.msra.mxu1 %v4096_v31  ;;  %2906 = vmatprep.subr.bf16.mxu0 %v4097_v32  ;;  %v4135_v31 = vld [vmem:[%s6049_s6 + $0x3ec] ss:$20 sps:$4 sm:$0xff]   ;;  %v211_v32 = vadd.f32 %v182_v24, %v121_v23  ;;  %v4157_v23 = vld [vmem:[%s6049_s6 + $0x5c8] ss:$20 sps:$4 sm:$0xff]  }
  0x21   :  { %2947 = vmatprep.subr.bf16.mxu1 %v4099_v33  ;;  %v223_v33 = vadd.f32 %v220_v25, %v182_v24  ;;  %v4166_v34 = vld [vmem:[%s6049_s6 + $0x820] ss:$20 sps:$4 sm:$0xff]  }
  0x23   :  { %2907 = vmatpush2.bf16.msra.mxu0 %v4101_v35  ;;  %v253_v35 = vadd.f32 %v250_v29, %v182_v24  ;;  %v108_v29 = vrot.slane %v94_v22, %v4804_v56 }
  0x24   :  { %2948 = vmatpush2.bf16.msra.mxu1 %v4102_v36  ;;  %2908 = vmatprep.subr.bf16.mxu0 %v4103_v37  ;;  %v4137_v36 = vld [vmem:[%s6049_s6 + $0x168] ss:$20 sps:$4 sm:$0xff]   ;;  %v214_v37 = vmax.f32 %v211_v32, 0.0 }
  0x25   :  { %2949 = vmatprep.subr.bf16.mxu1 %v4105_v38  ;;  %v226_v38 = vmax.f32 %v223_v33, 0.0 }
  0x27   :  { %2909 = vmatpush2.bf16.msra.mxu0 %v4107_v42  ;;  %v4139_v42 = vld [vmem:[%s6049_s6 + $0x144] ss:$20 sps:$4 sm:$0xff]  }
  0x28   :  { %2950 = vmatpush2.bf16.msra.mxu1 %v4108_v43  ;;  %2910 = vmatprep.subr.bf16.mxu0 %v4109_v44  ;;  %v4141_v43 = vld [vmem:[%s6049_s6 + $0x3c4] ss:$20 sps:$4 sm:$0xff]   ;;  %v229_v44 = vadd.f32 %v226_v38, %v214_v37  ;;  %v4177_v38 = vld [vmem:[%s6049_s6 + $0x554] ss:$20 sps:$4 sm:$0xff]  }
  0x29   :  { %2951 = vmatprep.subr.bf16.mxu1 %v4111_v45  ;;  %v256_v45 = vmax.f32 %v253_v35, 0.0  ;;  %v4174_v35 = vld [vmem:[%s6049_s6 + $0x7fc] ss:$20 sps:$4 sm:$0xff]   ;;  %v4169_v37 = vld [vmem:[%s6049_s6 + $0x578] ss:$20 sps:$4 sm:$0xff]  }
  0x2b   :  { %2911 = vmatpush2.bf16.msra.mxu0 %v4113_v49  ;;  %v244_v49 = vadd.f32 %v241_v40, %v229_v44 }
  0x2c   :  { %2952 = vmatpush2.bf16.msra.mxu1 %v4114_v50  ;;  %2912 = vmatprep.subr.bf16.mxu0 %v4115_v53  ;;  %v4144_v50 = vld [vmem:[%s6049_s6 + $0x3c0] ss:$20 sps:$4 sm:$0xff]   ;;  %v4150_v53 = vld [vmem:[%s6049_s6 + $0x89c] ss:$20 sps:$4 sm:$0xff]  }
  0x2d   :  { %2953 = vmatprep.subr.bf16.mxu1 %v4117_v54  ;;  %v259_v52 = vadd.f32 %v256_v45, %v244_v49  ;;  %v218_v45 = vld [vmem:[%s6053_s1 + $0x8] sm:$0xff] }
  0x2e   :  { %v248_v49 = vld [vmem:[%s6055_s3 + $0x8] sm:$0xff] }
  0x2f   :  { %2913 = vmatpush2.bf16.msra.mxu0 %v4119_v62  ;;  %v262_v54 = vmul.f32 0.25, %v259_v52  ;;  %v54_v62 = vsub.s32 4, %v4764_v39  ;;  %v4148_v39 = vld [vmem:[%s6049_s6 + $0x898] ss:$20 sps:$4 sm:$0xff]  }
  0x30   :  { %2954 = vmatpush2.bf16.msra.mxu1 %v4120_v63  ;;  %2914 = vmatprep.subr.bf16.mxu0 %v4121_v3 }
  0x31   :  { %2955 = vmatprep.subr.bf16.mxu1 %v4123_v4  ;;  %v275_v58 = vrot.slane %v262_v54, %v4804_v56  ;;  %v268_v59 = vcombine.high %v262_v54, %v262_v54  ;;  %v55_v10 = vrot.slane %v4801_v55, %v54_v62  ;;  %v145_v15 = vrot.slane %v4809_v57, %v54_v62  ;;  %v4183_v54 = vld [vmem:[%s6049_s6 + $0x52c] ss:$20 sps:$4 sm:$0xff]  }
  0x33   :  { %2915 = vmatpush2.bf16.msra.mxu0 %v4125_v8  ;;  %v283_v60 = vcombine.high %v275_v58, %v275_v58  ;;  %v282_v61 = vrot.slane %v268_v59, %v4804_v56  ;;  %v4902_v63 = vpack.c.bf16 %v275_v58, %v275_v58  ;;  %v183_v24 = vcombine.low %v145_v15, %v149_v17  ;;  %v4178_v59 = vld [vmem:[%s6049_s6 + $0x7d0] ss:$20 sps:$4 sm:$0xff]   ;;  %v4190_v15 = vld [vmem:[%s6049_s6 + $0x780] ss:$20 sps:$4 sm:$0xff]  }
  0x34   :  { %2956 = vmatpush2.bf16.msra.mxu1 %v4126_v9  ;;  %2916 = vmatprep.subr.bf16.mxu0 %v4127_v11  ;;  %v4156_v9 = vld [vmem:[%s6049_s6 + $0x874] ss:$20 sps:$4 sm:$0xff]   ;;  %v59_v11 = vrot.slane %v4801_v55, %v58_v0  ;;  %v153_v55 = vrot.slane %v4809_v57, %v62_v1  ;;  %v4165_v57 = vld [vmem:[%s6049_s6 + $0x5a4] ss:$20 sps:$4 sm:$0xff]   ;;  %v4186_v1 = vld [vmem:[%s6049_s6 + $0x7ac] ss:$20 sps:$4 sm:$0xff]  }
  0x35   :  { %2957 = vmatprep.subr.bf16.mxu1 %v4129_v19  ;;  %v4907_v3 = vpack.c.bf16 %v283_v60, %v283_v60  ;;  %v284_v4 = vcombine.high %v282_v61, %v282_v61  ;;  %v4912_v6 = vpack.c.bf16 %v282_v61, %v282_v61  ;;  %v4154_v19 = vld [vmem:[%s6049_s6 + $0x870] ss:$20 sps:$4 sm:$0xff]   ;;  %v191_v32 = vrot.slane %v183_v24, %v4804_v56  ;;  %v4181_v0 = vld [vmem:[%s6049_s6 + $0x528] ss:$20 sps:$4 sm:$0xff]  }
  0x36   :  { %v93_v21 = vcombine.low %v55_v10, %v59_v11  ;;  %v184_v25 = vcombine.low %v153_v55, %v157_v18  ;;  %v4192_v11 = vld [vmem:[%s6049_s6 + $0x784] ss:$20 sps:$4 sm:$0xff]   ;;  %v4198_v17 = vld [vmem:[%s6049_s6 + $0x9dc] ss:$20 sps:$4 sm:$0xff]  }
  0x37   :  { %2917 = vmatpush2.bf16.msra.mxu0 %v4131_v27  ;;  %2922 = vmatprep.mubr.bf16.mxu0 %v4907_v3  ;;  %v4918_v8 = vpack.c.bf16 %v284_v4, %v284_v4  ;;  %v4168_v27 = vld [vmem:[%s6049_s6 + $0x824] ss:$20 sps:$4 sm:$0xff]  }
  0x38   :  { %2958 = vmatpush2.bf16.msra.mxu1 %v4132_v28  ;;  %2918 = vmatprep.subr.bf16.mxu0 %v4133_v30  ;;  %v101_v28 = vrot.slane %v93_v21, %v4804_v56  ;;  %v4163_v30 = vld [vmem:[%s6049_s6 + $0x5a0] ss:$20 sps:$4 sm:$0xff]   ;;  %v198_v33 = vrot.slane %v184_v25, %v4804_v56  ;;  %v4193_v55 = vld [vmem:[%s6049_s6 + $0x758] ss:$20 sps:$4 sm:$0xff]  }
  0x39   :  { %2959 = vmatprep.subr.bf16.mxu1 %v4135_v31  ;;  %2963 = vmatprep.mubr.bf16.mxu1 %v4918_v8  ;;  %v4171_v31 = vld [vmem:[%s6049_s6 + $0x57c] ss:$20 sps:$4 sm:$0xff]  }
  0x3a   :  { %v199_v40 = vcombine.low %v191_v32, %v198_v33  ;;  %v4213_v33 = vld [vmem:[%s6049_s6 + $0x6e4] ss:$20 sps:$4 sm:$0xff]  }
  0x3b   :  { %2919 = vmatpush2.bf16.msra.mxu0 %v4137_v36  ;;  %v109_v36 = vcombine.low %v101_v28, %v108_v29 }
  0x3c   :  { %2960 = vmatpush2.bf16.msra.mxu1 %v4138_v41  ;;  %2920 = vmatprep.subr.bf16.mxu0 %v4139_v42  ;;  %v4172_v41 = vld [vmem:[%s6049_s6 + $0x7f8] ss:$20 sps:$4 sm:$0xff]   ;;  %v4180_v42 = vld [vmem:[%s6049_s6 + $0x7d4] ss:$20 sps:$4 sm:$0xff]  }
  0x3d   :  { %2961 = vmatprep.subr.bf16.mxu1 %v4141_v43  ;;  %v32_v43 = vld [vmem:[%s6052_s0 + $0x8] sm:$0xff] }
  0x3e   :  { %v122_v44 = vmul.f32 %v109_v36, %v32_v43  ;;  %v4220_v43 = vld [vmem:[%s6049_s6 + $0x938] ss:$20 sps:$4 sm:$0xff]  }
  0x3f   :  { %2921 = vmatpush2.bf16.msra.mxu0 %v4143_v48  ;;  %v233_v48 = vld [vmem:[%s6054_s2 + $0x8] sm:$0xff] }
  0x40   :  { %2962 = vmatpush2.bf16.msra.mxu1 %v4144_v50  ;;  %2972 = vmatprep.subr.bf16.mxu0 %v4147_v51  ;;  %v4175_v50 = vld [vmem:[%s6049_s6 + $0x550] ss:$20 sps:$4 sm:$0xff]   ;;  %v221_v51 = vmul.f32 %v218_v45, %v109_v36  ;;  %v236_v52 = vmul.f32 %v233_v48, %v109_v36  ;;  %v212_v58 = vadd.f32 %v199_v40, %v122_v44  ;;  %v4228_v44 = vld [vmem:[%s6049_s6 + $0x914] ss:$20 sps:$4 sm:$0xff]   ;;  %v4231_v48 = vld [vmem:[%s6049_s6 + $0x66c] ss:$20 sps:$4 sm:$0xff]  }
  0x41   :  { %3013 = vmatprep.subr.bf16.mxu1 %v4150_v53  ;;  %v251_v53 = vmul.f32 %v248_v49, %v109_v36  ;;  %v4211_v36 = vld [vmem:[%s6049_s6 + $0x6e0] ss:$20 sps:$4 sm:$0xff]   ;;  %v4223_v45 = vld [vmem:[%s6049_s6 + $0x690] ss:$20 sps:$4 sm:$0xff]  }
  0x42   :  { %2923 = vmatmul.mubr.bf16.vlgmr.msra.gmra.mxu0 %v4902_v63  ;;  %v224_v60 = vadd.f32 %v221_v51, %v199_v40  ;;  %v239_v61 = vadd.f32 %v236_v52, %v199_v40  ;;  %v215_v2 = vmax.f32 %v212_v58, 0.0  ;;  %v4226_v49 = vld [vmem:[%s6049_s6 + $0x910] ss:$20 sps:$4 sm:$0xff]   ;;  %v4229_v51 = vld [vmem:[%s6049_s6 + $0x668] ss:$20 sps:$4 sm:$0xff]  }
  0x43   :  { %2973 = vmatpush1.bf16.msra.mxu0 %v4145_v5  ;;  %2964 = vmatmul.mubr.bf16.vlgmr.msra.gmra.mxu1 %v4912_v6  ;;  %v254_v62 = vadd.f32 %v251_v53, %v199_v40  ;;  %v4222_v40 = vld [vmem:[%s6049_s6 + $0x93c] ss:$20 sps:$4 sm:$0xff]   ;;  %v4237_v52 = vld [vmem:[%s6049_s6 + $0x644] ss:$20 sps:$4 sm:$0xff]   ;;  %v4235_v58 = vld [vmem:[%s6049_s6 + $0x640] ss:$20 sps:$4 sm:$0xff]  }
  0x44   :  { %2974 = vmatprep.subr.bf16.mxu0 %v4153_v7  ;;  %3014 = vmatpush1.bf16.msra.mxu1 %v4148_v39  ;;  %v227_v4 = vmax.f32 %v224_v60, 0.0  ;;  %v242_v5 = vmax.f32 %v239_v61, 0.0  ;;  %v4189_v7 = vld [vmem:[%s6049_s6 + $0x504] ss:$20 sps:$4 sm:$0xff]   ;;  %v4184_v39 = vld [vmem:[%s6049_s6 + $0x7a8] ss:$20 sps:$4 sm:$0xff]  }
  0x45   :  { %3015 = vmatprep.subr.bf16.mxu1 %v4156_v9  ;;  %v257_v10 = vmax.f32 %v254_v62, 0.0  ;;  %v4232_v53 = vld [vmem:[%s6049_s6 + $0x8e8] ss:$20 sps:$4 sm:$0xff]   ;;  %v4238_v60 = vld [vmem:[%s6049_s6 + $0x8c0] ss:$20 sps:$4 sm:$0xff]  }
  0x46   :  { %v230_v9 = vadd.f32 %v227_v4, %v215_v2  ;;  %v28_v61 = vld [vmem:[%s6050_s4 + $0x8] sm:$0x3] }
  0x47   :  { %2975 = vmatpush1.bf16.msra.mxu0 %v4151_v14  ;;  %v4195_v14 = vld [vmem:[%s6049_s6 + $0x75c] ss:$20 sps:$4 sm:$0xff]   ;;  %v30_v2 = vld [vmem:[%s6051_s5 + $0x8] sm:$0x3]  ;;  %v71_v4 = vrot.slane %v28_v61, %v4779_v46 }
  0x48   :  { %2976 = vmatprep.subr.bf16.mxu0 %v4159_v16  ;;  %3016 = vmatpush1.bf16.msra.mxu1 %v4154_v19  ;;  %v245_v13 = vadd.f32 %v242_v5, %v230_v9  ;;  %v4201_v19 = vld [vmem:[%s6049_s6 + $0x734] ss:$20 sps:$4 sm:$0xff]   ;;  %v75_v5 = vrot.slane %v28_v61, %v4782_v47  ;;  %v161_v9 = vrot.slane %v30_v2, %v4779_v46  ;;  %v219_v46 = vld [vmem:[%s6053_s1 + $0x10] sm:$0xf]  ;;  %v4274_v61 = vld [vmem:[%s6049_s6 + $0x58] ss:$20 sps:$4 sm:$0xff]  }
  0x49   :  { %3017 = vmatprep.subr.bf16.mxu1 %v4162_v20  ;;  %v4196_v20 = vld [vmem:[%s6049_s6 + $0x9d8] ss:$20 sps:$4 sm:$0xff]  }
  0x4a   :  { %v260_v16 = vadd.f32 %v257_v10, %v245_v13  ;;  %v165_v10 = vrot.slane %v30_v2, %v4782_v47  ;;  %v33_v13 = vld [vmem:[%s6052_s0 + $0x10] sm:$0xf]  ;;  %v4277_v2 = vld [vmem:[%s6049_s6 + $0xa28] ss:$20 sps:$4 sm:$0xff]  }
  0x4b   :  { %2977 = vmatpush1.bf16.msra.mxu0 %v4157_v23  ;;  %v4204_v23 = vld [vmem:[%s6049_s6 + $0x9b4] ss:$20 sps:$4 sm:$0xff]  }
  0x4c   :  { %2978 = vmatprep.subr.bf16.mxu0 %v4165_v57  ;;  %3018 = vmatpush1.bf16.msra.mxu1 %v4160_v26  ;;  %v263_v18 = vmul.f32 0.25, %v260_v16  ;;  %v4199_v57 = vld [vmem:[%s6049_s6 + $0x730] ss:$20 sps:$4 sm:$0xff]   ;;  %v4207_v26 = vld [vmem:[%s6049_s6 + $0x70c] ss:$20 sps:$4 sm:$0xff]   ;;  %v200_v47 = vcombine.low %v161_v9, %v165_v10 }
  0x4d   :  { %3019 = vmatprep.subr.bf16.mxu1 %v4168_v27  ;;  %v4202_v27 = vld [vmem:[%s6049_s6 + $0x9b0] ss:$20 sps:$4 sm:$0xff]   ;;  %v4286_v10 = vld [vmem:[%s6049_s6 + $0x8] ss:$20 sps:$4 sm:$0xff]  }
  0x4e   :  { %v5047_v21 = vrot.slane %v263_v18, %v4804_v56  ;;  %v285_v22 = vcombine.high %v263_v18, %v263_v18  ;;  %v207_v18 = vrot.slane %v200_v47, %v4804_v56  ;;  %v4291_v9 = vld [vmem:[%s6049_s6 + $0xc5c] ss:$20 sps:$4 sm:$0xff]  }
  0x4f   :  { %2979 = vmatpush1.bf16.msra.mxu0 %v4163_v30  ;;  %v4210_v30 = vld [vmem:[%s6049_s6 + $0x98c] ss:$20 sps:$4 sm:$0xff]   ;;  %v4300_v47 = vld [vmem:[%s6049_s6 + $0x23c] ss:$20 sps:$4 sm:$0xff]  }
  0x50   :  { %2980 = vmatprep.subr.bf16.mxu0 %v4171_v31  ;;  %3020 = vmatpush1.bf16.msra.mxu1 %v4166_v34  ;;  %v300_v24 = vcombine.high %v5047_v21, %v5047_v21  ;;  %v5058_v25 = vrot.slane %v285_v22, %v4804_v56  ;;  %v4205_v31 = vld [vmem:[%s6049_s6 + $0x708] ss:$20 sps:$4 sm:$0xff]   ;;  %v5151_v62 = vpack.c.bf16 %v5047_v21, %v5047_v21 }
  0x51   :  { %3021 = vmatprep.subr.bf16.mxu1 %v4174_v35  ;;  %v4208_v34 = vld [vmem:[%s6049_s6 + $0x988] ss:$20 sps:$4 sm:$0xff]   ;;  %v4216_v35 = vld [vmem:[%s6049_s6 + $0x964] ss:$20 sps:$4 sm:$0xff]  }
  0x52   :  { %v5066_v28 = vpack.c.bf16 %v300_v24, %v300_v24  ;;  %v301_v29 = vcombine.high %v5058_v25, %v5058_v25  ;;  %v4258_v24 = vld [vmem:[%s6049_s6 + $0xd4] ss:$20 sps:$4 sm:$0xff]  }
  0x53   :  { %2981 = vmatpush1.bf16.msra.mxu0 %v4169_v37  ;;  %v4219_v37 = vld [vmem:[%s6049_s6 + $0x6bc] ss:$20 sps:$4 sm:$0xff]  }
  0x54   :  { %2982 = vmatprep.subr.bf16.mxu0 %v4177_v38  ;;  %3022 = vmatpush1.bf16.msra.mxu1 %v4172_v41  ;;  %v5077_v32 = vpack.c.bf16 %v301_v29, %v301_v29  ;;  %v4214_v38 = vld [vmem:[%s6049_s6 + $0x960] ss:$20 sps:$4 sm:$0xff]   ;;  %v4217_v41 = vld [vmem:[%s6049_s6 + $0x6b8] ss:$20 sps:$4 sm:$0xff]   ;;  %v4253_v29 = vld [vmem:[%s6049_s6 + $0xac8] ss:$20 sps:$4 sm:$0xff]  }
  0x55   :  { %3023 = vmatprep.subr.bf16.mxu1 %v4180_v42  ;;  %3004 = vmatprep.mubr.bf16.mxu0 %v5066_v28  ;;  %v4225_v42 = vld [vmem:[%s6049_s6 + $0x694] ss:$20 sps:$4 sm:$0xff]  }
  0x56   :  { %3045 = vmatprep.mubr.bf16.mxu1 %v5077_v32 }
  0x57   :  { %2983 = vmatpush1.bf16.msra.mxu0 %v4175_v50  ;;  %v4234_v50 = vld [vmem:[%s6049_s6 + $0x8ec] ss:$20 sps:$4 sm:$0xff]  }
  0x58   :  { %2984 = vmatprep.subr.bf16.mxu0 %v4183_v54  ;;  %3024 = vmatpush1.bf16.msra.mxu1 %v4178_v59  ;;  %v4240_v54 = vld [vmem:[%s6049_s6 + $0x8c4] ss:$20 sps:$4 sm:$0xff]   ;;  %v4243_v59 = vld [vmem:[%s6049_s6 + $0xb1c] ss:$20 sps:$4 sm:$0xff]  }
  0x59   :  { %3025 = vmatprep.subr.bf16.mxu1 %v4186_v1  ;;  %v4246_v1 = vld [vmem:[%s6049_s6 + $0x124] ss:$20 sps:$4 sm:$0xff]  }
  0x5b   :  { %2985 = vmatpush1.bf16.msra.mxu0 %v4181_v0  ;;  %v4241_v0 = vld [vmem:[%s6049_s6 + $0xb18] ss:$20 sps:$4 sm:$0xff]  }
  0x5c   :  { %2986 = vmatprep.subr.bf16.mxu0 %v4189_v7  ;;  %3026 = vmatpush1.bf16.msra.mxu1 %v4184_v39  ;;  %v4244_v7 = vld [vmem:[%s6049_s6 + $0x120] ss:$20 sps:$4 sm:$0xff]  }
  0x5d   :  { %3027 = vmatprep.subr.bf16.mxu1 %v4192_v11  ;;  %v4249_v39 = vld [vmem:[%s6049_s6 + $0xaf4] ss:$20 sps:$4 sm:$0xff]   ;;  %v5174_v11 = vpack.c.bf16 %v5058_v25, %v5058_v25 }
  0x5f   :  { %2987 = vmatpush1.bf16.msra.mxu0 %v4187_v12  ;;  %v4252_v12 = vld [vmem:[%s6049_s6 + $0xfc] ss:$20 sps:$4 sm:$0xff]  }
  0x60   :  { %2988 = vmatprep.subr.bf16.mxu0 %v4195_v14  ;;  %3028 = vmatpush1.bf16.msra.mxu1 %v4190_v15  ;;  %v110_v14 = vcombine.low %v71_v4, %v75_v5  ;;  %v234_v15 = vld [vmem:[%s6054_s2 + $0x10] sm:$0xf]  ;;  %v4285_v4 = vld [vmem:[%s6049_s6 + $0xa04] ss:$20 sps:$4 sm:$0xff]  }
  0x61   :  { %3029 = vmatprep.subr.bf16.mxu1 %v4198_v17  ;;  %v249_v17 = vld [vmem:[%s6055_s3 + $0x10] sm:$0xf] }
  0x62   :  { %v117_v16 = vrot.slane %v110_v14, %v4804_v56  ;;  %v4280_v5 = vld [vmem:[%s6049_s6 + $0x30] ss:$20 sps:$4 sm:$0xff]   ;;  %v4297_v14 = vld [vmem:[%s6049_s6 + $0xc34] ss:$20 sps:$4 sm:$0xff]  }
  0x63   :  { %2989 = vmatpush2.bf16.msra.mxu0 %v4193_v55  ;;  %v4247_v55 = vld [vmem:[%s6049_s6 + $0xaf0] ss:$20 sps:$4 sm:$0xff]  }
  0x64   :  { %2990 = vmatprep.subr.bf16.mxu0 %v4201_v19  ;;  %3030 = vmatpush2.bf16.msra.mxu1 %v4196_v20  ;;  %v4255_v19 = vld [vmem:[%s6049_s6 + $0xacc] ss:$20 sps:$4 sm:$0xff]   ;;  %v123_v20 = vmul.f32 %v117_v16, %v33_v13  ;;  %v222_v21 = vmul.f32 %v219_v46, %v117_v16  ;;  %v237_v22 = vmul.f32 %v234_v15, %v117_v16  ;;  %v4295_v15 = vld [vmem:[%s6049_s6 + $0xc30] ss:$20 sps:$4 sm:$0xff]  }
  0x65   :  { %3031 = vmatprep.subr.bf16.mxu1 %v4204_v23  ;;  %v4250_v23 = vld [vmem:[%s6049_s6 + $0xf8] ss:$20 sps:$4 sm:$0xff]   ;;  %v4292_v46 = vld [vmem:[%s6049_s6 + $0x260] ss:$20 sps:$4 sm:$0xff]  }
  0x66   :  { %v213_v25 = vadd.f32 %v207_v18, %v123_v20  ;;  %v4289_v13 = vld [vmem:[%s6049_s6 + $0xc58] ss:$20 sps:$4 sm:$0xff]   ;;  %v4304_v20 = vld [vmem:[%s6049_s6 + $0x210] ss:$20 sps:$4 sm:$0xff]  }
  0x67   :  { %2991 = vmatpush2.bf16.msra.mxu0 %v4199_v57  ;;  %v252_v57 = vmul.f32 %v249_v17, %v117_v16  ;;  %v4303_v16 = vld [vmem:[%s6049_s6 + $0xc0c] ss:$20 sps:$4 sm:$0xff]  }
  0x68   :  { %2992 = vmatprep.subr.bf16.mxu0 %v4207_v26  ;;  %3032 = vmatpush2.bf16.msra.mxu1 %v4202_v27  ;;  %v225_v26 = vadd.f32 %v222_v21, %v207_v18  ;;  %v240_v27 = vadd.f32 %v237_v22, %v207_v18  ;;  %v4298_v17 = vld [vmem:[%s6049_s6 + $0x238] ss:$20 sps:$4 sm:$0xff]   ;;  %v4307_v22 = vld [vmem:[%s6049_s6 + $0xbe0] ss:$20 sps:$4 sm:$0xff]  }
  0x69   :  { %3033 = vmatprep.subr.bf16.mxu1 %v4210_v30  ;;  %v255_v30 = vadd.f32 %v252_v57, %v207_v18  ;;  %v4301_v18 = vld [vmem:[%s6049_s6 + $0xc08] ss:$20 sps:$4 sm:$0xff]   ;;  %v4312_v21 = vld [vmem:[%s6049_s6 + $0x1ec] ss:$20 sps:$4 sm:$0xff]  }
  0x6a   :  { %v4310_v57 = vld [vmem:[%s6049_s6 + $0x1e8] ss:$20 sps:$4 sm:$0xff]  }
  0x6b   :  { %2993 = vmatpush2.bf16.msra.mxu0 %v4205_v31  ;;  %v4261_v31 = vld [vmem:[%s6049_s6 + $0xaa4] ss:$20 sps:$4 sm:$0xff]  }
  0x6c   :  { %2994 = vmatprep.subr.bf16.mxu0 %v4213_v33  ;;  %3034 = vmatpush2.bf16.msra.mxu1 %v4208_v34  ;;  %v216_v33 = vmax.f32 %v213_v25, 0.0  ;;  %v228_v34 = vmax.f32 %v225_v26, 0.0  ;;  %v4313_v25 = vld [vmem:[%s6049_s6 + $0xbb8] ss:$20 sps:$4 sm:$0xff]   ;;  %v4321_v26 = vld [vmem:[%s6049_s6 + $0xb94] ss:$20 sps:$4 sm:$0xff]  }
  0x6d   :  { %3035 = vmatprep.subr.bf16.mxu1 %v4216_v35  ;;  %v243_v35 = vmax.f32 %v240_v27, 0.0  ;;  %v4316_v27 = vld [vmem:[%s6049_s6 + $0x1c0] ss:$20 sps:$4 sm:$0xff]  }
  0x6f   :  { %2995 = vmatpush2.bf16.msra.mxu0 %v4211_v36  ;;  %v4256_v36 = vld [vmem:[%s6049_s6 + $0xd0] ss:$20 sps:$4 sm:$0xff]  }
  0x70   :  { %2996 = vmatprep.subr.bf16.mxu0 %v4219_v37  ;;  %3036 = vmatpush2.bf16.msra.mxu1 %v4214_v38  ;;  %v4264_v37 = vld [vmem:[%s6049_s6 + $0xac] ss:$20 sps:$4 sm:$0xff]   ;;  %v231_v38 = vadd.f32 %v228_v34, %v216_v33  ;;  %v4330_v34 = vld [vmem:[%s6049_s6 + $0x174] ss:$20 sps:$4 sm:$0xff]  }
  0x71   :  { %3037 = vmatprep.subr.bf16.mxu1 %v4222_v40  ;;  %v258_v40 = vmax.f32 %v255_v30, 0.0  ;;  %v4319_v30 = vld [vmem:[%s6049_s6 + $0xb90] ss:$20 sps:$4 sm:$0xff]   ;;  %v4322_v33 = vld [vmem:[%s6049_s6 + $0x198] ss:$20 sps:$4 sm:$0xff]  }
  0x73   :  { %2997 = vmatpush2.bf16.msra.mxu0 %v4217_v41  ;;  %v4259_v41 = vld [vmem:[%s6049_s6 + $0xaa0] ss:$20 sps:$4 sm:$0xff]  }
  0x74   :  { %2998 = vmatprep.subr.bf16.mxu0 %v4225_v42  ;;  %3038 = vmatpush2.bf16.msra.mxu1 %v4220_v43  ;;  %v4267_v42 = vld [vmem:[%s6049_s6 + $0xa7c] ss:$20 sps:$4 sm:$0xff]   ;;  %v246_v43 = vadd.f32 %v243_v35, %v231_v38  ;;  %v4336_v38 = vld [vmem:[%s6049_s6 + $0x14c] ss:$20 sps:$4 sm:$0xff]  }
  0x75   :  { %3039 = vmatprep.subr.bf16.mxu1 %v4228_v44  ;;  %v4262_v44 = vld [vmem:[%s6049_s6 + $0xa8] ss:$20 sps:$4 sm:$0xff]  }
  0x76   :  { %v4325_v35 = vld [vmem:[%s6049_s6 + $0xb68] ss:$20 sps:$4 sm:$0xff]  }
  0x77   :  { %2999 = vmatpush2.bf16.msra.mxu0 %v4223_v45  ;;  %v4270_v45 = vld [vmem:[%s6049_s6 + $0x84] ss:$20 sps:$4 sm:$0xff]  }
  0x78   :  { %3000 = vmatprep.subr.bf16.mxu0 %v4231_v48  ;;  %3040 = vmatpush2.bf16.msra.mxu1 %v4226_v49  ;;  %v261_v48 = vadd.f32 %v258_v40, %v246_v43  ;;  %v4265_v49 = vld [vmem:[%s6049_s6 + $0xa78] ss:$20 sps:$4 sm:$0xff]   ;;  %v4331_v40 = vld [vmem:[%s6049_s6 + $0xb40] ss:$20 sps:$4 sm:$0xff]  }
  0x79   :  { %3041 = vmatprep.subr.bf16.mxu1 %v4234_v50  ;;  %v4273_v50 = vld [vmem:[%s6049_s6 + $0xa54] ss:$20 sps:$4 sm:$0xff]  }
  0x7b   :  { %3001 = vmatpush2.bf16.msra.mxu0 %v4229_v51  ;;  %v264_v51 = vmul.f32 0.25, %v261_v48  ;;  %v4345_v48 = vld [vmem:[%s6049_s6 + $0x37c] ss:$20 sps:$4 sm:$0xff]  }
  0x7c   :  { %3002 = vmatprep.subr.bf16.mxu0 %v4237_v52  ;;  %3042 = vmatpush2.bf16.msra.mxu1 %v4232_v53  ;;  %v4268_v52 = vld [vmem:[%s6049_s6 + $0x80] ss:$20 sps:$4 sm:$0xff]   ;;  %v4276_v53 = vld [vmem:[%s6049_s6 + $0x5c] ss:$20 sps:$4 sm:$0xff]  }
  0x7d   :  { %3043 = vmatprep.subr.bf16.mxu1 %v4240_v54  ;;  %v5245_v54 = vrot.slane %v264_v51, %v4804_v56  ;;  %v4343_v51 = vld [vmem:[%s6049_s6 + $0x378] ss:$20 sps:$4 sm:$0xff]  }
  0x7f   :  { %3003 = vmatpush2.bf16.msra.mxu0 %v4235_v58  ;;  %v4271_v58 = vld [vmem:[%s6049_s6 + $0xa50] ss:$20 sps:$4 sm:$0xff]   ;;  %v5383_v43 = vpack.c.bf16 %v5245_v54, %v5245_v54 }
  0x80   :  { %3054 = vmatprep.subr.bf16.mxu0 %v4243_v59  ;;  %3044 = vmatpush2.bf16.msra.mxu1 %v4238_v60  ;;  %v4279_v59 = vld [vmem:[%s6049_s6 + $0xa2c] ss:$20 sps:$4 sm:$0xff]   ;;  %v309_v60 = vcombine.high %v5245_v54, %v5245_v54  ;;  %v4354_v54 = vld [vmem:[%s6049_s6 + $0x5d4] ss:$20 sps:$4 sm:$0xff]  }
  0x81   :  { %3095 = vmatprep.subr.bf16.mxu1 %v4246_v1 }
  0x82   :  { %3005 = vmatmul.mubr.bf16.vlgmr.msra.gmra.mxu0 %v5151_v62  ;;  %v5261_v1 = vpack.c.bf16 %v309_v60, %v309_v60  ;;  %v4352_v60 = vld [vmem:[%s6049_s6 + $0x5d0] ss:$20 sps:$4 sm:$0xff]  }
  0x83   :  { %3055 = vmatpush1.bf16.msra.mxu0 %v4241_v0  ;;  %3046 = vmatmul.mubr.bf16.vlgmr.msra.gmra.mxu1 %v5174_v11  ;;  %v4282_v0 = vld [vmem:[%s6049_s6 + $0x34] ss:$20 sps:$4 sm:$0xff]  }
  0x84   :  { %3056 = vmatprep.subr.bf16.mxu0 %v4249_v39  ;;  %3096 = vmatpush1.bf16.msra.mxu1 %v4244_v7  ;;  %v4288_v7 = vld [vmem:[%s6049_s6 + $0xc] ss:$20 sps:$4 sm:$0xff]  }
  0x85   :  { %3127 = vmatprep.mubr.bf16.mxu1 %v4907_v3  ;;  %3097 = vmatprep.subr.bf16.mxu1 %v4252_v12  ;;  %v4283_v39 = vld [vmem:[%s6049_s6 + $0xa00] ss:$20 sps:$4 sm:$0xff]   ;;  %v4294_v12 = vld [vmem:[%s6049_s6 + $0x264] ss:$20 sps:$4 sm:$0xff]  }
  0x86   :  { %3086 = vmatprep.mubr.bf16.mxu0 %v5261_v1 }
  0x87   :  { %3057 = vmatpush1.bf16.msra.mxu0 %v4247_v55  ;;  %v4306_v55 = vld [vmem:[%s6049_s6 + $0x214] ss:$20 sps:$4 sm:$0xff]  }
  0x88   :  { %3058 = vmatprep.subr.bf16.mxu0 %v4255_v19  ;;  %3098 = vmatpush1.bf16.msra.mxu1 %v4250_v23  ;;  %v4309_v19 = vld [vmem:[%s6049_s6 + $0xbe4] ss:$20 sps:$4 sm:$0xff]   ;;  %v4315_v23 = vld [vmem:[%s6049_s6 + $0xbbc] ss:$20 sps:$4 sm:$0xff]  }
  0x89   :  { %3099 = vmatprep.subr.bf16.mxu1 %v4258_v24  ;;  %v4318_v24 = vld [vmem:[%s6049_s6 + $0x1c4] ss:$20 sps:$4 sm:$0xff]  }
  0x8b   :  { %3059 = vmatpush1.bf16.msra.mxu0 %v4253_v29  ;;  %v4324_v29 = vld [vmem:[%s6049_s6 + $0x19c] ss:$20 sps:$4 sm:$0xff]  }
  0x8c   :  { %3060 = vmatprep.subr.bf16.mxu0 %v4261_v31  ;;  %3100 = vmatpush1.bf16.msra.mxu1 %v4256_v36  ;;  %v4327_v31 = vld [vmem:[%s6049_s6 + $0xb6c] ss:$20 sps:$4 sm:$0xff]   ;;  %v4333_v36 = vld [vmem:[%s6049_s6 + $0xb44] ss:$20 sps:$4 sm:$0xff]  }
  0x8d   :  { %3101 = vmatprep.subr.bf16.mxu1 %v4264_v37  ;;  %v4328_v37 = vld [vmem:[%s6049_s6 + $0x170] ss:$20 sps:$4 sm:$0xff]  }
  0x8f   :  { %3061 = vmatpush1.bf16.msra.mxu0 %v4259_v41  ;;  %v4339_v41 = vld [vmem:[%s6049_s6 + $0x3a4] ss:$20 sps:$4 sm:$0xff]  }
  0x90   :  { %3062 = vmatprep.subr.bf16.mxu0 %v4267_v42  ;;  %3102 = vmatpush1.bf16.msra.mxu1 %v4262_v44  ;;  %v4334_v42 = vld [vmem:[%s6049_s6 + $0x148] ss:$20 sps:$4 sm:$0xff]   ;;  %v4342_v44 = vld [vmem:[%s6049_s6 + $0x624] ss:$20 sps:$4 sm:$0xff]  }
  0x91   :  { %3103 = vmatprep.subr.bf16.mxu1 %v4270_v45  ;;  %v4337_v45 = vld [vmem:[%s6049_s6 + $0x3a0] ss:$20 sps:$4 sm:$0xff]  }
  0x93   :  { %3063 = vmatpush1.bf16.msra.mxu0 %v4265_v49  ;;  %v4340_v49 = vld [vmem:[%s6049_s6 + $0x620] ss:$20 sps:$4 sm:$0xff]  }
  0x94   :  { %3064 = vmatprep.subr.bf16.mxu0 %v4273_v50  ;;  %3104 = vmatpush1.bf16.msra.mxu1 %v4268_v52  ;;  %v4348_v50 = vld [vmem:[%s6049_s6 + $0x5fc] ss:$20 sps:$4 sm:$0xff]   ;;  %v4351_v52 = vld [vmem:[%s6049_s6 + $0x354] ss:$20 sps:$4 sm:$0xff]  }
  0x95   :  { %3105 = vmatprep.subr.bf16.mxu1 %v4276_v53  ;;  %v4346_v53 = vld [vmem:[%s6049_s6 + $0x5f8] ss:$20 sps:$4 sm:$0xff]  }
  0x97   :  { %3065 = vmatpush1.bf16.msra.mxu0 %v4271_v58  ;;  %v4349_v58 = vld [vmem:[%s6049_s6 + $0x350] ss:$20 sps:$4 sm:$0xff]  }
  0x98   :  { %3066 = vmatprep.subr.bf16.mxu0 %v4279_v59  ;;  %3106 = vmatpush1.bf16.msra.mxu1 %v4274_v61  ;;  %v4357_v59 = vld [vmem:[%s6049_s6 + $0x32c] ss:$20 sps:$4 sm:$0xff]  }
  0x99   :  { %3107 = vmatprep.subr.bf16.mxu1 %v4282_v0  ;;  %v4360_v61 = vld [vmem:[%s6049_s6 + $0x5ac] ss:$20 sps:$4 sm:$0xff]   ;;  %v4355_v0 = vld [vmem:[%s6049_s6 + $0x328] ss:$20 sps:$4 sm:$0xff]  }
  0x9b   :  { %3067 = vmatpush1.bf16.msra.mxu0 %v4277_v2  ;;  %v4363_v2 = vld [vmem:[%s6049_s6 + $0x304] ss:$20 sps:$4 sm:$0xff]  }
  0x9c   :  { %3068 = vmatprep.subr.bf16.mxu0 %v4285_v4  ;;  %3108 = vmatpush1.bf16.msra.mxu1 %v4280_v5  ;;  %v4358_v4 = vld [vmem:[%s6049_s6 + $0x5a8] ss:$20 sps:$4 sm:$0xff]   ;;  %v4366_v5 = vld [vmem:[%s6049_s6 + $0x584] ss:$20 sps:$4 sm:$0xff]  }
  0x9d   :  { %3109 = vmatprep.subr.bf16.mxu1 %v4288_v7  ;;  %v4361_v7 = vld [vmem:[%s6049_s6 + $0x300] ss:$20 sps:$4 sm:$0xff]  }
  0x9f   :  { %3069 = vmatpush1.bf16.msra.mxu0 %v4283_v39  ;;  %v4369_v39 = vld [vmem:[%s6049_s6 + $0x2dc] ss:$20 sps:$4 sm:$0xff]  }
  0xa0   :  { %3070 = vmatprep.subr.bf16.mxu0 %v4291_v9  ;;  %3110 = vmatpush1.bf16.msra.mxu1 %v4286_v10  ;;  %v4364_v9 = vld [vmem:[%s6049_s6 + $0x580] ss:$20 sps:$4 sm:$0xff]   ;;  %v4372_v10 = vld [vmem:[%s6049_s6 + $0x55c] ss:$20 sps:$4 sm:$0xff]  }
  0xa1   :  { %3111 = vmatprep.subr.bf16.mxu1 %v4294_v12  ;;  %v4367_v12 = vld [vmem:[%s6049_s6 + $0x2d8] ss:$20 sps:$4 sm:$0xff]  }
  0xa3   :  { %3071 = vmatpush2.bf16.msra.mxu0 %v4289_v13  ;;  %v4375_v13 = vld [vmem:[%s6049_s6 + $0x2b4] ss:$20 sps:$4 sm:$0xff]  }
  0xa4   :  { %3072 = vmatprep.subr.bf16.mxu0 %v4297_v14  ;;  %3112 = vmatpush2.bf16.msra.mxu1 %v4292_v46  ;;  %v4370_v14 = vld [vmem:[%s6049_s6 + $0x558] ss:$20 sps:$4 sm:$0xff]   ;;  %v4378_v46 = vld [vmem:[%s6049_s6 + $0x534] ss:$20 sps:$4 sm:$0xff]  }
  0xa5   :  { %3113 = vmatprep.subr.bf16.mxu1 %v4300_v47  ;;  %v4373_v47 = vld [vmem:[%s6049_s6 + $0x2b0] ss:$20 sps:$4 sm:$0xff]  }
  0xa7   :  { %3073 = vmatpush2.bf16.msra.mxu0 %v4295_v15  ;;  %v4381_v15 = vld [vmem:[%s6049_s6 + $0x28c] ss:$20 sps:$4 sm:$0xff]  }
  0xa8   :  { %3074 = vmatprep.subr.bf16.mxu0 %v4303_v16  ;;  %3114 = vmatpush2.bf16.msra.mxu1 %v4298_v17  ;;  %v4376_v16 = vld [vmem:[%s6049_s6 + $0x530] ss:$20 sps:$4 sm:$0xff]   ;;  %v4384_v17 = vld [vmem:[%s6049_s6 + $0x50c] ss:$20 sps:$4 sm:$0xff]  }
  0xa9   :  { %3115 = vmatprep.subr.bf16.mxu1 %v4306_v55  ;;  %v4379_v55 = vld [vmem:[%s6049_s6 + $0x288] ss:$20 sps:$4 sm:$0xff]  }
  0xab   :  { %3075 = vmatpush2.bf16.msra.mxu0 %v4301_v18  ;;  %v4387_v18 = vld [vmem:[%s6049_s6 + $0x4e4] ss:$20 sps:$4 sm:$0xff]  }
  0xac   :  { %3076 = vmatprep.subr.bf16.mxu0 %v4309_v19  ;;  %3116 = vmatpush2.bf16.msra.mxu1 %v4304_v20  ;;  %v4382_v19 = vld [vmem:[%s6049_s6 + $0x508] ss:$20 sps:$4 sm:$0xff]   ;;  %v4390_v20 = vld [vmem:[%s6049_s6 + $0x764] ss:$20 sps:$4 sm:$0xff]  }
  0xad   :  { %3117 = vmatprep.subr.bf16.mxu1 %v4312_v21  ;;  %v4385_v21 = vld [vmem:[%s6049_s6 + $0x4e0] ss:$20 sps:$4 sm:$0xff]  }
  0xaf   :  { %3077 = vmatpush2.bf16.msra.mxu0 %v4307_v22  ;;  %v4393_v22 = vld [vmem:[%s6049_s6 + $0x4bc] ss:$20 sps:$4 sm:$0xff]  }
  0xb0   :  { %3078 = vmatprep.subr.bf16.mxu0 %v4315_v23  ;;  %3118 = vmatpush2.bf16.msra.mxu1 %v4310_v57  ;;  %v4388_v23 = vld [vmem:[%s6049_s6 + $0x760] ss:$20 sps:$4 sm:$0xff]   ;;  %v4396_v57 = vld [vmem:[%s6049_s6 + $0x73c] ss:$20 sps:$4 sm:$0xff]  }
  0xb1   :  { %3119 = vmatprep.subr.bf16.mxu1 %v4318_v24  ;;  %v4391_v24 = vld [vmem:[%s6049_s6 + $0x4b8] ss:$20 sps:$4 sm:$0xff]  }
  0xb3   :  { %3079 = vmatpush2.bf16.msra.mxu0 %v4313_v25  ;;  %v4399_v25 = vld [vmem:[%s6049_s6 + $0x494] ss:$20 sps:$4 sm:$0xff]  }
  0xb4   :  { %3080 = vmatprep.subr.bf16.mxu0 %v4321_v26  ;;  %3120 = vmatpush2.bf16.msra.mxu1 %v4316_v27  ;;  %v4394_v26 = vld [vmem:[%s6049_s6 + $0x738] ss:$20 sps:$4 sm:$0xff]   ;;  %v4402_v27 = vld [vmem:[%s6049_s6 + $0x714] ss:$20 sps:$4 sm:$0xff]  }
  0xb5   :  { %3121 = vmatprep.subr.bf16.mxu1 %v4324_v29  ;;  %v4397_v29 = vld [vmem:[%s6049_s6 + $0x490] ss:$20 sps:$4 sm:$0xff]  }
  0xb7   :  { %3081 = vmatpush2.bf16.msra.mxu0 %v4319_v30  ;;  %v4405_v30 = vld [vmem:[%s6049_s6 + $0x46c] ss:$20 sps:$4 sm:$0xff]  }
  0xb8   :  { %3082 = vmatprep.subr.bf16.mxu0 %v4327_v31  ;;  %3122 = vmatpush2.bf16.msra.mxu1 %v4322_v33  ;;  %v4400_v31 = vld [vmem:[%s6049_s6 + $0x710] ss:$20 sps:$4 sm:$0xff]   ;;  %v4408_v33 = vld [vmem:[%s6049_s6 + $0x6ec] ss:$20 sps:$4 sm:$0xff]  }
  0xb9   :  { %3123 = vmatprep.subr.bf16.mxu1 %v4330_v34  ;;  %v4403_v34 = vld [vmem:[%s6049_s6 + $0x468] ss:$20 sps:$4 sm:$0xff]  }
  0xbb   :  { %3083 = vmatpush2.bf16.msra.mxu0 %v4325_v35  ;;  %v4411_v35 = vld [vmem:[%s6049_s6 + $0x444] ss:$20 sps:$4 sm:$0xff]  }
  0xbc   :  { %3084 = vmatprep.subr.bf16.mxu0 %v4333_v36  ;;  %3124 = vmatpush2.bf16.msra.mxu1 %v4328_v37  ;;  %v4406_v36 = vld [vmem:[%s6049_s6 + $0x6e8] ss:$20 sps:$4 sm:$0xff]   ;;  %v4414_v37 = vld [vmem:[%s6049_s6 + $0x6c4] ss:$20 sps:$4 sm:$0xff]  }
  0xbd   :  { %3125 = vmatprep.subr.bf16.mxu1 %v4336_v38  ;;  %v4409_v38 = vld [vmem:[%s6049_s6 + $0x440] ss:$20 sps:$4 sm:$0xff]  }
  0xbf   :  { %3085 = vmatpush2.bf16.msra.mxu0 %v4331_v40  ;;  %v4417_v40 = vld [vmem:[%s6049_s6 + $0x41c] ss:$20 sps:$4 sm:$0xff]  }
  0xc0   :  { %3136 = vmatprep.subr.bf16.mxu0 %v4339_v41  ;;  %3126 = vmatpush2.bf16.msra.mxu1 %v4334_v42  ;;  %v4412_v41 = vld [vmem:[%s6049_s6 + $0x6c0] ss:$20 sps:$4 sm:$0xff]   ;;  %v4420_v42 = vld [vmem:[%s6049_s6 + $0x69c] ss:$20 sps:$4 sm:$0xff]  }
  0xc1   :  { %3177 = vmatprep.subr.bf16.mxu1 %v4342_v44  ;;  %v4415_v44 = vld [vmem:[%s6049_s6 + $0x418] ss:$20 sps:$4 sm:$0xff]  }
  0xc2   :  { %3087 = vmatmul.mubr.bf16.vlgmr.msra.gmra.mxu0 %v5383_v43 }
  0xc3   :  { %3137 = vmatpush1.bf16.msra.mxu0 %v4337_v45  ;;  %3168 = vmatprep.mubr.bf16.mxu0 %v4918_v8  ;;  %v4423_v45 = vld [vmem:[%s6049_s6 + $0x3f4] ss:$20 sps:$4 sm:$0xff]  }
  0xc4   :  { %3128 = vmatmul.mubr.bf16.vlgmr.msra.gmra.mxu1 %v4902_v63  ;;  %3138 = vmatprep.subr.bf16.mxu0 %v4345_v48  ;;  %v4418_v48 = vld [vmem:[%s6049_s6 + $0x698] ss:$20 sps:$4 sm:$0xff]  }
  0xc5   :  { %3178 = vmatpush1.bf16.msra.mxu1 %v4340_v49  ;;  %3209 = vmatprep.mubr.bf16.mxu1 %v5066_v28  ;;  %v4426_v49 = vld [vmem:[%s6049_s6 + $0x674] ss:$20 sps:$4 sm:$0xff]  }
  0xc6   :  { %3179 = vmatprep.subr.bf16.mxu1 %v4348_v50  ;;  %v4421_v50 = vld [vmem:[%s6049_s6 + $0x3f0] ss:$20 sps:$4 sm:$0xff]  }
  0xc7   :  { %3139 = vmatpush1.bf16.msra.mxu0 %v4343_v51  ;;  %v4429_v51 = vld [vmem:[%s6049_s6 + $0x3cc] ss:$20 sps:$4 sm:$0xff]  }
  0xc8   :  { %3140 = vmatprep.subr.bf16.mxu0 %v4351_v52  ;;  %v4424_v52 = vld [vmem:[%s6049_s6 + $0x670] ss:$20 sps:$4 sm:$0xff]  }
  0xc9   :  { %3180 = vmatpush1.bf16.msra.mxu1 %v4346_v53  ;;  %v4432_v53 = vld [vmem:[%s6049_s6 + $0x64c] ss:$20 sps:$4 sm:$0xff]  }
  0xca   :  { %3181 = vmatprep.subr.bf16.mxu1 %v4354_v54  ;;  %v4427_v54 = vld [vmem:[%s6049_s6 + $0x3c8] ss:$20 sps:$4 sm:$0xff]  }
  0xcb   :  { %3141 = vmatpush1.bf16.msra.mxu0 %v4349_v58  ;;  %v4435_v58 = vld [vmem:[%s6049_s6 + $0x8a4] ss:$20 sps:$4 sm:$0xff]  }
  0xcc   :  { %3142 = vmatprep.subr.bf16.mxu0 %v4357_v59  ;;  %v4430_v59 = vld [vmem:[%s6049_s6 + $0x648] ss:$20 sps:$4 sm:$0xff]  }
  0xcd   :  { %3182 = vmatpush1.bf16.msra.mxu1 %v4352_v60  ;;  %v4438_v60 = vld [vmem:[%s6049_s6 + $0xb24] ss:$20 sps:$4 sm:$0xff]  }
  0xce   :  { %3183 = vmatprep.subr.bf16.mxu1 %v4360_v61  ;;  %v4433_v61 = vld [vmem:[%s6049_s6 + $0x8a0] ss:$20 sps:$4 sm:$0xff]  }
  0xcf   :  { %3143 = vmatpush1.bf16.msra.mxu0 %v4355_v0  ;;  %v4441_v0 = vld [vmem:[%s6049_s6 + $0x87c] ss:$20 sps:$4 sm:$0xff]  }
  0xd0   :  { %3144 = vmatprep.subr.bf16.mxu0 %v4363_v2  ;;  %v4436_v2 = vld [vmem:[%s6049_s6 + $0xb20] ss:$20 sps:$4 sm:$0xff]  }
  0xd1   :  { %3184 = vmatpush1.bf16.msra.mxu1 %v4358_v4 }
  0xd2   :  { %3185 = vmatprep.subr.bf16.mxu1 %v4366_v5  ;;  %v4444_v5 = vld [vmem:[%s6049_s6 + $0xafc] ss:$20 sps:$4 sm:$0xff]  }
  0xd3   :  { %3145 = vmatpush1.bf16.msra.mxu0 %v4361_v7  ;;  %v4439_v7 = vld [vmem:[%s6049_s6 + $0x878] ss:$20 sps:$4 sm:$0xff]  }
  0xd4   :  { %3146 = vmatprep.subr.bf16.mxu0 %v4369_v39 }
  0xd5   :  { %3186 = vmatpush1.bf16.msra.mxu1 %v4364_v9 }
  0xd6   :  { %3187 = vmatprep.subr.bf16.mxu1 %v4372_v10  ;;  %v4447_v10 = vld [vmem:[%s6049_s6 + $0x854] ss:$20 sps:$4 sm:$0xff]  }
  0xd7   :  { %3147 = vmatpush1.bf16.msra.mxu0 %v4367_v12 }
  0xd8   :  { %3148 = vmatprep.subr.bf16.mxu0 %v4375_v13  ;;  %v4442_v13 = vld [vmem:[%s6049_s6 + $0xaf8] ss:$20 sps:$4 sm:$0xff]  }
  0xd9   :  { %3188 = vmatpush1.bf16.msra.mxu1 %v4370_v14 }
  0xda   :  { %3189 = vmatprep.subr.bf16.mxu1 %v4378_v46 }
  0xdb   :  { %3149 = vmatpush1.bf16.msra.mxu0 %v4373_v47  ;;  %v4450_v47 = vld [vmem:[%s6049_s6 + $0xad4] ss:$20 sps:$4 sm:$0xff]  }
  0xdc   :  { %3150 = vmatprep.subr.bf16.mxu0 %v4381_v15 }
  0xdd   :  { %3190 = vmatpush1.bf16.msra.mxu1 %v4376_v16  ;;  %v4445_v16 = vld [vmem:[%s6049_s6 + $0x850] ss:$20 sps:$4 sm:$0xff]  }
  0xde   :  { %3191 = vmatprep.subr.bf16.mxu1 %v4384_v17 }
  0xdf   :  { %3151 = vmatpush1.bf16.msra.mxu0 %v4379_v55  ;;  %v4453_v55 = vld [vmem:[%s6049_s6 + $0x82c] ss:$20 sps:$4 sm:$0xff]  }
  0xe0   :  { %3152 = vmatprep.subr.bf16.mxu0 %v4387_v18 }
  0xe1   :  { %3192 = vmatpush1.bf16.msra.mxu1 %v4382_v19  ;;  %v4448_v19 = vld [vmem:[%s6049_s6 + $0xad0] ss:$20 sps:$4 sm:$0xff]  }
  0xe2   :  { %3193 = vmatprep.subr.bf16.mxu1 %v4390_v20  ;;  %v4456_v20 = vld [vmem:[%s6049_s6 + $0xaac] ss:$20 sps:$4 sm:$0xff]  }
  0xe3   :  { %3153 = vmatpush2.bf16.msra.mxu0 %v4385_v21 }
  0xe4   :  { %3154 = vmatprep.subr.bf16.mxu0 %v4393_v22  ;;  %v4451_v22 = vld [vmem:[%s6049_s6 + $0x828] ss:$20 sps:$4 sm:$0xff]  }
  0xe5   :  { %3194 = vmatpush2.bf16.msra.mxu1 %v4388_v23  ;;  %v4459_v23 = vld [vmem:[%s6049_s6 + $0x804] ss:$20 sps:$4 sm:$0xff]  }
  0xe6   :  { %3195 = vmatprep.subr.bf16.mxu1 %v4396_v57  ;;  %v4454_v57 = vld [vmem:[%s6049_s6 + $0xaa8] ss:$20 sps:$4 sm:$0xff]  }
  0xe7   :  { %3155 = vmatpush2.bf16.msra.mxu0 %v4391_v24  ;;  %v4462_v24 = vld [vmem:[%s6049_s6 + $0xa84] ss:$20 sps:$4 sm:$0xff]  }
  0xe8   :  { %3156 = vmatprep.subr.bf16.mxu0 %v4399_v25  ;;  %v4457_v25 = vld [vmem:[%s6049_s6 + $0x800] ss:$20 sps:$4 sm:$0xff]  }
  0xe9   :  { %3196 = vmatpush2.bf16.msra.mxu1 %v4394_v26  ;;  %v4465_v26 = vld [vmem:[%s6049_s6 + $0x7dc] ss:$20 sps:$4 sm:$0xff]  }
  0xea   :  { %3197 = vmatprep.subr.bf16.mxu1 %v4402_v27  ;;  %v4460_v27 = vld [vmem:[%s6049_s6 + $0xa80] ss:$20 sps:$4 sm:$0xff]  }
  0xeb   :  { %3157 = vmatpush2.bf16.msra.mxu0 %v4397_v29  ;;  %v4468_v29 = vld [vmem:[%s6049_s6 + $0xa5c] ss:$20 sps:$4 sm:$0xff]  }
  0xec   :  { %3158 = vmatprep.subr.bf16.mxu0 %v4405_v30  ;;  %v4463_v30 = vld [vmem:[%s6049_s6 + $0x7d8] ss:$20 sps:$4 sm:$0xff]  }
  0xed   :  { %3198 = vmatpush2.bf16.msra.mxu1 %v4400_v31  ;;  %v4471_v31 = vld [vmem:[%s6049_s6 + $0x7b4] ss:$20 sps:$4 sm:$0xff]  }
  0xee   :  { %3199 = vmatprep.subr.bf16.mxu1 %v4408_v33  ;;  %v4466_v33 = vld [vmem:[%s6049_s6 + $0xa58] ss:$20 sps:$4 sm:$0xff]  }
  0xef   :  { %3159 = vmatpush2.bf16.msra.mxu0 %v4403_v34  ;;  %v4474_v34 = vld [vmem:[%s6049_s6 + $0xa34] ss:$20 sps:$4 sm:$0xff]  }
  0xf0   :  { %3160 = vmatprep.subr.bf16.mxu0 %v4411_v35  ;;  %v4469_v35 = vld [vmem:[%s6049_s6 + $0x7b0] ss:$20 sps:$4 sm:$0xff]  }
  0xf1   :  { %3200 = vmatpush2.bf16.msra.mxu1 %v4406_v36  ;;  %v4477_v36 = vld [vmem:[%s6049_s6 + $0x78c] ss:$20 sps:$4 sm:$0xff]  }
  0xf2   :  { %3201 = vmatprep.subr.bf16.mxu1 %v4414_v37  ;;  %v4472_v37 = vld [vmem:[%s6049_s6 + $0xa30] ss:$20 sps:$4 sm:$0xff]  }
  0xf3   :  { %3161 = vmatpush2.bf16.msra.mxu0 %v4409_v38  ;;  %v4480_v38 = vld [vmem:[%s6049_s6 + $0xa0c] ss:$20 sps:$4 sm:$0xff]  }
  0xf4   :  { %3162 = vmatprep.subr.bf16.mxu0 %v4417_v40  ;;  %v4475_v40 = vld [vmem:[%s6049_s6 + $0x788] ss:$20 sps:$4 sm:$0xff]  }
  0xf5   :  { %3202 = vmatpush2.bf16.msra.mxu1 %v4412_v41  ;;  %v4483_v41 = vld [vmem:[%s6049_s6 + $0x9e4] ss:$20 sps:$4 sm:$0xff]  }
  0xf6   :  { %3203 = vmatprep.subr.bf16.mxu1 %v4420_v42  ;;  %v4478_v42 = vld [vmem:[%s6049_s6 + $0xa08] ss:$20 sps:$4 sm:$0xff]  }
  0xf7   :  { %3163 = vmatpush2.bf16.msra.mxu0 %v4415_v44  ;;  %v4486_v44 = vld [vmem:[%s6049_s6 + $0xc64] ss:$20 sps:$4 sm:$0xff]  }
  0xf8   :  { %3164 = vmatprep.subr.bf16.mxu0 %v4423_v45  ;;  %v4481_v45 = vld [vmem:[%s6049_s6 + $0x9e0] ss:$20 sps:$4 sm:$0xff]  }
  0xf9   :  { %3204 = vmatpush2.bf16.msra.mxu1 %v4418_v48  ;;  %v4489_v48 = vld [vmem:[%s6049_s6 + $0x9bc] ss:$20 sps:$4 sm:$0xff]  }
  0xfa   :  { %3205 = vmatprep.subr.bf16.mxu1 %v4426_v49  ;;  %v4484_v49 = vld [vmem:[%s6049_s6 + $0xc60] ss:$20 sps:$4 sm:$0xff]  }
  0xfb   :  { %3165 = vmatpush2.bf16.msra.mxu0 %v4421_v50  ;;  %v4492_v50 = vld [vmem:[%s6049_s6 + $0xc3c] ss:$20 sps:$4 sm:$0xff]  }
  0xfc   :  { %3166 = vmatprep.subr.bf16.mxu0 %v4429_v51  ;;  %v4487_v51 = vld [vmem:[%s6049_s6 + $0x9b8] ss:$20 sps:$4 sm:$0xff]  }
  0xfd   :  { %3206 = vmatpush2.bf16.msra.mxu1 %v4424_v52  ;;  %v4495_v52 = vld [vmem:[%s6049_s6 + $0x994] ss:$20 sps:$4 sm:$0xff]  }
  0xfe   :  { %3207 = vmatprep.subr.bf16.mxu1 %v4432_v53  ;;  %v4490_v53 = vld [vmem:[%s6049_s6 + $0xc38] ss:$20 sps:$4 sm:$0xff]  }
  0xff   :  { %3167 = vmatpush2.bf16.msra.mxu0 %v4427_v54  ;;  %v4498_v54 = vld [vmem:[%s6049_s6 + $0xc14] ss:$20 sps:$4 sm:$0xff]  }
 0x100   :  { %3218 = vmatprep.subr.bf16.mxu0 %v4435_v58  ;;  %v4493_v58 = vld [vmem:[%s6049_s6 + $0x990] ss:$20 sps:$4 sm:$0xff]  }
 0x101   :  { %3208 = vmatpush2.bf16.msra.mxu1 %v4430_v59  ;;  %v4501_v59 = vld [vmem:[%s6049_s6 + $0x96c] ss:$20 sps:$4 sm:$0xff]  }
 0x102   :  { %v2924_v4 = vpop.f32.mrf.mxu0  ;;  %3169 = vmatmul.mubr.bf16.vlgmr.msra.gmra.mxu0 %v4912_v6  ;;  %3259 = vmatprep.subr.bf16.mxu1 %v4438_v60  ;;  %v4496_v60 = vld [vmem:[%s6049_s6 + $0xc10] ss:$20 sps:$4 sm:$0xff]  }
 0x103   :  { %3219 = vmatpush1.bf16.msra.mxu0 %v4433_v61  ;;  %3250 = vmatprep.mubr.bf16.mxu0 %v5077_v32  ;;  %v2965_v39 = vpop.f32.mrf.mxu1  ;;  %v4504_v61 = vld [vmem:[%s6049_s6 + $0xbec] ss:$20 sps:$4 sm:$0xff]  }
 0x104   :  { %3210 = vmatmul.mubr.bf16.vlgmr.msra.gmra.mxu1 %v5151_v62  ;;  %v2926_v9 = vpop.f32.mrf.mxu0  ;;  %3220 = vmatprep.subr.bf16.mxu0 %v4441_v0  ;;  %v5605_v12 = vadd.f32 %v2965_v39, %v2924_v4  ;;  %v4499_v0 = vld [vmem:[%s6049_s6 + $0x968] ss:$20 sps:$4 sm:$0xff]  }
 0x105   :  { %3260 = vmatpush1.bf16.msra.mxu1 %v4436_v2  ;;  %3291 = vmatprep.mubr.bf16.mxu1 %v5261_v1  ;;  %v2967_v14 = vpop.f32.mrf.mxu1  ;;  %v4507_v2 = vld [vmem:[%s6049_s6 + $0x944] ss:$20 sps:$4 sm:$0xff]   ;;  %v4502_v4 = vld [vmem:[%s6049_s6 + $0xbe8] ss:$20 sps:$4 sm:$0xff]  }
 0x106   :  { %v2928_v46 = vpop.f32.mrf.mxu0  ;;  %3261 = vmatprep.subr.bf16.mxu1 %v4444_v5  ;;  %v5614_v15 = vadd.f32 %v2967_v14, %v2926_v9  ;;  %v4510_v5 = vld [vmem:[%s6049_s6 + $0xbc4] ss:$20 sps:$4 sm:$0xff]   ;;  %v4513_v39 = vld [vmem:[%s6049_s6 + $0x91c] ss:$20 sps:$4 sm:$0xff]   ;;  %v4508_v9 = vld [vmem:[%s6049_s6 + $0xbc0] ss:$20 sps:$4 sm:$0xff]  }
 0x107   :  { %3221 = vmatpush1.bf16.msra.mxu0 %v4439_v7  ;;  %v2969_v18 = vpop.f32.mrf.mxu1  ;;  %v4505_v7 = vld [vmem:[%s6049_s6 + $0x940] ss:$20 sps:$4 sm:$0xff]   ;;  %v4514_v46 = vld [vmem:[%s6049_s6 + $0xb98] ss:$20 sps:$4 sm:$0xff]  }
 0x108   :  { %v2929_v17 = vpop.f32.mrf.mxu0  ;;  %3222 = vmatprep.subr.bf16.mxu0 %v4447_v10  ;;  %v4516_v10 = vld [vmem:[%s6049_s6 + $0xb9c] ss:$20 sps:$4 sm:$0xff]   ;;  %v4519_v14 = vld [vmem:[%s6049_s6 + $0x8f4] ss:$20 sps:$4 sm:$0xff]   ;;  %v4528_v18 = vld [vmem:[%s6049_s6 + $0xb4c] ss:$20 sps:$4 sm:$0xff]  }
 0x109   :  { %3262 = vmatpush1.bf16.msra.mxu1 %v4442_v13  ;;  %v2970_v21 = vpop.f32.mrf.mxu1  ;;  %v4511_v13 = vld [vmem:[%s6049_s6 + $0x918] ss:$20 sps:$4 sm:$0xff]  }
 0x10a   :  { %3263 = vmatprep.subr.bf16.mxu1 %v4450_v47  ;;  %v4522_v47 = vld [vmem:[%s6049_s6 + $0xb74] ss:$20 sps:$4 sm:$0xff]   ;;  %v4525_v17 = vld [vmem:[%s6049_s6 + $0x8cc] ss:$20 sps:$4 sm:$0xff]  }
 0x10b   :  { %3223 = vmatpush1.bf16.msra.mxu0 %v4445_v16  ;;  %v4517_v16 = vld [vmem:[%s6049_s6 + $0x8f0] ss:$20 sps:$4 sm:$0xff]   ;;  %v4526_v21 = vld [vmem:[%s6049_s6 + $0xb48] ss:$20 sps:$4 sm:$0xff]  }
 0x10c   :  { %3224 = vmatprep.subr.bf16.mxu0 %v4453_v55  ;;  %v4520_v55 = vld [vmem:[%s6049_s6 + $0xb70] ss:$20 sps:$4 sm:$0xff]  }
 0x10d   :  { %3264 = vmatpush1.bf16.msra.mxu1 %v4448_v19  ;;  %v4523_v19 = vld [vmem:[%s6049_s6 + $0x8c8] ss:$20 sps:$4 sm:$0xff]  }
 0x10e   :  { %3265 = vmatprep.subr.bf16.mxu1 %v4456_v20  ;;  %v4529_v20 = vld [vmem:[%s6049_s6 + $0x268] ss:$20 sps:$4 sm:$0xff]  }
 0x10f   :  { %3225 = vmatpush1.bf16.msra.mxu0 %v4451_v22  ;;  %v4530_v22 = vld [vmem:[%s6049_s6 + $0x4e8] ss:$20 sps:$4 sm:$0xff]  }
 0x110   :  { %3226 = vmatprep.subr.bf16.mxu0 %v4459_v23  ;;  %v4531_v23 = vld [vmem:[%s6049_s6 + $0x128] ss:$20 sps:$4 sm:$0xff]  }
 0x111   :  { %3266 = vmatpush1.bf16.msra.mxu1 %v4454_v57  ;;  %v4533_v57 = vld [vmem:[%s6049_s6 + $0x240] ss:$20 sps:$4 sm:$0xff]  }
 0x112   :  { %3267 = vmatprep.subr.bf16.mxu1 %v4462_v24  ;;  %v4532_v24 = vld [vmem:[%s6049_s6 + $0x3a8] ss:$20 sps:$4 sm:$0xff]  }
 0x113   :  { %3227 = vmatpush1.bf16.msra.mxu0 %v4457_v25 }
 0x114   :  { %3228 = vmatprep.subr.bf16.mxu0 %v4465_v26  ;;  %v4534_v26 = vld [vmem:[%s6049_s6 + $0x4c0] ss:$20 sps:$4 sm:$0xff]  }
 0x115   :  { %3268 = vmatpush1.bf16.msra.mxu1 %v4460_v27 }
 0x116   :  { %3269 = vmatprep.subr.bf16.mxu1 %v4468_v29  ;;  %v4535_v29 = vld [vmem:[%s6049_s6 + $0x100] ss:$20 sps:$4 sm:$0xff]  }
 0x117   :  { %3229 = vmatpush1.bf16.msra.mxu0 %v4463_v30 }
 0x118   :  { %3230 = vmatprep.subr.bf16.mxu0 %v4471_v31 }
 0x119   :  { %3270 = vmatpush1.bf16.msra.mxu1 %v4466_v33  ;;  %v4537_v33 = vld [vmem:[%s6049_s6 + $0x218] ss:$20 sps:$4 sm:$0xff]  }
 0x11a   :  { %3271 = vmatprep.subr.bf16.mxu1 %v4474_v34 }
 0x11b   :  { %3231 = vmatpush1.bf16.msra.mxu0 %v4469_v35  ;;  %v4536_v35 = vld [vmem:[%s6049_s6 + $0x380] ss:$20 sps:$4 sm:$0xff]  }
 0x11c   :  { %3232 = vmatprep.subr.bf16.mxu0 %v4477_v36 }
 0x11d   :  { %3272 = vmatpush1.bf16.msra.mxu1 %v4472_v37  ;;  %v4538_v37 = vld [vmem:[%s6049_s6 + $0x498] ss:$20 sps:$4 sm:$0xff]  }
 0x11e   :  { %3273 = vmatprep.subr.bf16.mxu1 %v4480_v38 }
 0x11f   :  { %3233 = vmatpush1.bf16.msra.mxu0 %v4475_v40 }
 0x120   :  { %3234 = vmatprep.subr.bf16.mxu0 %v4483_v41 }
 0x121   :  { %3274 = vmatpush1.bf16.msra.mxu1 %v4478_v42  ;;  %v4540_v42 = vld [vmem:[%s6049_s6 + $0x358] ss:$20 sps:$4 sm:$0xff]  }
 0x122   :  { %3275 = vmatprep.subr.bf16.mxu1 %v4486_v44  ;;  %v4542_v44 = vld [vmem:[%s6049_s6 + $0x470] ss:$20 sps:$4 sm:$0xff]  }
 0x123   :  { %3235 = vmatpush2.bf16.msra.mxu0 %v4481_v45 }
 0x124   :  { %3236 = vmatprep.subr.bf16.mxu0 %v4489_v48  ;;  %v4543_v48 = vld [vmem:[%s6049_s6 + $0xb0] ss:$20 sps:$4 sm:$0xff]  }
 0x125   :  { %3276 = vmatpush2.bf16.msra.mxu1 %v4484_v49  ;;  %v4545_v49 = vld [vmem:[%s6049_s6 + $0x1c8] ss:$20 sps:$4 sm:$0xff]  }
 0x126   :  { %3277 = vmatprep.subr.bf16.mxu1 %v4492_v50  ;;  %v4544_v50 = vld [vmem:[%s6049_s6 + $0x330] ss:$20 sps:$4 sm:$0xff]  }
 0x127   :  { %3237 = vmatpush2.bf16.msra.mxu0 %v4487_v51  ;;  %v4546_v51 = vld [vmem:[%s6049_s6 + $0x448] ss:$20 sps:$4 sm:$0xff]  }
 0x128   :  { %3238 = vmatprep.subr.bf16.mxu0 %v4495_v52  ;;  %v4547_v52 = vld [vmem:[%s6049_s6 + $0x88] ss:$20 sps:$4 sm:$0xff]  }
 0x129   :  { %3278 = vmatpush2.bf16.msra.mxu1 %v4490_v53  ;;  %v4549_v53 = vld [vmem:[%s6049_s6 + $0x1a0] ss:$20 sps:$4 sm:$0xff]  }
 0x12a   :  { %3279 = vmatprep.subr.bf16.mxu1 %v4498_v54  ;;  %v4548_v54 = vld [vmem:[%s6049_s6 + $0x308] ss:$20 sps:$4 sm:$0xff]  }
 0x12b   :  { %3239 = vmatpush2.bf16.msra.mxu0 %v4493_v58  ;;  %v4550_v58 = vld [vmem:[%s6049_s6 + $0x420] ss:$20 sps:$4 sm:$0xff]  }
 0x12c   :  { %3240 = vmatprep.subr.bf16.mxu0 %v4501_v59  ;;  %v4551_v59 = vld [vmem:[%s6049_s6 + $0x60] ss:$20 sps:$4 sm:$0xff]  }
 0x12d   :  { %3280 = vmatpush2.bf16.msra.mxu1 %v4496_v60  ;;  %v4553_v60 = vld [vmem:[%s6049_s6 + $0x178] ss:$20 sps:$4 sm:$0xff]  }
 0x12e   :  { %3281 = vmatprep.subr.bf16.mxu1 %v4504_v61  ;;  %v4552_v61 = vld [vmem:[%s6049_s6 + $0x2e0] ss:$20 sps:$4 sm:$0xff]  }
 0x12f   :  { %3241 = vmatpush2.bf16.msra.mxu0 %v4499_v0  ;;  %v4554_v0 = vld [vmem:[%s6049_s6 + $0x3f8] ss:$20 sps:$4 sm:$0xff]  }
 0x130   :  { %3242 = vmatprep.subr.bf16.mxu0 %v4507_v2  ;;  %v4555_v2 = vld [vmem:[%s6049_s6 + $0x38] ss:$20 sps:$4 sm:$0xff]  }
 0x131   :  { %3282 = vmatpush2.bf16.msra.mxu1 %v4502_v4  ;;  %v4557_v4 = vld [vmem:[%s6049_s6 + $0x150] ss:$20 sps:$4 sm:$0xff]  }
 0x132   :  { %3283 = vmatprep.subr.bf16.mxu1 %v4510_v5  ;;  %v4556_v5 = vld [vmem:[%s6049_s6 + $0x2b8] ss:$20 sps:$4 sm:$0xff]  }
 0x133   :  { %3243 = vmatpush2.bf16.msra.mxu0 %v4505_v7  ;;  %v4558_v7 = vld [vmem:[%s6049_s6 + $0x3d0] ss:$20 sps:$4 sm:$0xff]  }
 0x134   :  { %3244 = vmatprep.subr.bf16.mxu0 %v4513_v39  ;;  %v4559_v39 = vld [vmem:[%s6049_s6 + $0x10] ss:$20 sps:$4 sm:$0xff]  }
 0x135   :  { %3284 = vmatpush2.bf16.msra.mxu1 %v4508_v9  ;;  %v4561_v9 = vld [vmem:[%s6049_s6 + $0x768] ss:$20 sps:$4 sm:$0xff]  }
 0x136   :  { %3285 = vmatprep.subr.bf16.mxu1 %v4516_v10  ;;  %v4560_v10 = vld [vmem:[%s6049_s6 + $0x290] ss:$20 sps:$4 sm:$0xff]  }
 0x137   :  { %3245 = vmatpush2.bf16.msra.mxu0 %v4511_v13  ;;  %v4563_v13 = vld [vmem:[%s6049_s6 + $0x9e8] ss:$20 sps:$4 sm:$0xff]  }
 0x138   :  { %3246 = vmatprep.subr.bf16.mxu0 %v4519_v14  ;;  %v4562_v14 = vld [vmem:[%s6049_s6 + $0x628] ss:$20 sps:$4 sm:$0xff]  }
 0x139   :  { %3286 = vmatpush2.bf16.msra.mxu1 %v4514_v46  ;;  %v4565_v46 = vld [vmem:[%s6049_s6 + $0x740] ss:$20 sps:$4 sm:$0xff]  }
 0x13a   :  { %3287 = vmatprep.subr.bf16.mxu1 %v4522_v47  ;;  %v4564_v47 = vld [vmem:[%s6049_s6 + $0x8a8] ss:$20 sps:$4 sm:$0xff]  }
 0x13b   :  { %3247 = vmatpush2.bf16.msra.mxu0 %v4517_v16  ;;  %v4567_v16 = vld [vmem:[%s6049_s6 + $0x9c0] ss:$20 sps:$4 sm:$0xff]  }
 0x13c   :  { %3248 = vmatprep.subr.bf16.mxu0 %v4525_v17  ;;  %v4566_v17 = vld [vmem:[%s6049_s6 + $0x600] ss:$20 sps:$4 sm:$0xff]  }
 0x13d   :  { %3288 = vmatpush2.bf16.msra.mxu1 %v4520_v55  ;;  %v4569_v55 = vld [vmem:[%s6049_s6 + $0x718] ss:$20 sps:$4 sm:$0xff]  }
 0x13e   :  { %3289 = vmatprep.subr.bf16.mxu1 %v4528_v18  ;;  %v4571_v18 = vld [vmem:[%s6049_s6 + $0x998] ss:$20 sps:$4 sm:$0xff]  }
 0x13f   :  { %3249 = vmatpush2.bf16.msra.mxu0 %v4523_v19  ;;  %v4575_v19 = vld [vmem:[%s6049_s6 + $0x970] ss:$20 sps:$4 sm:$0xff]  }
 0x140   :  { %3938 = vmatprep.subr.bf16.mxu0 %v4529_v20  ;;  %v4574_v20 = vld [vmem:[%s6049_s6 + $0x5b0] ss:$20 sps:$4 sm:$0xff]  }
 0x141   :  { %3290 = vmatpush2.bf16.msra.mxu1 %v4526_v21  ;;  %v4577_v21 = vld [vmem:[%s6049_s6 + $0x6c8] ss:$20 sps:$4 sm:$0xff]  }
 0x142   :  { %v3006_v25 = vpop.f32.mrf.mxu0  ;;  %3251 = vmatmul.mubr.bf16.vlgmr.msra.gmra.mxu0 %v5174_v11  ;;  %3960 = vmatprep.subr.bf16.mxu1 %v4530_v22  ;;  %v4576_v22 = vld [vmem:[%s6049_s6 + $0x830] ss:$20 sps:$4 sm:$0xff]  }
 0x143   :  { %v3007_v27 = vadd.f32 %v3006_v25, %v5605_v12  ;;  %3939 = vmatpush3.bf16.msra.mxu0 %v4531_v23  ;;  %3332 = vmatprep.mubr.bf16.mxu0 %v4907_v3  ;;  %v3047_v31 = vpop.f32.mrf.mxu1  ;;  %v4579_v23 = vld [vmem:[%s6049_s6 + $0x948] ss:$20 sps:$4 sm:$0xff]  }
 0x144   :  { %3292 = vmatmul.mubr.bf16.vlgmr.msra.gmra.mxu1 %v5383_v43  ;;  %v3008_v30 = vpop.f32.mrf.mxu0  ;;  %3940 = vmatprep.subr.bf16.mxu0 %v4533_v57  ;;  %v4578_v57 = vld [vmem:[%s6049_s6 + $0x588] ss:$20 sps:$4 sm:$0xff]  }
 0x145   :  { %3961 = vmatpush3.bf16.msra.mxu1 %v4532_v24  ;;  %v3009_v34 = vadd.f32 %v3008_v30, %v5614_v15  ;;  %v5807_v12 = vadd.f32 %v3047_v31, %v3007_v27  ;;  %3372 = vmatprep.mubr.bf16.mxu1 %v4918_v8  ;;  %v3049_v36 = vpop.f32.mrf.mxu1  ;;  %v4539_v15 = vld [vmem:[%s6049_s6 + $0xd8] ss:$20 sps:$4 sm:$0xff]   ;;  %v4541_v8 = vld [vmem:[%s6049_s6 + $0x1f0] ss:$20 sps:$4 sm:$0xff]   ;;  %v4581_v24 = vld [vmem:[%s6049_s6 + $0x6a0] ss:$20 sps:$4 sm:$0xff]  }
 0x146   :  { %v3010_v3 = vpop.f32.mrf.mxu0  ;;  %3962 = vmatprep.subr.bf16.mxu1 %v4534_v26  ;;  %v4580_v25 = vld [vmem:[%s6049_s6 + $0x808] ss:$20 sps:$4 sm:$0xff]   ;;  %v4583_v26 = vld [vmem:[%s6049_s6 + $0x920] ss:$20 sps:$4 sm:$0xff]   ;;  %v4587_v31 = vld [vmem:[%s6049_s6 + $0x8f8] ss:$20 sps:$4 sm:$0xff]  }
 0x147   :  { %v5816_v38 = vadd.f32 %v3049_v36, %v3009_v34  ;;  %3941 = vmatpush3.bf16.msra.mxu0 %v4535_v29  ;;  %v3051_v41 = vpop.f32.mrf.mxu1  ;;  %v4582_v27 = vld [vmem:[%s6049_s6 + $0x560] ss:$20 sps:$4 sm:$0xff]   ;;  %v4585_v29 = vld [vmem:[%s6049_s6 + $0x678] ss:$20 sps:$4 sm:$0xff]   ;;  %v4589_v34 = vld [vmem:[%s6049_s6 + $0x650] ss:$20 sps:$4 sm:$0xff]  }
 0x148   :  { %v3011_v40 = vpop.f32.mrf.mxu0  ;;  %3942 = vmatprep.subr.bf16.mxu0 %v4537_v33  ;;  %v4584_v30 = vld [vmem:[%s6049_s6 + $0x7e0] ss:$20 sps:$4 sm:$0xff]   ;;  %v4586_v33 = vld [vmem:[%s6049_s6 + $0x538] ss:$20 sps:$4 sm:$0xff]   ;;  %v4591_v3 = vld [vmem:[%s6049_s6 + $0x8d0] ss:$20 sps:$4 sm:$0xff]  }
 0x149   :  { %3963 = vmatpush3.bf16.msra.mxu1 %v4536_v35  ;;  %v3052_v45 = vpop.f32.mrf.mxu1  ;;  %v4588_v35 = vld [vmem:[%s6049_s6 + $0x7b8] ss:$20 sps:$4 sm:$0xff]   ;;  %v4590_v36 = vld [vmem:[%s6049_s6 + $0x510] ss:$20 sps:$4 sm:$0xff]   ;;  %v4594_v40 = vld [vmem:[%s6049_s6 + $0xb28] ss:$20 sps:$4 sm:$0xff]  }
 0x14a   :  { %3964 = vmatprep.subr.bf16.mxu1 %v4538_v37  ;;  %v4593_v37 = vld [vmem:[%s6049_s6 + $0xc68] ss:$20 sps:$4 sm:$0xff]  }
 0x14b   :  { %3943 = vmatpush3.bf16.msra.mxu0 %v4539_v15  ;;  %v4592_v15 = vld [vmem:[%s6049_s6 + $0x790] ss:$20 sps:$4 sm:$0xff]  }
 0x14c   :  { %3944 = vmatprep.subr.bf16.mxu0 %v4541_v8  ;;  %v4595_v8 = vld [vmem:[%s6049_s6 + $0xc40] ss:$20 sps:$4 sm:$0xff]  }
 0x14d   :  { %3965 = vmatpush3.bf16.msra.mxu1 %v4540_v42 }
 0x14e   :  { %3966 = vmatprep.subr.bf16.mxu1 %v4542_v44  ;;  %v4596_v44 = vld [vmem:[%s6049_s6 + $0xb00] ss:$20 sps:$4 sm:$0xff]  }
 0x14f   :  { %3945 = vmatpush3.bf16.msra.mxu0 %v4543_v48  ;;  %v4597_v48 = vld [vmem:[%s6049_s6 + $0xc18] ss:$20 sps:$4 sm:$0xff]  }
 0x150   :  { %3946 = vmatprep.subr.bf16.mxu0 %v4545_v49 }
 0x151   :  { %3967 = vmatpush3.bf16.msra.mxu1 %v4544_v50 }
 0x152   :  { %3968 = vmatprep.subr.bf16.mxu1 %v4546_v51 }
 0x153   :  { %3947 = vmatpush3.bf16.msra.mxu0 %v4547_v52 }
 0x154   :  { %3948 = vmatprep.subr.bf16.mxu0 %v4549_v53 }
 0x155   :  { %3969 = vmatpush3.bf16.msra.mxu1 %v4548_v54 }
 0x156   :  { %3970 = vmatprep.subr.bf16.mxu1 %v4550_v58  ;;  %v4601_v58 = vld [vmem:[%s6049_s6 + $0xbc8] ss:$20 sps:$4 sm:$0xff]  }
 0x157   :  { %3949 = vmatpush3.bf16.msra.mxu0 %v4551_v59  ;;  %v4602_v59 = vld [vmem:[%s6049_s6 + $0xa88] ss:$20 sps:$4 sm:$0xff]  }
 0x158   :  { %3950 = vmatprep.subr.bf16.mxu0 %v4553_v60  ;;  %v4603_v60 = vld [vmem:[%s6049_s6 + $0xba0] ss:$20 sps:$4 sm:$0xff]  }
 0x159   :  { %3971 = vmatpush3.bf16.msra.mxu1 %v4552_v61  ;;  %v4604_v61 = vld [vmem:[%s6049_s6 + $0xa60] ss:$20 sps:$4 sm:$0xff]  }
 0x15a   :  { %3972 = vmatprep.subr.bf16.mxu1 %v4554_v0  ;;  %v4605_v0 = vld [vmem:[%s6049_s6 + $0xb78] ss:$20 sps:$4 sm:$0xff]  }
 0x15b   :  { %3951 = vmatpush3.bf16.msra.mxu0 %v4555_v2  ;;  %v4606_v2 = vld [vmem:[%s6049_s6 + $0xa38] ss:$20 sps:$4 sm:$0xff]  }
 0x15c   :  { %3952 = vmatprep.subr.bf16.mxu0 %v4557_v4  ;;  %v4607_v4 = vld [vmem:[%s6049_s6 + $0xb50] ss:$20 sps:$4 sm:$0xff]  }
 0x15d   :  { %3973 = vmatpush3.bf16.msra.mxu1 %v4556_v5  ;;  %v4608_v5 = vld [vmem:[%s6049_s6 + $0xa10] ss:$20 sps:$4 sm:$0xff]  }
 0x15e   :  { %3974 = vmatprep.subr.bf16.mxu1 %v4558_v7 }
 0x15f   :  { %3953 = vmatpush3.bf16.msra.mxu0 %v4559_v39 }
 0x160   :  { %3982 = vmatprep.subr.bf16.mxu0 %v4561_v9 }
 0x161   :  { %3975 = vmatpush3.bf16.msra.mxu1 %v4560_v10 }
 0x162   :  { %3333 = vmatmul.mubr.bf16.vlgmr.msra.gmra.mxu0 %v4902_v63  ;;  %4004 = vmatprep.subr.bf16.mxu1 %v4563_v13  ;;  %v4568_v63 = vld [vmem:[%s6049_s6 + $0x880] ss:$20 sps:$4 sm:$0xff]  }
 0x163   :  { %3983 = vmatpush3.bf16.msra.mxu0 %v4562_v14  ;;  %3412 = vmatprep.mubr.bf16.mxu0 %v5066_v28  ;;  %v4573_v28 = vld [vmem:[%s6049_s6 + $0x6f0] ss:$20 sps:$4 sm:$0xff]  }
 0x164   :  { %3373 = vmatmul.mubr.bf16.vlgmr.msra.gmra.mxu1 %v4912_v6  ;;  %3984 = vmatprep.subr.bf16.mxu0 %v4565_v46  ;;  %v4570_v6 = vld [vmem:[%s6049_s6 + $0x5d8] ss:$20 sps:$4 sm:$0xff]  }
 0x165   :  { %4005 = vmatpush3.bf16.msra.mxu1 %v4564_v47  ;;  %3452 = vmatprep.mubr.bf16.mxu1 %v5077_v32  ;;  %v4572_v32 = vld [vmem:[%s6049_s6 + $0x858] ss:$20 sps:$4 sm:$0xff]  }
 0x166   :  { %4006 = vmatprep.subr.bf16.mxu1 %v4567_v16 }
 0x167   :  { %3985 = vmatpush3.bf16.msra.mxu0 %v4566_v17 }
 0x168   :  { %3986 = vmatprep.subr.bf16.mxu0 %v4569_v55 }
 0x169   :  { %4007 = vmatpush3.bf16.msra.mxu1 %v4568_v63 }
 0x16a   :  { %4008 = vmatprep.subr.bf16.mxu1 %v4571_v18 }
 0x16b   :  { %3987 = vmatpush3.bf16.msra.mxu0 %v4570_v6 }
 0x16c   :  { %3988 = vmatprep.subr.bf16.mxu0 %v4573_v28 }
 0x16d   :  { %4009 = vmatpush3.bf16.msra.mxu1 %v4572_v32 }
 0x16e   :  { %4010 = vmatprep.subr.bf16.mxu1 %v4575_v19 }
 0x16f   :  { %3989 = vmatpush3.bf16.msra.mxu0 %v4574_v20 }
 0x170   :  { %3990 = vmatprep.subr.bf16.mxu0 %v4577_v21 }
 0x171   :  { %4011 = vmatpush3.bf16.msra.mxu1 %v4576_v22 }
 0x172   :  { %4012 = vmatprep.subr.bf16.mxu1 %v4579_v23 }
 0x173   :  { %3991 = vmatpush3.bf16.msra.mxu0 %v4578_v57 }
 0x174   :  { %3992 = vmatprep.subr.bf16.mxu0 %v4581_v24 }
 0x175   :  { %4013 = vmatpush3.bf16.msra.mxu1 %v4580_v25 }
 0x176   :  { %4014 = vmatprep.subr.bf16.mxu1 %v4583_v26 }
 0x177   :  { %3993 = vmatpush3.bf16.msra.mxu0 %v4582_v27 }
 0x178   :  { %3994 = vmatprep.subr.bf16.mxu0 %v4585_v29 }
 0x179   :  { %4015 = vmatpush3.bf16.msra.mxu1 %v4584_v30 }
 0x17a   :  { %4016 = vmatprep.subr.bf16.mxu1 %v4587_v31 }
 0x17b   :  { %3995 = vmatpush3.bf16.msra.mxu0 %v4586_v33 }
 0x17c   :  { %3996 = vmatprep.subr.bf16.mxu0 %v4589_v34 }
 0x17d   :  { %4017 = vmatpush3.bf16.msra.mxu1 %v4588_v35 }
 0x17e   :  { %4018 = vmatprep.subr.bf16.mxu1 %v4591_v3 }
 0x17f   :  { %3997 = vmatpush3.bf16.msra.mxu0 %v4590_v36 }
 0x180   :  { %4026 = vmatprep.subr.bf16.mxu0 %v4593_v37 }
 0x181   :  { %4019 = vmatpush3.bf16.msra.mxu1 %v4592_v15 }
 0x182   :  { %v3088_v41 = vpop.f32.mrf.mxu0  ;;  %3413 = vmatmul.mubr.bf16.vlgmr.msra.gmra.mxu0 %v5151_v62 }
 0x183   :  { %v5995_v42 = vadd.f32 %v3088_v41, %v5807_v12  ;;  %4027 = vmatpush3.bf16.msra.mxu0 %v4594_v40  ;;  %3492 = vmatprep.mubr.bf16.mxu0 %v5261_v1  ;;  %v4598_v1 = vld [vmem:[%s6049_s6 + $0xad8] ss:$20 sps:$4 sm:$0xff]  }
 0x184   :  { %v3090_v45 = vpop.f32.mrf.mxu0  ;;  %3453 = vmatmul.mubr.bf16.vlgmr.msra.gmra.mxu1 %v5174_v11  ;;  %4028 = vmatprep.subr.bf16.mxu0 %v4595_v8  ;;  %v3129_v49 = vpop.f32.mrf.mxu1  ;;  %v4599_v11 = vld [vmem:[%s6049_s6 + $0xbf0] ss:$20 sps:$4 sm:$0xff]  }
 0x185   :  { %v3091_v62 = vadd.f32 %v3090_v45, %v5816_v38  ;;  %v4600_v38 = vld [vmem:[%s6049_s6 + $0xab0] ss:$20 sps:$4 sm:$0xff]  }
 0x186   :  { %v3092_v12 = vpop.f32.mrf.mxu0  ;;  %v3131_v50 = vpop.f32.mrf.mxu1 }
 0x187   :  { %v3505_v51 = vcombine.low %v5995_v42, %v3091_v62  ;;  %4029 = vmatpush3.bf16.msra.mxu0 %v4596_v44 }
 0x188   :  { %v3093_v52 = vpop.f32.mrf.mxu0  ;;  %4030 = vmatprep.subr.bf16.mxu0 %v4597_v48  ;;  %v3133_v53 = vpop.f32.mrf.mxu1 }
 0x189   :  { %v3513_v26 = vrot.slane %v3505_v51, %v4804_v56 }
 0x18a   :  { %v3134_v54 = vpop.f32.mrf.mxu1 }
 0x18b   :  { %4031 = vmatpush3.bf16.msra.mxu0 %v4598_v1 }
 0x18c   :  { %4032 = vmatprep.subr.bf16.mxu0 %v4599_v11 }
 0x18f   :  { %4033 = vmatpush3.bf16.msra.mxu0 %v4600_v38 }
 0x190   :  { %4034 = vmatprep.subr.bf16.mxu0 %v4601_v58 }
 0x193   :  { %4035 = vmatpush3.bf16.msra.mxu0 %v4602_v59 }
 0x194   :  { %4036 = vmatprep.subr.bf16.mxu0 %v4603_v60 }
 0x197   :  { %4037 = vmatpush3.bf16.msra.mxu0 %v4604_v61 }
 0x198   :  { %4038 = vmatprep.subr.bf16.mxu0 %v4605_v0 }
 0x19b   :  { %4039 = vmatpush3.bf16.msra.mxu0 %v4606_v2 }
 0x19c   :  { %4040 = vmatprep.subr.bf16.mxu0 %v4607_v4 }
 0x19f   :  { %4041 = vmatpush3.bf16.msra.mxu0 %v4608_v5 }
 0x1a2   :  { %3493 = vmatmul.mubr.bf16.vlgmr.msra.gmra.mxu0 %v5383_v43 }
 0x1c2   :  { %v3170_v7 = vpop.f32.mrf.mxu0 }
 0x1c3   :  { %v3171_v16 = vadd.f32 %v3170_v7, %v3129_v49 }
 0x1c4   :  { %v3172_v39 = vpop.f32.mrf.mxu0  ;;  %v3211_v9 = vpop.f32.mrf.mxu1 }
 0x1c5   :  { %v3173_v17 = vadd.f32 %v3172_v39, %v3131_v50  ;;  %v3212_v55 = vadd.f32 %v3211_v9, %v3171_v16 }
 0x1c6   :  { %v3174_v10 = vpop.f32.mrf.mxu0  ;;  %v3213_v13 = vpop.f32.mrf.mxu1 }
 0x1c7   :  { %v3214_v18 = vadd.f32 %v3213_v13, %v3173_v17 }
 0x1c8   :  { %v3175_v14 = vpop.f32.mrf.mxu0  ;;  %v3215_v46 = vpop.f32.mrf.mxu1 }
 0x1ca   :  { %v3216_v47 = vpop.f32.mrf.mxu1 }
 0x202   :  { %v3252_v63 = vpop.f32.mrf.mxu0 }
 0x203   :  { %v3253_v6 = vadd.f32 %v3252_v63, %v3212_v55 }
 0x204   :  { %v3254_v28 = vpop.f32.mrf.mxu0  ;;  %v3293_v32 = vpop.f32.mrf.mxu1 }
 0x205   :  { %v3255_v19 = vadd.f32 %v3254_v28, %v3214_v18  ;;  %v3294_v43 = vadd.f32 %v3293_v32, %v3253_v6 }
 0x206   :  { %v3256_v20 = vpop.f32.mrf.mxu0  ;;  %v3295_v21 = vpop.f32.mrf.mxu1 }
 0x207   :  { %v3296_v22 = vadd.f32 %v3295_v21, %v3255_v19 }
 0x208   :  { %v3257_v23 = vpop.f32.mrf.mxu0  ;;  %v3297_v57 = vpop.f32.mrf.mxu1 }
 0x209   :  { %v3506_v24 = vcombine.low %v3294_v43, %v3296_v22 }
 0x20a   :  { %v3298_v25 = vpop.f32.mrf.mxu1 }
 0x20b   :  { %v3520_v27 = vrot.slane %v3506_v24, %v4804_v56 }
 0x20d   :  { %v3521_v29 = vcombine.low %v3513_v26, %v3520_v27 }
 0x20f   :  { %3531 = vst [vmem:[%s6056_s7] sm:$0xff] %v3521_v29 }
 0x222   :  { %v3954_v30 = vpop.f32.mrf.mxu0 }
 0x224   :  { %v3976_v31 = vpop.f32.mrf.mxu1  ;;  %v3955_v33 = vpop.f32.mrf.mxu0 }
 0x225   :  { %v3956_v48 = vadd.f32 %v3955_v33, %v3954_v30 }
 0x226   :  { %v3977_v34 = vpop.f32.mrf.mxu1  ;;  %v3957_v35 = vpop.f32.mrf.mxu0 }
 0x227   :  { %v3978_v49 = vadd.f32 %v3977_v34, %v3976_v31 }
 0x228   :  { %v3958_v3 = vpop.f32.mrf.mxu0  ;;  %v3979_v36 = vpop.f32.mrf.mxu1 }
 0x229   :  { %v3375_v12 = vadd.f32 %v3978_v49, %v3956_v48 }
 0x22a   :  { %v3980_v37 = vpop.f32.mrf.mxu1 }
 0x242   :  { %v3998_v15 = vpop.f32.mrf.mxu0 }
 0x244   :  { %v3999_v40 = vpop.f32.mrf.mxu0  ;;  %v4020_v8 = vpop.f32.mrf.mxu1 }
 0x245   :  { %v4000_v62 = vadd.f32 %v3999_v40, %v3998_v15 }
 0x246   :  { %v4001_v41 = vpop.f32.mrf.mxu0  ;;  %v4021_v42 = vpop.f32.mrf.mxu1 }
 0x247   :  { %v3415_v50 = vadd.f32 %v4000_v62, %v3375_v12  ;;  %v4022_v51 = vadd.f32 %v4021_v42, %v4020_v8 }
 0x248   :  { %v4002_v44 = vpop.f32.mrf.mxu0  ;;  %v4023_v56 = vpop.f32.mrf.mxu1 }
 0x249   :  { %v3455_v11 = vadd.f32 %v4022_v51, %v3415_v50 }
 0x24a   :  { %v4024_v45 = vpop.f32.mrf.mxu1 }
 0x262   :  { %v4042_v1 = vpop.f32.mrf.mxu0 }
 0x264   :  { %v4043_v52 = vpop.f32.mrf.mxu0 }
 0x265   :  { %v4044_v53 = vadd.f32 %v4043_v52, %v4042_v1 }
 0x266   :  { %v4045_v54 = vpop.f32.mrf.mxu0 }
 0x267   :  { %v3495_v38 = vadd.f32 %v4044_v53, %v3455_v11 }
 0x268   :  { %v4046_v58 = vpop.f32.mrf.mxu0 }
 0x269   :  { %3937 = vst.sshfl [vmem:[%s6056_s7 + $0x8] sm:$0x3 pattern:$0x76325410] %v3495_v38 }

// kernel: densenet169_forward.341
= control target key start
LH: loop header
LB: loop body
LE: loop exit
PB: predicated region body
PF: predicated region fallthrough
CT: control target
= control target key end

     0   :  { %s2382_s0 = inlined_call_operand.hbm [shape: f32[2,1,1,9,128], index: 0, kind: input, shape index: {}, may-alias: {0,7}]   ;;  %s2383_s1 = inlined_call_operand.vmem [shape: f32[2,1664], index: 1, kind: input, shape index: {}]   ;;  %s2384_s2 = inlined_call_operand.vmem [shape: f32[1,1664], index: 2, kind: input, shape index: {}]   ;;  %s2385_s3 = inlined_call_operand.vmem [shape: f32[1,1664], index: 3, kind: input, shape index: {}]   ;;  %s2386_s4 = inlined_call_operand.vmem [shape: bf16[1664,128], index: 4, kind: input, shape index: {}]   ;;  %s2387_s5 = inlined_call_operand.vmem [shape: f32[1,128], index: 5, kind: input, shape index: {}]   ;;  %s2388_s6 = inlined_call_operand.vmem [shape: f32[1,128], index: 6, kind: input, shape index: {}]   ;;  %s2389_s7 = inlined_call_operand.hbm [shape: f32[2,1,1,9,128], index: 7, kind: output, shape index: {}, may-alias: {0,7}]  }
   0x1   :  { %s8_s25 = scalar_lea.hbm %s2389_s7, 128  }
   0x2   :  { %v1782_v0 = vld [vmem:[%s2386_s4 + $0x78] sm:$0xff]   ;;  %v1786_v4 = vld [vmem:[%s2386_s4 + $0x70] sm:$0xff]   ;;  %v1790_v8 = vld [vmem:[%s2386_s4 + $0x68] sm:$0xff]   ;;  %v35_v19 = vlaneseq  ;;  %v1911_v45 = vmov 1983009808  }
   0x3   :  { %v1783_v1 = vld [vmem:[%s2386_s4 + $0xf8] sm:$0xff]   ;;  %1617 = vmatprep.subr.bf16.mxu0 %v1782_v0  ;;  %v1787_v5 = vld [vmem:[%s2386_s4 + $0xf0] sm:$0xff]   ;;  %v1791_v9 = vld [vmem:[%s2386_s4 + $0xe8] sm:$0xff]   ;;  %v90_v46 = vunpack.c.l.s4 %v1911_v45 }
   0x4   :  { %v1784_v2 = vld [vmem:[%s2386_s4 + $0x38] sm:$0xff]   ;;  %1639 = vmatprep.subr.bf16.mxu1 %v1783_v1  ;;  %v1788_v6 = vld [vmem:[%s2386_s4 + $0x30] sm:$0xff]   ;;  %v1792_v10 = vld [vmem:[%s2386_s4 + $0x28] sm:$0xff]   ;;  %v2027_v24 = vshrl.u32 %v35_v19, 7 }
   0x5   :  { %v1785_v3 = vld [vmem:[%s2386_s4 + $0xb8] sm:$0xff]   ;;  %1618 = vmatpush3.bf16.msra.mxu0 %v1784_v2  ;;  %v1789_v7 = vld [vmem:[%s2386_s4 + $0xb0] sm:$0xff]   ;;  %v1793_v11 = vld [vmem:[%s2386_s4 + $0xa8] sm:$0xff]   ;;  %v91_v54 = vunpack.c.0.s8 %v90_v46 }
   0x6   :  { %1640 = vmatpush3.bf16.msra.mxu1 %v1785_v3  ;;  %1619 = vmatprep.subr.bf16.mxu0 %v1786_v4  ;;  %v1794_v12 = vld [vmem:[%s2386_s4 + $0x60] sm:$0xff]   ;;  %v1798_v16 = vld [vmem:[%s2386_s4 + $0x58] sm:$0xff]   ;;  %v1802_v21 = vld [vmem:[%s2386_s4 + $0x50] sm:$0xff]   ;;  %v2042_v29 = vsub.s32 0, %v2027_v24  ;;  %v2048_v31 = vsub.s32 1, %v2027_v24  ;;  %v2054_v33 = vsub.s32 2, %v2027_v24 }
   0x7   :  { %1641 = vmatprep.subr.bf16.mxu1 %v1787_v5  ;;  %v1795_v13 = vld [vmem:[%s2386_s4 + $0xe0] sm:$0xff]   ;;  %v1799_v17 = vld [vmem:[%s2386_s4 + $0xd8] sm:$0xff]   ;;  %v1803_v22 = vld [vmem:[%s2386_s4 + $0xd0] sm:$0xff]   ;;  %v2060_v35 = vsub.s32 3, %v2027_v24  ;;  %v2089_v57 = vsub.s32 %v91_v54, %v2027_v24  ;;  %v2099_v2 = vsub.s32 4, %v2027_v24  ;;  %v57_v3 = vsub.s32 5, %v2027_v24 }
   0x8   :  { %v1796_v14 = vld [vmem:[%s2386_s4 + $0x20] sm:$0xff]   ;;  %v1800_v18 = vld [vmem:[%s2386_s4 + $0x18] sm:$0xff]   ;;  %v1804_v23 = vld [vmem:[%s2386_s4 + $0x10] sm:$0xff]   ;;  %v61_v4 = vsub.s32 6, %v2027_v24  ;;  %v65_v5 = vsub.s32 7, %v2027_v24 }
   0x9   :  { %1620 = vmatpush3.bf16.msra.mxu0 %v1788_v6  ;;  %v1797_v15 = vld [vmem:[%s2386_s4 + $0xa0] sm:$0xff]   ;;  %v1801_v20 = vld [vmem:[%s2386_s4 + $0x98] sm:$0xff]   ;;  %v1805_v25 = vld [vmem:[%s2386_s4 + $0x90] sm:$0xff]  }
   0xa   :  { %1642 = vmatpush3.bf16.msra.mxu1 %v1789_v7  ;;  %1621 = vmatprep.subr.bf16.mxu0 %v1790_v8  ;;  %v1806_v26 = vld [vmem:[%s2386_s4 + $0x48] sm:$0xff]   ;;  %v1810_v32 = vld [vmem:[%s2386_s4 + $0x40] sm:$0xff]   ;;  %v1814_v44 = vld [vmem:[%s2386_s4 + $0x178] sm:$0xff]  }
   0xb   :  { %1643 = vmatprep.subr.bf16.mxu1 %v1791_v9  ;;  %v1807_v27 = vld [vmem:[%s2386_s4 + $0xc8] sm:$0xff]   ;;  %v1811_v34 = vld [vmem:[%s2386_s4 + $0xc0] sm:$0xff]   ;;  %v1816_v51 = vld [vmem:[%s2386_s4 + $0x1f8] sm:$0xff]  }
   0xc   :  { %v1808_v28 = vld [vmem:[%s2386_s4 + $0x8] sm:$0xff]   ;;  %v1812_v36 = vld [vmem:[%s2386_s4] sm:$0xff]  }
   0xd   :  { %1622 = vmatpush3.bf16.msra.mxu0 %v1792_v10  ;;  %v1809_v30 = vld [vmem:[%s2386_s4 + $0x88] sm:$0xff]   ;;  %v1813_v37 = vld [vmem:[%s2386_s4 + $0x80] sm:$0xff]  }
   0xe   :  { %1644 = vmatpush3.bf16.msra.mxu1 %v1793_v11  ;;  %1623 = vmatprep.subr.bf16.mxu0 %v1794_v12  ;;  %v31_v38 = vld [vmem:[%s2384_s2] sm:$0xff]  ;;  %v1824_v45 = vld [vmem:[%s2386_s4 + $0x1e8] sm:$0xff]  }
   0xf   :  { %1645 = vmatprep.subr.bf16.mxu1 %v1795_v13  ;;  %v153_v39 = vld [vmem:[%s2385_s3] sm:$0xff]  ;;  %v38_v40 = vrot.slane %v31_v38, %v2042_v29  ;;  %v42_v41 = vrot.slane %v31_v38, %v2048_v31  ;;  %v46_v42 = vrot.slane %v31_v38, %v2054_v33  ;;  %v50_v43 = vrot.slane %v31_v38, %v2060_v35 }
  0x10   :  { %v160_v47 = vrot.slane %v153_v39, %v2042_v29  ;;  %v164_v48 = vrot.slane %v153_v39, %v2048_v31  ;;  %v168_v49 = vrot.slane %v153_v39, %v2054_v33  ;;  %v172_v50 = vrot.slane %v153_v39, %v2060_v35  ;;  %v27_v62 = vld [vmem:[%s2383_s1] sm:$0xff] }
  0x11   :  { %1624 = vmatpush3.bf16.msra.mxu0 %v1796_v14  ;;  %v87_v52 = vcombine.low %v38_v40, %v42_v41  ;;  %v88_v53 = vcombine.low %v46_v42, %v50_v43  ;;  %v54_v8 = vrot.slane %v31_v38, %v2099_v2  ;;  %v58_v9 = vrot.slane %v31_v38, %v57_v3  ;;  %v1821_v40 = vld [vmem:[%s2386_s4 + $0x1b0] sm:$0xff]   ;;  %v1822_v41 = vld [vmem:[%s2386_s4 + $0x168] sm:$0xff]   ;;  %v1829_v54 = vld [vmem:[%s2386_s4 + $0x1a0] sm:$0xff]  }
  0x12   :  { %1646 = vmatpush3.bf16.msra.mxu1 %v1797_v15  ;;  %1625 = vmatprep.subr.bf16.mxu0 %v1798_v16  ;;  %v209_v55 = vcombine.low %v160_v47, %v164_v48  ;;  %v210_v56 = vcombine.low %v168_v49, %v172_v50  ;;  %v62_v10 = vrot.slane %v31_v38, %v61_v4  ;;  %v1825_v47 = vld [vmem:[%s2386_s4 + $0x1a8] sm:$0xff]   ;;  %v1826_v48 = vld [vmem:[%s2386_s4 + $0x160] sm:$0xff]  }
  0x13   :  { %1647 = vmatprep.subr.bf16.mxu1 %v1799_v17  ;;  %v95_v58 = vrot.slane %v87_v52, %v2089_v57  ;;  %v102_v59 = vrot.slane %v88_v53, %v2089_v57  ;;  %v66_v11 = vrot.slane %v31_v38, %v65_v5  ;;  %v176_v14 = vrot.slane %v153_v39, %v2099_v2  ;;  %v1827_v50 = vld [vmem:[%s2386_s4 + $0x120] sm:$0xff]  }
  0x14   :  { %v217_v60 = vrot.slane %v209_v55, %v2089_v57  ;;  %v224_v61 = vrot.slane %v210_v56, %v2089_v57  ;;  %v180_v15 = vrot.slane %v153_v39, %v57_v3  ;;  %v184_v16 = vrot.slane %v153_v39, %v61_v4  ;;  %v1828_v52 = vld [vmem:[%s2386_s4 + $0x1e0] sm:$0xff]   ;;  %v1830_v55 = vld [vmem:[%s2386_s4 + $0x158] sm:$0xff]   ;;  %v1836_v3 = vld [vmem:[%s2386_s4 + $0x1d0] sm:$0xff]  }
  0x15   :  { %1626 = vmatpush3.bf16.msra.mxu0 %v1800_v18  ;;  %v103_v63 = vcombine.low %v95_v58, %v102_v59  ;;  %v188_v17 = vrot.slane %v153_v39, %v65_v5  ;;  %v1831_v58 = vld [vmem:[%s2386_s4 + $0x118] sm:$0xff]  }
  0x16   :  { %1648 = vmatpush3.bf16.msra.mxu1 %v1801_v20  ;;  %1627 = vmatprep.subr.bf16.mxu0 %v1802_v21  ;;  %v225_v0 = vcombine.low %v217_v60, %v224_v61  ;;  %v1815_v21 = vld [vmem:[%s2386_s4 + $0x138] sm:$0xff]  }
  0x17   :  { %1649 = vmatprep.subr.bf16.mxu1 %v1803_v22  ;;  %v149_v1 = vmul.f32 %v103_v63, %v27_v62  ;;  %v104_v22 = vcombine.low %v54_v8, %v58_v9  ;;  %v1832_v59 = vld [vmem:[%s2386_s4 + $0x1d8] sm:$0xff]   ;;  %v1834_v62 = vld [vmem:[%s2386_s4 + $0x150] sm:$0xff]  }
  0x18   :  { %v1833_v61 = vld [vmem:[%s2386_s4 + $0x198] sm:$0xff]  }
  0x19   :  { %1628 = vmatpush3.bf16.msra.mxu0 %v1804_v23  ;;  %v271_v6 = vadd.f32 %v225_v0, %v149_v1  ;;  %v105_v23 = vcombine.low %v62_v10, %v66_v11  ;;  %v112_v38 = vrot.slane %v104_v22, %v2089_v57  ;;  %v1835_v1 = vld [vmem:[%s2386_s4 + $0x110] sm:$0xff]   ;;  %v1839_v10 = vld [vmem:[%s2386_s4 + $0x108] sm:$0xff]   ;;  %v1849_v22 = vld [vmem:[%s2386_s4 + $0x2b8] sm:$0xff]  }
  0x1a   :  { %1650 = vmatpush3.bf16.msra.mxu1 %v1805_v25  ;;  %1629 = vmatprep.subr.bf16.mxu0 %v1806_v26  ;;  %v1817_v26 = vld [vmem:[%s2386_s4 + $0x1b8] sm:$0xff]   ;;  %v1840_v11 = vld [vmem:[%s2386_s4 + $0x1c8] sm:$0xff]  }
  0x1b   :  { %1651 = vmatprep.subr.bf16.mxu1 %v1807_v27  ;;  %v275_v7 = vmax.f32 %v271_v6, 0.0  ;;  %v119_v39 = vrot.slane %v105_v23, %v2089_v57  ;;  %v1837_v6 = vld [vmem:[%s2386_s4 + $0x190] sm:$0xff]  }
  0x1d   :  { %1630 = vmatpush3.bf16.msra.mxu0 %v1808_v28  ;;  %v290_v12 = vrot.slane %v275_v7, %v2089_v57  ;;  %v283_v13 = vcombine.high %v275_v7, %v275_v7  ;;  %v1818_v28 = vld [vmem:[%s2386_s4 + $0x170] sm:$0xff]   ;;  %v120_v46 = vcombine.low %v112_v38, %v119_v39  ;;  %v1838_v7 = vld [vmem:[%s2386_s4 + $0x148] sm:$0xff]   ;;  %v1860_v38 = vld [vmem:[%s2386_s4 + $0x2e0] sm:$0xff]  }
  0x1e   :  { %1652 = vmatpush3.bf16.msra.mxu1 %v1809_v30  ;;  %1631 = vmatprep.subr.bf16.mxu0 %v1810_v32  ;;  %v226_v30 = vcombine.low %v176_v14, %v180_v15  ;;  %v227_v32 = vcombine.low %v184_v16, %v188_v17  ;;  %v1842_v14 = vld [vmem:[%s2386_s4 + $0x140] sm:$0xff]   ;;  %v2255_v39 = vld [vmem:[%s2384_s2 + $0x8] sm:$0x1f] }
  0x1f   :  { %1653 = vmatprep.subr.bf16.mxu1 %v1811_v34  ;;  %v298_v18 = vcombine.high %v290_v12, %v290_v12  ;;  %v297_v19 = vrot.slane %v283_v13, %v2089_v57  ;;  %v354_v20 = vpack.c.bf16 %v290_v12, %v290_v12  ;;  %v1841_v13 = vld [vmem:[%s2386_s4 + $0x188] sm:$0xff]   ;;  %v1843_v15 = vld [vmem:[%s2386_s4 + $0x100] sm:$0xff]  }
  0x20   :  { %v234_v42 = vrot.slane %v226_v30, %v2089_v57  ;;  %v241_v43 = vrot.slane %v227_v32, %v2089_v57  ;;  %v1844_v16 = vld [vmem:[%s2386_s4 + $0x1c0] sm:$0xff]   ;;  %v1855_v30 = vld [vmem:[%s2386_s4 + $0x228] sm:$0xff]  }
  0x21   :  { %1632 = vmatpush3.bf16.msra.mxu0 %v1812_v36  ;;  %v355_v24 = vpack.c.bf16 %v298_v18, %v298_v18  ;;  %v299_v25 = vcombine.high %v297_v19, %v297_v19  ;;  %v356_v27 = vpack.c.bf16 %v297_v19, %v297_v19  ;;  %v1819_v36 = vld [vmem:[%s2386_s4 + $0x130] sm:$0xff]   ;;  %v1845_v17 = vld [vmem:[%s2386_s4 + $0x180] sm:$0xff]   ;;  %v1846_v18 = vld [vmem:[%s2386_s4 + $0x278] sm:$0xff]  }
  0x22   :  { %1654 = vmatpush3.bf16.msra.mxu1 %v1813_v37  ;;  %1661 = vmatprep.subr.bf16.mxu0 %v1814_v44  ;;  %v1820_v37 = vld [vmem:[%s2386_s4 + $0x1f0] sm:$0xff]   ;;  %v1823_v44 = vld [vmem:[%s2386_s4 + $0x128] sm:$0xff]   ;;  %v242_v49 = vcombine.low %v234_v42, %v241_v43  ;;  %v1847_v19 = vld [vmem:[%s2386_s4 + $0x238] sm:$0xff]   ;;  %v78_v42 = vrot.slane %v2255_v39, %v2054_v33  ;;  %v82_v43 = vrot.slane %v2255_v39, %v2060_v35 }
  0x23   :  { %1683 = vmatprep.subr.bf16.mxu1 %v1816_v51  ;;  %1231 = vmatprep.mubr.bf16.mxu0 %v355_v24  ;;  %v357_v34 = vpack.c.bf16 %v299_v25, %v299_v25  ;;  %v28_v51 = vld [vmem:[%s2383_s1 + $0x8] sm:$0xff]  ;;  %v1850_v24 = vld [vmem:[%s2386_s4 + $0x270] sm:$0xff]  }
  0x24   :  { %1232 = vmatmul.mubr.bf16.vlgmr.msra.gmra.mxu0 %v354_v20  ;;  %v150_v53 = vmul.f32 %v120_v46, %v28_v51  ;;  %v1851_v25 = vld [vmem:[%s2386_s4 + $0x230] sm:$0xff]   ;;  %v1856_v32 = vld [vmem:[%s2386_s4 + $0x2e8] sm:$0xff]  }
  0x25   :  { %1271 = vmatprep.mubr.bf16.mxu1 %v357_v34  ;;  %1662 = vmatpush3.bf16.msra.mxu0 %v1815_v21  ;;  %v1848_v21 = vld [vmem:[%s2386_s4 + $0x2f8] sm:$0xff]   ;;  %v1857_v34 = vld [vmem:[%s2386_s4 + $0x2a8] sm:$0xff]  }
  0x26   :  { %1272 = vmatmul.mubr.bf16.vlgmr.msra.gmra.mxu1 %v356_v27  ;;  %1663 = vmatprep.subr.bf16.mxu0 %v1818_v28  ;;  %v272_v56 = vadd.f32 %v242_v49, %v150_v53  ;;  %v1853_v27 = vld [vmem:[%s2386_s4 + $0x2b0] sm:$0xff]   ;;  %v1854_v28 = vld [vmem:[%s2386_s4 + $0x268] sm:$0xff]  }
  0x27   :  { %1684 = vmatpush3.bf16.msra.mxu1 %v1817_v26  ;;  %v1852_v26 = vld [vmem:[%s2386_s4 + $0x2f0] sm:$0xff]  }
  0x28   :  { %1685 = vmatprep.subr.bf16.mxu1 %v1820_v37  ;;  %v276_v60 = vmax.f32 %v272_v56, 0.0  ;;  %v1859_v37 = vld [vmem:[%s2386_s4 + $0x220] sm:$0xff]  }
  0x29   :  { %1664 = vmatpush3.bf16.msra.mxu0 %v1819_v36  ;;  %v1858_v36 = vld [vmem:[%s2386_s4 + $0x260] sm:$0xff]  }
  0x2a   :  { %1665 = vmatprep.subr.bf16.mxu0 %v1822_v41  ;;  %v307_v63 = vrot.slane %v276_v60, %v2089_v57  ;;  %v300_v0 = vcombine.high %v276_v60, %v276_v60  ;;  %v74_v41 = vrot.slane %v2255_v39, %v2048_v31 }
  0x2b   :  { %1686 = vmatpush3.bf16.msra.mxu1 %v1821_v40  ;;  %v70_v40 = vrot.slane %v2255_v39, %v2042_v29 }
  0x2c   :  { %1687 = vmatprep.subr.bf16.mxu1 %v1824_v45  ;;  %v315_v4 = vcombine.high %v307_v63, %v307_v63  ;;  %v314_v5 = vrot.slane %v300_v0, %v2089_v57  ;;  %v358_v20 = vpack.c.bf16 %v307_v63, %v307_v63  ;;  %v1861_v45 = vld [vmem:[%s2386_s4 + $0x2a0] sm:$0xff]   ;;  %v1868_v63 = vld [vmem:[%s2386_s4 + $0x2d0] sm:$0xff]  }
  0x2d   :  { %1666 = vmatpush3.bf16.msra.mxu0 %v1823_v44  ;;  %v2268_v44 = vld [vmem:[%s2385_s3 + $0x8] sm:$0x1f]  ;;  %v121_v51 = vcombine.low %v70_v40, %v74_v41 }
  0x2e   :  { %1667 = vmatprep.subr.bf16.mxu0 %v1826_v48  ;;  %v359_v8 = vpack.c.bf16 %v315_v4, %v315_v4  ;;  %v316_v9 = vcombine.high %v314_v5, %v314_v5  ;;  %v360_v23 = vpack.c.bf16 %v314_v5, %v314_v5  ;;  %v192_v46 = vrot.slane %v2268_v44, %v2042_v29  ;;  %v1863_v29 = vld [vmem:[%s2386_s4 + $0x218] sm:$0xff]  }
  0x2f   :  { %1688 = vmatpush3.bf16.msra.mxu1 %v1825_v47  ;;  %v196_v47 = vrot.slane %v2268_v44, %v2048_v31  ;;  %v200_v48 = vrot.slane %v2268_v44, %v2054_v33  ;;  %v204_v49 = vrot.slane %v2268_v44, %v2060_v35  ;;  %v1864_v33 = vld [vmem:[%s2386_s4 + $0x2d8] sm:$0xff]   ;;  %v129_v35 = vrot.slane %v121_v51, %v2089_v57 }
  0x30   :  { %1689 = vmatprep.subr.bf16.mxu1 %v1828_v52  ;;  %1311 = vmatprep.mubr.bf16.mxu0 %v359_v8  ;;  %v361_v12 = vpack.c.bf16 %v316_v9, %v316_v9  ;;  %v122_v52 = vcombine.low %v78_v42, %v82_v43 }
  0x31   :  { %1668 = vmatpush3.bf16.msra.mxu0 %v1827_v50  ;;  %v1862_v50 = vld [vmem:[%s2386_s4 + $0x258] sm:$0xff]   ;;  %v243_v53 = vcombine.low %v192_v46, %v196_v47  ;;  %v244_v31 = vcombine.low %v200_v48, %v204_v49 }
  0x32   :  { %1669 = vmatprep.subr.bf16.mxu0 %v1830_v55  ;;  %1351 = vmatprep.mubr.bf16.mxu1 %v361_v12  ;;  %v29_v55 = vld [vmem:[%s2383_s1 + $0x10] sm:$0xff] }
  0x33   :  { %1690 = vmatpush3.bf16.msra.mxu1 %v1829_v54  ;;  %v136_v54 = vrot.slane %v122_v52, %v2089_v57  ;;  %v251_v56 = vrot.slane %v243_v53, %v2089_v57 }
  0x34   :  { %1691 = vmatprep.subr.bf16.mxu1 %v1832_v59  ;;  %v1866_v59 = vld [vmem:[%s2386_s4 + $0x250] sm:$0xff]  }
  0x35   :  { %1670 = vmatpush3.bf16.msra.mxu0 %v1831_v58  ;;  %v258_v58 = vrot.slane %v244_v31, %v2089_v57  ;;  %v137_v60 = vcombine.low %v129_v35, %v136_v54 }
  0x36   :  { %1671 = vmatprep.subr.bf16.mxu0 %v1834_v62 }
  0x37   :  { %1692 = vmatpush3.bf16.msra.mxu1 %v1833_v61  ;;  %v1865_v61 = vld [vmem:[%s2386_s4 + $0x298] sm:$0xff]   ;;  %v259_v62 = vcombine.low %v251_v56, %v258_v58  ;;  %v151_v0 = vmul.f32 %v137_v60, %v29_v55 }
  0x38   :  { %1693 = vmatprep.subr.bf16.mxu1 %v1836_v3 }
  0x39   :  { %1672 = vmatpush3.bf16.msra.mxu0 %v1835_v1  ;;  %v1867_v1 = vld [vmem:[%s2386_s4 + $0x210] sm:$0xff]  }
  0x3a   :  { %1673 = vmatprep.subr.bf16.mxu0 %v1838_v7 }
  0x3b   :  { %1694 = vmatpush3.bf16.msra.mxu1 %v1837_v6 }
  0x3c   :  { %1695 = vmatprep.subr.bf16.mxu1 %v1840_v11 }
  0x3d   :  { %1674 = vmatpush3.bf16.msra.mxu0 %v1839_v10 }
  0x3e   :  { %1675 = vmatprep.subr.bf16.mxu0 %v1842_v14 }
  0x3f   :  { %1696 = vmatpush3.bf16.msra.mxu1 %v1841_v13 }
  0x40   :  { %1697 = vmatprep.subr.bf16.mxu1 %v1844_v16 }
  0x41   :  { %1676 = vmatpush3.bf16.msra.mxu0 %v1843_v15 }
  0x42   :  { %1705 = vmatprep.subr.bf16.mxu0 %v1846_v18 }
  0x43   :  { %1698 = vmatpush3.bf16.msra.mxu1 %v1845_v17 }
  0x44   :  { %1312 = vmatmul.mubr.bf16.vlgmr.msra.gmra.mxu0 %v358_v20  ;;  %1727 = vmatprep.subr.bf16.mxu1 %v1848_v21 }
  0x45   :  { %1706 = vmatpush3.bf16.msra.mxu0 %v1847_v19 }
  0x46   :  { %1352 = vmatmul.mubr.bf16.vlgmr.msra.gmra.mxu1 %v360_v23  ;;  %1707 = vmatprep.subr.bf16.mxu0 %v1850_v24 }
  0x47   :  { %1728 = vmatpush3.bf16.msra.mxu1 %v1849_v22 }
  0x48   :  { %1729 = vmatprep.subr.bf16.mxu1 %v1852_v26 }
  0x49   :  { %1708 = vmatpush3.bf16.msra.mxu0 %v1851_v25 }
  0x4a   :  { %1709 = vmatprep.subr.bf16.mxu0 %v1854_v28 }
  0x4b   :  { %1730 = vmatpush3.bf16.msra.mxu1 %v1853_v27 }
  0x4c   :  { %1731 = vmatprep.subr.bf16.mxu1 %v1856_v32 }
  0x4d   :  { %1710 = vmatpush3.bf16.msra.mxu0 %v1855_v30 }
  0x4e   :  { %1711 = vmatprep.subr.bf16.mxu0 %v1858_v36 }
  0x4f   :  { %1732 = vmatpush3.bf16.msra.mxu1 %v1857_v34 }
  0x50   :  { %1733 = vmatprep.subr.bf16.mxu1 %v1860_v38 }
  0x51   :  { %1712 = vmatpush3.bf16.msra.mxu0 %v1859_v37 }
  0x52   :  { %1713 = vmatprep.subr.bf16.mxu0 %v1862_v50 }
  0x53   :  { %1734 = vmatpush3.bf16.msra.mxu1 %v1861_v45 }
  0x54   :  { %1735 = vmatprep.subr.bf16.mxu1 %v1864_v33 }
  0x55   :  { %1714 = vmatpush3.bf16.msra.mxu0 %v1863_v29 }
  0x56   :  { %13 = vsyncpa [#allocation3], 0  ;;  %1715 = vmatprep.subr.bf16.mxu0 %v1866_v59  ;;  %v1870_v3 = vld [vmem:[%s2386_s4 + $0x248] sm:$0xff]   ;;  %v273_v4 = vadd.f32 %v259_v62, %v151_v0  ;;  %v1869_v5 = vld [vmem:[%s2386_s4 + $0x290] sm:$0xff]   ;;  %v1912_v23 = vmov 0.0   ;;  %vm1913_vm0 = vmmov 0   ;;  %v86_v26 = vrot.slane %v2255_v39, %v2099_v2 }
  0x57   :  { %1736 = vmatpush3.bf16.msra.mxu1 %v1865_v61  ;;  %v1872_v6 = vld [vmem:[%s2386_s4 + $0x2c8] sm:$0xff]   ;;  %v1874_v9 = vld [vmem:[%s2386_s4 + $0x240] sm:$0xff]   ;;  %v1878_v22 = vld [vmem:[%s2386_s4 + $0x338] sm:$0xff]   ;;  %v208_v30 = vrot.slane %v2268_v44, %v2099_v2  ;;  %s1914_s16 = smov [#allocation2]  }
  0x58   :  { %1737 = vmatprep.subr.bf16.mxu1 %v1868_v63  ;;  %v277_v7 = vmax.f32 %v273_v4, 0.0  ;;  %v1871_v8 = vld [vmem:[%s2386_s4 + $0x208] sm:$0xff]   ;;  %v1876_v13 = vld [vmem:[%s2386_s4 + $0x2c0] sm:$0xff]   ;;  %v1879_v25 = vld [vmem:[%s2386_s4 + $0x330] sm:$0xff]   ;;  %v144_v28 = vrot.slane %v86_v26, %v2089_v57  ;;  %s1503_s17 = sshll.u32 %s1914_s16, 4  ;;  %s1504_s17 = int_to_ptr.vmem [resolvable:$true] %s1503_s17 }
  0x59   :  { %1716 = vmatpush3.bf16.msra.mxu0 %v1867_v1  ;;  %v1873_v12 = vld [vmem:[%s2386_s4 + $0x288] sm:$0xff]   ;;  %v1875_v16 = vld [vmem:[%s2386_s4 + $0x200] sm:$0xff]   ;;  %v30_v34 = vld [vmem:[%s2383_s1 + $0x18] sm:$0x3]  ;;  %v266_v37 = vrot.slane %v208_v30, %v2089_v57  ;;  %s1886_s18 = scalar_lea.vmem %s1504_s17, 32  ;;  %p1891_p1 = scmp.lt.s32.totalorder %s1504_s17, %s1504_s17 }
  0x5a   :  { %1717 = vmatprep.subr.bf16.mxu0 %v1870_v3  ;;  %v324_v10 = vrot.slane %v277_v7, %v2089_v57  ;;  %v317_v11 = vcombine.high %v277_v7, %v277_v7  ;;  %v1877_v19 = vld [vmem:[%s2386_s4 + $0x280] sm:$0xff]   ;;  %v1880_v27 = vld [vmem:[%s2386_s4 + $0x328] sm:$0xff]   ;;  %v152_v36 = vmul.f32 %v144_v28, %v30_v34  ;;  %v1882_v38 = vld [vmem:[%s2386_s4 + $0x318] sm:$0xff]   ;;  %p1887_p0 = scmp.ne.s32.totalorder %s1504_s17, %s1886_s18  ;;  %p1892_p2 = scmp.lt.s32.totalorder %s1886_s18, %s1886_s18 }
  0x5b   :  { %1738 = vmatpush3.bf16.msra.mxu1 %v1869_v5  ;;  %v1881_v32 = vld [vmem:[%s2386_s4 + $0x320] sm:$0xff]   ;;  %v1883_v39 = vld [vmem:[%s2386_s4 + $0x310] sm:$0xff]   ;;  %v1884_v41 = vld [vmem:[%s2386_s4 + $0x308] sm:$0xff]  }
  0x5c   :  { %1739 = vmatprep.subr.bf16.mxu1 %v1872_v6  ;;  %v332_v14 = vcombine.high %v324_v10, %v324_v10  ;;  %v331_v15 = vrot.slane %v317_v11, %v2089_v57  ;;  %v362_v20 = vpack.c.bf16 %v324_v10, %v324_v10  ;;  %v274_v2 = vadd.f32 %v266_v37, %v152_v36  ;;  %v1885_v43 = vld [vmem:[%s2386_s4 + $0x300] sm:$0xff]   ;;  %p1893_p3 = por %p1892_p2, %p1891_p1 }
  0x5d   :  { %1718 = vmatpush3.bf16.msra.mxu0 %v1871_v8 }
  0x5e   :  { %1719 = vmatprep.subr.bf16.mxu0 %v1874_v9  ;;  %v363_v17 = vpack.c.bf16 %v332_v14, %v332_v14  ;;  %v333_v18 = vcombine.high %v331_v15, %v331_v15  ;;  %v364_v24 = vpack.c.bf16 %v331_v15, %v331_v15  ;;  %v278_v40 = vmax.f32 %v274_v2, 0.0  ;;  %v1615_v14 = vld [vmem:[%s2387_s5] ss:$0 sm:$0xff]  ;;  %p1894_p4 = pnand %p1893_p3, %p1887_p0 }
  0x5f   :  { %1740 = vmatpush3.bf16.msra.mxu1 %v1873_v12 }
  0x60   :  { %1741 = vmatprep.subr.bf16.mxu1 %v1876_v13  ;;  %1391 = vmatprep.mubr.bf16.mxu0 %v363_v17  ;;  %v365_v21 = vpack.c.bf16 %v333_v18, %v333_v18  ;;  %v340_v42 = vrot.slane %v278_v40, %v2089_v57  ;;  %v1616_v17 = vld [vmem:[%s2388_s6] ss:$0 sm:$0xff] }
  0x61   :  { %1720 = vmatpush3.bf16.msra.mxu0 %v1875_v16 }
  0x62   :  { %1758 = vmatprep.subr.bf16.mxu0 %v1912_v23  ;;  %1431 = vmatprep.mubr.bf16.mxu1 %v365_v21  ;;  %v366_v44 = vpack.c.bf16 %v340_v42, %v340_v42 }
  0x63   :  { %1742 = vmatpush3.bf16.msra.mxu1 %v1877_v19 }
  0x64   :  { %1392 = vmatmul.mubr.bf16.vlgmr.msra.gmra.mxu0 %v362_v20 }
  0x65   :  { %1759 = vmatpush3.bf16.msra.mxu0 %v1878_v22  ;;  %1774 = vmatprep.mubr.msk.bf16.mxu0 %vm1913_vm0, %v1912_v23 }
  0x66   :  { %1432 = vmatmul.mubr.bf16.vlgmr.msra.gmra.mxu1 %v364_v24  ;;  %1760 = vmatprep.subr.bf16.mxu0 %v1912_v23 }
  0x69   :  { %1761 = vmatpush3.bf16.msra.mxu0 %v1879_v25 }
  0x6a   :  { %1762 = vmatprep.subr.bf16.mxu0 %v1912_v23 }
  0x6d   :  { %1763 = vmatpush3.bf16.msra.mxu0 %v1880_v27 }
  0x6e   :  { %1764 = vmatprep.subr.bf16.mxu0 %v1912_v23 }
  0x71   :  { %1765 = vmatpush3.bf16.msra.mxu0 %v1881_v32 }
  0x72   :  { %1766 = vmatprep.subr.bf16.mxu0 %v1912_v23 }
  0x75   :  { %1767 = vmatpush3.bf16.msra.mxu0 %v1882_v38 }
  0x76   :  { %1768 = vmatprep.subr.bf16.mxu0 %v1912_v23 }
  0x79   :  { %1769 = vmatpush3.bf16.msra.mxu0 %v1883_v39 }
  0x7a   :  { %1770 = vmatprep.subr.bf16.mxu0 %v1912_v23 }
  0x7d   :  { %1771 = vmatpush3.bf16.msra.mxu0 %v1884_v41 }
  0x7e   :  { %1772 = vmatprep.subr.bf16.mxu0 %v1912_v23 }
  0x81   :  { %1773 = vmatpush3.bf16.msra.mxu0 %v1885_v43 }
  0x84   :  { %1775 = vmatmul.mubr.bf16.vlgmr.msra.gmra.mxu0 %v366_v44 }
  0xe4   :  { %v1633_v45 = vpop.f32.mrf.mxu0 }
  0xe6   :  { %v1655_v46 = vpop.f32.mrf.mxu1  ;;  %v1634_v47 = vpop.f32.mrf.mxu0 }
  0xe7   :  { %v1635_v48 = vadd.f32 %v1634_v47, %v1633_v45 }
  0xe8   :  { %v1656_v49 = vpop.f32.mrf.mxu1  ;;  %v1636_v50 = vpop.f32.mrf.mxu0 }
  0xe9   :  { %v1657_v51 = vadd.f32 %v1656_v49, %v1655_v46 }
  0xea   :  { %v1637_v52 = vpop.f32.mrf.mxu0  ;;  %v1658_v29 = vpop.f32.mrf.mxu1 }
  0xeb   :  { %v1274_v53 = vadd.f32 %v1657_v51, %v1635_v48 }
  0xec   :  { %v1659_v57 = vpop.f32.mrf.mxu1 }
 0x104   :  { %v1677_v31 = vpop.f32.mrf.mxu0 }
 0x106   :  { %v1678_v33 = vpop.f32.mrf.mxu0  ;;  %v1699_v35 = vpop.f32.mrf.mxu1 }
 0x107   :  { %v1679_v5 = vadd.f32 %v1678_v33, %v1677_v31 }
 0x108   :  { %v1680_v54 = vpop.f32.mrf.mxu0  ;;  %v1700_v55 = vpop.f32.mrf.mxu1 }
 0x109   :  { %v1314_v6 = vadd.f32 %v1679_v5, %v1274_v53  ;;  %v1701_v7 = vadd.f32 %v1700_v55, %v1699_v35 }
 0x10a   :  { %v1681_v56 = vpop.f32.mrf.mxu0  ;;  %v1702_v58 = vpop.f32.mrf.mxu1 }
 0x10b   :  { %v1354_v9 = vadd.f32 %v1701_v7, %v1314_v6 }
 0x10c   :  { %v1703_v59 = vpop.f32.mrf.mxu1 }
 0x124   :  { %v1721_v60 = vpop.f32.mrf.mxu0 }
 0x126   :  { %v1722_v61 = vpop.f32.mrf.mxu0  ;;  %v1743_v62 = vpop.f32.mrf.mxu1 }
 0x127   :  { %v1723_v8 = vadd.f32 %v1722_v61, %v1721_v60 }
 0x128   :  { %v1724_v63 = vpop.f32.mrf.mxu0  ;;  %v1744_v0 = vpop.f32.mrf.mxu1 }
 0x129   :  { %v1394_v10 = vadd.f32 %v1723_v8, %v1354_v9  ;;  %v1745_v11 = vadd.f32 %v1744_v0, %v1743_v62 }
 0x12a   :  { %v1725_v1 = vpop.f32.mrf.mxu0  ;;  %v1746_v3 = vpop.f32.mrf.mxu1 }
 0x12b   :  { %v1434_v12 = vadd.f32 %v1745_v11, %v1394_v10 }
 0x12c   :  { %v1747_v4 = vpop.f32.mrf.mxu1 }
 0x144   :  { %v1473_v13 = vpop.f32.mrf.mxu0 }
 0x145   :  { %v1474_v15 = vadd.f32 %v1473_v13, %v1434_v12 }
 0x146   :  { %v1776_v16 = vpop.f32.mrf.mxu0 }
 0x147   :  { %v1486_v18 = vmul.f32 %v1615_v14, %v1474_v15 }
 0x148   :  { %v1476_v19 = vpop.f32.mrf.mxu0 }
 0x149   :  { %v1494_v20 = vadd.f32 %v1616_v17, %v1486_v18 }
 0x14a   :  { %v1777_v21 = vpop.f32.mrf.mxu0 }
 0x14b   :  { %v1495_v22 = vmax.f32 %v1494_v20, 0.0 }
 0x14d   :  { %1496 = vst [vmem:[#allocation2] sm:$0x3] %v1495_v22 }
 0x14e   :  { %1897 = shalt.err (!%p1894_p4)
}
 0x14f   :  { %1506 = dma.vmem_to_hbm [thread:$0]  %s1504_s17, 32, %s8_s25, [#allocation3]  }
 0x150   :  { %1909 = dma.done.wait [#allocation3], 32  }
 0x151   :  { %1910 = vsyncadd [#allocation3], 4294967264 }
 0x152   :  { %1510 = vsyncpa [#allocation3], 1 }

// kernel: densenet169_forward.308
= control target key start
LH: loop header
LB: loop body
LE: loop exit
PB: predicated region body
PF: predicated region fallthrough
CT: control target
= control target key end

     0   :  { %7 = vsyncpa [#allocation3], 0  ;;  %s1162_s9 = smov [#allocation2]   ;;  %s1409_s0 = inlined_call_operand.hbm [shape: f32[2,1152], index: 0, kind: input, shape index: {}]   ;;  %s1410_s1 = inlined_call_operand.vmem [shape: bf16[1152,32], index: 1, kind: input, shape index: {}]   ;;  %s1411_s2 = inlined_call_operand.vmem [shape: f32[2,32], index: 2, kind: output, shape index: {}]  }
   0x1   :  { %s14_s10 = sshll.u32 %s1162_s9, 4  ;;  %s15_s10 = int_to_ptr.vmem [resolvable:$true] %s14_s10 }
   0x2   :  { %s1148_s11 = scalar_lea.vmem %s15_s10, 288  ;;  %p1153_p1 = scmp.lt.s32.totalorder %s15_s10, %s15_s10 }
   0x3   :  { %p1149_p0 = scmp.ne.s32.totalorder %s15_s10, %s1148_s11  ;;  %p1154_p2 = scmp.lt.s32.totalorder %s1148_s11, %s1148_s11 }
   0x5   :  { %p1155_p3 = por %p1154_p2, %p1153_p1 }
   0x7   :  { %p1156_p4 = pnand %p1155_p3, %p1149_p0 }
   0x9   :  { %1159 = shalt.err (!%p1156_p4)
}
   0xa   :  { %17 = dma.hbm_to_vmem [thread:$0]  %s1409_s0, 288, %s15_s10, [#allocation3]  }
   0xb   :  { %1160 = dma.done.wait [#allocation3], 288  }
   0xc   :  { %1161 = vsyncadd [#allocation3], 4294967008  ;;  %v1066_v0 = vld [vmem:[%s1410_s1 + $0x78] sm:$0xff]   ;;  %v1070_v4 = vld [vmem:[%s1410_s1 + $0x70] sm:$0xff]   ;;  %v1163_v22 = vmov 1983009808   ;;  %v34_v24 = vlaneseq }
   0xd   :  { %v1067_v1 = vld [vmem:[%s1410_s1 + $0xf8] sm:$0xff]   ;;  %945 = vmatprep.subr.bf16.mxu0 %v1066_v0  ;;  %v1071_v5 = vld [vmem:[%s1410_s1 + $0xf0] sm:$0xff]   ;;  %v1074_v8 = vld [vmem:[%s1410_s1 + $0x68] sm:$0xff]   ;;  %v32_v23 = vunpack.c.l.s4 %v1163_v22  ;;  %vm1165_vm0 = vmmov 0   ;;  %vm865_vm1 = vcmask 254976  }
   0xe   :  { %v1068_v2 = vld [vmem:[%s1410_s1 + $0x38] sm:$0xff]   ;;  %967 = vmatprep.subr.bf16.mxu1 %v1067_v1  ;;  %v1072_v6 = vld [vmem:[%s1410_s1 + $0x30] sm:$0xff]   ;;  %v1075_v9 = vld [vmem:[%s1410_s1 + $0xe8] sm:$0xff]   ;;  %v35_v30 = vshrl.u32 %v34_v24, 7 }
   0xf   :  { %v1069_v3 = vld [vmem:[%s1410_s1 + $0xb8] sm:$0xff]   ;;  %946 = vmatpush3.bf16.msra.mxu0 %v1068_v2  ;;  %v1073_v7 = vld [vmem:[%s1410_s1 + $0xb0] sm:$0xff]   ;;  %v1076_v10 = vld [vmem:[%s1410_s1 + $0x28] sm:$0xff]   ;;  %v33_v29 = vunpack.c.0.s8 %v32_v23 }
  0x10   :  { %968 = vmatpush3.bf16.msra.mxu1 %v1069_v3  ;;  %947 = vmatprep.subr.bf16.mxu0 %v1070_v4  ;;  %v1077_v11 = vld [vmem:[%s1410_s1 + $0xa8] sm:$0xff]   ;;  %v1078_v12 = vld [vmem:[%s1410_s1 + $0x60] sm:$0xff]   ;;  %v1082_v16 = vld [vmem:[%s1410_s1 + $0x58] sm:$0xff]  }
  0x11   :  { %969 = vmatprep.subr.bf16.mxu1 %v1071_v5  ;;  %v1079_v13 = vld [vmem:[%s1410_s1 + $0xe0] sm:$0xff]   ;;  %v1083_v17 = vld [vmem:[%s1410_s1 + $0xd8] sm:$0xff]   ;;  %v1086_v20 = vld [vmem:[%s1410_s1 + $0x50] sm:$0xff]   ;;  %v1274_v35 = vsub.s32 %v33_v29, %v35_v30 }
  0x12   :  { %v1080_v14 = vld [vmem:[%s1410_s1 + $0x20] sm:$0xff]   ;;  %v1084_v18 = vld [vmem:[%s1410_s1 + $0x18] sm:$0xff]   ;;  %v1087_v21 = vld [vmem:[%s1410_s1 + $0xd0] sm:$0xff]  }
  0x13   :  { %948 = vmatpush3.bf16.msra.mxu0 %v1072_v6  ;;  %v1081_v15 = vld [vmem:[%s1410_s1 + $0xa0] sm:$0xff]   ;;  %v1085_v19 = vld [vmem:[%s1410_s1 + $0x98] sm:$0xff]   ;;  %v1088_v25 = vld [vmem:[%s1410_s1 + $0x10] sm:$0xff]  }
  0x14   :  { %970 = vmatpush3.bf16.msra.mxu1 %v1073_v7  ;;  %949 = vmatprep.subr.bf16.mxu0 %v1074_v8  ;;  %v1089_v26 = vld [vmem:[%s1410_s1 + $0x90] sm:$0xff]   ;;  %v1090_v27 = vld [vmem:[%s1410_s1 + $0x48] sm:$0xff]   ;;  %v1094_v33 = vld [vmem:[%s1410_s1 + $0x40] sm:$0xff]  }
  0x15   :  { %971 = vmatprep.subr.bf16.mxu1 %v1075_v9  ;;  %v1091_v28 = vld [vmem:[%s1410_s1 + $0xc8] sm:$0xff]   ;;  %v1095_v34 = vld [vmem:[%s1410_s1 + $0xc0] sm:$0xff]   ;;  %v1099_v41 = vld [vmem:[%s1410_s1 + $0x178] sm:$0xff]  }
  0x16   :  { %v1092_v31 = vld [vmem:[%s1410_s1 + $0x8] sm:$0xff]   ;;  %v1096_v36 = vld [vmem:[%s1410_s1] sm:$0xff]   ;;  %v1101_v44 = vld [vmem:[%s1410_s1 + $0x1f8] sm:$0xff]  }
  0x17   :  { %950 = vmatpush3.bf16.msra.mxu0 %v1076_v10  ;;  %v1093_v32 = vld [vmem:[%s1410_s1 + $0x88] sm:$0xff]   ;;  %v1097_v37 = vld [vmem:[%s1410_s1 + $0x80] sm:$0xff]   ;;  %v1100_v48 = vld [vmem:[%s1410_s1 + $0x138] sm:$0xff]  }
  0x18   :  { %972 = vmatpush3.bf16.msra.mxu1 %v1077_v11  ;;  %951 = vmatprep.subr.bf16.mxu0 %v1078_v12  ;;  %v24_v38 = vld [vmem:[#allocation2] sm:$0xff]  ;;  %v1103_v50 = vld [vmem:[%s1410_s1 + $0x170] sm:$0xff]   ;;  %v1102_v52 = vld [vmem:[%s1410_s1 + $0x1b8] sm:$0xff]  }
  0x19   :  { %973 = vmatprep.subr.bf16.mxu1 %v1079_v13  ;;  %v37_v39 = vrot.slane %v24_v38, %v1274_v35  ;;  %v30_v40 = vcombine.high %v24_v38, %v24_v38  ;;  %v1105_v53 = vld [vmem:[%s1410_s1 + $0x1f0] sm:$0xff]   ;;  %v1107_v55 = vld [vmem:[%s1410_s1 + $0x168] sm:$0xff]   ;;  %v1111_v59 = vld [vmem:[%s1410_s1 + $0x160] sm:$0xff]  }
  0x1a   :  { %v1104_v54 = vld [vmem:[%s1410_s1 + $0x130] sm:$0xff]   ;;  %v1109_v57 = vld [vmem:[%s1410_s1 + $0x1e8] sm:$0xff]   ;;  %v1113_v61 = vld [vmem:[%s1410_s1 + $0x1e0] sm:$0xff]  }
  0x1b   :  { %952 = vmatpush3.bf16.msra.mxu0 %v1080_v14  ;;  %v45_v42 = vcombine.high %v37_v39, %v37_v39  ;;  %v44_v43 = vrot.slane %v30_v40, %v1274_v35  ;;  %v80_v45 = vpack.c.bf16 %v37_v39, %v37_v39  ;;  %v1106_v56 = vld [vmem:[%s1410_s1 + $0x1b0] sm:$0xff]   ;;  %v1108_v58 = vld [vmem:[%s1410_s1 + $0x128] sm:$0xff]   ;;  %v1112_v62 = vld [vmem:[%s1410_s1 + $0x120] sm:$0xff]  }
  0x1c   :  { %974 = vmatpush3.bf16.msra.mxu1 %v1081_v15  ;;  %953 = vmatprep.subr.bf16.mxu0 %v1082_v16  ;;  %v1110_v60 = vld [vmem:[%s1410_s1 + $0x1a8] sm:$0xff]   ;;  %v1115_v63 = vld [vmem:[%s1410_s1 + $0x158] sm:$0xff]   ;;  %v1114_v0 = vld [vmem:[%s1410_s1 + $0x1a0] sm:$0xff]  }
  0x1d   :  { %975 = vmatprep.subr.bf16.mxu1 %v1083_v17  ;;  %v81_v46 = vpack.c.bf16 %v45_v42, %v45_v42  ;;  %v46_v47 = vcombine.high %v44_v43, %v44_v43  ;;  %v82_v49 = vpack.c.bf16 %v44_v43, %v44_v43  ;;  %v1117_v1 = vld [vmem:[%s1410_s1 + $0x1d8] sm:$0xff]   ;;  %v1119_v3 = vld [vmem:[%s1410_s1 + $0x150] sm:$0xff]   ;;  %v1123_v7 = vld [vmem:[%s1410_s1 + $0x148] sm:$0xff]  }
  0x1e   :  { %v1116_v2 = vld [vmem:[%s1410_s1 + $0x118] sm:$0xff]   ;;  %v1121_v5 = vld [vmem:[%s1410_s1 + $0x1d0] sm:$0xff]   ;;  %v1125_v9 = vld [vmem:[%s1410_s1 + $0x1c8] sm:$0xff]  }
  0x1f   :  { %954 = vmatpush3.bf16.msra.mxu0 %v1084_v18  ;;  %697 = vmatprep.mubr.bf16.mxu0 %v81_v46  ;;  %v83_v51 = vpack.c.bf16 %v46_v47, %v46_v47  ;;  %v1118_v4 = vld [vmem:[%s1410_s1 + $0x198] sm:$0xff]   ;;  %v1120_v6 = vld [vmem:[%s1410_s1 + $0x110] sm:$0xff]   ;;  %v1124_v10 = vld [vmem:[%s1410_s1 + $0x108] sm:$0xff]  }
  0x20   :  { %976 = vmatpush3.bf16.msra.mxu1 %v1085_v19  ;;  %955 = vmatprep.subr.bf16.mxu0 %v1086_v20  ;;  %v1122_v8 = vld [vmem:[%s1410_s1 + $0x190] sm:$0xff]   ;;  %v1127_v11 = vld [vmem:[%s1410_s1 + $0x140] sm:$0xff]   ;;  %v1126_v12 = vld [vmem:[%s1410_s1 + $0x188] sm:$0xff]  }
  0x21   :  { %977 = vmatprep.subr.bf16.mxu1 %v1087_v21  ;;  %737 = vmatprep.mubr.bf16.mxu1 %v83_v51  ;;  %v25_v13 = vld [vmem:[#allocation2 + $0x8] sm:$0xff]  ;;  %v1129_v14 = vld [vmem:[%s1410_s1 + $0x1c0] sm:$0xff]   ;;  %v1132_v24 = vld [vmem:[%s1410_s1 + $0x238] sm:$0xff]  }
  0x22   :  { %v54_v15 = vrot.slane %v25_v13, %v1274_v35  ;;  %v47_v16 = vcombine.high %v25_v13, %v25_v13  ;;  %v1128_v17 = vld [vmem:[%s1410_s1 + $0x100] sm:$0xff]   ;;  %v1134_v29 = vld [vmem:[%s1410_s1 + $0x228] sm:$0xff]  }
  0x23   :  { %956 = vmatpush3.bf16.msra.mxu0 %v1088_v25  ;;  %v1130_v20 = vld [vmem:[%s1410_s1 + $0x180] sm:$0xff]   ;;  %v1164_v25 = vmov 0.0  }
  0x24   :  { %978 = vmatpush3.bf16.msra.mxu1 %v1089_v26  ;;  %957 = vmatprep.subr.bf16.mxu0 %v1090_v27  ;;  %v62_v18 = vcombine.high %v54_v15, %v54_v15  ;;  %v61_v19 = vrot.slane %v47_v16, %v1274_v35  ;;  %v84_v22 = vpack.c.bf16 %v54_v15, %v54_v15  ;;  %v1135_v30 = vld [vmem:[%s1410_s1 + $0x220] sm:$0xff]   ;;  %v872_v35 = vld.sshfl [vmem:[#allocation2 + $0x10] sm:$0x3 pattern:$0x76325410] }
  0x25   :  { %979 = vmatprep.subr.bf16.mxu1 %v1091_v28  ;;  %v1133_v28 = vld [vmem:[%s1410_s1 + $0x230] sm:$0xff]  }
  0x26   :  { %v85_v21 = vpack.c.bf16 %v62_v18, %v62_v18  ;;  %v63_v23 = vcombine.high %v61_v19, %v61_v19  ;;  %v86_v27 = vpack.c.bf16 %v61_v19, %v61_v19 }
  0x27   :  { %958 = vmatpush3.bf16.msra.mxu0 %v1092_v31  ;;  %v1136_v31 = vld [vmem:[%s1410_s1 + $0x218] sm:$0xff]  }
  0x28   :  { %980 = vmatpush3.bf16.msra.mxu1 %v1093_v32  ;;  %959 = vmatprep.subr.bf16.mxu0 %v1094_v33  ;;  %v87_v26 = vpack.c.bf16 %v63_v23, %v63_v23  ;;  %v1137_v32 = vld [vmem:[%s1410_s1 + $0x210] sm:$0xff]   ;;  %v1138_v33 = vld [vmem:[%s1410_s1 + $0x208] sm:$0xff]  }
  0x29   :  { %981 = vmatprep.subr.bf16.mxu1 %v1095_v34  ;;  %v1139_v34 = vld [vmem:[%s1410_s1 + $0x200] sm:$0xff]  }
  0x2b   :  { %960 = vmatpush3.bf16.msra.mxu0 %v1096_v36  ;;  %v88_v36 = vpack.c.bf16 %v872_v35, %v872_v35 }
  0x2c   :  { %982 = vmatpush3.bf16.msra.mxu1 %v1097_v37  ;;  %989 = vmatprep.subr.bf16.mxu0 %v1099_v41 }
  0x2d   :  { %1011 = vmatprep.subr.bf16.mxu1 %v1101_v44 }
  0x2e   :  { %698 = vmatmul.mubr.bf16.vlgmr.msra.gmra.mxu0 %v80_v45 }
  0x2f   :  { %990 = vmatpush3.bf16.msra.mxu0 %v1100_v48  ;;  %738 = vmatmul.mubr.bf16.vlgmr.msra.gmra.mxu1 %v82_v49 }
  0x30   :  { %991 = vmatprep.subr.bf16.mxu0 %v1103_v50  ;;  %1012 = vmatpush3.bf16.msra.mxu1 %v1102_v52 }
  0x31   :  { %1013 = vmatprep.subr.bf16.mxu1 %v1105_v53  ;;  %777 = vmatprep.mubr.bf16.mxu0 %v85_v21 }
  0x32   :  { %817 = vmatprep.mubr.bf16.mxu1 %v87_v26 }
  0x33   :  { %992 = vmatpush3.bf16.msra.mxu0 %v1104_v54 }
  0x34   :  { %993 = vmatprep.subr.bf16.mxu0 %v1107_v55  ;;  %1014 = vmatpush3.bf16.msra.mxu1 %v1106_v56 }
  0x35   :  { %1015 = vmatprep.subr.bf16.mxu1 %v1109_v57 }
  0x37   :  { %994 = vmatpush3.bf16.msra.mxu0 %v1108_v58 }
  0x38   :  { %995 = vmatprep.subr.bf16.mxu0 %v1111_v59  ;;  %1016 = vmatpush3.bf16.msra.mxu1 %v1110_v60 }
  0x39   :  { %1017 = vmatprep.subr.bf16.mxu1 %v1113_v61 }
  0x3b   :  { %996 = vmatpush3.bf16.msra.mxu0 %v1112_v62 }
  0x3c   :  { %997 = vmatprep.subr.bf16.mxu0 %v1115_v63  ;;  %1018 = vmatpush3.bf16.msra.mxu1 %v1114_v0 }
  0x3d   :  { %1019 = vmatprep.subr.bf16.mxu1 %v1117_v1 }
  0x3f   :  { %998 = vmatpush3.bf16.msra.mxu0 %v1116_v2 }
  0x40   :  { %999 = vmatprep.subr.bf16.mxu0 %v1119_v3  ;;  %1020 = vmatpush3.bf16.msra.mxu1 %v1118_v4 }
  0x41   :  { %1021 = vmatprep.subr.bf16.mxu1 %v1121_v5 }
  0x43   :  { %1000 = vmatpush3.bf16.msra.mxu0 %v1120_v6 }
  0x44   :  { %1001 = vmatprep.subr.bf16.mxu0 %v1123_v7  ;;  %1022 = vmatpush3.bf16.msra.mxu1 %v1122_v8 }
  0x45   :  { %1023 = vmatprep.subr.bf16.mxu1 %v1125_v9 }
  0x47   :  { %1002 = vmatpush3.bf16.msra.mxu0 %v1124_v10 }
  0x48   :  { %1003 = vmatprep.subr.bf16.mxu0 %v1127_v11  ;;  %1024 = vmatpush3.bf16.msra.mxu1 %v1126_v12 }
  0x49   :  { %1025 = vmatprep.subr.bf16.mxu1 %v1129_v14 }
  0x4b   :  { %1004 = vmatpush3.bf16.msra.mxu0 %v1128_v17 }
  0x4c   :  { %1042 = vmatprep.subr.bf16.mxu0 %v1164_v25  ;;  %1026 = vmatpush3.bf16.msra.mxu1 %v1130_v20 }
  0x4e   :  { %778 = vmatmul.mubr.bf16.vlgmr.msra.gmra.mxu0 %v84_v22 }
  0x4f   :  { %1043 = vmatpush3.bf16.msra.mxu0 %v1132_v24  ;;  %1058 = vmatprep.mubr.msk.bf16.mxu0 %vm1165_vm0, %v1164_v25 }
  0x50   :  { %818 = vmatmul.mubr.bf16.vlgmr.msra.gmra.mxu1 %v86_v27  ;;  %1044 = vmatprep.subr.bf16.mxu0 %v1164_v25 }
  0x53   :  { %1045 = vmatpush3.bf16.msra.mxu0 %v1133_v28 }
  0x54   :  { %1046 = vmatprep.subr.bf16.mxu0 %v1164_v25 }
  0x57   :  { %1047 = vmatpush3.bf16.msra.mxu0 %v1134_v29 }
  0x58   :  { %1048 = vmatprep.subr.bf16.mxu0 %v1164_v25 }
  0x5b   :  { %1049 = vmatpush3.bf16.msra.mxu0 %v1135_v30 }
  0x5c   :  { %1050 = vmatprep.subr.bf16.mxu0 %v1164_v25 }
  0x5f   :  { %1051 = vmatpush3.bf16.msra.mxu0 %v1136_v31 }
  0x60   :  { %1052 = vmatprep.subr.bf16.mxu0 %v1164_v25 }
  0x63   :  { %1053 = vmatpush3.bf16.msra.mxu0 %v1137_v32 }
  0x64   :  { %1054 = vmatprep.subr.bf16.mxu0 %v1164_v25 }
  0x67   :  { %1055 = vmatpush3.bf16.msra.mxu0 %v1138_v33 }
  0x68   :  { %1056 = vmatprep.subr.bf16.mxu0 %v1164_v25 }
  0x6b   :  { %1057 = vmatpush3.bf16.msra.mxu0 %v1139_v34 }
  0x6e   :  { %1059 = vmatmul.mubr.bf16.vlgmr.msra.gmra.mxu0 %v88_v36 }
  0xee   :  { %v961_v37 = vpop.f32.mrf.mxu0 }
  0xef   :  { %v983_v38 = vpop.f32.mrf.mxu1 }
  0xf0   :  { %v962_v39 = vpop.f32.mrf.mxu0 }
  0xf1   :  { %v984_v40 = vpop.f32.mrf.mxu1  ;;  %v963_v53 = vadd.f32 %v962_v39, %v961_v37 }
  0xf2   :  { %v964_v41 = vpop.f32.mrf.mxu0  ;;  %v985_v54 = vadd.f32 %v984_v40, %v983_v38 }
  0xf3   :  { %v986_v43 = vpop.f32.mrf.mxu1 }
  0xf4   :  { %v965_v42 = vpop.f32.mrf.mxu0  ;;  %v740_v56 = vadd.f32 %v985_v54, %v963_v53 }
  0xf5   :  { %v987_v44 = vpop.f32.mrf.mxu1 }
 0x10e   :  { %v1005_v45 = vpop.f32.mrf.mxu0 }
 0x110   :  { %v1006_v46 = vpop.f32.mrf.mxu0  ;;  %v1027_v47 = vpop.f32.mrf.mxu1 }
 0x111   :  { %v1007_v55 = vadd.f32 %v1006_v46, %v1005_v45 }
 0x112   :  { %v1008_v48 = vpop.f32.mrf.mxu0  ;;  %v1028_v49 = vpop.f32.mrf.mxu1 }
 0x113   :  { %v780_v57 = vadd.f32 %v1007_v55, %v740_v56  ;;  %v1029_v58 = vadd.f32 %v1028_v49, %v1027_v47 }
 0x114   :  { %v1009_v50 = vpop.f32.mrf.mxu0  ;;  %v1030_v51 = vpop.f32.mrf.mxu1 }
 0x115   :  { %v820_v59 = vadd.f32 %v1029_v58, %v780_v57 }
 0x116   :  { %v1031_v52 = vpop.f32.mrf.mxu1 }
 0x12e   :  { %v859_v60 = vpop.f32.mrf.mxu0 }
 0x12f   :  { %v860_v61 = vadd.f32 %v859_v60, %v820_v59 }
 0x130   :  { %v1060_v62 = vpop.f32.mrf.mxu0 }
 0x131   :  { %866 = vst.msk [vmem:[%s1411_s2] sm:$0x3] %vm865_vm1, %v860_v61 }
 0x132   :  { %v862_v63 = vpop.f32.mrf.mxu0 }
 0x134   :  { %v1061_v0 = vpop.f32.mrf.mxu0 }
 0x135   :  { %871 = vsyncpa [#allocation3], 1 }

// kernel: densenet169_forward.339
= control target key start
LH: loop header
LB: loop body
LE: loop exit
PB: predicated region body
PF: predicated region fallthrough
CT: control target
= control target key end

     0   :  { %v50_v41 = vlaneseq  ;;  %vm479_vm0 = vcmask 1041409   ;;  %s3249_s0 = inlined_call_operand.vmem [shape: f32[2,1,1664], index: 0, kind: input, shape index: {}]   ;;  %s3250_s1 = inlined_call_operand.vmem [shape: f32[1,1,1664], index: 1, kind: input, shape index: {}]   ;;  %s3251_s2 = inlined_call_operand.vmem [shape: f32[1,1,1664], index: 2, kind: input, shape index: {}]   ;;  %s3252_s3 = inlined_call_operand.vmem [shape: bf16[1664,156], index: 3, kind: input, shape index: {}]   ;;  %s3253_s4 = inlined_call_operand.vmem [shape: f32[1,156], index: 4, kind: input, shape index: {}]   ;;  %s3254_s5 = inlined_call_operand.hbm [shape: f32[2,156], index: 5, kind: output, shape index: {}]  }
   0x1   :  { %v2110_v0 = vld [vmem:[%s3252_s3 + $0x74] ss:$8 sps:$4 sm:$0xff]   ;;  %v2112_v1 = vld [vmem:[%s3252_s3 + $0x70] ss:$8 sps:$4 sm:$0xff]   ;;  %v2116_v4 = vld [vmem:[%s3252_s3 + $0x64] ss:$8 sps:$4 sm:$0xff]  }
   0x2   :  { %1571 = vmatprep.subr.bf16.mxu0 %v2110_v0  ;;  %v2113_v2 = vld [vmem:[%s3252_s3 + $0x174] ss:$8 sps:$4 sm:$0xff]   ;;  %v2115_v3 = vld [vmem:[%s3252_s3 + $0x170] ss:$8 sps:$4 sm:$0xff]   ;;  %v2118_v5 = vld [vmem:[%s3252_s3 + $0x60] ss:$8 sps:$4 sm:$0xff]  }
   0x3   :  { %1572 = vmatpush1.bf16.msra.mxu0 %v2112_v1  ;;  %1612 = vmatprep.subr.bf16.mxu1 %v2113_v2  ;;  %v2119_v6 = vld [vmem:[%s3252_s3 + $0x164] ss:$8 sps:$4 sm:$0xff]   ;;  %v2121_v7 = vld [vmem:[%s3252_s3 + $0x160] ss:$8 sps:$4 sm:$0xff]   ;;  %v2122_v8 = vld [vmem:[%s3252_s3 + $0x54] ss:$8 sps:$4 sm:$0xff]  }
   0x4   :  { %1613 = vmatpush1.bf16.msra.mxu1 %v2115_v3  ;;  %1573 = vmatprep.subr.bf16.mxu0 %v2116_v4  ;;  %v2124_v9 = vld [vmem:[%s3252_s3 + $0x50] ss:$8 sps:$4 sm:$0xff]   ;;  %v2125_v10 = vld [vmem:[%s3252_s3 + $0x154] ss:$8 sps:$4 sm:$0xff]   ;;  %v2128_v11 = vld [vmem:[%s3252_s3 + $0x44] ss:$8 sps:$4 sm:$0xff]  }
   0x5   :  { %1614 = vmatprep.subr.bf16.mxu1 %v2119_v6  ;;  %v2127_v12 = vld [vmem:[%s3252_s3 + $0x150] ss:$8 sps:$4 sm:$0xff]   ;;  %v2131_v13 = vld [vmem:[%s3252_s3 + $0x144] ss:$8 sps:$4 sm:$0xff]   ;;  %v2130_v14 = vld [vmem:[%s3252_s3 + $0x40] ss:$8 sps:$4 sm:$0xff]  }
   0x6   :  { %v2134_v15 = vld [vmem:[%s3252_s3 + $0x34] ss:$8 sps:$4 sm:$0xff]   ;;  %v2133_v16 = vld [vmem:[%s3252_s3 + $0x140] ss:$8 sps:$4 sm:$0xff]   ;;  %v2136_v18 = vld [vmem:[%s3252_s3 + $0x30] ss:$8 sps:$4 sm:$0xff]  }
   0x7   :  { %1574 = vmatpush1.bf16.msra.mxu0 %v2118_v5  ;;  %v2137_v17 = vld [vmem:[%s3252_s3 + $0x134] ss:$8 sps:$4 sm:$0xff]   ;;  %v2140_v19 = vld [vmem:[%s3252_s3 + $0x24] ss:$8 sps:$4 sm:$0xff]   ;;  %v2139_v20 = vld [vmem:[%s3252_s3 + $0x130] ss:$8 sps:$4 sm:$0xff]  }
   0x8   :  { %1575 = vmatprep.subr.bf16.mxu0 %v2122_v8  ;;  %1615 = vmatpush1.bf16.msra.mxu1 %v2121_v7  ;;  %v2143_v21 = vld [vmem:[%s3252_s3 + $0x124] ss:$8 sps:$4 sm:$0xff]   ;;  %v2142_v22 = vld [vmem:[%s3252_s3 + $0x20] ss:$8 sps:$4 sm:$0xff]   ;;  %v2146_v23 = vld [vmem:[%s3252_s3 + $0x14] ss:$8 sps:$4 sm:$0xff]  }
   0x9   :  { %1616 = vmatprep.subr.bf16.mxu1 %v2125_v10  ;;  %v2145_v24 = vld [vmem:[%s3252_s3 + $0x120] ss:$8 sps:$4 sm:$0xff]   ;;  %v2149_v25 = vld [vmem:[%s3252_s3 + $0x114] ss:$8 sps:$4 sm:$0xff]   ;;  %v2148_v26 = vld [vmem:[%s3252_s3 + $0x10] ss:$8 sps:$4 sm:$0xff]  }
   0xa   :  { %v2152_v27 = vld [vmem:[%s3252_s3 + $0x4] ss:$8 sps:$4 sm:$0xff]   ;;  %v2151_v28 = vld [vmem:[%s3252_s3 + $0x110] ss:$8 sps:$4 sm:$0xff]   ;;  %v2154_v30 = vld [vmem:[%s3252_s3] ss:$8 sps:$4 sm:$0xff]  }
   0xb   :  { %1576 = vmatpush1.bf16.msra.mxu0 %v2124_v9  ;;  %v2155_v29 = vld [vmem:[%s3252_s3 + $0x104] ss:$8 sps:$4 sm:$0xff]   ;;  %v2158_v31 = vld [vmem:[%s3252_s3 + $0xf4] ss:$8 sps:$4 sm:$0xff]   ;;  %v2157_v32 = vld [vmem:[%s3252_s3 + $0x100] ss:$8 sps:$4 sm:$0xff]  }
   0xc   :  { %1577 = vmatprep.subr.bf16.mxu0 %v2128_v11  ;;  %1617 = vmatpush1.bf16.msra.mxu1 %v2127_v12  ;;  %v2161_v33 = vld [vmem:[%s3252_s3 + $0x1f4] ss:$8 sps:$4 sm:$0xff]   ;;  %v2160_v34 = vld [vmem:[%s3252_s3 + $0xf0] ss:$8 sps:$4 sm:$0xff]   ;;  %v2164_v35 = vld [vmem:[%s3252_s3 + $0xe4] ss:$8 sps:$4 sm:$0xff]  }
   0xd   :  { %1618 = vmatprep.subr.bf16.mxu1 %v2131_v13  ;;  %v2163_v36 = vld [vmem:[%s3252_s3 + $0x1f0] ss:$8 sps:$4 sm:$0xff]   ;;  %v2167_v37 = vld [vmem:[%s3252_s3 + $0x1e4] ss:$8 sps:$4 sm:$0xff]   ;;  %v2166_v38 = vld [vmem:[%s3252_s3 + $0xe0] ss:$8 sps:$4 sm:$0xff]  }
   0xe   :  { %v2170_v39 = vld [vmem:[%s3252_s3 + $0xd4] ss:$8 sps:$4 sm:$0xff]   ;;  %v2169_v40 = vld [vmem:[%s3252_s3 + $0x1e0] ss:$8 sps:$4 sm:$0xff]   ;;  %v2172_v43 = vld [vmem:[%s3252_s3 + $0xd0] ss:$8 sps:$4 sm:$0xff]  }
   0xf   :  { %1578 = vmatpush1.bf16.msra.mxu0 %v2130_v14  ;;  %v2173_v42 = vld [vmem:[%s3252_s3 + $0x1d4] ss:$8 sps:$4 sm:$0xff]   ;;  %v2176_v44 = vld [vmem:[%s3252_s3 + $0xc4] ss:$8 sps:$4 sm:$0xff]   ;;  %v2175_v45 = vld [vmem:[%s3252_s3 + $0x1d0] ss:$8 sps:$4 sm:$0xff]  }
  0x10   :  { %1579 = vmatprep.subr.bf16.mxu0 %v2134_v15  ;;  %1619 = vmatpush1.bf16.msra.mxu1 %v2133_v16  ;;  %v2620_v46 = vshrl.u32 %v50_v41, 7  ;;  %v2179_v47 = vld [vmem:[%s3252_s3 + $0x1c4] ss:$8 sps:$4 sm:$0xff]   ;;  %v2178_v50 = vld [vmem:[%s3252_s3 + $0xc0] ss:$8 sps:$4 sm:$0xff]  }
  0x11   :  { %1620 = vmatprep.subr.bf16.mxu1 %v2137_v17  ;;  %v22_v48 = vld [vmem:[%s3249_s0] sm:$0xff]  ;;  %v24_v49 = vld [vmem:[%s3249_s0 + $0xd] sm:$0xff] }
  0x12   :  { %v26_v51 = vld [vmem:[%s3250_s1] sm:$0xff]  ;;  %v2182_v53 = vld [vmem:[%s3252_s3 + $0xb4] ss:$8 sps:$4 sm:$0xff]   ;;  %v2647_v57 = vsub.s32 1, %v2620_v46  ;;  %v2653_v61 = vsub.s32 0, %v2620_v46  ;;  %v2656_v62 = vsub.s32 3, %v2620_v46 }
  0x13   :  { %1580 = vmatpush1.bf16.msra.mxu0 %v2136_v18  ;;  %v32_v52 = vld [vmem:[%s3251_s2] sm:$0xff]  ;;  %v28_v54 = vmul.f32 %v26_v51, %v22_v48  ;;  %v30_v55 = vmul.f32 %v26_v51, %v24_v49  ;;  %v2185_v58 = vld [vmem:[%s3252_s3 + $0x1b4] ss:$8 sps:$4 sm:$0xff]   ;;  %v2184_v63 = vld [vmem:[%s3252_s3 + $0xb0] ss:$8 sps:$4 sm:$0xff]   ;;  %v2662_v0 = vsub.s32 2, %v2620_v46 }
  0x14   :  { %1581 = vmatprep.subr.bf16.mxu0 %v2140_v19  ;;  %1621 = vmatpush1.bf16.msra.mxu1 %v2139_v20  ;;  %v2181_v56 = vld [vmem:[%s3252_s3 + $0x1c0] ss:$8 sps:$4 sm:$0xff]   ;;  %v72_v1 = vsub.s32 5, %v2620_v46  ;;  %v2666_v2 = vsub.s32 4, %v2620_v46  ;;  %v2188_v3 = vld [vmem:[%s3252_s3 + $0xa4] ss:$8 sps:$4 sm:$0xff]  }
  0x15   :  { %1622 = vmatprep.subr.bf16.mxu1 %v2143_v21  ;;  %v34_v59 = vadd.f32 %v32_v52, %v28_v54  ;;  %v36_v60 = vadd.f32 %v32_v52, %v30_v55  ;;  %v2187_v6 = vld [vmem:[%s3252_s3 + $0x1b0] ss:$8 sps:$4 sm:$0xff]   ;;  %v80_v7 = vsub.s32 7, %v2620_v46  ;;  %v76_v8 = vsub.s32 6, %v2620_v46  ;;  %v2191_v9 = vld [vmem:[%s3252_s3 + $0x1a4] ss:$8 sps:$4 sm:$0xff]  }
  0x16   :  { %v2190_v14 = vld [vmem:[%s3252_s3 + $0xa0] ss:$8 sps:$4 sm:$0xff]   ;;  %v2194_v19 = vld [vmem:[%s3252_s3 + $0x94] ss:$8 sps:$4 sm:$0xff]  }
  0x17   :  { %1582 = vmatpush1.bf16.msra.mxu0 %v2142_v22  ;;  %v2671_v4 = vmax.f32 %v34_v59, 0.0  ;;  %v2673_v5 = vmax.f32 %v36_v60, 0.0  ;;  %v2202_v55 = vld [vmem:[%s3252_s3 + $0x80] ss:$8 sps:$4 sm:$0xff]   ;;  %v2208_v60 = vld [vmem:[%s3252_s3 + $0x274] ss:$8 sps:$4 sm:$0xff]  }
  0x18   :  { %1583 = vmatprep.subr.bf16.mxu0 %v2146_v23  ;;  %1623 = vmatpush1.bf16.msra.mxu1 %v2145_v24  ;;  %v2193_v24 = vld [vmem:[%s3252_s3 + $0x1a0] ss:$8 sps:$4 sm:$0xff]  }
  0x19   :  { %1624 = vmatprep.subr.bf16.mxu1 %v2149_v25  ;;  %v57_v10 = vrot.slane %v2671_v4, %v2647_v57  ;;  %v109_v11 = vrot.slane %v2673_v5, %v2647_v57  ;;  %v53_v12 = vrot.slane %v2671_v4, %v2653_v61  ;;  %v105_v13 = vrot.slane %v2673_v5, %v2653_v61 }
  0x1a   :  { %v65_v15 = vrot.slane %v2671_v4, %v2656_v62  ;;  %v117_v16 = vrot.slane %v2673_v5, %v2656_v62  ;;  %v61_v17 = vrot.slane %v2671_v4, %v2662_v0  ;;  %v113_v18 = vrot.slane %v2673_v5, %v2662_v0 }
  0x1b   :  { %1584 = vmatpush1.bf16.msra.mxu0 %v2148_v26  ;;  %v181_v20 = vpack.c.bf16 %v57_v10, %v57_v10  ;;  %v194_v21 = vpack.c.bf16 %v109_v11, %v109_v11  ;;  %v180_v22 = vpack.c.bf16 %v53_v12, %v53_v12  ;;  %v193_v23 = vpack.c.bf16 %v105_v13, %v105_v13  ;;  %v2211_v13 = vld [vmem:[%s3252_s3 + $0x374] ss:$8 sps:$4 sm:$0xff]  }
  0x1c   :  { %1585 = vmatprep.subr.bf16.mxu0 %v2152_v27  ;;  %1625 = vmatpush1.bf16.msra.mxu1 %v2151_v28  ;;  %v183_v25 = vpack.c.bf16 %v65_v15, %v65_v15  ;;  %v196_v26 = vpack.c.bf16 %v117_v16, %v117_v16  ;;  %v182_v27 = vpack.c.bf16 %v61_v17, %v61_v17 }
  0x1d   :  { %1626 = vmatprep.subr.bf16.mxu1 %v2155_v29  ;;  %v195_v28 = vpack.c.bf16 %v113_v18, %v113_v18  ;;  %v2197_v29 = vld [vmem:[%s3252_s3 + $0x194] ss:$8 sps:$4 sm:$0xff]   ;;  %v69_v48 = vrot.slane %v2671_v4, %v2666_v2  ;;  %v121_v49 = vrot.slane %v2673_v5, %v2666_v2  ;;  %v81_v12 = vrot.slane %v2671_v4, %v80_v7  ;;  %v2206_v18 = vld [vmem:[%s3252_s3 + $0x270] ss:$8 sps:$4 sm:$0xff]  }
  0x1e   :  { %v133_v15 = vrot.slane %v2673_v5, %v80_v7  ;;  %v77_v16 = vrot.slane %v2671_v4, %v76_v8  ;;  %v129_v17 = vrot.slane %v2673_v5, %v76_v8  ;;  %v2214_v7 = vld [vmem:[%s3252_s3 + $0x264] ss:$8 sps:$4 sm:$0xff]  }
  0x1f   :  { %1586 = vmatpush1.bf16.msra.mxu0 %v2154_v30  ;;  %v453_v30 = vunpack.c.l.b16 %v181_v20  ;;  %v184_v10 = vpack.c.bf16 %v69_v48, %v69_v48  ;;  %v197_v11 = vpack.c.bf16 %v121_v49, %v121_v49  ;;  %v2232_v48 = vld [vmem:[%s3252_s3 + $0x234] ss:$8 sps:$4 sm:$0xff]   ;;  %v2227_v49 = vld [vmem:[%s3252_s3 + $0x340] ss:$8 sps:$4 sm:$0xff]  }
  0x20   :  { %1587 = vmatprep.subr.bf16.mxu0 %v2158_v31  ;;  %1627 = vmatpush1.bf16.msra.mxu1 %v2157_v32  ;;  %v466_v31 = vunpack.c.l.b16 %v194_v21  ;;  %v452_v32 = vunpack.c.l.b16 %v180_v22  ;;  %v187_v22 = vpack.c.bf16 %v81_v12, %v81_v12  ;;  %v2254_v12 = vld [vmem:[%s3252_s3 + $0x2f0] ss:$8 sps:$4 sm:$0xff]  }
  0x21   :  { %1628 = vmatprep.subr.bf16.mxu1 %v2161_v33  ;;  %v465_v33 = vunpack.c.l.b16 %v193_v23  ;;  %v456_v20 = vunpack.c.l.b16 %v184_v10  ;;  %v469_v21 = vunpack.c.l.b16 %v197_v11  ;;  %v200_v23 = vpack.c.bf16 %v133_v15, %v133_v15  ;;  %v2251_v10 = vld [vmem:[%s3252_s3 + $0x300] ss:$8 sps:$4 sm:$0xff]   ;;  %v2259_v11 = vld [vmem:[%s3252_s3 + $0x3f4] ss:$8 sps:$4 sm:$0xff]   ;;  %v2265_v15 = vld [vmem:[%s3252_s3 + $0x3e4] ss:$8 sps:$4 sm:$0xff]  }
  0x23   :  { %1588 = vmatpush2.bf16.msra.mxu0 %v2160_v34  ;;  %v2196_v34 = vld [vmem:[%s3252_s3 + $0x90] ss:$8 sps:$4 sm:$0xff]   ;;  %v478_v41 = vrot.slane %v465_v33, 7 }
  0x24   :  { %1589 = vmatprep.subr.bf16.mxu0 %v2164_v35  ;;  %1629 = vmatpush2.bf16.msra.mxu1 %v2163_v36  ;;  %v455_v35 = vunpack.c.l.b16 %v183_v25  ;;  %v468_v36 = vunpack.c.l.b16 %v196_v26  ;;  %v199_v25 = vpack.c.bf16 %v129_v17, %v129_v17  ;;  %v487_v26 = vrot.slane %v469_v21, 7  ;;  %v2268_v17 = vld [vmem:[%s3252_s3 + $0x2d4] ss:$8 sps:$4 sm:$0xff]   ;;  %v2274_v21 = vld [vmem:[%s3252_s3 + $0x2c4] ss:$8 sps:$4 sm:$0xff]  }
  0x25   :  { %1630 = vmatprep.subr.bf16.mxu1 %v2167_v37  ;;  %v454_v37 = vunpack.c.l.b16 %v182_v27  ;;  %v480_v52 = vsel %vm479_vm0, %v478_v41, %v452_v32  ;;  %v2217_v27 = vld [vmem:[%s3252_s3 + $0x364] ss:$8 sps:$4 sm:$0xff]   ;;  %v2212_v32 = vld [vmem:[%s3252_s3 + $0x260] ss:$8 sps:$4 sm:$0xff]   ;;  %v2218_v41 = vld [vmem:[%s3252_s3 + $0x250] ss:$8 sps:$4 sm:$0xff]  }
  0x26   :  { %v2774_v33 = vsel %vm479_vm0, %v487_v26, %v456_v20  ;;  %v2266_v20 = vld [vmem:[%s3252_s3 + $0x2d0] ss:$8 sps:$4 sm:$0xff]  }
  0x27   :  { %1590 = vmatpush2.bf16.msra.mxu0 %v2166_v38  ;;  %v467_v38 = vunpack.c.l.b16 %v195_v28  ;;  %v459_v28 = vunpack.c.l.b16 %v187_v22  ;;  %v2269_v22 = vld [vmem:[%s3252_s3 + $0x3d0] ss:$8 sps:$4 sm:$0xff]  }
  0x28   :  { %1591 = vmatprep.subr.bf16.mxu0 %v2170_v39  ;;  %1631 = vmatpush2.bf16.msra.mxu1 %v2169_v40  ;;  %v2200_v39 = vld [vmem:[%s3252_s3 + $0x84] ss:$8 sps:$4 sm:$0xff]   ;;  %v481_v40 = vrot.slane %v466_v31, 7  ;;  %v471_v31 = vunpack.c.l.b16 %v199_v25  ;;  %v2283_v25 = vld [vmem:[%s3252_s3 + $0x3b4] ss:$8 sps:$4 sm:$0xff]  }
  0x29   :  { %1632 = vmatprep.subr.bf16.mxu1 %v2173_v42  ;;  %v73_v42 = vrot.slane %v2671_v4, %v72_v1  ;;  %v2281_v26 = vld [vmem:[%s3252_s3 + $0x3b0] ss:$8 sps:$4 sm:$0xff]  }
  0x2a   :  { %v482_v51 = vsel %vm479_vm0, %v481_v40, %v453_v30 }
  0x2b   :  { %1592 = vmatpush2.bf16.msra.mxu0 %v2172_v43  ;;  %v125_v43 = vrot.slane %v2673_v5, %v72_v1  ;;  %v2209_v5 = vld [vmem:[%s3252_s3 + $0x370] ss:$8 sps:$4 sm:$0xff]  }
  0x2c   :  { %1593 = vmatprep.subr.bf16.mxu0 %v2176_v44  ;;  %1633 = vmatpush2.bf16.msra.mxu1 %v2175_v45  ;;  %v2199_v44 = vld [vmem:[%s3252_s3 + $0x190] ss:$8 sps:$4 sm:$0xff]   ;;  %v485_v45 = vrot.slane %v468_v36, 7  ;;  %v491_v36 = vrot.slane %v471_v31, 7  ;;  %v2295_v31 = vld [vmem:[%s3252_s3 + $0x394] ss:$8 sps:$4 sm:$0xff]  }
  0x2d   :  { %1634 = vmatprep.subr.bf16.mxu1 %v2179_v47  ;;  %v483_v47 = vrot.slane %v467_v38, 7  ;;  %v198_v54 = vpack.c.bf16 %v125_v43, %v125_v43  ;;  %v2223_v38 = vld [vmem:[%s3252_s3 + $0x354] ss:$8 sps:$4 sm:$0xff]   ;;  %v2226_v43 = vld [vmem:[%s3252_s3 + $0x244] ss:$8 sps:$4 sm:$0xff]  }
  0x2e   :  { %v486_v59 = vsel %vm479_vm0, %v485_v45, %v455_v35  ;;  %v2229_v45 = vld [vmem:[%s3252_s3 + $0x344] ss:$8 sps:$4 sm:$0xff]  }
  0x2f   :  { %1594 = vmatpush2.bf16.msra.mxu0 %v2178_v50  ;;  %v2203_v50 = vld [vmem:[%s3252_s3 + $0x184] ss:$8 sps:$4 sm:$0xff]   ;;  %v484_v1 = vsel %vm479_vm0, %v483_v47, %v454_v37  ;;  %v2215_v37 = vld [vmem:[%s3252_s3 + $0x360] ss:$8 sps:$4 sm:$0xff]  }
  0x30   :  { %1595 = vmatprep.subr.bf16.mxu0 %v2182_v53  ;;  %1635 = vmatpush2.bf16.msra.mxu1 %v2181_v56  ;;  %v185_v53 = vpack.c.bf16 %v73_v42, %v73_v42  ;;  %v506_v56 = vpack.c.b16 %v482_v51, %v482_v51  ;;  %v2224_v47 = vld [vmem:[%s3252_s3 + $0x240] ss:$8 sps:$4 sm:$0xff]   ;;  %v2230_v51 = vld [vmem:[%s3252_s3 + $0x230] ss:$8 sps:$4 sm:$0xff]  }
  0x31   :  { %1636 = vmatprep.subr.bf16.mxu1 %v2185_v58  ;;  %v505_v58 = vpack.c.b16 %v480_v52, %v480_v52  ;;  %v2238_v52 = vld [vmem:[%s3252_s3 + $0x224] ss:$8 sps:$4 sm:$0xff]  }
  0x32   :  { %1603 = vmatprep.mubr.bf16.mxu0 %v506_v56  ;;  %v2244_v56 = vld [vmem:[%s3252_s3 + $0x214] ss:$8 sps:$4 sm:$0xff]  }
  0x33   :  { %1596 = vmatpush2.bf16.msra.mxu0 %v2184_v63  ;;  %v508_v63 = vpack.c.b16 %v486_v59, %v486_v59  ;;  %v2247_v59 = vld [vmem:[%s3252_s3 + $0x314] ss:$8 sps:$4 sm:$0xff]  }
  0x34   :  { %1597 = vmatprep.subr.bf16.mxu0 %v2188_v3  ;;  %1637 = vmatpush2.bf16.msra.mxu1 %v2187_v6  ;;  %v457_v3 = vunpack.c.l.b16 %v185_v53  ;;  %v470_v6 = vunpack.c.l.b16 %v198_v54  ;;  %v2233_v53 = vld [vmem:[%s3252_s3 + $0x330] ss:$8 sps:$4 sm:$0xff]   ;;  %v2241_v54 = vld [vmem:[%s3252_s3 + $0x324] ss:$8 sps:$4 sm:$0xff]  }
  0x35   :  { %1638 = vmatprep.subr.bf16.mxu1 %v2191_v9  ;;  %v2205_v9 = vld [vmem:[%s3252_s3 + $0x180] ss:$8 sps:$4 sm:$0xff]   ;;  %1644 = vmatprep.mubr.bf16.mxu1 %v508_v63  ;;  %v2250_v63 = vld [vmem:[%s3252_s3 + $0x204] ss:$8 sps:$4 sm:$0xff]  }
  0x37   :  { %1598 = vmatpush2.bf16.msra.mxu0 %v2190_v14  ;;  %v489_v14 = vrot.slane %v470_v6, 7  ;;  %v2248_v6 = vld [vmem:[%s3252_s3 + $0x200] ss:$8 sps:$4 sm:$0xff]  }
  0x38   :  { %1599 = vmatprep.subr.bf16.mxu0 %v2194_v19  ;;  %1639 = vmatpush2.bf16.msra.mxu1 %v2193_v24  ;;  %v507_v19 = vpack.c.b16 %v484_v1, %v484_v1  ;;  %v186_v24 = vpack.c.bf16 %v77_v16, %v77_v16  ;;  %v2245_v1 = vld [vmem:[%s3252_s3 + $0x310] ss:$8 sps:$4 sm:$0xff]   ;;  %v2260_v16 = vld [vmem:[%s3252_s3 + $0x2e0] ss:$8 sps:$4 sm:$0xff]  }
  0x39   :  { %1640 = vmatprep.subr.bf16.mxu1 %v2197_v29  ;;  %v490_v4 = vsel %vm479_vm0, %v489_v14, %v457_v3  ;;  %v472_v29 = vunpack.c.l.b16 %v200_v23  ;;  %v2253_v3 = vld [vmem:[%s3252_s3 + $0x304] ss:$8 sps:$4 sm:$0xff]   ;;  %v2257_v14 = vld [vmem:[%s3252_s3 + $0x3f0] ss:$8 sps:$4 sm:$0xff]   ;;  %v2280_v23 = vld [vmem:[%s3252_s3 + $0x2b4] ss:$8 sps:$4 sm:$0xff]  }
  0x3a   :  { %v510_v8 = vpack.c.b16 %v490_v4, %v490_v4  ;;  %v458_v30 = vunpack.c.l.b16 %v186_v24  ;;  %v2272_v4 = vld [vmem:[%s3252_s3 + $0x2c0] ss:$8 sps:$4 sm:$0xff]  }
  0x3b   :  { %1600 = vmatpush2.bf16.msra.mxu0 %v2196_v34  ;;  %v2220_v34 = vld [vmem:[%s3252_s3 + $0x254] ss:$8 sps:$4 sm:$0xff]   ;;  %v493_v35 = vrot.slane %v472_v29, 7  ;;  %v2275_v24 = vld [vmem:[%s3252_s3 + $0x3c0] ss:$8 sps:$4 sm:$0xff]  }
  0x3c   :  { %1601 = vmatprep.subr.bf16.mxu0 %v2200_v39  ;;  %1641 = vmatpush2.bf16.msra.mxu1 %v2199_v44  ;;  %v2787_v40 = vsel %vm479_vm0, %v491_v36, %v458_v30  ;;  %v2221_v44 = vld [vmem:[%s3252_s3 + $0x350] ss:$8 sps:$4 sm:$0xff]   ;;  %v2292_v29 = vld [vmem:[%s3252_s3 + $0x294] ss:$8 sps:$4 sm:$0xff]   ;;  %v2287_v30 = vld [vmem:[%s3252_s3 + $0x3a0] ss:$8 sps:$4 sm:$0xff]  }
  0x3d   :  { %1642 = vmatprep.subr.bf16.mxu1 %v2203_v50  ;;  %v494_v39 = vsel %vm479_vm0, %v493_v35, %v459_v28  ;;  %v2235_v50 = vld [vmem:[%s3252_s3 + $0x334] ss:$8 sps:$4 sm:$0xff]   ;;  %v2284_v28 = vld [vmem:[%s3252_s3 + $0x2a0] ss:$8 sps:$4 sm:$0xff]   ;;  %v2293_v35 = vld [vmem:[%s3252_s3 + $0x390] ss:$8 sps:$4 sm:$0xff]  }
  0x3e   :  { %v512_v42 = vpack.c.b16 %v494_v39, %v494_v39  ;;  %v2301_v36 = vld [vmem:[%s3252_s3 + $0x384] ss:$8 sps:$4 sm:$0xff]   ;;  %v2299_v39 = vld [vmem:[%s3252_s3 + $0x380] ss:$8 sps:$4 sm:$0xff]  }
  0x3f   :  { %1602 = vmatpush2.bf16.msra.mxu0 %v2202_v55  ;;  %v2236_v55 = vld [vmem:[%s3252_s3 + $0x220] ss:$8 sps:$4 sm:$0xff]  }
  0x40   :  { %1653 = vmatprep.subr.bf16.mxu0 %v2208_v60  ;;  %1643 = vmatpush2.bf16.msra.mxu1 %v2205_v9  ;;  %v2242_v60 = vld [vmem:[%s3252_s3 + $0x210] ss:$8 sps:$4 sm:$0xff]   ;;  %v2256_v9 = vld [vmem:[%s3252_s3 + $0x2f4] ss:$8 sps:$4 sm:$0xff]  }
  0x41   :  { %1694 = vmatprep.subr.bf16.mxu1 %v2211_v13  ;;  %v2262_v13 = vld [vmem:[%s3252_s3 + $0x2e4] ss:$8 sps:$4 sm:$0xff]  }
  0x42   :  { %1604 = vmatmul.mubr.bf16.vlgmr.msra.gmra.mxu0 %v505_v58  ;;  %v2239_v58 = vld [vmem:[%s3252_s3 + $0x320] ss:$8 sps:$4 sm:$0xff]  }
  0x43   :  { %1654 = vmatpush1.bf16.msra.mxu0 %v2206_v18  ;;  %1685 = vmatprep.mubr.bf16.mxu0 %v510_v8  ;;  %v2263_v18 = vld [vmem:[%s3252_s3 + $0x3e0] ss:$8 sps:$4 sm:$0xff]   ;;  %v2286_v8 = vld [vmem:[%s3252_s3 + $0x2a4] ss:$8 sps:$4 sm:$0xff]  }
  0x44   :  { %1645 = vmatmul.mubr.bf16.vlgmr.msra.gmra.mxu1 %v507_v19  ;;  %1655 = vmatprep.subr.bf16.mxu0 %v2214_v7  ;;  %v2271_v19 = vld [vmem:[%s3252_s3 + $0x3d4] ss:$8 sps:$4 sm:$0xff]   ;;  %v2277_v7 = vld [vmem:[%s3252_s3 + $0x3c4] ss:$8 sps:$4 sm:$0xff]  }
  0x45   :  { %1695 = vmatpush1.bf16.msra.mxu1 %v2209_v5  ;;  %1726 = vmatprep.mubr.bf16.mxu1 %v512_v42  ;;  %v2278_v5 = vld [vmem:[%s3252_s3 + $0x2b0] ss:$8 sps:$4 sm:$0xff]   ;;  %v2307_v42 = vld [vmem:[%s3252_s3 + $0x574] ss:$8 sps:$4 sm:$0xff]  }
  0x46   :  { %1696 = vmatprep.subr.bf16.mxu1 %v2217_v27  ;;  %v2289_v27 = vld [vmem:[%s3252_s3 + $0x3a4] ss:$8 sps:$4 sm:$0xff]  }
  0x47   :  { %1656 = vmatpush1.bf16.msra.mxu0 %v2212_v32  ;;  %v2290_v32 = vld [vmem:[%s3252_s3 + $0x290] ss:$8 sps:$4 sm:$0xff]  }
  0x48   :  { %1657 = vmatprep.subr.bf16.mxu0 %v2220_v34  ;;  %v2298_v34 = vld [vmem:[%s3252_s3 + $0x284] ss:$8 sps:$4 sm:$0xff]  }
  0x49   :  { %1697 = vmatpush1.bf16.msra.mxu1 %v2215_v37  ;;  %v2296_v37 = vld [vmem:[%s3252_s3 + $0x280] ss:$8 sps:$4 sm:$0xff]  }
  0x4a   :  { %1698 = vmatprep.subr.bf16.mxu1 %v2223_v38  ;;  %v2304_v38 = vld [vmem:[%s3252_s3 + $0x474] ss:$8 sps:$4 sm:$0xff]  }
  0x4b   :  { %1658 = vmatpush1.bf16.msra.mxu0 %v2218_v41  ;;  %v509_v41 = vpack.c.b16 %v2774_v33, %v2774_v33  ;;  %v2310_v33 = vld [vmem:[%s3252_s3 + $0x464] ss:$8 sps:$4 sm:$0xff]  }
  0x4c   :  { %1659 = vmatprep.subr.bf16.mxu0 %v2226_v43  ;;  %v2302_v43 = vld [vmem:[%s3252_s3 + $0x470] ss:$8 sps:$4 sm:$0xff]  }
  0x4d   :  { %1699 = vmatpush1.bf16.msra.mxu1 %v2221_v44  ;;  %v2305_v44 = vld [vmem:[%s3252_s3 + $0x570] ss:$8 sps:$4 sm:$0xff]  }
  0x4e   :  { %1700 = vmatprep.subr.bf16.mxu1 %v2229_v45  ;;  %v511_v45 = vpack.c.b16 %v2787_v40, %v2787_v40  ;;  %v27_v40 = vld [vmem:[%s3250_s1 + $0x8] sm:$0x1f] }
  0x4f   :  { %1660 = vmatpush1.bf16.msra.mxu0 %v2224_v47  ;;  %v2313_v47 = vld [vmem:[%s3252_s3 + $0x564] ss:$8 sps:$4 sm:$0xff]  }
  0x50   :  { %1661 = vmatprep.subr.bf16.mxu0 %v2232_v48  ;;  %v23_v48 = vld [vmem:[%s3249_s0 + $0x8] sm:$0x1f] }
  0x51   :  { %1701 = vmatpush1.bf16.msra.mxu1 %v2227_v49  ;;  %v25_v49 = vld [vmem:[%s3249_s0 + $0x15] sm:$0x1f] }
  0x52   :  { %1702 = vmatprep.subr.bf16.mxu1 %v2235_v50  ;;  %v33_v50 = vld [vmem:[%s3251_s2 + $0x8] sm:$0x1f] }
  0x53   :  { %1662 = vmatpush1.bf16.msra.mxu0 %v2230_v51  ;;  %v2308_v51 = vld [vmem:[%s3252_s3 + $0x460] ss:$8 sps:$4 sm:$0xff]  }
  0x54   :  { %1663 = vmatprep.subr.bf16.mxu0 %v2238_v52  ;;  %v29_v52 = vmul.f32 %v27_v40, %v23_v48 }
  0x55   :  { %1703 = vmatpush1.bf16.msra.mxu1 %v2233_v53  ;;  %v31_v53 = vmul.f32 %v27_v40, %v25_v49 }
  0x56   :  { %1704 = vmatprep.subr.bf16.mxu1 %v2241_v54  ;;  %v2316_v54 = vld [vmem:[%s3252_s3 + $0x454] ss:$8 sps:$4 sm:$0xff]  }
  0x57   :  { %1664 = vmatpush1.bf16.msra.mxu0 %v2236_v55  ;;  %v2311_v55 = vld [vmem:[%s3252_s3 + $0x560] ss:$8 sps:$4 sm:$0xff]  }
  0x58   :  { %1665 = vmatprep.subr.bf16.mxu0 %v2244_v56  ;;  %v35_v56 = vadd.f32 %v33_v50, %v29_v52 }
  0x59   :  { %1705 = vmatpush1.bf16.msra.mxu1 %v2239_v58  ;;  %v37_v58 = vadd.f32 %v33_v50, %v31_v53 }
  0x5a   :  { %1706 = vmatprep.subr.bf16.mxu1 %v2247_v59  ;;  %v2319_v59 = vld [vmem:[%s3252_s3 + $0x554] ss:$8 sps:$4 sm:$0xff]  }
  0x5b   :  { %1666 = vmatpush1.bf16.msra.mxu0 %v2242_v60  ;;  %v2314_v60 = vld [vmem:[%s3252_s3 + $0x450] ss:$8 sps:$4 sm:$0xff]  }
  0x5c   :  { %1667 = vmatprep.subr.bf16.mxu0 %v2250_v63  ;;  %v3000_v63 = vmax.f32 %v35_v56, 0.0 }
  0x5d   :  { %1707 = vmatpush1.bf16.msra.mxu1 %v2245_v1  ;;  %v3002_v1 = vmax.f32 %v37_v58, 0.0 }
  0x5e   :  { %1708 = vmatprep.subr.bf16.mxu1 %v2253_v3  ;;  %v2322_v3 = vld [vmem:[%s3252_s3 + $0x444] ss:$8 sps:$4 sm:$0xff]  }
  0x5f   :  { %1668 = vmatpush1.bf16.msra.mxu0 %v2248_v6  ;;  %v2317_v6 = vld [vmem:[%s3252_s3 + $0x550] ss:$8 sps:$4 sm:$0xff]  }
  0x60   :  { %1669 = vmatprep.subr.bf16.mxu0 %v2256_v9  ;;  %v89_v9 = vrot.slane %v3000_v63, %v2647_v57 }
  0x61   :  { %1709 = vmatpush1.bf16.msra.mxu1 %v2251_v10  ;;  %v141_v10 = vrot.slane %v3002_v1, %v2647_v57 }
  0x62   :  { %1710 = vmatprep.subr.bf16.mxu1 %v2259_v11  ;;  %v2325_v11 = vld [vmem:[%s3252_s3 + $0x544] ss:$8 sps:$4 sm:$0xff]  }
  0x63   :  { %1670 = vmatpush2.bf16.msra.mxu0 %v2254_v12  ;;  %v97_v12 = vrot.slane %v3000_v63, %v2656_v62 }
  0x64   :  { %1671 = vmatprep.subr.bf16.mxu0 %v2262_v13  ;;  %v149_v13 = vrot.slane %v3002_v1, %v2656_v62 }
  0x65   :  { %1711 = vmatpush2.bf16.msra.mxu1 %v2257_v14  ;;  %v2320_v14 = vld [vmem:[%s3252_s3 + $0x440] ss:$8 sps:$4 sm:$0xff]  }
  0x66   :  { %1712 = vmatprep.subr.bf16.mxu1 %v2265_v15  ;;  %v189_v15 = vpack.c.bf16 %v89_v9, %v89_v9 }
  0x67   :  { %1672 = vmatpush2.bf16.msra.mxu0 %v2260_v16  ;;  %v202_v16 = vpack.c.bf16 %v141_v10, %v141_v10 }
  0x68   :  { %1673 = vmatprep.subr.bf16.mxu0 %v2268_v17  ;;  %v2328_v17 = vld [vmem:[%s3252_s3 + $0x434] ss:$8 sps:$4 sm:$0xff]   ;;  %v461_v62 = vunpack.c.l.b16 %v189_v15 }
  0x69   :  { %1713 = vmatpush2.bf16.msra.mxu1 %v2263_v18  ;;  %v191_v18 = vpack.c.bf16 %v97_v12, %v97_v12 }
  0x6a   :  { %1714 = vmatprep.subr.bf16.mxu1 %v2271_v19  ;;  %v204_v19 = vpack.c.bf16 %v149_v13, %v149_v13 }
  0x6b   :  { %1674 = vmatpush2.bf16.msra.mxu0 %v2266_v20  ;;  %v2323_v20 = vld [vmem:[%s3252_s3 + $0x540] ss:$8 sps:$4 sm:$0xff]  }
  0x6c   :  { %1675 = vmatprep.subr.bf16.mxu0 %v2274_v21  ;;  %v474_v21 = vunpack.c.l.b16 %v202_v16 }
  0x6d   :  { %1715 = vmatpush2.bf16.msra.mxu1 %v2269_v22 }
  0x6e   :  { %1716 = vmatprep.subr.bf16.mxu1 %v2277_v7 }
  0x6f   :  { %1676 = vmatpush2.bf16.msra.mxu0 %v2272_v4 }
  0x70   :  { %1677 = vmatprep.subr.bf16.mxu0 %v2280_v23 }
  0x71   :  { %1717 = vmatpush2.bf16.msra.mxu1 %v2275_v24 }
  0x72   :  { %1718 = vmatprep.subr.bf16.mxu1 %v2283_v25 }
  0x73   :  { %1678 = vmatpush2.bf16.msra.mxu0 %v2278_v5 }
  0x74   :  { %1679 = vmatprep.subr.bf16.mxu0 %v2286_v8 }
  0x75   :  { %1719 = vmatpush2.bf16.msra.mxu1 %v2281_v26 }
  0x76   :  { %1720 = vmatprep.subr.bf16.mxu1 %v2289_v27 }
  0x77   :  { %1680 = vmatpush2.bf16.msra.mxu0 %v2284_v28 }
  0x78   :  { %1681 = vmatprep.subr.bf16.mxu0 %v2292_v29 }
  0x79   :  { %1721 = vmatpush2.bf16.msra.mxu1 %v2287_v30 }
  0x7a   :  { %1722 = vmatprep.subr.bf16.mxu1 %v2295_v31 }
  0x7b   :  { %1682 = vmatpush2.bf16.msra.mxu0 %v2290_v32 }
  0x7c   :  { %1683 = vmatprep.subr.bf16.mxu0 %v2298_v34 }
  0x7d   :  { %1723 = vmatpush2.bf16.msra.mxu1 %v2293_v35 }
  0x7e   :  { %1724 = vmatprep.subr.bf16.mxu1 %v2301_v36 }
  0x7f   :  { %1684 = vmatpush2.bf16.msra.mxu0 %v2296_v37 }
  0x80   :  { %1735 = vmatprep.subr.bf16.mxu0 %v2304_v38 }
  0x81   :  { %1725 = vmatpush2.bf16.msra.mxu1 %v2299_v39 }
  0x82   :  { %1686 = vmatmul.mubr.bf16.vlgmr.msra.gmra.mxu0 %v509_v41  ;;  %1776 = vmatprep.subr.bf16.mxu1 %v2307_v42 }
  0x83   :  { %1736 = vmatpush1.bf16.msra.mxu0 %v2302_v43 }
  0x84   :  { %1727 = vmatmul.mubr.bf16.vlgmr.msra.gmra.mxu1 %v511_v45  ;;  %1737 = vmatprep.subr.bf16.mxu0 %v2310_v33 }
  0x85   :  { %1777 = vmatpush1.bf16.msra.mxu1 %v2305_v44 }
  0x86   :  { %1778 = vmatprep.subr.bf16.mxu1 %v2313_v47 }
  0x87   :  { %1738 = vmatpush1.bf16.msra.mxu0 %v2308_v51 }
  0x88   :  { %1739 = vmatprep.subr.bf16.mxu0 %v2316_v54 }
  0x89   :  { %1779 = vmatpush1.bf16.msra.mxu1 %v2311_v55 }
  0x8a   :  { %1780 = vmatprep.subr.bf16.mxu1 %v2319_v59 }
  0x8b   :  { %1740 = vmatpush1.bf16.msra.mxu0 %v2314_v60 }
  0x8c   :  { %1741 = vmatprep.subr.bf16.mxu0 %v2322_v3 }
  0x8d   :  { %1781 = vmatpush1.bf16.msra.mxu1 %v2317_v6 }
  0x8e   :  { %10 = vsyncpa [#allocation3], 0  ;;  %1782 = vmatprep.subr.bf16.mxu1 %v2325_v11  ;;  %v2331_v22 = vld [vmem:[%s3252_s3 + $0x534] ss:$8 sps:$4 sm:$0xff]   ;;  %v463_v7 = vunpack.c.l.b16 %v191_v18  ;;  %v476_v4 = vunpack.c.l.b16 %v204_v19  ;;  %v2326_v23 = vld [vmem:[%s3252_s3 + $0x430] ss:$8 sps:$4 sm:$0xff]   ;;  %v101_v25 = vrot.slane %v3000_v63, %v2666_v2  ;;  %v153_v5 = vrot.slane %v3002_v1, %v2666_v2 }
  0x8f   :  { %1742 = vmatpush1.bf16.msra.mxu0 %v2320_v14  ;;  %v497_v24 = vrot.slane %v474_v21, 7  ;;  %v2334_v8 = vld [vmem:[%s3252_s3 + $0x424] ss:$8 sps:$4 sm:$0xff]   ;;  %v2329_v27 = vld [vmem:[%s3252_s3 + $0x530] ss:$8 sps:$4 sm:$0xff]   ;;  %v137_v11 = vrot.slane %v3002_v1, %v2653_v61  ;;  %v145_v14 = vrot.slane %v3002_v1, %v2662_v0  ;;  %vm1881_vm1 = vcmask 1041408  }
  0x90   :  { %1743 = vmatprep.subr.bf16.mxu0 %v2328_v17  ;;  %v501_v26 = vrot.slane %v476_v4, 7  ;;  %v192_v29 = vpack.c.bf16 %v101_v25, %v101_v25  ;;  %v205_v30 = vpack.c.bf16 %v153_v5, %v153_v5  ;;  %v2337_v2 = vld [vmem:[%s3252_s3 + $0x524] ss:$8 sps:$4 sm:$0xff]   ;;  %v2332_v34 = vld [vmem:[%s3252_s3 + $0x420] ss:$8 sps:$4 sm:$0xff]   ;;  %v85_v17 = vrot.slane %v3000_v63, %v2653_v61 }
  0x91   :  { %1783 = vmatpush1.bf16.msra.mxu1 %v2323_v20  ;;  %v498_v28 = vsel %vm479_vm0, %v497_v24, %v461_v62  ;;  %v2340_v38 = vld [vmem:[%s3252_s3 + $0x414] ss:$8 sps:$4 sm:$0xff]   ;;  %v2335_v39 = vld [vmem:[%s3252_s3 + $0x520] ss:$8 sps:$4 sm:$0xff]   ;;  %v2338_v43 = vld [vmem:[%s3252_s3 + $0x410] ss:$8 sps:$4 sm:$0xff]   ;;  %v201_v18 = vpack.c.bf16 %v137_v11, %v137_v11  ;;  %v93_v20 = vrot.slane %v3000_v63, %v2662_v0  ;;  %v203_v62 = vpack.c.bf16 %v145_v14, %v145_v14 }
  0x92   :  { %1784 = vmatprep.subr.bf16.mxu1 %v2331_v22  ;;  %v514_v31 = vpack.c.b16 %v498_v28, %v498_v28  ;;  %v502_v32 = vsel %vm479_vm0, %v501_v26, %v463_v7  ;;  %v464_v36 = vunpack.c.l.b16 %v192_v29  ;;  %v477_v37 = vunpack.c.l.b16 %v205_v30  ;;  %v2343_v42 = vld [vmem:[%s3252_s3 + $0x514] ss:$8 sps:$4 sm:$0xff]   ;;  %v2346_v45 = vld [vmem:[%s3252_s3 + $0x404] ss:$8 sps:$4 sm:$0xff]   ;;  %v2341_v33 = vld [vmem:[%s3252_s3 + $0x510] ss:$8 sps:$4 sm:$0xff]  }
  0x93   :  { %1744 = vmatpush1.bf16.msra.mxu0 %v2326_v23  ;;  %v516_v35 = vpack.c.b16 %v502_v32, %v502_v32  ;;  %v2349_v47 = vld [vmem:[%s3252_s3 + $0x504] ss:$8 sps:$4 sm:$0xff]   ;;  %v2344_v48 = vld [vmem:[%s3252_s3 + $0x400] ss:$8 sps:$4 sm:$0xff]   ;;  %v2352_v49 = vld [vmem:[%s3252_s3 + $0x4f4] ss:$8 sps:$4 sm:$0xff]   ;;  %v188_v7 = vpack.c.bf16 %v85_v17, %v85_v17  ;;  %v473_v4 = vunpack.c.l.b16 %v201_v18  ;;  %v190_v63 = vpack.c.bf16 %v93_v20, %v93_v20 }
  0x94   :  { %1745 = vmatprep.subr.bf16.mxu0 %v2334_v8  ;;  %1767 = vmatprep.mubr.bf16.mxu0 %v514_v31  ;;  %v503_v41 = vrot.slane %v477_v37, 7  ;;  %v2347_v40 = vld [vmem:[%s3252_s3 + $0x500] ss:$8 sps:$4 sm:$0xff]   ;;  %v2355_v50 = vld [vmem:[%s3252_s3 + $0x5f4] ss:$8 sps:$4 sm:$0xff]   ;;  %v475_v24 = vunpack.c.l.b16 %v203_v62  ;;  %vm1882_vm2 = vcmask 224258  }
  0x95   :  { %1785 = vmatpush1.bf16.msra.mxu1 %v2329_v27  ;;  %1808 = vmatprep.mubr.bf16.mxu1 %v516_v35  ;;  %v2350_v51 = vld [vmem:[%s3252_s3 + $0x4f0] ss:$8 sps:$4 sm:$0xff]   ;;  %v2358_v52 = vld [vmem:[%s3252_s3 + $0x4e4] ss:$8 sps:$4 sm:$0xff]   ;;  %v2356_v55 = vld [vmem:[%s3252_s3 + $0x4e0] ss:$8 sps:$4 sm:$0xff]   ;;  %v460_v8 = vunpack.c.l.b16 %v188_v7  ;;  %v462_v29 = vunpack.c.l.b16 %v190_v63 }
  0x96   :  { %1786 = vmatprep.subr.bf16.mxu1 %v2337_v2  ;;  %v3067_v44 = vsel %vm479_vm0, %v503_v41, %v464_v36  ;;  %v2353_v53 = vld [vmem:[%s3252_s3 + $0x5f0] ss:$8 sps:$4 sm:$0xff]   ;;  %v2361_v54 = vld [vmem:[%s3252_s3 + $0x5e4] ss:$8 sps:$4 sm:$0xff]   ;;  %v2364_v56 = vld [vmem:[%s3252_s3 + $0x4d4] ss:$8 sps:$4 sm:$0xff]  }
  0x97   :  { %1746 = vmatpush1.bf16.msra.mxu0 %v2332_v34  ;;  %v2359_v58 = vld [vmem:[%s3252_s3 + $0x5e0] ss:$8 sps:$4 sm:$0xff]   ;;  %v2367_v59 = vld [vmem:[%s3252_s3 + $0x5d4] ss:$8 sps:$4 sm:$0xff]   ;;  %v2362_v60 = vld [vmem:[%s3252_s3 + $0x4d0] ss:$8 sps:$4 sm:$0xff]  }
  0x98   :  { %1747 = vmatprep.subr.bf16.mxu0 %v2340_v38  ;;  %v2370_v3 = vld [vmem:[%s3252_s3 + $0x4c4] ss:$8 sps:$4 sm:$0xff]   ;;  %v2365_v6 = vld [vmem:[%s3252_s3 + $0x5d0] ss:$8 sps:$4 sm:$0xff]   ;;  %v2368_v10 = vld [vmem:[%s3252_s3 + $0x4c0] ss:$8 sps:$4 sm:$0xff]  }
  0x99   :  { %1787 = vmatpush1.bf16.msra.mxu1 %v2335_v39  ;;  %v2373_v9 = vld [vmem:[%s3252_s3 + $0x5c4] ss:$8 sps:$4 sm:$0xff]   ;;  %v2376_v12 = vld [vmem:[%s3252_s3 + $0x4b4] ss:$8 sps:$4 sm:$0xff]   ;;  %v2371_v13 = vld [vmem:[%s3252_s3 + $0x5c0] ss:$8 sps:$4 sm:$0xff]  }
  0x9a   :  { %1788 = vmatprep.subr.bf16.mxu1 %v2343_v42  ;;  %v2379_v15 = vld [vmem:[%s3252_s3 + $0x5b4] ss:$8 sps:$4 sm:$0xff]   ;;  %v2374_v16 = vld [vmem:[%s3252_s3 + $0x4b0] ss:$8 sps:$4 sm:$0xff]   ;;  %v2382_v19 = vld [vmem:[%s3252_s3 + $0x4a4] ss:$8 sps:$4 sm:$0xff]  }
  0x9b   :  { %1748 = vmatpush1.bf16.msra.mxu0 %v2338_v43  ;;  %v2377_v1 = vld [vmem:[%s3252_s3 + $0x5b0] ss:$8 sps:$4 sm:$0xff]   ;;  %v2385_v21 = vld [vmem:[%s3252_s3 + $0x5a4] ss:$8 sps:$4 sm:$0xff]   ;;  %v2380_v22 = vld [vmem:[%s3252_s3 + $0x4a0] ss:$8 sps:$4 sm:$0xff]  }
  0x9c   :  { %1749 = vmatprep.subr.bf16.mxu0 %v2346_v45  ;;  %v2388_v23 = vld [vmem:[%s3252_s3 + $0x494] ss:$8 sps:$4 sm:$0xff]   ;;  %v2383_v0 = vld [vmem:[%s3252_s3 + $0x5a0] ss:$8 sps:$4 sm:$0xff]   ;;  %v2386_v5 = vld [vmem:[%s3252_s3 + $0x490] ss:$8 sps:$4 sm:$0xff]  }
  0x9d   :  { %1789 = vmatpush1.bf16.msra.mxu1 %v2341_v33  ;;  %v2391_v25 = vld [vmem:[%s3252_s3 + $0x594] ss:$8 sps:$4 sm:$0xff]   ;;  %v495_v26 = vrot.slane %v473_v4, 7  ;;  %v2394_v27 = vld [vmem:[%s3252_s3 + $0x484] ss:$8 sps:$4 sm:$0xff]   ;;  %v499_v30 = vrot.slane %v475_v24, 7  ;;  %vm1883_vm3 = vmor %vm1882_vm2, %vm1881_vm1 }
  0x9e   :  { %1790 = vmatprep.subr.bf16.mxu1 %v2349_v47  ;;  %v2389_v28 = vld [vmem:[%s3252_s3 + $0x590] ss:$8 sps:$4 sm:$0xff]   ;;  %v2397_v2 = vld [vmem:[%s3252_s3 + $0x584] ss:$8 sps:$4 sm:$0xff]   ;;  %v2392_v31 = vld [vmem:[%s3252_s3 + $0x480] ss:$8 sps:$4 sm:$0xff]  }
  0x9f   :  { %1750 = vmatpush1.bf16.msra.mxu0 %v2344_v48  ;;  %v496_v32 = vsel %vm479_vm0, %v495_v26, %v460_v8  ;;  %v2400_v34 = vld [vmem:[%s3252_s3 + $0x674] ss:$8 sps:$4 sm:$0xff]   ;;  %v2395_v35 = vld [vmem:[%s3252_s3 + $0x580] ss:$8 sps:$4 sm:$0xff]   ;;  %v500_v36 = vsel %vm479_vm0, %v499_v30, %v462_v29  ;;  %v2398_v38 = vld [vmem:[%s3252_s3 + $0x670] ss:$8 sps:$4 sm:$0xff]  }
  0xa0   :  { %1751 = vmatprep.subr.bf16.mxu0 %v2352_v49  ;;  %v513_v37 = vpack.c.b16 %v496_v32, %v496_v32  ;;  %v515_v39 = vpack.c.b16 %v500_v36, %v500_v36  ;;  %v2403_v41 = vld [vmem:[%s3252_s3 + $0x664] ss:$8 sps:$4 sm:$0xff]   ;;  %v2401_v42 = vld [vmem:[%s3252_s3 + $0x660] ss:$8 sps:$4 sm:$0xff]   ;;  %v2452_v43 = vmov 0  }
  0xa1   :  { %1791 = vmatpush1.bf16.msra.mxu1 %v2347_v40  ;;  %v2406_v45 = vld [vmem:[%s3252_s3 + $0x654] ss:$8 sps:$4 sm:$0xff]   ;;  %v2404_v33 = vld [vmem:[%s3252_s3 + $0x650] ss:$8 sps:$4 sm:$0xff]   ;;  %v2409_v47 = vld [vmem:[%s3252_s3 + $0x644] ss:$8 sps:$4 sm:$0xff]  }
  0xa2   :  { %1792 = vmatprep.subr.bf16.mxu1 %v2355_v50  ;;  %v2407_v48 = vld [vmem:[%s3252_s3 + $0x640] ss:$8 sps:$4 sm:$0xff]   ;;  %v2412_v49 = vld [vmem:[%s3252_s3 + $0x634] ss:$8 sps:$4 sm:$0xff]   ;;  %v2410_v40 = vld [vmem:[%s3252_s3 + $0x630] ss:$8 sps:$4 sm:$0xff]  }
  0xa3   :  { %1752 = vmatpush2.bf16.msra.mxu0 %v2350_v51  ;;  %v2415_v50 = vld [vmem:[%s3252_s3 + $0x624] ss:$8 sps:$4 sm:$0xff]   ;;  %v2413_v51 = vld [vmem:[%s3252_s3 + $0x620] ss:$8 sps:$4 sm:$0xff]  }
  0xa4   :  { %1753 = vmatprep.subr.bf16.mxu0 %v2358_v52  ;;  %v2418_v52 = vld [vmem:[%s3252_s3 + $0x614] ss:$8 sps:$4 sm:$0xff]  }
  0xa5   :  { %1793 = vmatpush2.bf16.msra.mxu1 %v2353_v53  ;;  %v2416_v53 = vld [vmem:[%s3252_s3 + $0x610] ss:$8 sps:$4 sm:$0xff]  }
  0xa6   :  { %1794 = vmatprep.subr.bf16.mxu1 %v2361_v54  ;;  %v2421_v54 = vld [vmem:[%s3252_s3 + $0x604] ss:$8 sps:$4 sm:$0xff]  }
  0xa7   :  { %1754 = vmatpush2.bf16.msra.mxu0 %v2356_v55  ;;  %v2419_v55 = vld [vmem:[%s3252_s3 + $0x600] ss:$8 sps:$4 sm:$0xff]   ;;  %s2454_s3 = smov [#allocation2]  }
  0xa8   :  { %1755 = vmatprep.subr.bf16.mxu0 %v2364_v56  ;;  %v517_v56 = vpack.c.b16 %v3067_v44, %v3067_v44 }
  0xa9   :  { %1795 = vmatpush2.bf16.msra.mxu1 %v2359_v58  ;;  %v414_v58 = vld [vmem:[%s3253_s4] sm:$0x3]  ;;  %s1891_s4 = sshll.u32 %s2454_s3, 4  ;;  %s1892_s4 = int_to_ptr.vmem [resolvable:$true] %s1891_s4 }
  0xaa   :  { %1796 = vmatprep.subr.bf16.mxu1 %v2367_v59  ;;  %v419_v59 = vrot.slane %v414_v58, %v2653_v61  ;;  %s2430_s9 = scalar_lea.vmem %s1892_s4, 64  ;;  %p2435_p1 = scmp.lt.s32.totalorder %s1892_s4, %s1892_s4 }
  0xab   :  { %1756 = vmatpush2.bf16.msra.mxu0 %v2362_v60  ;;  %v423_v60 = vrot.slane %v414_v58, %v2647_v57  ;;  %p2431_p0 = scmp.ne.s32.totalorder %s1892_s4, %s2430_s9  ;;  %p2436_p2 = scmp.lt.s32.totalorder %s2430_s9, %s2430_s9 }
  0xac   :  { %1757 = vmatprep.subr.bf16.mxu0 %v2370_v3 }
  0xad   :  { %1797 = vmatpush2.bf16.msra.mxu1 %v2365_v6  ;;  %p2437_p3 = por %p2436_p2, %p2435_p1 }
  0xae   :  { %1798 = vmatprep.subr.bf16.mxu1 %v2373_v9 }
  0xaf   :  { %1758 = vmatpush2.bf16.msra.mxu0 %v2368_v10  ;;  %p2438_p4 = pnand %p2437_p3, %p2431_p0 }
  0xb0   :  { %1759 = vmatprep.subr.bf16.mxu0 %v2376_v12 }
  0xb1   :  { %1799 = vmatpush2.bf16.msra.mxu1 %v2371_v13 }
  0xb2   :  { %1800 = vmatprep.subr.bf16.mxu1 %v2379_v15 }
  0xb3   :  { %1760 = vmatpush2.bf16.msra.mxu0 %v2374_v16 }
  0xb4   :  { %1761 = vmatprep.subr.bf16.mxu0 %v2382_v19 }
  0xb5   :  { %1801 = vmatpush2.bf16.msra.mxu1 %v2377_v1 }
  0xb6   :  { %1802 = vmatprep.subr.bf16.mxu1 %v2385_v21 }
  0xb7   :  { %1762 = vmatpush2.bf16.msra.mxu0 %v2380_v22 }
  0xb8   :  { %1763 = vmatprep.subr.bf16.mxu0 %v2388_v23 }
  0xb9   :  { %1803 = vmatpush2.bf16.msra.mxu1 %v2383_v0 }
  0xba   :  { %1804 = vmatprep.subr.bf16.mxu1 %v2391_v25 }
  0xbb   :  { %1764 = vmatpush2.bf16.msra.mxu0 %v2386_v5 }
  0xbc   :  { %1765 = vmatprep.subr.bf16.mxu0 %v2394_v27 }
  0xbd   :  { %1805 = vmatpush2.bf16.msra.mxu1 %v2389_v28 }
  0xbe   :  { %1806 = vmatprep.subr.bf16.mxu1 %v2397_v2 }
  0xbf   :  { %1766 = vmatpush2.bf16.msra.mxu0 %v2392_v31 }
  0xc0   :  { %1817 = vmatprep.subr.bf16.mxu0 %v2400_v34 }
  0xc1   :  { %1807 = vmatpush2.bf16.msra.mxu1 %v2395_v35 }
  0xc2   :  { %1768 = vmatmul.mubr.bf16.vlgmr.msra.gmra.mxu0 %v513_v37 }
  0xc3   :  { %1818 = vmatpush1.bf16.msra.mxu0 %v2398_v38  ;;  %1849 = vmatprep.mubr.bf16.mxu0 %v2452_v43 }
  0xc4   :  { %1809 = vmatmul.mubr.bf16.vlgmr.msra.gmra.mxu1 %v515_v39  ;;  %1819 = vmatprep.subr.bf16.mxu0 %v2403_v41 }
  0xc7   :  { %1820 = vmatpush1.bf16.msra.mxu0 %v2401_v42 }
  0xc8   :  { %1821 = vmatprep.subr.bf16.mxu0 %v2406_v45 }
  0xcb   :  { %1822 = vmatpush1.bf16.msra.mxu0 %v2404_v33 }
  0xcc   :  { %1823 = vmatprep.subr.bf16.mxu0 %v2409_v47 }
  0xcf   :  { %1824 = vmatpush1.bf16.msra.mxu0 %v2407_v48  ;;  %v2453_v48 = vmov 1983009808  }
  0xd0   :  { %1825 = vmatprep.subr.bf16.mxu0 %v2412_v49  ;;  %v1874_v49 = vunpack.c.l.s4 %v2453_v48 }
  0xd3   :  { %1826 = vmatpush1.bf16.msra.mxu0 %v2410_v40  ;;  %v1875_v40 = vunpack.c.0.s8 %v1874_v49 }
  0xd4   :  { %1827 = vmatprep.subr.bf16.mxu0 %v2415_v50 }
  0xd7   :  { %1828 = vmatpush1.bf16.msra.mxu0 %v2413_v51  ;;  %v1878_v51 = vsub.s32 %v1875_v40, %v2620_v46 }
  0xd8   :  { %1829 = vmatprep.subr.bf16.mxu0 %v2418_v52 }
  0xdb   :  { %1830 = vmatpush1.bf16.msra.mxu0 %v2416_v53 }
  0xdc   :  { %1831 = vmatprep.subr.bf16.mxu0 %v2421_v54 }
  0xdf   :  { %1832 = vmatpush1.bf16.msra.mxu0 %v2419_v55 }
  0xe2   :  { %1850 = vmatmul.mubr.bf16.vlgmr.msra.gmra.mxu0 %v517_v56 }
 0x102   :  { %v1605_v3 = vpop.f32.mrf.mxu0 }
 0x103   :  { %v1606_v6 = vadd.f32 %v1605_v3, %v419_v59 }
 0x104   :  { %v1607_v9 = vpop.f32.mrf.mxu0  ;;  %v1646_v10 = vpop.f32.mrf.mxu1 }
 0x105   :  { %v1608_v11 = vadd.f32 %v1607_v9, %v423_v60  ;;  %v1647_v12 = vadd.f32 %v1646_v10, %v1606_v6 }
 0x106   :  { %v1609_v13 = vpop.f32.mrf.mxu0  ;;  %v1648_v14 = vpop.f32.mrf.mxu1 }
 0x107   :  { %v1649_v15 = vadd.f32 %v1648_v14, %v1608_v11 }
 0x108   :  { %v1610_v44 = vpop.f32.mrf.mxu0  ;;  %v1650_v16 = vpop.f32.mrf.mxu1 }
 0x10a   :  { %v1651_v17 = vpop.f32.mrf.mxu1 }
 0x142   :  { %v1687_v18 = vpop.f32.mrf.mxu0 }
 0x143   :  { %v1688_v19 = vadd.f32 %v1687_v18, %v1647_v12 }
 0x144   :  { %v1689_v1 = vpop.f32.mrf.mxu0  ;;  %v1728_v20 = vpop.f32.mrf.mxu1 }
 0x145   :  { %v1690_v62 = vadd.f32 %v1689_v1, %v1649_v15  ;;  %v1729_v61 = vadd.f32 %v1728_v20, %v1688_v19 }
 0x146   :  { %v1691_v21 = vpop.f32.mrf.mxu0  ;;  %v1730_v57 = vpop.f32.mrf.mxu1 }
 0x147   :  { %v1731_v22 = vadd.f32 %v1730_v57, %v1690_v62 }
 0x148   :  { %v1692_v7 = vpop.f32.mrf.mxu0  ;;  %v1732_v4 = vpop.f32.mrf.mxu1 }
 0x14a   :  { %v1733_v23 = vpop.f32.mrf.mxu1 }
 0x182   :  { %v1769_v0 = vpop.f32.mrf.mxu0 }
 0x183   :  { %v1770_v28 = vadd.f32 %v1769_v0, %v1729_v61 }
 0x184   :  { %v1771_v63 = vpop.f32.mrf.mxu0  ;;  %v1810_v24 = vpop.f32.mrf.mxu1 }
 0x185   :  { %v1772_v29 = vadd.f32 %v1771_v63, %v1731_v22  ;;  %v1811_v30 = vadd.f32 %v1810_v24, %v1770_v28 }
 0x186   :  { %v1773_v25 = vpop.f32.mrf.mxu0  ;;  %v1812_v5 = vpop.f32.mrf.mxu1 }
 0x187   :  { %v1813_v31 = vadd.f32 %v1812_v5, %v1772_v29 }
 0x188   :  { %v1774_v8 = vpop.f32.mrf.mxu0  ;;  %v1814_v26 = vpop.f32.mrf.mxu1 }
 0x18a   :  { %v1815_v27 = vpop.f32.mrf.mxu1 }
 0x1a2   :  { %v1851_v2 = vpop.f32.mrf.mxu0 }
 0x1a3   :  { %v1852_v32 = vadd.f32 %v1851_v2, %v1811_v30 }
 0x1a4   :  { %v1853_v34 = vpop.f32.mrf.mxu0 }
 0x1a5   :  { %v1858_v35 = vsub.f32 0.0, %v1852_v32  ;;  %v1854_v36 = vadd.f32 %v1853_v34, %v1813_v31 }
 0x1a6   :  { %v1855_v37 = vpop.f32.mrf.mxu0 }
 0x1a7   :  { %v1860_v38 = vmul.f32 1.442695, %v1858_v35  ;;  %v1859_v39 = vsub.f32 0.0, %v1854_v36 }
 0x1a8   :  { %v1856_v41 = vpop.f32.mrf.mxu0 }
 0x1a9   :  { %2422 = vpow2.f32 %v1860_v38  ;;  %v1862_v42 = vmul.f32 1.442695, %v1859_v39 }
 0x1ab   :  { %2424 = vpow2.f32 %v1862_v42 }
 0x1b6   :  { %v2423_v43 = vpop.eup %2422 }
 0x1b7   :  { %v1864_v45 = vadd.f32 1.0, %v2423_v43 }
 0x1b8   :  { %v2425_v33 = vpop.eup %2424 }
 0x1b9   :  { %v1865_v47 = vadd.f32 1.0, %v2425_v33  ;;  %2426 = vrcp.f32 %v1864_v45 }
 0x1bb   :  { %2428 = vrcp.f32 %v1865_v47 }
 0x1c6   :  { %v2427_v50 = vpop.eup %2426 }
 0x1c8   :  { %v2429_v52 = vpop.eup %2428 }
 0x1c9   :  { %v1872_v53 = vcombine.low %v2427_v50, %v2429_v52 }
 0x1cb   :  { %v1879_v54 = vrot.slane %v1872_v53, %v1878_v51 }
 0x1cd   :  { %1884 = vst.msk [vmem:[#allocation2] sm:$0xf] %vm1883_vm3, %v1879_v54 }
 0x1ce   :  { %2441 = shalt.err (!%p2438_p4)
}
 0x1cf   :  { %1894 = dma.vmem_to_hbm [thread:$0]  %s1892_s4, 64, %s3254_s5, [#allocation3]  }
 0x1d0   :  { %2450 = dma.done.wait [#allocation3], 64  }
 0x1d1   :  { %2451 = vsyncadd [#allocation3], 4294967232 }
 0x1d2   :  { %1898 = vsyncpa [#allocation3], 1 }

</bundles_post_ra>
